<compile_context>
chip_gen: v7x
topology: tpu7x:2x2x1
jax: 0.10.0
libtpu: 0.0.40
codegen_flags: <defaults>
</compile_context>

<pallas_src>
import jax
import jax.numpy as jnp
from jax import lax
from jax.experimental import pallas as pl
from jax.experimental.pallas import tpu as pltpu


# ----------------------------------------------------------------------------
# In-kernel graph-attention helpers (traced once inside the single fused call).
# packed layout: row0 = b (W bias), row1 = vkt_w, row2 = vkr_w,
#                [3,0] = vkt_b, [4,0] = vkr_b.
# ----------------------------------------------------------------------------
def _attend(R, A, A_T, packed):
    """softmax(sigmoid(A * t^T + (A * r^T)^T), dim=1) @ R, given R = relu(W h + b)."""
    # t_row[0, j] = vkt(R[j]): feature-axis contraction (q @ k.T pattern) so the
    # result is already lane-dense; `packed` is already an 8-sublane MXU LHS.
    t8 = lax.dot_general(packed, R, (((1,), (1,)), ((), ())),
                         preferred_element_type=jnp.float32)            # (8, M)
    t_row = t8[1:2, :] + packed[3:4, 0:1]                                # (1, M)
    # r_col[i, 0] = vkr(R[i]): lane reduction on VPU/XLU (no width-1 MXU matmul).
    r_col = jnp.sum(R * packed[2:3, :], axis=1, keepdims=True) + packed[4:5, 0:1]  # (M, 1)

    # S[i, j] = A[i, j] * t[j] + A^T[i, j] * r[i]
    S = A * t_row + A_T * r_col
    P = jax.nn.sigmoid(S)
    # sigmoid output is bounded in (0, 1): exp cannot overflow -> skip max-subtraction.
    E = jnp.exp(P)
    inv_denom = pl.reciprocal(jnp.sum(E, axis=1, keepdims=True), approx=True)
    Att = E * inv_denom                                                  # softmax over dim 1
    return jnp.dot(Att, R, preferred_element_type=jnp.float32)


def _gat(h, A, A_T, W, packed):
    R = jnp.maximum(jnp.dot(h, W, preferred_element_type=jnp.float32) + packed[0:1, :], 0.0)
    return _attend(R, A, A_T, packed)


# ----------------------------------------------------------------------------
# Single fused kernel: encoder + decoder + both heads, everything resident in VMEM.
# ----------------------------------------------------------------------------
def _scdega_fused_kernel(h_ref, a_cell_ref, a_dec_ref, gg_ref,
                         ew1_ref, ep1_ref, ew2_ref, ep2_ref, ew3_ref, ep3_ref,
                         dw1_ref, dp1_ref, dw2_ref, dp2_ref,
                         dw3c_ref, dp3_ref, dp3b_ref,
                         o_ref):
    # ---- encoder: N x F_pca -> N x 64 ----
    Ac = a_cell_ref[...]
    AcT = Ac.T                               # transpose once per graph, in-kernel (XLU)
    h = h_ref[...]
    h = _gat(h, Ac, AcT, ew1_ref[...], ep1_ref[...])
    h = _gat(h, Ac, AcT, ew2_ref[...], ep2_ref[...])
    cell_emb = _gat(h, Ac, AcT, ew3_ref[...], ep3_ref[...])             # (N, 64)

    # ---- decoder input: cat((gene_graph, cell_emb.T), dim=1).T ----
    dec_in = jnp.concatenate([gg_ref[...].T, cell_emb], axis=0)          # (G+N, 64)

    Ad = a_dec_ref[...]
    AdT = Ad.T
    h1 = _gat(dec_in, Ad, AdT, dw1_ref[...], dp1_ref[...])
    h2 = _gat(h1, Ad, AdT, dw2_ref[...], dp2_ref[...])

    # ---- two heads share one MXU projection: relu(h2 @ [W3 | W3_2] + [b3 | b3_2]) ----
    p3 = dp3_ref[...]
    p3b = dp3b_ref[...]
    recon_dim = p3.shape[1]
    b_cat = jnp.concatenate([p3[0:1, :], p3b[0:1, :]], axis=1)
    R_cat = jnp.maximum(
        jnp.dot(h2, dw3c_ref[...], preferred_element_type=jnp.float32) + b_cat, 0.0)
    R3 = R_cat[:, :recon_dim]
    R3b = R_cat[:, recon_dim:]

    out_cell = _attend(R3, Ad, AdT, p3)                                   # (M, recon_dim)
    out_gene = _attend(R3b, Ad, AdT, p3b)                                 # (M, gene_dim)

    # Single lane-dense output slab; wrapper slices the two heads apart.
    o_ref[...] = jnp.concatenate([out_cell, out_gene], axis=1)


# ----------------------------------------------------------------------------
# Forward wrapper — exactly one pallas_call.
# ----------------------------------------------------------------------------
def scdega_forward(H, A_cell, A_dec, gene_graph, enc_params, dec_params):
    M = A_dec.shape[0]

    (ew1, ep1), (ew2, ep2), (ew3, ep3) = enc_params
    (dw1, dp1), (dw2, dp2), (dw3, dp3), (dw3b, dp3b) = dec_params
    dw3c = jnp.concatenate([dw3, dw3b], axis=1)      # shared-LHS head projection weight
    recon_dim = dw3.shape[1]
    gene_dim = dw3b.shape[1]

    full = lambda i: (0, 0)
    spec = lambda arr: pl.BlockSpec(arr.shape, full)

    inputs = (H, A_cell, A_dec, gene_graph,
              ew1, ep1, ew2, ep2, ew3, ep3,
              dw1, dp1, dw2, dp2, dw3c, dp3, dp3b)

    # TODO(synk): on v7x the two reconstruction heads could be split across the
    # two TensorCores (leading parallel grid axis / pl.core_map); single-core
    # single-step here since v5e/v6e have one TC and the whole net fits in VMEM.
    out = pl.pallas_call(
        _scdega_fused_kernel,
        out_shape=jax.ShapeDtypeStruct((M, recon_dim + gene_dim), jnp.float32),
        grid_spec=pltpu.PrefetchScalarGridSpec(
            num_scalar_prefetch=0,
            grid=(1,),
            in_specs=[spec(x) for x in inputs],
            out_specs=pl.BlockSpec((M, recon_dim + gene_dim), full)),
        compiler_params=pltpu.CompilerParams(
            dimension_semantics=("arbitrary",)),
    )(*inputs)

    reconstructed_cell_matrix = out[:, :recon_dim]
    reconstructed_gene_matrix = out[:, recon_dim:]
    # TODO(synk): the reference also computes F.cosine_similarity /
    # F.mean_absolute_error losses with mismatched shapes and a nonexistent
    # torch function; forward() only returns the reconstructions, so losses
    # are omitted here.
    return reconstructed_cell_matrix, reconstructed_gene_matrix


# ----------------------------------------------------------------------------
# Parameter init (deterministic, PyTorch nn.Linear-style uniform init).
# Small per-layer params are packed into a single (8, F_out) block.
# ----------------------------------------------------------------------------
def _init_linear(key, fan_in, fan_out):
    k1, k2 = jax.random.split(key)
    bound = 1.0 / jnp.sqrt(jnp.float32(fan_in))
    W = jax.random.uniform(k1, (fan_in, fan_out), jnp.float32, -bound, bound)
    b = jax.random.uniform(k2, (1, fan_out), jnp.float32, -bound, bound)
    return W, b


def _init_gat(key, f_in, f_out):
    k1, k2, k3 = jax.random.split(key, 3)
    W, b = _init_linear(k1, f_in, f_out)
    vt_w, vt_b = _init_linear(k2, f_out, 1)
    vr_w, vr_b = _init_linear(k3, f_out, 1)
    packed = jnp.zeros((8, f_out), jnp.float32)
    packed = packed.at[0, :].set(b[0])
    packed = packed.at[1, :].set(vt_w[:, 0])
    packed = packed.at[2, :].set(vr_w[:, 0])
    packed = packed.at[3, 0].set(vt_b[0, 0])
    packed = packed.at[4, 0].set(vr_b[0, 0])
    return W, packed


def init_scdega_params(key, pca_dim, recon_dim, gene_head_dim):
    ks = jax.random.split(key, 7)
    enc = [_init_gat(ks[0], pca_dim, 512),
           _init_gat(ks[1], 512, 256),
           _init_gat(ks[2], 256, 64)]
    dec = [_init_gat(ks[3], 64, 256),
           _init_gat(ks[4], 256, 512),
           _init_gat(ks[5], 512, recon_dim),
           _init_gat(ks[6], 512, gene_head_dim)]   # layer3_2 (gene head)
    return enc, dec


# ----------------------------------------------------------------------------
if __name__ == "__main__":
    key = jax.random.PRNGKey(0)
    kH, kG, kAe, kAd, kP = jax.random.split(key, 5)

    N = 64          # number of cells
    F_PCA = 32      # PCA-reduced cell feature dim (encoder input)
    G = 64          # number of genes stacked in the decoder
    M_DEC = G + N   # decoder graph size (genes + cells)

    # inputs
    H = jax.random.normal(kH, (N, F_PCA), jnp.float32)            # cell matrix (PCA)
    gene_graph = jax.random.normal(kG, (64, G), jnp.float32)       # node2vec gene embeddings (64 x G)

    # adjacency matrices (symmetric 0/1 with self loops)
    # TODO(synk): the reference passes one adjM everywhere even though encoder
    # (N x N) and decoder (G+N x G+N) graphs differ in size; build both here.
    def make_adj(k, n):
        a = (jax.random.uniform(k, (n, n)) > 0.7).astype(jnp.float32)
        a = jnp.maximum(a, a.T)
        return jnp.maximum(a, jnp.eye(n, dtype=jnp.float32))

    A_cell = make_adj(kAe, N)
    A_dec = make_adj(kAd, M_DEC)

    enc_params, dec_params = init_scdega_params(
        kP, pca_dim=F_PCA, recon_dim=F_PCA, gene_head_dim=gene_graph.shape[0])

    fwd = jax.jit(scdega_forward)
    recon_cell, recon_gene = fwd(H, A_cell, A_dec, gene_graph, enc_params, dec_params)
    jax.block_until_ready((recon_cell, recon_gene))

    assert recon_cell.shape == (M_DEC, F_PCA)
    assert recon_gene.shape == (M_DEC, gene_graph.shape[0])
    assert bool(jnp.all(jnp.isfinite(recon_cell))) and bool(jnp.all(jnp.isfinite(recon_gene)))
    print("KERNEL_OK")
</pallas_src>

<mosaic_0001>
module attributes {stable_mosaic.version = 11 : i64} {
  func.func @_scdega_fused_kernel(%arg0: i32, %arg1: memref<64x32xf32, #tpu.memory_space<vmem>>, %arg2: memref<64x64xf32, #tpu.memory_space<vmem>>, %arg3: memref<128x128xf32, #tpu.memory_space<vmem>>, %arg4: memref<64x64xf32, #tpu.memory_space<vmem>>, %arg5: memref<32x512xf32, #tpu.memory_space<vmem>>, %arg6: memref<8x512xf32, #tpu.memory_space<vmem>>, %arg7: memref<512x256xf32, #tpu.memory_space<vmem>>, %arg8: memref<8x256xf32, #tpu.memory_space<vmem>>, %arg9: memref<256x64xf32, #tpu.memory_space<vmem>>, %arg10: memref<8x64xf32, #tpu.memory_space<vmem>>, %arg11: memref<64x256xf32, #tpu.memory_space<vmem>>, %arg12: memref<8x256xf32, #tpu.memory_space<vmem>>, %arg13: memref<256x512xf32, #tpu.memory_space<vmem>>, %arg14: memref<8x512xf32, #tpu.memory_space<vmem>>, %arg15: memref<512x96xf32, #tpu.memory_space<vmem>>, %arg16: memref<8x32xf32, #tpu.memory_space<vmem>>, %arg17: memref<8x64xf32, #tpu.memory_space<vmem>>, %arg18: memref<128x96xf32, #tpu.memory_space<vmem>>) attributes {dimension_semantics = [#tpu.dimension_semantics<arbitrary>], iteration_bounds = array<i64: 1>, scalar_prefetch = 0 : i64, scratch_operands = 0 : i64, tpu.core_type = #tpu.core_type<tc>, window_params = [{pipeline_mode = #tpu.pipeline_mode<synchronous>, transform_indices = @transform_0, window_bounds = array<i64: 64, 32>}, {pipeline_mode = #tpu.pipeline_mode<synchronous>, transform_indices = @transform_1, window_bounds = array<i64: 64, 64>}, {pipeline_mode = #tpu.pipeline_mode<synchronous>, transform_indices = @transform_2, window_bounds = array<i64: 128, 128>}, {pipeline_mode = #tpu.pipeline_mode<synchronous>, transform_indices = @transform_3, window_bounds = array<i64: 64, 64>}, {pipeline_mode = #tpu.pipeline_mode<synchronous>, transform_indices = @transform_4, window_bounds = array<i64: 32, 512>}, {pipeline_mode = #tpu.pipeline_mode<synchronous>, transform_indices = @transform_5, window_bounds = array<i64: 8, 512>}, {pipeline_mode = #tpu.pipeline_mode<synchronous>, transform_indices = @transform_6, window_bounds = array<i64: 512, 256>}, {pipeline_mode = #tpu.pipeline_mode<synchronous>, transform_indices = @transform_7, window_bounds = array<i64: 8, 256>}, {pipeline_mode = #tpu.pipeline_mode<synchronous>, transform_indices = @transform_8, window_bounds = array<i64: 256, 64>}, {pipeline_mode = #tpu.pipeline_mode<synchronous>, transform_indices = @transform_9, window_bounds = array<i64: 8, 64>}, {pipeline_mode = #tpu.pipeline_mode<synchronous>, transform_indices = @transform_10, window_bounds = array<i64: 64, 256>}, {pipeline_mode = #tpu.pipeline_mode<synchronous>, transform_indices = @transform_11, window_bounds = array<i64: 8, 256>}, {pipeline_mode = #tpu.pipeline_mode<synchronous>, transform_indices = @transform_12, window_bounds = array<i64: 256, 512>}, {pipeline_mode = #tpu.pipeline_mode<synchronous>, transform_indices = @transform_13, window_bounds = array<i64: 8, 512>}, {pipeline_mode = #tpu.pipeline_mode<synchronous>, transform_indices = @transform_14, window_bounds = array<i64: 512, 96>}, {pipeline_mode = #tpu.pipeline_mode<synchronous>, transform_indices = @transform_15, window_bounds = array<i64: 8, 32>}, {pipeline_mode = #tpu.pipeline_mode<synchronous>, transform_indices = @transform_16, window_bounds = array<i64: 8, 64>}, {pipeline_mode = #tpu.pipeline_mode<synchronous>, transform_indices = @transform_17, window_bounds = array<i64: 128, 96>}]} {
    %c0 = arith.constant 0 : index
    %c0_0 = arith.constant 0 : index
    %0 = vector.load %arg2[%c0, %c0_0] : memref<64x64xf32, #tpu.memory_space<vmem>>, vector<64x64xf32>
    %1 = tpu.transpose %0, [1, 0] : vector<64x64xf32> -> vector<64x64xf32>
    %c0_1 = arith.constant 0 : index
    %c0_2 = arith.constant 0 : index
    %2 = vector.load %arg1[%c0_1, %c0_2] : memref<64x32xf32, #tpu.memory_space<vmem>>, vector<64x32xf32>
    %c0_3 = arith.constant 0 : index
    %c0_4 = arith.constant 0 : index
    %3 = vector.load %arg5[%c0_3, %c0_4] : memref<32x512xf32, #tpu.memory_space<vmem>>, vector<32x512xf32>
    %c0_5 = arith.constant 0 : index
    %c0_6 = arith.constant 0 : index
    %4 = vector.load %arg6[%c0_5, %c0_6] : memref<8x512xf32, #tpu.memory_space<vmem>>, vector<8x512xf32>
    %cst = arith.constant dense<0.000000e+00> : vector<64x512xf32>
    %5 = tpu.matmul %2, %3, %cst {dimension_numbers = #tpu.dot_dimension_numbers<[1], [0], [0], [1], [0, 0, 1, 1], [], []>} : vector<64x32xf32>, vector<32x512xf32>, vector<64x512xf32> -> vector<64x512xf32>
    %6 = vector.extract_strided_slice %4 {offsets = [0, 0], sizes = [1, 512], strides = [1, 1]} : vector<8x512xf32> to vector<1x512xf32>
    %7 = vector.broadcast %6 : vector<1x512xf32> to vector<64x512xf32>
    %8 = arith.addf %5, %7 : vector<64x512xf32>
    %cst_7 = arith.constant 0.000000e+00 : f32
    %9 = vector.broadcast %cst_7 : f32 to vector<64x512xf32>
    %10 = arith.maximumf %8, %9 : vector<64x512xf32>
    %cst_8 = arith.constant dense<0.000000e+00> : vector<8x64xf32>
    %11 = tpu.matmul %4, %10, %cst_8 {dimension_numbers = #tpu.dot_dimension_numbers<[1], [1], [0], [0], [0, 0, 1, 0], [], []>} : vector<8x512xf32>, vector<64x512xf32>, vector<8x64xf32> -> vector<8x64xf32>
    %12 = vector.extract_strided_slice %11 {offsets = [1, 0], sizes = [1, 64], strides = [1, 1]} : vector<8x64xf32> to vector<1x64xf32>
    %13 = vector.extract_strided_slice %4 {offsets = [3, 0], sizes = [1, 1], strides = [1, 1]} : vector<8x512xf32> to vector<1x1xf32>
    %14 = vector.broadcast %13 : vector<1x1xf32> to vector<1x64xf32>
    %15 = arith.addf %12, %14 : vector<1x64xf32>
    %16 = vector.extract_strided_slice %4 {offsets = [2, 0], sizes = [1, 512], strides = [1, 1]} : vector<8x512xf32> to vector<1x512xf32>
    %17 = vector.broadcast %16 : vector<1x512xf32> to vector<64x512xf32>
    %18 = arith.mulf %10, %17 : vector<64x512xf32>
    %cst_9 = arith.constant dense<0.000000e+00> : vector<64xf32>
    %19 = vector.multi_reduction <add>, %18, %cst_9 [1] : vector<64x512xf32> to vector<64xf32>
    %20 = vector.shape_cast %19 : vector<64xf32> to vector<64x1xf32>
    %21 = vector.extract_strided_slice %4 {offsets = [4, 0], sizes = [1, 1], strides = [1, 1]} : vector<8x512xf32> to vector<1x1xf32>
    %22 = vector.broadcast %21 : vector<1x1xf32> to vector<64x1xf32>
    %23 = arith.addf %20, %22 : vector<64x1xf32>
    %24 = vector.broadcast %15 : vector<1x64xf32> to vector<64x64xf32>
    %25 = arith.mulf %0, %24 : vector<64x64xf32>
    %26 = vector.broadcast %23 : vector<64x1xf32> to vector<64x64xf32>
    %27 = arith.mulf %1, %26 : vector<64x64xf32>
    %28 = arith.addf %25, %27 : vector<64x64xf32>
    %29 = arith.negf %28 : vector<64x64xf32>
    %30 = math.exp %29 : vector<64x64xf32>
    %cst_10 = arith.constant 1.000000e+00 : f32
    %31 = vector.broadcast %cst_10 : f32 to vector<64x64xf32>
    %32 = arith.addf %31, %30 : vector<64x64xf32>
    %33 = arith.divf %31, %32 : vector<64x64xf32>
    %34 = math.exp %33 : vector<64x64xf32>
    %cst_11 = arith.constant dense<0.000000e+00> : vector<64xf32>
    %35 = vector.multi_reduction <add>, %34, %cst_11 [1] : vector<64x64xf32> to vector<64xf32>
    %36 = vector.shape_cast %35 : vector<64xf32> to vector<64x1xf32>
    %37 = tpu.reciprocal %36 {approx = true} : vector<64x1xf32> -> vector<64x1xf32>
    %38 = vector.broadcast %37 : vector<64x1xf32> to vector<64x64xf32>
    %39 = arith.mulf %34, %38 : vector<64x64xf32>
    %cst_12 = arith.constant dense<0.000000e+00> : vector<64x512xf32>
    %40 = tpu.matmul %39, %10, %cst_12 {dimension_numbers = #tpu.dot_dimension_numbers<[1], [0], [0], [1], [0, 0, 1, 1], [], []>} : vector<64x64xf32>, vector<64x512xf32>, vector<64x512xf32> -> vector<64x512xf32>
    %c0_13 = arith.constant 0 : index
    %c0_14 = arith.constant 0 : index
    %41 = vector.load %arg7[%c0_13, %c0_14] : memref<512x256xf32, #tpu.memory_space<vmem>>, vector<512x256xf32>
    %c0_15 = arith.constant 0 : index
    %c0_16 = arith.constant 0 : index
    %42 = vector.load %arg8[%c0_15, %c0_16] : memref<8x256xf32, #tpu.memory_space<vmem>>, vector<8x256xf32>
    %cst_17 = arith.constant dense<0.000000e+00> : vector<64x256xf32>
    %43 = tpu.matmul %40, %41, %cst_17 {dimension_numbers = #tpu.dot_dimension_numbers<[1], [0], [0], [1], [0, 0, 1, 1], [], []>} : vector<64x512xf32>, vector<512x256xf32>, vector<64x256xf32> -> vector<64x256xf32>
    %44 = vector.extract_strided_slice %42 {offsets = [0, 0], sizes = [1, 256], strides = [1, 1]} : vector<8x256xf32> to vector<1x256xf32>
    %45 = vector.broadcast %44 : vector<1x256xf32> to vector<64x256xf32>
    %46 = arith.addf %43, %45 : vector<64x256xf32>
    %cst_18 = arith.constant 0.000000e+00 : f32
    %47 = vector.broadcast %cst_18 : f32 to vector<64x256xf32>
    %48 = arith.maximumf %46, %47 : vector<64x256xf32>
    %cst_19 = arith.constant dense<0.000000e+00> : vector<8x64xf32>
    %49 = tpu.matmul %42, %48, %cst_19 {dimension_numbers = #tpu.dot_dimension_numbers<[1], [1], [0], [0], [0, 0, 1, 0], [], []>} : vector<8x256xf32>, vector<64x256xf32>, vector<8x64xf32> -> vector<8x64xf32>
    %50 = vector.extract_strided_slice %49 {offsets = [1, 0], sizes = [1, 64], strides = [1, 1]} : vector<8x64xf32> to vector<1x64xf32>
    %51 = vector.extract_strided_slice %42 {offsets = [3, 0], sizes = [1, 1], strides = [1, 1]} : vector<8x256xf32> to vector<1x1xf32>
    %52 = vector.broadcast %51 : vector<1x1xf32> to vector<1x64xf32>
    %53 = arith.addf %50, %52 : vector<1x64xf32>
    %54 = vector.extract_strided_slice %42 {offsets = [2, 0], sizes = [1, 256], strides = [1, 1]} : vector<8x256xf32> to vector<1x256xf32>
    %55 = vector.broadcast %54 : vector<1x256xf32> to vector<64x256xf32>
    %56 = arith.mulf %48, %55 : vector<64x256xf32>
    %cst_20 = arith.constant dense<0.000000e+00> : vector<64xf32>
    %57 = vector.multi_reduction <add>, %56, %cst_20 [1] : vector<64x256xf32> to vector<64xf32>
    %58 = vector.shape_cast %57 : vector<64xf32> to vector<64x1xf32>
    %59 = vector.extract_strided_slice %42 {offsets = [4, 0], sizes = [1, 1], strides = [1, 1]} : vector<8x256xf32> to vector<1x1xf32>
    %60 = vector.broadcast %59 : vector<1x1xf32> to vector<64x1xf32>
    %61 = arith.addf %58, %60 : vector<64x1xf32>
    %62 = vector.broadcast %53 : vector<1x64xf32> to vector<64x64xf32>
    %63 = arith.mulf %0, %62 : vector<64x64xf32>
    %64 = vector.broadcast %61 : vector<64x1xf32> to vector<64x64xf32>
    %65 = arith.mulf %1, %64 : vector<64x64xf32>
    %66 = arith.addf %63, %65 : vector<64x64xf32>
    %67 = arith.negf %66 : vector<64x64xf32>
    %68 = math.exp %67 : vector<64x64xf32>
    %cst_21 = arith.constant 1.000000e+00 : f32
    %69 = vector.broadcast %cst_21 : f32 to vector<64x64xf32>
    %70 = arith.addf %69, %68 : vector<64x64xf32>
    %71 = arith.divf %69, %70 : vector<64x64xf32>
    %72 = math.exp %71 : vector<64x64xf32>
    %cst_22 = arith.constant dense<0.000000e+00> : vector<64xf32>
    %73 = vector.multi_reduction <add>, %72, %cst_22 [1] : vector<64x64xf32> to vector<64xf32>
    %74 = vector.shape_cast %73 : vector<64xf32> to vector<64x1xf32>
    %75 = tpu.reciprocal %74 {approx = true} : vector<64x1xf32> -> vector<64x1xf32>
    %76 = vector.broadcast %75 : vector<64x1xf32> to vector<64x64xf32>
    %77 = arith.mulf %72, %76 : vector<64x64xf32>
    %cst_23 = arith.constant dense<0.000000e+00> : vector<64x256xf32>
    %78 = tpu.matmul %77, %48, %cst_23 {dimension_numbers = #tpu.dot_dimension_numbers<[1], [0], [0], [1], [0, 0, 1, 1], [], []>} : vector<64x64xf32>, vector<64x256xf32>, vector<64x256xf32> -> vector<64x256xf32>
    %c0_24 = arith.constant 0 : index
    %c0_25 = arith.constant 0 : index
    %79 = vector.load %arg9[%c0_24, %c0_25] : memref<256x64xf32, #tpu.memory_space<vmem>>, vector<256x64xf32>
    %c0_26 = arith.constant 0 : index
    %c0_27 = arith.constant 0 : index
    %80 = vector.load %arg10[%c0_26, %c0_27] : memref<8x64xf32, #tpu.memory_space<vmem>>, vector<8x64xf32>
    %cst_28 = arith.constant dense<0.000000e+00> : vector<64x64xf32>
    %81 = tpu.matmul %78, %79, %cst_28 {dimension_numbers = #tpu.dot_dimension_numbers<[1], [0], [0], [1], [0, 0, 1, 1], [], []>} : vector<64x256xf32>, vector<256x64xf32>, vector<64x64xf32> -> vector<64x64xf32>
    %82 = vector.extract_strided_slice %80 {offsets = [0, 0], sizes = [1, 64], strides = [1, 1]} : vector<8x64xf32> to vector<1x64xf32>
    %83 = vector.broadcast %82 : vector<1x64xf32> to vector<64x64xf32>
    %84 = arith.addf %81, %83 : vector<64x64xf32>
    %cst_29 = arith.constant 0.000000e+00 : f32
    %85 = vector.broadcast %cst_29 : f32 to vector<64x64xf32>
    %86 = arith.maximumf %84, %85 : vector<64x64xf32>
    %cst_30 = arith.constant dense<0.000000e+00> : vector<8x64xf32>
    %87 = tpu.matmul %80, %86, %cst_30 {dimension_numbers = #tpu.dot_dimension_numbers<[1], [1], [0], [0], [0, 0, 1, 0], [], []>} : vector<8x64xf32>, vector<64x64xf32>, vector<8x64xf32> -> vector<8x64xf32>
    %88 = vector.extract_strided_slice %87 {offsets = [1, 0], sizes = [1, 64], strides = [1, 1]} : vector<8x64xf32> to vector<1x64xf32>
    %89 = vector.extract_strided_slice %80 {offsets = [3, 0], sizes = [1, 1], strides = [1, 1]} : vector<8x64xf32> to vector<1x1xf32>
    %90 = vector.broadcast %89 : vector<1x1xf32> to vector<1x64xf32>
    %91 = arith.addf %88, %90 : vector<1x64xf32>
    %92 = vector.extract_strided_slice %80 {offsets = [2, 0], sizes = [1, 64], strides = [1, 1]} : vector<8x64xf32> to vector<1x64xf32>
    %93 = vector.broadcast %92 : vector<1x64xf32> to vector<64x64xf32>
    %94 = arith.mulf %86, %93 : vector<64x64xf32>
    %cst_31 = arith.constant dense<0.000000e+00> : vector<64xf32>
    %95 = vector.multi_reduction <add>, %94, %cst_31 [1] : vector<64x64xf32> to vector<64xf32>
    %96 = vector.shape_cast %95 : vector<64xf32> to vector<64x1xf32>
    %97 = vector.extract_strided_slice %80 {offsets = [4, 0], sizes = [1, 1], strides = [1, 1]} : vector<8x64xf32> to vector<1x1xf32>
    %98 = vector.broadcast %97 : vector<1x1xf32> to vector<64x1xf32>
    %99 = arith.addf %96, %98 : vector<64x1xf32>
    %100 = vector.broadcast %91 : vector<1x64xf32> to vector<64x64xf32>
    %101 = arith.mulf %0, %100 : vector<64x64xf32>
    %102 = vector.broadcast %99 : vector<64x1xf32> to vector<64x64xf32>
    %103 = arith.mulf %1, %102 : vector<64x64xf32>
    %104 = arith.addf %101, %103 : vector<64x64xf32>
    %105 = arith.negf %104 : vector<64x64xf32>
    %106 = math.exp %105 : vector<64x64xf32>
    %cst_32 = arith.constant 1.000000e+00 : f32
    %107 = vector.broadcast %cst_32 : f32 to vector<64x64xf32>
    %108 = arith.addf %107, %106 : vector<64x64xf32>
    %109 = arith.divf %107, %108 : vector<64x64xf32>
    %110 = math.exp %109 : vector<64x64xf32>
    %cst_33 = arith.constant dense<0.000000e+00> : vector<64xf32>
    %111 = vector.multi_reduction <add>, %110, %cst_33 [1] : vector<64x64xf32> to vector<64xf32>
    %112 = vector.shape_cast %111 : vector<64xf32> to vector<64x1xf32>
    %113 = tpu.reciprocal %112 {approx = true} : vector<64x1xf32> -> vector<64x1xf32>
    %114 = vector.broadcast %113 : vector<64x1xf32> to vector<64x64xf32>
    %115 = arith.mulf %110, %114 : vector<64x64xf32>
    %cst_34 = arith.constant dense<0.000000e+00> : vector<64x64xf32>
    %116 = tpu.matmul %115, %86, %cst_34 {dimension_numbers = #tpu.dot_dimension_numbers<[1], [0], [0], [1], [0, 0, 1, 1], [], []>} : vector<64x64xf32>, vector<64x64xf32>, vector<64x64xf32> -> vector<64x64xf32>
    %c0_35 = arith.constant 0 : index
    %c0_36 = arith.constant 0 : index
    %117 = vector.load %arg4[%c0_35, %c0_36] : memref<64x64xf32, #tpu.memory_space<vmem>>, vector<64x64xf32>
    %118 = tpu.transpose %117, [1, 0] : vector<64x64xf32> -> vector<64x64xf32>
    %119 = tpu.concatenate %118, %116 in 0 : vector<64x64xf32>, vector<64x64xf32> -> vector<128x64xf32>
    %c0_37 = arith.constant 0 : index
    %c0_38 = arith.constant 0 : index
    %120 = vector.load %arg3[%c0_37, %c0_38] : memref<128x128xf32, #tpu.memory_space<vmem>>, vector<128x128xf32>
    %121 = tpu.transpose %120, [1, 0] : vector<128x128xf32> -> vector<128x128xf32>
    %c0_39 = arith.constant 0 : index
    %c0_40 = arith.constant 0 : index
    %122 = vector.load %arg11[%c0_39, %c0_40] : memref<64x256xf32, #tpu.memory_space<vmem>>, vector<64x256xf32>
    %c0_41 = arith.constant 0 : index
    %c0_42 = arith.constant 0 : index
    %123 = vector.load %arg12[%c0_41, %c0_42] : memref<8x256xf32, #tpu.memory_space<vmem>>, vector<8x256xf32>
    %cst_43 = arith.constant dense<0.000000e+00> : vector<128x256xf32>
    %124 = tpu.matmul %119, %122, %cst_43 {dimension_numbers = #tpu.dot_dimension_numbers<[1], [0], [0], [1], [0, 0, 1, 1], [], []>} : vector<128x64xf32>, vector<64x256xf32>, vector<128x256xf32> -> vector<128x256xf32>
    %125 = vector.extract_strided_slice %123 {offsets = [0, 0], sizes = [1, 256], strides = [1, 1]} : vector<8x256xf32> to vector<1x256xf32>
    %126 = vector.broadcast %125 : vector<1x256xf32> to vector<128x256xf32>
    %127 = arith.addf %124, %126 : vector<128x256xf32>
    %cst_44 = arith.constant 0.000000e+00 : f32
    %128 = vector.broadcast %cst_44 : f32 to vector<128x256xf32>
    %129 = arith.maximumf %127, %128 : vector<128x256xf32>
    %cst_45 = arith.constant dense<0.000000e+00> : vector<8x128xf32>
    %130 = tpu.matmul %123, %129, %cst_45 {dimension_numbers = #tpu.dot_dimension_numbers<[1], [1], [0], [0], [0, 0, 1, 0], [], []>} : vector<8x256xf32>, vector<128x256xf32>, vector<8x128xf32> -> vector<8x128xf32>
    %131 = vector.extract_strided_slice %130 {offsets = [1, 0], sizes = [1, 128], strides = [1, 1]} : vector<8x128xf32> to vector<1x128xf32>
    %132 = vector.extract_strided_slice %123 {offsets = [3, 0], sizes = [1, 1], strides = [1, 1]} : vector<8x256xf32> to vector<1x1xf32>
    %133 = vector.broadcast %132 : vector<1x1xf32> to vector<1x128xf32>
    %134 = arith.addf %131, %133 : vector<1x128xf32>
    %135 = vector.extract_strided_slice %123 {offsets = [2, 0], sizes = [1, 256], strides = [1, 1]} : vector<8x256xf32> to vector<1x256xf32>
    %136 = vector.broadcast %135 : vector<1x256xf32> to vector<128x256xf32>
    %137 = arith.mulf %129, %136 : vector<128x256xf32>
    %cst_46 = arith.constant dense<0.000000e+00> : vector<128xf32>
    %138 = vector.multi_reduction <add>, %137, %cst_46 [1] : vector<128x256xf32> to vector<128xf32>
    %139 = vector.shape_cast %138 : vector<128xf32> to vector<128x1xf32>
    %140 = vector.extract_strided_slice %123 {offsets = [4, 0], sizes = [1, 1], strides = [1, 1]} : vector<8x256xf32> to vector<1x1xf32>
    %141 = vector.broadcast %140 : vector<1x1xf32> to vector<128x1xf32>
    %142 = arith.addf %139, %141 : vector<128x1xf32>
    %143 = vector.broadcast %134 : vector<1x128xf32> to vector<128x128xf32>
    %144 = arith.mulf %120, %143 : vector<128x128xf32>
    %145 = vector.broadcast %142 : vector<128x1xf32> to vector<128x128xf32>
    %146 = arith.mulf %121, %145 : vector<128x128xf32>
    %147 = arith.addf %144, %146 : vector<128x128xf32>
    %148 = arith.negf %147 : vector<128x128xf32>
    %149 = math.exp %148 : vector<128x128xf32>
    %cst_47 = arith.constant 1.000000e+00 : f32
    %150 = vector.broadcast %cst_47 : f32 to vector<128x128xf32>
    %151 = arith.addf %150, %149 : vector<128x128xf32>
    %152 = arith.divf %150, %151 : vector<128x128xf32>
    %153 = math.exp %152 : vector<128x128xf32>
    %cst_48 = arith.constant dense<0.000000e+00> : vector<128xf32>
    %154 = vector.multi_reduction <add>, %153, %cst_48 [1] : vector<128x128xf32> to vector<128xf32>
    %155 = vector.shape_cast %154 : vector<128xf32> to vector<128x1xf32>
    %156 = tpu.reciprocal %155 {approx = true} : vector<128x1xf32> -> vector<128x1xf32>
    %157 = vector.broadcast %156 : vector<128x1xf32> to vector<128x128xf32>
    %158 = arith.mulf %153, %157 : vector<128x128xf32>
    %cst_49 = arith.constant dense<0.000000e+00> : vector<128x256xf32>
    %159 = tpu.matmul %158, %129, %cst_49 {dimension_numbers = #tpu.dot_dimension_numbers<[1], [0], [0], [1], [0, 0, 1, 1], [], []>} : vector<128x128xf32>, vector<128x256xf32>, vector<128x256xf32> -> vector<128x256xf32>
    %c0_50 = arith.constant 0 : index
    %c0_51 = arith.constant 0 : index
    %160 = vector.load %arg13[%c0_50, %c0_51] : memref<256x512xf32, #tpu.memory_space<vmem>>, vector<256x512xf32>
    %c0_52 = arith.constant 0 : index
    %c0_53 = arith.constant 0 : index
    %161 = vector.load %arg14[%c0_52, %c0_53] : memref<8x512xf32, #tpu.memory_space<vmem>>, vector<8x512xf32>
    %cst_54 = arith.constant dense<0.000000e+00> : vector<128x512xf32>
    %162 = tpu.matmul %159, %160, %cst_54 {dimension_numbers = #tpu.dot_dimension_numbers<[1], [0], [0], [1], [0, 0, 1, 1], [], []>} : vector<128x256xf32>, vector<256x512xf32>, vector<128x512xf32> -> vector<128x512xf32>
    %163 = vector.extract_strided_slice %161 {offsets = [0, 0], sizes = [1, 512], strides = [1, 1]} : vector<8x512xf32> to vector<1x512xf32>
    %164 = vector.broadcast %163 : vector<1x512xf32> to vector<128x512xf32>
    %165 = arith.addf %162, %164 : vector<128x512xf32>
    %cst_55 = arith.constant 0.000000e+00 : f32
    %166 = vector.broadcast %cst_55 : f32 to vector<128x512xf32>
    %167 = arith.maximumf %165, %166 : vector<128x512xf32>
    %cst_56 = arith.constant dense<0.000000e+00> : vector<8x128xf32>
    %168 = tpu.matmul %161, %167, %cst_56 {dimension_numbers = #tpu.dot_dimension_numbers<[1], [1], [0], [0], [0, 0, 1, 0], [], []>} : vector<8x512xf32>, vector<128x512xf32>, vector<8x128xf32> -> vector<8x128xf32>
    %169 = vector.extract_strided_slice %168 {offsets = [1, 0], sizes = [1, 128], strides = [1, 1]} : vector<8x128xf32> to vector<1x128xf32>
    %170 = vector.extract_strided_slice %161 {offsets = [3, 0], sizes = [1, 1], strides = [1, 1]} : vector<8x512xf32> to vector<1x1xf32>
    %171 = vector.broadcast %170 : vector<1x1xf32> to vector<1x128xf32>
    %172 = arith.addf %169, %171 : vector<1x128xf32>
    %173 = vector.extract_strided_slice %161 {offsets = [2, 0], sizes = [1, 512], strides = [1, 1]} : vector<8x512xf32> to vector<1x512xf32>
    %174 = vector.broadcast %173 : vector<1x512xf32> to vector<128x512xf32>
    %175 = arith.mulf %167, %174 : vector<128x512xf32>
    %cst_57 = arith.constant dense<0.000000e+00> : vector<128xf32>
    %176 = vector.multi_reduction <add>, %175, %cst_57 [1] : vector<128x512xf32> to vector<128xf32>
    %177 = vector.shape_cast %176 : vector<128xf32> to vector<128x1xf32>
    %178 = vector.extract_strided_slice %161 {offsets = [4, 0], sizes = [1, 1], strides = [1, 1]} : vector<8x512xf32> to vector<1x1xf32>
    %179 = vector.broadcast %178 : vector<1x1xf32> to vector<128x1xf32>
    %180 = arith.addf %177, %179 : vector<128x1xf32>
    %181 = vector.broadcast %172 : vector<1x128xf32> to vector<128x128xf32>
    %182 = arith.mulf %120, %181 : vector<128x128xf32>
    %183 = vector.broadcast %180 : vector<128x1xf32> to vector<128x128xf32>
    %184 = arith.mulf %121, %183 : vector<128x128xf32>
    %185 = arith.addf %182, %184 : vector<128x128xf32>
    %186 = arith.negf %185 : vector<128x128xf32>
    %187 = math.exp %186 : vector<128x128xf32>
    %cst_58 = arith.constant 1.000000e+00 : f32
    %188 = vector.broadcast %cst_58 : f32 to vector<128x128xf32>
    %189 = arith.addf %188, %187 : vector<128x128xf32>
    %190 = arith.divf %188, %189 : vector<128x128xf32>
    %191 = math.exp %190 : vector<128x128xf32>
    %cst_59 = arith.constant dense<0.000000e+00> : vector<128xf32>
    %192 = vector.multi_reduction <add>, %191, %cst_59 [1] : vector<128x128xf32> to vector<128xf32>
    %193 = vector.shape_cast %192 : vector<128xf32> to vector<128x1xf32>
    %194 = tpu.reciprocal %193 {approx = true} : vector<128x1xf32> -> vector<128x1xf32>
    %195 = vector.broadcast %194 : vector<128x1xf32> to vector<128x128xf32>
    %196 = arith.mulf %191, %195 : vector<128x128xf32>
    %cst_60 = arith.constant dense<0.000000e+00> : vector<128x512xf32>
    %197 = tpu.matmul %196, %167, %cst_60 {dimension_numbers = #tpu.dot_dimension_numbers<[1], [0], [0], [1], [0, 0, 1, 1], [], []>} : vector<128x128xf32>, vector<128x512xf32>, vector<128x512xf32> -> vector<128x512xf32>
    %c0_61 = arith.constant 0 : index
    %c0_62 = arith.constant 0 : index
    %198 = vector.load %arg16[%c0_61, %c0_62] : memref<8x32xf32, #tpu.memory_space<vmem>>, vector<8x32xf32>
    %c0_63 = arith.constant 0 : index
    %c0_64 = arith.constant 0 : index
    %199 = vector.load %arg17[%c0_63, %c0_64] : memref<8x64xf32, #tpu.memory_space<vmem>>, vector<8x64xf32>
    %200 = vector.extract_strided_slice %198 {offsets = [0, 0], sizes = [1, 32], strides = [1, 1]} : vector<8x32xf32> to vector<1x32xf32>
    %201 = vector.extract_strided_slice %199 {offsets = [0, 0], sizes = [1, 64], strides = [1, 1]} : vector<8x64xf32> to vector<1x64xf32>
    %202 = tpu.concatenate %200, %201 in 1 : vector<1x32xf32>, vector<1x64xf32> -> vector<1x96xf32>
    %c0_65 = arith.constant 0 : index
    %c0_66 = arith.constant 0 : index
    %203 = vector.load %arg15[%c0_65, %c0_66] : memref<512x96xf32, #tpu.memory_space<vmem>>, vector<512x96xf32>
    %cst_67 = arith.constant dense<0.000000e+00> : vector<128x96xf32>
    %204 = tpu.matmul %197, %203, %cst_67 {dimension_numbers = #tpu.dot_dimension_numbers<[1], [0], [0], [1], [0, 0, 1, 1], [], []>} : vector<128x512xf32>, vector<512x96xf32>, vector<128x96xf32> -> vector<128x96xf32>
    %205 = vector.broadcast %202 : vector<1x96xf32> to vector<128x96xf32>
    %206 = arith.addf %204, %205 : vector<128x96xf32>
    %cst_68 = arith.constant 0.000000e+00 : f32
    %207 = vector.broadcast %cst_68 : f32 to vector<128x96xf32>
    %208 = arith.maximumf %206, %207 : vector<128x96xf32>
    %209 = vector.extract_strided_slice %208 {offsets = [0, 0], sizes = [128, 32], strides = [1, 1]} : vector<128x96xf32> to vector<128x32xf32>
    %210 = vector.extract_strided_slice %208 {offsets = [0, 32], sizes = [128, 64], strides = [1, 1]} : vector<128x96xf32> to vector<128x64xf32>
    %cst_69 = arith.constant dense<0.000000e+00> : vector<8x128xf32>
    %211 = tpu.matmul %198, %209, %cst_69 {dimension_numbers = #tpu.dot_dimension_numbers<[1], [1], [0], [0], [0, 0, 1, 0], [], []>} : vector<8x32xf32>, vector<128x32xf32>, vector<8x128xf32> -> vector<8x128xf32>
    %212 = vector.extract_strided_slice %211 {offsets = [1, 0], sizes = [1, 128], strides = [1, 1]} : vector<8x128xf32> to vector<1x128xf32>
    %213 = vector.extract_strided_slice %198 {offsets = [3, 0], sizes = [1, 1], strides = [1, 1]} : vector<8x32xf32> to vector<1x1xf32>
    %214 = vector.broadcast %213 : vector<1x1xf32> to vector<1x128xf32>
    %215 = arith.addf %212, %214 : vector<1x128xf32>
    %216 = vector.extract_strided_slice %198 {offsets = [2, 0], sizes = [1, 32], strides = [1, 1]} : vector<8x32xf32> to vector<1x32xf32>
    %217 = vector.broadcast %216 : vector<1x32xf32> to vector<128x32xf32>
    %218 = arith.mulf %209, %217 : vector<128x32xf32>
    %cst_70 = arith.constant dense<0.000000e+00> : vector<128xf32>
    %219 = vector.multi_reduction <add>, %218, %cst_70 [1] : vector<128x32xf32> to vector<128xf32>
    %220 = vector.shape_cast %219 : vector<128xf32> to vector<128x1xf32>
    %221 = vector.extract_strided_slice %198 {offsets = [4, 0], sizes = [1, 1], strides = [1, 1]} : vector<8x32xf32> to vector<1x1xf32>
    %222 = vector.broadcast %221 : vector<1x1xf32> to vector<128x1xf32>
    %223 = arith.addf %220, %222 : vector<128x1xf32>
    %224 = vector.broadcast %215 : vector<1x128xf32> to vector<128x128xf32>
    %225 = arith.mulf %120, %224 : vector<128x128xf32>
    %226 = vector.broadcast %223 : vector<128x1xf32> to vector<128x128xf32>
    %227 = arith.mulf %121, %226 : vector<128x128xf32>
    %228 = arith.addf %225, %227 : vector<128x128xf32>
    %229 = arith.negf %228 : vector<128x128xf32>
    %230 = math.exp %229 : vector<128x128xf32>
    %cst_71 = arith.constant 1.000000e+00 : f32
    %231 = vector.broadcast %cst_71 : f32 to vector<128x128xf32>
    %232 = arith.addf %231, %230 : vector<128x128xf32>
    %233 = arith.divf %231, %232 : vector<128x128xf32>
    %234 = math.exp %233 : vector<128x128xf32>
    %cst_72 = arith.constant dense<0.000000e+00> : vector<128xf32>
    %235 = vector.multi_reduction <add>, %234, %cst_72 [1] : vector<128x128xf32> to vector<128xf32>
    %236 = vector.shape_cast %235 : vector<128xf32> to vector<128x1xf32>
    %237 = tpu.reciprocal %236 {approx = true} : vector<128x1xf32> -> vector<128x1xf32>
    %238 = vector.broadcast %237 : vector<128x1xf32> to vector<128x128xf32>
    %239 = arith.mulf %234, %238 : vector<128x128xf32>
    %cst_73 = arith.constant dense<0.000000e+00> : vector<128x32xf32>
    %240 = tpu.matmul %239, %209, %cst_73 {dimension_numbers = #tpu.dot_dimension_numbers<[1], [0], [0], [1], [0, 0, 1, 1], [], []>} : vector<128x128xf32>, vector<128x32xf32>, vector<128x32xf32> -> vector<128x32xf32>
    %cst_74 = arith.constant dense<0.000000e+00> : vector<8x128xf32>
    %241 = tpu.matmul %199, %210, %cst_74 {dimension_numbers = #tpu.dot_dimension_numbers<[1], [1], [0], [0], [0, 0, 1, 0], [], []>} : vector<8x64xf32>, vector<128x64xf32>, vector<8x128xf32> -> vector<8x128xf32>
    %242 = vector.extract_strided_slice %241 {offsets = [1, 0], sizes = [1, 128], strides = [1, 1]} : vector<8x128xf32> to vector<1x128xf32>
    %243 = vector.extract_strided_slice %199 {offsets = [3, 0], sizes = [1, 1], strides = [1, 1]} : vector<8x64xf32> to vector<1x1xf32>
    %244 = vector.broadcast %243 : vector<1x1xf32> to vector<1x128xf32>
    %245 = arith.addf %242, %244 : vector<1x128xf32>
    %246 = vector.extract_strided_slice %199 {offsets = [2, 0], sizes = [1, 64], strides = [1, 1]} : vector<8x64xf32> to vector<1x64xf32>
    %247 = vector.broadcast %246 : vector<1x64xf32> to vector<128x64xf32>
    %248 = arith.mulf %210, %247 : vector<128x64xf32>
    %cst_75 = arith.constant dense<0.000000e+00> : vector<128xf32>
    %249 = vector.multi_reduction <add>, %248, %cst_75 [1] : vector<128x64xf32> to vector<128xf32>
    %250 = vector.shape_cast %249 : vector<128xf32> to vector<128x1xf32>
    %251 = vector.extract_strided_slice %199 {offsets = [4, 0], sizes = [1, 1], strides = [1, 1]} : vector<8x64xf32> to vector<1x1xf32>
    %252 = vector.broadcast %251 : vector<1x1xf32> to vector<128x1xf32>
    %253 = arith.addf %250, %252 : vector<128x1xf32>
    %254 = vector.broadcast %245 : vector<1x128xf32> to vector<128x128xf32>
    %255 = arith.mulf %120, %254 : vector<128x128xf32>
    %256 = vector.broadcast %253 : vector<128x1xf32> to vector<128x128xf32>
    %257 = arith.mulf %121, %256 : vector<128x128xf32>
    %258 = arith.addf %255, %257 : vector<128x128xf32>
    %259 = arith.negf %258 : vector<128x128xf32>
    %260 = math.exp %259 : vector<128x128xf32>
    %cst_76 = arith.constant 1.000000e+00 : f32
    %261 = vector.broadcast %cst_76 : f32 to vector<128x128xf32>
    %262 = arith.addf %261, %260 : vector<128x128xf32>
    %263 = arith.divf %261, %262 : vector<128x128xf32>
    %264 = math.exp %263 : vector<128x128xf32>
    %cst_77 = arith.constant dense<0.000000e+00> : vector<128xf32>
    %265 = vector.multi_reduction <add>, %264, %cst_77 [1] : vector<128x128xf32> to vector<128xf32>
    %266 = vector.shape_cast %265 : vector<128xf32> to vector<128x1xf32>
    %267 = tpu.reciprocal %266 {approx = true} : vector<128x1xf32> -> vector<128x1xf32>
    %268 = vector.broadcast %267 : vector<128x1xf32> to vector<128x128xf32>
    %269 = arith.mulf %264, %268 : vector<128x128xf32>
    %cst_78 = arith.constant dense<0.000000e+00> : vector<128x64xf32>
    %270 = tpu.matmul %269, %210, %cst_78 {dimension_numbers = #tpu.dot_dimension_numbers<[1], [0], [0], [1], [0, 0, 1, 1], [], []>} : vector<128x128xf32>, vector<128x64xf32>, vector<128x64xf32> -> vector<128x64xf32>
    %271 = tpu.concatenate %240, %270 in 1 : vector<128x32xf32>, vector<128x64xf32> -> vector<128x96xf32>
    %c0_79 = arith.constant 0 : index
    %c0_80 = arith.constant 0 : index
    %272 = vector.load %arg18[%c0_79, %c0_80] : memref<128x96xf32, #tpu.memory_space<vmem>>, vector<128x96xf32>
    tpu.vector_store %arg18[%c0_79, %c0_80], %271 {strides = array<i32>} : memref<128x96xf32, #tpu.memory_space<vmem>>, vector<128x96xf32>,
    return
  }
  func.func @transform_0(%arg0: i32) -> (i32, i32) {
    %c0_i32 = arith.constant 0 : i32
    %c0_i32_0 = arith.constant 0 : i32
    %c0_i32_1 = arith.constant 0 : i32
    return %c0_i32, %c0_i32_0 : i32, i32
  }
  func.func @transform_1(%arg0: i32) -> (i32, i32) {
    %c0_i32 = arith.constant 0 : i32
    %c0_i32_0 = arith.constant 0 : i32
    %c0_i32_1 = arith.constant 0 : i32
    return %c0_i32, %c0_i32_0 : i32, i32
  }
  func.func @transform_2(%arg0: i32) -> (i32, i32) {
    %c0_i32 = arith.constant 0 : i32
    %c0_i32_0 = arith.constant 0 : i32
    %c0_i32_1 = arith.constant 0 : i32
    return %c0_i32, %c0_i32_0 : i32, i32
  }
  func.func @transform_3(%arg0: i32) -> (i32, i32) {
    %c0_i32 = arith.constant 0 : i32
    %c0_i32_0 = arith.constant 0 : i32
    %c0_i32_1 = arith.constant 0 : i32
    return %c0_i32, %c0_i32_0 : i32, i32
  }
  func.func @transform_4(%arg0: i32) -> (i32, i32) {
    %c0_i32 = arith.constant 0 : i32
    %c0_i32_0 = arith.constant 0 : i32
    %c0_i32_1 = arith.constant 0 : i32
    return %c0_i32, %c0_i32_0 : i32, i32
  }
  func.func @transform_5(%arg0: i32) -> (i32, i32) {
    %c0_i32 = arith.constant 0 : i32
    %c0_i32_0 = arith.constant 0 : i32
    %c0_i32_1 = arith.constant 0 : i32
    return %c0_i32, %c0_i32_0 : i32, i32
  }
  func.func @transform_6(%arg0: i32) -> (i32, i32) {
    %c0_i32 = arith.constant 0 : i32
    %c0_i32_0 = arith.constant 0 : i32
    %c0_i32_1 = arith.constant 0 : i32
    return %c0_i32, %c0_i32_0 : i32, i32
  }
  func.func @transform_7(%arg0: i32) -> (i32, i32) {
    %c0_i32 = arith.constant 0 : i32
    %c0_i32_0 = arith.constant 0 : i32
    %c0_i32_1 = arith.constant 0 : i32
    return %c0_i32, %c0_i32_0 : i32, i32
  }
  func.func @transform_8(%arg0: i32) -> (i32, i32) {
    %c0_i32 = arith.constant 0 : i32
    %c0_i32_0 = arith.constant 0 : i32
    %c0_i32_1 = arith.constant 0 : i32
    return %c0_i32, %c0_i32_0 : i32, i32
  }
  func.func @transform_9(%arg0: i32) -> (i32, i32) {
    %c0_i32 = arith.constant 0 : i32
    %c0_i32_0 = arith.constant 0 : i32
    %c0_i32_1 = arith.constant 0 : i32
    return %c0_i32, %c0_i32_0 : i32, i32
  }
  func.func @transform_10(%arg0: i32) -> (i32, i32) {
    %c0_i32 = arith.constant 0 : i32
    %c0_i32_0 = arith.constant 0 : i32
    %c0_i32_1 = arith.constant 0 : i32
    return %c0_i32, %c0_i32_0 : i32, i32
  }
  func.func @transform_11(%arg0: i32) -> (i32, i32) {
    %c0_i32 = arith.constant 0 : i32
    %c0_i32_0 = arith.constant 0 : i32
    %c0_i32_1 = arith.constant 0 : i32
    return %c0_i32, %c0_i32_0 : i32, i32
  }
  func.func @transform_12(%arg0: i32) -> (i32, i32) {
    %c0_i32 = arith.constant 0 : i32
    %c0_i32_0 = arith.constant 0 : i32
    %c0_i32_1 = arith.constant 0 : i32
    return %c0_i32, %c0_i32_0 : i32, i32
  }
  func.func @transform_13(%arg0: i32) -> (i32, i32) {
    %c0_i32 = arith.constant 0 : i32
    %c0_i32_0 = arith.constant 0 : i32
    %c0_i32_1 = arith.constant 0 : i32
    return %c0_i32, %c0_i32_0 : i32, i32
  }
  func.func @transform_14(%arg0: i32) -> (i32, i32) {
    %c0_i32 = arith.constant 0 : i32
    %c0_i32_0 = arith.constant 0 : i32
    %c0_i32_1 = arith.constant 0 : i32
    return %c0_i32, %c0_i32_0 : i32, i32
  }
  func.func @transform_15(%arg0: i32) -> (i32, i32) {
    %c0_i32 = arith.constant 0 : i32
    %c0_i32_0 = arith.constant 0 : i32
    %c0_i32_1 = arith.constant 0 : i32
    return %c0_i32, %c0_i32_0 : i32, i32
  }
  func.func @transform_16(%arg0: i32) -> (i32, i32) {
    %c0_i32 = arith.constant 0 : i32
    %c0_i32_0 = arith.constant 0 : i32
    %c0_i32_1 = arith.constant 0 : i32
    return %c0_i32, %c0_i32_0 : i32, i32
  }
  func.func @transform_17(%arg0: i32) -> (i32, i32) {
    %c0_i32 = arith.constant 0 : i32
    %c0_i32_0 = arith.constant 0 : i32
    %c0_i32_1 = arith.constant 0 : i32
    return %c0_i32, %c0_i32_0 : i32, i32
  }
}

</mosaic_0001>

<bundles_post_ra>
// kernel: scdega_forward.1
= control target key start
LH: loop header
LB: loop body
LE: loop exit
PB: predicated region body
PF: predicated region fallthrough
CT: control target
= control target key end

     0   :  { %v13255_v3 = vmov 0.0   ;;  %vm140_vm0 = vcmask 261120   ;;  %v124_v35 = vlaneseq  ;;  %vm802_vm1 = vcmask 523264   ;;  %s9427_s28 = smov 32   ;;  %s13233_s4 = inlined_call_operand.vmem [shape: f32[32,512], index: 4, kind: input, shape index: {}]   ;;  %s13234_s0 = inlined_call_operand.vmem [shape: f32[64,32], index: 0, kind: input, shape index: {}]   ;;  %s13235_s5 = inlined_call_operand.vmem [shape: f32[8,512], index: 5, kind: input, shape index: {}]   ;;  %s13236_s1 = inlined_call_operand.vmem [shape: f32[64,64], index: 1, kind: input, shape index: {}]   ;;  %s13237_s6 = inlined_call_operand.vmem [shape: f32[512,256], index: 6, kind: input, shape index: {}]   ;;  %s13238_s7 = inlined_call_operand.vmem [shape: f32[8,256], index: 7, kind: input, shape index: {}]   ;;  %s13239_s8 = inlined_call_operand.vmem [shape: f32[256,64], index: 8, kind: input, shape index: {}]   ;;  %s13240_s9 = inlined_call_operand.vmem [shape: f32[8,64], index: 9, kind: input, shape index: {}]   ;;  %s13241_s11 = inlined_call_operand.vmem [shape: f32[8,256], index: 11, kind: input, shape index: {}]   ;;  %s13242_s10 = inlined_call_operand.vmem [shape: f32[64,256], index: 10, kind: input, shape index: {}]   ;;  %s13243_s3 = inlined_call_operand.vmem [shape: f32[64,64], index: 3, kind: input, shape index: {}]   ;;  %s13244_s2 = inlined_call_operand.vmem [shape: f32[128,128], index: 2, kind: input, shape index: {}]   ;;  %s13245_s12 = inlined_call_operand.vmem [shape: f32[256,512], index: 12, kind: input, shape index: {}]   ;;  %s13246_s13 = inlined_call_operand.vmem [shape: f32[8,512], index: 13, kind: input, shape index: {}]   ;;  %s13247_s16 = inlined_call_operand.vmem [shape: f32[8,64], index: 16, kind: input, shape index: {}]   ;;  %s13248_s15 = inlined_call_operand.vmem [shape: f32[8,32], index: 15, kind: input, shape index: {}]   ;;  %s13249_s14 = inlined_call_operand.vmem [shape: f32[512,96], index: 14, kind: input, shape index: {}]   ;;  %s13250_s17 = inlined_call_operand.vmem [shape: f32[128,96], index: 17, kind: output, shape index: {}]  }
   0x1   :  { %13303 = sst [smem:[#allocation28_spill]] %s13233_s4  ;;  %229 = vmatprep.mubr.f32.mxu0 %v13255_v3  ;;  %342 = vmatprep.mubr.f32.mxu1 %v13255_v3  ;;  %v121_v33 = vld [vmem:[%s13235_s5 + $0x8] sm:$0xff]  ;;  %v123_v34 = vld [vmem:[%s13235_s5 + $0x18] sm:$0xff]  ;;  %v9637_v38 = vld [vmem:[%s13235_s5] sm:$0xff]  ;;  %vm9426_vm2 = vmmov 0   ;;  %vm6981_vm5 = vcmask 785408  }
   0x2   :  { %13304 = sst [smem:[#allocation29_spill]] %s13234_s0  ;;  %s13305_s26 = sld [smem:[#allocation28_spill]]  ;;  %v9629_v36 = vshrl.u32 %v124_v35, 7  ;;  %v9642_v39 = vld [vmem:[%s13235_s5 + $0x10] sm:$0xff]  ;;  %vm10651_vm3 = vmpackc.low %vm802_vm1, %vm802_vm1 }
   0x3   :  { %s13306_s30 = sld [smem:[#allocation29_spill]]  ;;  %vm12340_vm4 = vmpackc.low %vm140_vm0, %vm140_vm0 }
   0x4   :  { %v9632_v37 = vsub.s32 0, %v9629_v36  ;;  %v9649_v41 = vsub.s32 2, %v9629_v36 }
   0x6   :  { %13307 = vst [vmem:[#allocation2_spill] sm:$0xff] %v9632_v37  ;;  %v9646_v40 = vrot.slane %v9637_v38, %v9632_v37  ;;  %13308 = vst [vmem:[#allocation3_spill] sm:$0xff] %v9649_v41  ;;  %v9652_v42 = vrot.slane %v121_v33, %v9632_v37  ;;  %v9656_v43 = vrot.slane %v9642_v39, %v9632_v37 }
   0x7   :  { %v9659_v44 = vrot.slane %v123_v34, %v9632_v37  ;;  %v9664_v47 = vrot.slane %v9637_v38, %v9649_v41  ;;  %v9668_v51 = vrot.slane %v121_v33, %v9649_v41  ;;  %v9673_v56 = vrot.slane %v123_v34, %v9649_v41 }
   0x8   :  { %v105_v0 = vld [vmem:[%s13305_s26 + $0x8] sm:$0xff]  ;;  %v107_v2 = vld [vmem:[%s13305_s26 + $0x18] sm:$0xff]  ;;  %v104_v6 = vld [vmem:[%s13305_s26] sm:$0xff]  ;;  %v9677_v60 = vrot.slane %v9642_v39, %v9649_v41 }
   0x9   :  { %v109_v1 = vld [vmem:[%s13305_s26 + $0x28] sm:$0xff]  ;;  %v111_v5 = vld [vmem:[%s13305_s26 + $0x38] sm:$0xff]  ;;  %v108_v7 = vld [vmem:[%s13305_s26 + $0x20] sm:$0xff] }
   0xa   :  { %v7765_v4 = vpack.c.bf16 %v109_v1, %v105_v0  ;;  %v7773_v8 = vpack.c.bf16 %v111_v5, %v107_v2  ;;  %v7767_v9 = vpack.c.bf16 %v108_v7, %v104_v6  ;;  %v106_v10 = vld [vmem:[%s13305_s26 + $0x10] sm:$0xff]  ;;  %v113_v12 = vld [vmem:[%s13305_s26 + $0x48] sm:$0xff]  ;;  %v115_v15 = vld [vmem:[%s13305_s26 + $0x58] sm:$0xff] }
   0xb   :  { %v110_v11 = vld [vmem:[%s13305_s26 + $0x30] sm:$0xff]  ;;  %v117_v14 = vld [vmem:[%s13305_s26 + $0x68] sm:$0xff]  ;;  %v119_v16 = vld [vmem:[%s13305_s26 + $0x78] sm:$0xff] }
   0xc   :  { %7766 = vmatprep.subr.bf16.mxu0 %v7765_v4  ;;  %v7775_v13 = vpack.c.bf16 %v110_v11, %v106_v10  ;;  %7774 = vmatprep.subr.bf16.mxu1 %v7773_v8  ;;  %v7769_v17 = vpack.c.bf16 %v117_v14, %v113_v12  ;;  %v7777_v18 = vpack.c.bf16 %v119_v16, %v115_v15  ;;  %v112_v19 = vld [vmem:[%s13305_s26 + $0x40] sm:$0xff]  ;;  %v114_v21 = vld [vmem:[%s13305_s26 + $0x50] sm:$0xff]  ;;  %v97_v26 = vld [vmem:[%s13306_s30 + $0x8] sm:$0xff] }
   0xd   :  { %7768 = vmatpush1.bf16.msra.mxu0 %v7767_v9  ;;  %v116_v20 = vld [vmem:[%s13305_s26 + $0x60] sm:$0xff]  ;;  %v118_v23 = vld [vmem:[%s13305_s26 + $0x70] sm:$0xff]  ;;  %v99_v28 = vld [vmem:[%s13306_s30 + $0x18] sm:$0xff] }
   0xe   :  { %7776 = vmatpush1.bf16.msra.mxu1 %v7775_v13  ;;  %v7771_v22 = vpack.c.bf16 %v116_v20, %v112_v19  ;;  %7770 = vmatprep.subr.bf16.mxu0 %v7769_v17  ;;  %v7779_v24 = vpack.c.bf16 %v118_v23, %v114_v21  ;;  %v96_v25 = vld [vmem:[%s13306_s30] sm:$0xff]  ;;  %v98_v27 = vld [vmem:[%s13306_s30 + $0x10] sm:$0xff]  ;;  %v101_v30 = vld [vmem:[%s13306_s30 + $0x28] sm:$0xff] }
   0xf   :  { %7778 = vmatprep.subr.bf16.mxu1 %v7777_v18  ;;  %v100_v29 = vld [vmem:[%s13306_s30 + $0x20] sm:$0xff]  ;;  %v102_v31 = vld [vmem:[%s13306_s30 + $0x30] sm:$0xff]  ;;  %v103_v32 = vld [vmem:[%s13306_s30 + $0x38] sm:$0xff] }
  0x11   :  { %7772 = vmatpush1.bf16.msra.mxu0 %v7771_v22 }
  0x12   :  { %7780 = vmatpush1.bf16.msra.mxu1 %v7779_v24 }
  0x14   :  { %7002 = vmatmul.mubr.msk.f32.vlgmr.msra.gmra.mrb[0].mxu0 %vm140_vm0, %v96_v25 }
  0x15   :  { %7010 = vmatmul.mubr.msk.f32.vlgmr.msra.gmra.mrb[0].mxu1 %vm140_vm0, %v96_v25  ;;  %235 = vmatprep.mubr.f32.mxu0 %v13255_v3 }
  0x16   :  { %348 = vmatprep.mubr.f32.mxu1 %v13255_v3 }
  0x18   :  { %7003 = vmatmul.mubr.msk.f32.gmra.mrb[2].mxu0 %vm140_vm0, %v97_v26 }
  0x19   :  { %7011 = vmatmul.mubr.msk.f32.gmra.mrb[2].mxu1 %vm140_vm0, %v97_v26  ;;  %241 = vmatprep.mubr.f32.mxu0 %v13255_v3 }
  0x1a   :  { %354 = vmatprep.mubr.f32.mxu1 %v13255_v3 }
  0x1c   :  { %7004 = vmatmul.mubr.msk.f32.gmra.mrb[4].mxu0 %vm140_vm0, %v98_v27 }
  0x1d   :  { %7012 = vmatmul.mubr.msk.f32.gmra.mrb[4].mxu1 %vm140_vm0, %v98_v27  ;;  %247 = vmatprep.mubr.f32.mxu0 %v13255_v3 }
  0x1e   :  { %360 = vmatprep.mubr.f32.mxu1 %v13255_v3 }
  0x20   :  { %7005 = vmatmul.mubr.msk.f32.gmra.mrb[6].mxu0 %vm140_vm0, %v99_v28 }
  0x21   :  { %7013 = vmatmul.mubr.msk.f32.gmra.mrb[6].mxu1 %vm140_vm0, %v99_v28  ;;  %253 = vmatprep.mubr.f32.mxu0 %v13255_v3 }
  0x22   :  { %366 = vmatprep.mubr.f32.mxu1 %v13255_v3 }
  0x24   :  { %7006 = vmatmul.mubr.msk.f32.gmra.mrb[8].mxu0 %vm140_vm0, %v100_v29 }
  0x25   :  { %7014 = vmatmul.mubr.msk.f32.gmra.mrb[8].mxu1 %vm140_vm0, %v100_v29  ;;  %259 = vmatprep.mubr.f32.mxu0 %v13255_v3 }
  0x26   :  { %372 = vmatprep.mubr.f32.mxu1 %v13255_v3 }
  0x28   :  { %7007 = vmatmul.mubr.msk.f32.gmra.mrb[10].mxu0 %vm140_vm0, %v101_v30 }
  0x29   :  { %7015 = vmatmul.mubr.msk.f32.gmra.mrb[10].mxu1 %vm140_vm0, %v101_v30  ;;  %265 = vmatprep.mubr.f32.mxu0 %v13255_v3 }
  0x2a   :  { %378 = vmatprep.mubr.f32.mxu1 %v13255_v3 }
  0x2c   :  { %7008 = vmatmul.mubr.msk.f32.gmra.mrb[12].mxu0 %vm140_vm0, %v102_v31 }
  0x2d   :  { %7016 = vmatmul.mubr.msk.f32.gmra.mrb[12].mxu1 %vm140_vm0, %v102_v31  ;;  %271 = vmatprep.mubr.f32.mxu0 %v13255_v3 }
  0x2e   :  { %384 = vmatprep.mubr.f32.mxu1 %v13255_v3 }
  0x30   :  { %7009 = vmatmul.mubr.msk.f32.gmra.mrb[14].mxu0 %vm140_vm0, %v103_v32 }
  0x31   :  { %7017 = vmatmul.mubr.msk.f32.gmra.mrb[14].mxu1 %vm140_vm0, %v103_v32  ;;  %487 = vmatprep.mubr.f32.mxu0 %v121_v33 }
  0x32   :  { %557 = vmatprep.mubr.f32.mxu1 %v123_v34 }
  0xe7   :  { %v231_v45 = vpop.f32.mrb[0].mxu0 }
  0xe8   :  { %v232_v46 = vadd.f32 %v231_v45, %v9646_v40  ;;  %v233_v48 = vpop.f32.mrb[1].mxu0  ;;  %v344_v49 = vpop.f32.mrb[0].mxu1 }
  0xe9   :  { %v234_v50 = vadd.f32 %v233_v48, %v9652_v42  ;;  %v345_v52 = vadd.f32 %v344_v49, %v9656_v43  ;;  %v346_v53 = vpop.f32.mrb[1].mxu1 }
  0xea   :  { %v391_v54 = vmax.f32 %v232_v46, 0.0  ;;  %v347_v55 = vadd.f32 %v346_v53, %v9659_v44 }
  0xeb   :  { %v392_v57 = vmax.f32 %v234_v50, 0.0  ;;  %v393_v58 = vmax.f32 %v345_v52, 0.0  ;;  %v237_v59 = vpop.f32.mrb[2].mxu0 }
  0xec   :  { %v586_v61 = vmul.f32 %v9664_v47, %v391_v54  ;;  %v394_v62 = vmax.f32 %v347_v55, 0.0  ;;  %v238_v63 = vadd.f32 %v237_v59, %v9646_v40  ;;  %v350_v0 = vpop.f32.mrb[2].mxu1  ;;  %v239_v1 = vpop.f32.mrb[3].mxu0 }
  0xed   :  { %v587_v2 = vmul.f32 %v9668_v51, %v392_v57  ;;  %v351_v4 = vadd.f32 %v350_v0, %v9656_v43  ;;  %v240_v5 = vadd.f32 %v239_v1, %v9652_v42  ;;  %v352_v6 = vpop.f32.mrb[3].mxu1  ;;  %v588_v13 = vmul.f32 %v9677_v60, %v393_v58 }
  0xee   :  { %v395_v7 = vmax.f32 %v238_v63, 0.0  ;;  %v353_v8 = vadd.f32 %v352_v6, %v9659_v44  ;;  %v589_v9 = vmul.f32 %v9673_v56, %v394_v62 }
  0xef   :  { %v397_v10 = vmax.f32 %v351_v4, 0.0  ;;  %v396_v11 = vmax.f32 %v240_v5, 0.0  ;;  %v243_v12 = vpop.f32.mrb[4].mxu0  ;;  %v618_v14 = vadd.f32 %v587_v2, %v586_v61 }
  0xf0   :  { %v9687_v15 = vpack.c.bf16 %v395_v7, %v391_v54  ;;  %v590_v16 = vmul.f32 %v9664_v47, %v395_v7  ;;  %v398_v17 = vmax.f32 %v353_v8, 0.0  ;;  %v244_v18 = vadd.f32 %v243_v12, %v9646_v40  ;;  %v356_v19 = vpop.f32.mrb[4].mxu1  ;;  %v245_v20 = vpop.f32.mrb[5].mxu0 }
  0xf1   :  { %v9691_v21 = vpack.c.bf16 %v397_v10, %v393_v58  ;;  %v9693_v22 = vpack.c.bf16 %v396_v11, %v392_v57  ;;  %v591_v23 = vmul.f32 %v9668_v51, %v396_v11  ;;  %v357_v24 = vadd.f32 %v356_v19, %v9656_v43  ;;  %v358_v25 = vpop.f32.mrb[5].mxu1 }
  0xf2   :  { %v399_v26 = vmax.f32 %v244_v18, 0.0  ;;  %v246_v27 = vadd.f32 %v245_v20, %v9652_v42  ;;  %v359_v28 = vadd.f32 %v358_v25, %v9659_v44  ;;  %v9699_v29 = vpack.c.bf16 %v398_v17, %v394_v62 }
  0xf3   :  { %v623_v30 = vadd.f32 %v591_v23, %v590_v16  ;;  %v401_v31 = vmax.f32 %v357_v24, 0.0  ;;  %v249_v32 = vpop.f32.mrb[6].mxu0  ;;  %7782 = vmatprep.subr.bf16.mxu0 %v9693_v22  ;;  %v619_v33 = vadd.f32 %v618_v14, %v588_v13  ;;  %v592_v34 = vmul.f32 %v9677_v60, %v397_v10 }
  0xf4   :  { %v594_v35 = vmul.f32 %v9664_v47, %v399_v26  ;;  %v400_v45 = vmax.f32 %v246_v27, 0.0  ;;  %v402_v46 = vmax.f32 %v359_v28, 0.0  ;;  %v250_v48 = vadd.f32 %v249_v32, %v9646_v40  ;;  %v362_v49 = vpop.f32.mrb[6].mxu1  ;;  %7798 = vmatprep.subr.bf16.mxu1 %v9699_v29  ;;  %v251_v50 = vpop.f32.mrb[7].mxu0  ;;  %7784 = vmatpush1.bf16.xpose.msra.mxu0 %v9687_v15 }
  0xf5   :  { %v363_v52 = vadd.f32 %v362_v49, %v9656_v43  ;;  %v252_v53 = vadd.f32 %v251_v50, %v9652_v42  ;;  %v364_v54 = vpop.f32.mrb[7].mxu1  ;;  %7800 = vmatpush1.bf16.xpose.msra.mxu1 %v9691_v21  ;;  %v620_v55 = vadd.f32 %v619_v33, %v589_v9  ;;  %v593_v57 = vmul.f32 %v9673_v56, %v398_v17 }
  0xf6   :  { %v595_v58 = vmul.f32 %v9668_v51, %v400_v45  ;;  %v403_v59 = vmax.f32 %v250_v48, 0.0  ;;  %v365_v61 = vadd.f32 %v364_v54, %v9659_v44  ;;  %v624_v62 = vadd.f32 %v623_v30, %v592_v34 }
  0xf7   :  { %v405_v63 = vmax.f32 %v363_v52, 0.0  ;;  %v404_v0 = vmax.f32 %v252_v53, 0.0  ;;  %621 = vadd.xlane.f32.xlu0 %v620_v55  ;;  %v255_v1 = vpop.f32.mrb[8].mxu0  ;;  %v596_v2 = vmul.f32 %v9677_v60, %v401_v31  ;;  %v597_v4 = vmul.f32 %v9673_v56, %v402_v46 }
  0xf8   :  { %v9715_v5 = vpack.c.bf16 %v403_v59, %v399_v26  ;;  %v598_v6 = vmul.f32 %v9664_v47, %v403_v59  ;;  %v406_v7 = vmax.f32 %v365_v61, 0.0  ;;  %v256_v8 = vadd.f32 %v255_v1, %v9646_v40  ;;  %v368_v9 = vpop.f32.mrb[8].mxu1  ;;  %v257_v10 = vpop.f32.mrb[9].mxu0 }
  0xf9   :  { %v9719_v11 = vpack.c.bf16 %v405_v63, %v401_v31  ;;  %v9721_v12 = vpack.c.bf16 %v404_v0, %v400_v45  ;;  %v599_v13 = vmul.f32 %v9668_v51, %v404_v0  ;;  %v369_v14 = vadd.f32 %v368_v9, %v9656_v43  ;;  %v370_v16 = vpop.f32.mrb[9].mxu1 }
  0xfa   :  { %v407_v17 = vmax.f32 %v256_v8, 0.0  ;;  %v258_v18 = vadd.f32 %v257_v10, %v9652_v42  ;;  %v9727_v19 = vadd.f32 %v370_v16, %v9659_v44  ;;  %v9729_v20 = vpack.c.bf16 %v406_v7, %v402_v46 }
  0xfb   :  { %v633_v23 = vadd.f32 %v599_v13, %v598_v6  ;;  %v261_v24 = vpop.f32.mrb[10].mxu0  ;;  %7786 = vmatprep.subr.bf16.mxu0 %v9721_v12  ;;  %v625_v25 = vadd.f32 %v624_v62, %v593_v57  ;;  %v628_v26 = vadd.f32 %v595_v58, %v594_v35  ;;  %v409_v28 = vmax.f32 %v369_v14, 0.0 }
  0xfc   :  { %v602_v27 = vmul.f32 %v9664_v47, %v407_v17  ;;  %v408_v30 = vmax.f32 %v258_v18, 0.0  ;;  %v262_v31 = vadd.f32 %v261_v24, %v9646_v40  ;;  %v374_v32 = vpop.f32.mrb[10].mxu1  ;;  %7802 = vmatprep.subr.bf16.mxu1 %v9729_v20  ;;  %v263_v33 = vpop.f32.mrb[11].mxu0  ;;  %7788 = vmatpush1.bf16.xpose.msra.mxu0 %v9715_v5  ;;  %v410_v34 = vmax.f32 %v9727_v19, 0.0 }
  0xfd   :  { %v375_v45 = vadd.f32 %v374_v32, %v9656_v43  ;;  %v264_v46 = vadd.f32 %v263_v33, %v9652_v42  ;;  %v376_v48 = vpop.f32.mrb[11].mxu1  ;;  %7804 = vmatpush1.bf16.xpose.msra.mxu1 %v9719_v11  ;;  %626 = vadd.xlane.f32.xlu0 %v625_v25  ;;  %v629_v35 = vadd.f32 %v628_v26, %v596_v2 }
  0xfe   :  { %v603_v49 = vmul.f32 %v9668_v51, %v408_v30  ;;  %v411_v50 = vmax.f32 %v262_v31, 0.0  ;;  %v377_v52 = vadd.f32 %v376_v48, %v9659_v44  ;;  %v600_v53 = vmul.f32 %v9677_v60, %v405_v63 }
  0xff   :  { %v413_v54 = vmax.f32 %v375_v45, 0.0  ;;  %v412_v55 = vmax.f32 %v264_v46, 0.0  ;;  %v267_v57 = vpop.f32.mrb[12].mxu0  ;;  %v630_v58 = vadd.f32 %v629_v35, %v597_v4  ;;  %v601_v59 = vmul.f32 %v9673_v56, %v406_v7 }
 0x100   :  { %v638_v61 = vadd.f32 %v603_v49, %v602_v27  ;;  %v9744_v62 = vpack.c.bf16 %v411_v50, %v407_v17  ;;  %v606_v0 = vmul.f32 %v9664_v47, %v411_v50  ;;  %v414_v1 = vmax.f32 %v377_v52, 0.0  ;;  %v380_v2 = vpop.f32.mrb[12].mxu1  ;;  %v269_v6 = vpop.f32.mrb[13].mxu0 }
 0x101   :  { %v9747_v8 = vpack.c.bf16 %v413_v54, %v409_v28  ;;  %v9749_v9 = vpack.c.bf16 %v412_v55, %v408_v30  ;;  %v607_v63 = vmul.f32 %v9668_v51, %v412_v55  ;;  %v268_v10 = vadd.f32 %v267_v57, %v9646_v40  ;;  %v382_v13 = vpop.f32.mrb[13].mxu1  ;;  %631 = vadd.xlane.f32.xlu1 %v630_v58 }
 0x102   :  { %v381_v4 = vadd.f32 %v380_v2, %v9656_v43  ;;  %v270_v7 = vadd.f32 %v269_v6, %v9652_v42  ;;  %v383_v14 = vadd.f32 %v382_v13, %v9659_v44  ;;  %v9756_v16 = vpack.c.bf16 %v414_v1, %v410_v34 }
 0x103   :  { %v643_v17 = vadd.f32 %v607_v63, %v606_v0  ;;  %v415_v18 = vmax.f32 %v268_v10, 0.0  ;;  %v273_v19 = vpop.f32.mrb[14].mxu0  ;;  %7790 = vmatprep.subr.bf16.mxu0 %v9749_v9  ;;  %v634_v24 = vadd.f32 %v633_v23, %v600_v53  ;;  %v604_v25 = vmul.f32 %v9677_v60, %v409_v28 }
 0x104   :  { %v417_v26 = vmax.f32 %v381_v4, 0.0  ;;  %v416_v27 = vmax.f32 %v270_v7, 0.0  ;;  %v418_v30 = vmax.f32 %v383_v14, 0.0  ;;  %v274_v31 = vadd.f32 %v273_v19, %v9646_v40  ;;  %v386_v32 = vpop.f32.mrb[14].mxu1  ;;  %7806 = vmatprep.subr.bf16.mxu1 %v9756_v16  ;;  %v275_v33 = vpop.f32.mrb[15].mxu0  ;;  %7792 = vmatpush1.bf16.xpose.msra.mxu0 %v9744_v62 }
 0x105   :  { %v610_v45 = vmul.f32 %v9664_v47, %v415_v18  ;;  %v387_v46 = vadd.f32 %v386_v32, %v9656_v43  ;;  %v276_v48 = vadd.f32 %v275_v33, %v9652_v42  ;;  %v388_v23 = vpop.f32.mrb[15].mxu1  ;;  %7808 = vmatpush1.bf16.xpose.msra.mxu1 %v9747_v8  ;;  %v635_v28 = vadd.f32 %v634_v24, %v601_v59  ;;  %v61_v32 = vld [vmem:[%s13236_s1 + $0x28] sm:$0xff]  ;;  %v9821_v33 = vld [vmem:[%s13236_s1 + $0x30] sm:$0xff] }
 0x106   :  { %v611_v35 = vmul.f32 %v9668_v51, %v416_v27  ;;  %v419_v49 = vmax.f32 %v274_v31, 0.0  ;;  %v389_v40 = vadd.f32 %v388_v23, %v9659_v44  ;;  %v605_v50 = vmul.f32 %v9673_v56, %v410_v34  ;;  %v60_v31 = vld [vmem:[%s13236_s1 + $0x20] sm:$0xff] }
 0x107   :  { %v421_v52 = vmax.f32 %v387_v46, 0.0  ;;  %v420_v53 = vmax.f32 %v276_v48, 0.0  ;;  %636 = vadd.xlane.f32.xlu1 %v635_v28  ;;  %v639_v55 = vadd.f32 %v638_v61, %v604_v25  ;;  %v608_v57 = vmul.f32 %v9677_v60, %v413_v54  ;;  %v56_v25 = vld [vmem:[%s13236_s1] sm:$0xff] }
 0x108   :  { %v648_v43 = vadd.f32 %v611_v35, %v610_v45  ;;  %v7795_v58 = vpack.c.bf16 %v419_v49, %v415_v18  ;;  %v614_v42 = vmul.f32 %v9664_v47, %v419_v49  ;;  %v422_v0 = vmax.f32 %v389_v40, 0.0  ;;  %v9827_v45 = vld [vmem:[%s13236_s1 + $0x38] sm:$0xff] }
 0x109   :  { %v7811_v2 = vpack.c.bf16 %v421_v52, %v417_v26  ;;  %v7793_v59 = vpack.c.bf16 %v420_v53, %v416_v27  ;;  %v615_v6 = vmul.f32 %v9668_v51, %v420_v53  ;;  %v640_v63 = vadd.f32 %v639_v55, %v605_v50  ;;  %v58_v27 = vld [vmem:[%s13236_s1 + $0x10] sm:$0xff] }
 0x10a   :  { %v7809_v10 = vpack.c.bf16 %v422_v0, %v418_v30  ;;  %v609_v44 = vmul.f32 %v9673_v56, %v414_v1  ;;  %v644_v34 = vadd.f32 %v643_v17, %v608_v57  ;;  %v612_v13 = vmul.f32 %v9677_v60, %v417_v26  ;;  %v57_v26 = vld [vmem:[%s13236_s1 + $0x8] sm:$0xff] }
 0x10b   :  { %v653_v4 = vadd.f32 %v615_v6, %v614_v42  ;;  %7794 = vmatprep.subr.bf16.mxu0 %v7793_v59  ;;  %641 = vadd.xlane.f32.xlu0 %v640_v63  ;;  %v613_v54 = vmul.f32 %v9673_v56, %v418_v30  ;;  %v616_v61 = vmul.f32 %v9677_v60, %v421_v52  ;;  %v9424_v18 = vmov 0   ;;  %v59_v30 = vld [vmem:[%s13236_s1 + $0x18] sm:$0xff] }
 0x10c   :  { %7810 = vmatprep.subr.bf16.mxu1 %v7809_v10  ;;  %7796 = vmatpush1.bf16.xpose.msra.mxu0 %v7795_v58  ;;  %v645_v47 = vadd.f32 %v644_v34, %v609_v44  ;;  %v649_v7 = vadd.f32 %v648_v43, %v612_v13  ;;  %v617_v51 = vmul.f32 %v9673_v56, %v422_v0  ;;  %v9831_v52 = vsub.s32 1, %v9629_v36 }
 0x10d   :  { %7812 = vmatpush1.bf16.xpose.msra.mxu1 %v7811_v2  ;;  %7814 = vmatprep.subr.bf16.mxu0 %v9693_v22  ;;  %v654_v1 = vadd.f32 %v653_v4, %v616_v61 }
 0x10e   :  { %7830 = vmatprep.subr.bf16.mxu1 %v9699_v29  ;;  %646 = vadd.xlane.f32.xlu1 %v645_v47  ;;  %v650_v14 = vadd.f32 %v649_v7, %v613_v54  ;;  %13310 = vst [vmem:[#allocation5_spill] sm:$0xff] %v9831_v52 }
 0x10f   :  { %v655_v17 = vadd.f32 %v654_v1, %v617_v51  ;;  %8636 = vset.pattern.permute.xlu1 %v9424_v18  ;;  %8635 = vset.pattern.permute.xlu0 %v9424_v18 }
 0x110   :  { %651 = vadd.xlane.f32.xlu0 %v650_v14 }
 0x112   :  { %656 = vadd.xlane.f32.xlu1 %v655_v17 }
 0x113   :  { %488 = vmatmul.mubr.f32.vlgmr.msra.gmra.mrb[16].mxu0 %v9637_v38 }
 0x114   :  { %558 = vmatmul.mubr.f32.vlgmr.msra.gmra.mrb[16].mxu1 %v9642_v39  ;;  %7816 = vmatpush1.bf16.msra.mxu0 %v9687_v15  ;;  %v9796_v39 = vsub.s32 4, %v9629_v36 }
 0x115   :  { %7832 = vmatpush1.bf16.msra.mxu1 %v9691_v21  ;;  %7818 = vmatprep.subr.bf16.mxu0 %v9721_v12 }
 0x116   :  { %7834 = vmatprep.subr.bf16.mxu1 %v9729_v20  ;;  %931 = vmatprep.mubr.f32.mxu0 %v13255_v3  ;;  %13309 = vst [vmem:[#allocation4_spill] sm:$0xff] %v9796_v39  ;;  %v661_v56 = vrot.slane %v9637_v38, %v9796_v39 }
 0x117   :  { %1044 = vmatprep.mubr.f32.mxu1 %v13255_v3 }
 0x118   :  { %7820 = vmatpush1.bf16.msra.mxu0 %v9715_v5 }
 0x119   :  { %7836 = vmatpush1.bf16.msra.mxu1 %v9719_v11  ;;  %7822 = vmatprep.subr.bf16.mxu0 %v9749_v9 }
 0x11a   :  { %7838 = vmatprep.subr.bf16.mxu1 %v9756_v16 }
 0x11c   :  { %7824 = vmatpush1.bf16.msra.mxu0 %v9744_v62 }
 0x11d   :  { %7840 = vmatpush1.bf16.msra.mxu1 %v9747_v8  ;;  %7826 = vmatprep.subr.bf16.mxu0 %v7793_v59 }
 0x11e   :  { %7842 = vmatprep.subr.bf16.mxu1 %v7809_v10 }
 0x120   :  { %7828 = vmatpush1.bf16.msra.mxu0 %v7795_v58 }
 0x121   :  { %7844 = vmatpush1.bf16.msra.mxu1 %v7811_v2 }
 0x126   :  { %565 = vperm.xlu0 %8635, %v9637_v38  }
 0x184   :  { %v622_v60 = vpop.xlane.xlu0 %621 }
 0x185   :  { %v662_v15 = vadd.f32 %v661_v56, %v622_v60 }
 0x187   :  { %684 = vperm.xlu1 %8636, %v662_v15  }
 0x18a   :  { %v627_v21 = vpop.xlane.xlu0 %626 }
 0x18b   :  { %v663_v22 = vadd.f32 %v661_v56, %v627_v21 }
 0x18d   :  { %689 = vperm.xlu0 %8635, %v663_v22  }
 0x18e   :  { %v632_v29 = vpop.xlane.xlu1 %631 }
 0x18f   :  { %v664_v5 = vadd.f32 %v661_v56, %v632_v29 }
 0x191   :  { %694 = vperm.xlu0 %8635, %v664_v5  }
 0x194   :  { %v637_v11 = vpop.xlane.xlu1 %636 }
 0x195   :  { %v665_v12 = vadd.f32 %v661_v56, %v637_v11 }
 0x197   :  { %699 = vperm.xlu0 %8635, %v665_v12  }
 0x198   :  { %v642_v20 = vpop.xlane.xlu0 %641 }
 0x199   :  { %v666_v62 = vadd.f32 %v661_v56, %v642_v20 }
 0x19b   :  { %704 = vperm.xlu0 %8635, %v666_v62   ;;  %v647_v8 = vpop.xlane.xlu1 %646 }
 0x19c   :  { %v667_v9 = vadd.f32 %v661_v56, %v647_v8 }
 0x19d   :  { %v652_v16 = vpop.xlane.xlu0 %651 }
 0x19e   :  { %v668_v38 = vadd.f32 %v661_v56, %v652_v16 }
 0x19f   :  { %709 = vperm.xlu0 %8635, %v667_v9   ;;  %v657_v19 = vpop.xlane.xlu1 %656 }
 0x1a0   :  { %v669_v24 = vadd.f32 %v661_v56, %v657_v19 }
 0x1a3   :  { %714 = vperm.xlu0 %8635, %v668_v38  }
 0x1a5   :  { %v566_v49 = vpop.permute.xlu0 %565 }
 0x1a6   :  { %v567_v40 = vrot.slane %v566_v49, 2 }
 0x1a7   :  { %719 = vperm.xlu0 %8635, %v669_v24  }
 0x1b0   :  { %64 = vxpose.xlu1.b32.start [1/8] (short) (narrow) %v56_v25, 64 }
 0x1b4   :  { %65 = vxpose.xlu1.b32.cont [2/8] (short) (narrow) %v57_v26, 64 }
 0x1b8   :  { %66 = vxpose.xlu1.b32.cont [3/8] (short) (narrow) %v58_v27, 64 }
 0x1bc   :  { %67 = vxpose.xlu1.b32.cont [4/8] (short) (narrow) %v59_v30, 64 }
 0x1c0   :  { %68 = vxpose.xlu1.b32.cont [5/8] (short) (narrow) %v60_v31, 64 }
 0x1c4   :  { %69 = vxpose.xlu1.b32.cont [6/8] (short) (narrow) %v61_v32, 64 }
 0x1c8   :  { %70 = vxpose.xlu1.b32.cont [7/8] (short) (narrow) %v9821_v33, 64 }
 0x1cc   :  { %71 = vxpose.xlu1.b32.end [8/8] (short) (narrow) %v9827_v45, 64 }
 0x1e6   :  { %v489_v46 = vpop.f32.mrb[16].mxu0 }
 0x1e7   :  { %v559_v48 = vpop.f32.mrb[16].mxu1  ;;  %v491_v23 = vpop.f32.mrb[17].mxu0 }
 0x1e8   :  { %v560_v28 = vadd.f32 %v559_v48, %v489_v46  ;;  %v561_v35 = vpop.f32.mrb[17].mxu1 }
 0x1ea   :  { %v569_v50 = vadd.f32 %v567_v40, %v560_v28 }
 0x1ec   :  { %v673_v55 = vrot.slane %v569_v50, %v9831_v52 }
 0x1ee   :  { %v674_v58 = vmul.f32 %v673_v55, %v56_v25  ;;  %v675_v10 = vmul.f32 %v673_v55, %v57_v26  ;;  %v676_v4 = vmul.f32 %v673_v55, %v58_v27  ;;  %v677_v1 = vmul.f32 %v673_v55, %v59_v30 }
 0x1ef   :  { %v678_v21 = vmul.f32 %v673_v55, %v60_v31  ;;  %v679_v62 = vmul.f32 %v673_v55, %v61_v32  ;;  %v680_v26 = vmul.f32 %v673_v55, %v9821_v33  ;;  %v681_v28 = vmul.f32 %v673_v55, %v9827_v45 }
 0x206   :  { %v685_v57 = vpop.permute.xlu1 %684 }
 0x20c   :  { %v690_v53 = vpop.permute.xlu0 %689 }
 0x210   :  { %v695_v43 = vpop.permute.xlu0 %694 }
 0x216   :  { %v700_v59 = vpop.permute.xlu0 %699 }
 0x21a   :  { %v705_v61 = vpop.permute.xlu0 %704 }
 0x21e   :  { %v710_v18 = vpop.permute.xlu0 %709 }
 0x222   :  { %v715_v9 = vpop.permute.xlu0 %714 }
 0x226   :  { %v720_v46 = vpop.permute.xlu0 %719 }
 0x230   :  { %v9834_v42 = vpop.trf.xlu1 }
 0x231   :  { %v722_v0 = vmul.f32 %v685_v57, %v9834_v42 }
 0x233   :  { %v730_v2 = vadd.f32 %v722_v0, %v674_v58 }
 0x234   :  { %v9837_v6 = vpop.trf.xlu1 }
 0x235   :  { %v7018_v63 = vmul.f32 -1.442695, %v730_v2  ;;  %v723_v44 = vmul.f32 %v690_v53, %v9837_v6 }
 0x237   :  { %8677 = vpow2.f32 %v7018_v63  ;;  %v731_v36 = vadd.f32 %v723_v44, %v675_v10 }
 0x238   :  { %v9840_v34 = vpop.trf.xlu1 }
 0x239   :  { %v7019_v13 = vmul.f32 -1.442695, %v731_v36  ;;  %v724_v54 = vmul.f32 %v695_v43, %v9840_v34 }
 0x23b   :  { %8679 = vpow2.f32 %v7019_v13  ;;  %v732_v47 = vadd.f32 %v724_v54, %v676_v4 }
 0x23c   :  { %v9843_v7 = vpop.trf.xlu1 }
 0x23d   :  { %v7020_v51 = vmul.f32 -1.442695, %v732_v47  ;;  %v725_v14 = vmul.f32 %v700_v59, %v9843_v7 }
 0x23f   :  { %8681 = vpow2.f32 %v7020_v51  ;;  %v733_v17 = vadd.f32 %v725_v14, %v677_v1 }
 0x240   :  { %v9846_v56 = vpop.trf.xlu1 }
 0x241   :  { %v8678_v60 = vpop.eup %8677  ;;  %v7021_v15 = vmul.f32 -1.442695, %v733_v17  ;;  %v726_v22 = vmul.f32 %v705_v61, %v9846_v56 }
 0x242   :  { %v762_v29 = vadd.f32 1.0, %v8678_v60 }
 0x243   :  { %8683 = vpow2.f32 %v7021_v15  ;;  %v734_v5 = vadd.f32 %v726_v22, %v678_v21 }
 0x244   :  { %8685 = vrcp.f32 %v762_v29  ;;  %v9849_v11 = vpop.trf.xlu1 }
 0x245   :  { %v8680_v12 = vpop.eup %8679  ;;  %v7022_v20 = vmul.f32 -1.442695, %v734_v5  ;;  %v727_v8 = vmul.f32 %v710_v18, %v9849_v11 }
 0x246   :  { %v763_v16 = vadd.f32 1.0, %v8680_v12 }
 0x247   :  { %8687 = vpow2.f32 %v7022_v20  ;;  %v735_v38 = vadd.f32 %v727_v8, %v679_v62 }
 0x248   :  { %8689 = vrcp.f32 %v763_v16  ;;  %v9852_v19 = vpop.trf.xlu1 }
 0x249   :  { %v8682_v24 = vpop.eup %8681  ;;  %v7023_v25 = vmul.f32 -1.442695, %v735_v38  ;;  %v728_v27 = vmul.f32 %v715_v9, %v9852_v19 }
 0x24a   :  { %v764_v30 = vadd.f32 1.0, %v8682_v24 }
 0x24b   :  { %8691 = vpow2.f32 %v7023_v25  ;;  %v736_v31 = vadd.f32 %v728_v27, %v680_v26  ;;  %v1094_v27 = vld [vmem:[%s13237_s6 + $0x8] sm:$0xff] }
 0x24c   :  { %8693 = vrcp.f32 %v764_v30  ;;  %v9856_v32 = vpop.trf.xlu1  ;;  %v1096_v30 = vld [vmem:[%s13237_s6 + $0x18] sm:$0xff] }
 0x24d   :  { %v8684_v48 = vpop.eup %8683  ;;  %v7024_v23 = vmul.f32 -1.442695, %v736_v31  ;;  %v729_v35 = vmul.f32 %v720_v46, %v9856_v32  ;;  %v7845_v31 = vpack.c.bf16 %v1096_v30, %v1094_v27 }
 0x24e   :  { %v8686_v49 = vpop.eup %8685  ;;  %v765_v40 = vadd.f32 1.0, %v8684_v48 }
 0x24f   :  { %8695 = vpow2.f32 %v7024_v23  ;;  %v737_v50 = vadd.f32 %v729_v35, %v681_v28  ;;  %v786_v33 = vmul.f32 1.442695, %v8686_v49  ;;  %7846 = vmatprep.subr.bf16.mxu0 %v7845_v31  ;;  %v1093_v28 = vld [vmem:[%s13237_s6] sm:$0xff]  ;;  %v1095_v35 = vld [vmem:[%s13237_s6 + $0x10] sm:$0xff]  ;;  %v1098_v49 = vld [vmem:[%s13237_s6 + $0x28] sm:$0xff] }
 0x250   :  { %8697 = vrcp.f32 %v765_v40  ;;  %v1100_v40 = vld [vmem:[%s13237_s6 + $0x38] sm:$0xff] }
 0x251   :  { %v8688_v53 = vpop.eup %8687  ;;  %v7025_v57 = vmul.f32 -1.442695, %v737_v50  ;;  %8699 = vpow2.f32 %v786_v33 }
 0x252   :  { %v8690_v43 = vpop.eup %8689  ;;  %v766_v58 = vadd.f32 1.0, %v8688_v53 }
 0x253   :  { %8701 = vpow2.f32 %v7025_v57  ;;  %v788_v0 = vmul.f32 1.442695, %v8690_v43  ;;  %v7847_v57 = vpack.c.bf16 %v1095_v35, %v1093_v28  ;;  %v7849_v43 = vpack.c.bf16 %v1100_v40, %v1098_v49  ;;  %v1120_v28 = vld [vmem:[%s13237_s6 + $0xd8] sm:$0xff] }
 0x254   :  { %8703 = vrcp.f32 %v766_v58  ;;  %v1097_v58 = vld [vmem:[%s13237_s6 + $0x20] sm:$0xff] }
 0x255   :  { %v8692_v2 = vpop.eup %8691  ;;  %8705 = vpow2.f32 %v788_v0  ;;  %v1099_v0 = vld [vmem:[%s13237_s6 + $0x30] sm:$0xff] }
 0x256   :  { %v8694_v59 = vpop.eup %8693  ;;  %v767_v45 = vadd.f32 1.0, %v8692_v2  ;;  %v1102_v2 = vld [vmem:[%s13237_s6 + $0x48] sm:$0xff] }
 0x257   :  { %v790_v55 = vmul.f32 1.442695, %v8694_v59  ;;  %v1104_v59 = vld [vmem:[%s13237_s6 + $0x58] sm:$0xff] }
 0x258   :  { %8707 = vrcp.f32 %v767_v45 }
 0x259   :  { %v8696_v63 = vpop.eup %8695  ;;  %8709 = vpow2.f32 %v790_v55 }
 0x25a   :  { %v8698_v10 = vpop.eup %8697  ;;  %v768_v44 = vadd.f32 1.0, %v8696_v63 }
 0x25b   :  { %v8700_v36 = vpop.eup %8699  ;;  %v792_v13 = vmul.f32 1.442695, %v8698_v10  ;;  %v7851_v10 = vpack.c.bf16 %v1099_v0, %v1097_v58 }
 0x25c   :  { %8711 = vrcp.f32 %v768_v44  ;;  %v803_v4 = vsel %vm802_vm1, %v8700_v36, 0.0  ;;  %v7853_v44 = vpack.c.bf16 %v1104_v59, %v1102_v2  ;;  %v1121_v59 = vld [vmem:[%s13237_s6 + $0xe0] sm:$0xff] }
 0x25d   :  { %v8702_v54 = vpop.eup %8701  ;;  %804 = vadd.xlane.f32.xlu0 %v803_v4  ;;  %8713 = vpow2.f32 %v792_v13  ;;  %v1103_v13 = vld [vmem:[%s13237_s6 + $0x50] sm:$0xff]  ;;  %v1106_v4 = vld [vmem:[%s13237_s6 + $0x68] sm:$0xff] }
 0x25e   :  { %v8704_v61 = vpop.eup %8703  ;;  %v769_v47 = vadd.f32 1.0, %v8702_v54  ;;  %v1108_v54 = vld [vmem:[%s13237_s6 + $0x78] sm:$0xff] }
 0x25f   :  { %v9861_v51 = vpop.eup %8705  ;;  %v794_v1 = vmul.f32 1.442695, %v8704_v61 }
 0x260   :  { %8715 = vrcp.f32 %v769_v47  ;;  %v806_v14 = vsel %vm802_vm1, %v9861_v51, 0.0 }
 0x261   :  { %807 = vadd.xlane.f32.xlu1 %v806_v14  ;;  %8717 = vpow2.f32 %v794_v1  ;;  %v7857_v14 = vpack.c.bf16 %v1108_v54, %v1106_v4  ;;  %v1127_v4 = vld [vmem:[%s13237_s6 + $0x110] sm:$0xff]  ;;  %v1132_v54 = vld [vmem:[%s13237_s6 + $0x138] sm:$0xff] }
 0x262   :  { %v8708_v17 = vpop.eup %8707 }
 0x263   :  { %v9865_v18 = vpop.eup %8709  ;;  %v796_v60 = vmul.f32 1.442695, %v8708_v17  ;;  %v1105_v17 = vld [vmem:[%s13237_s6 + $0x60] sm:$0xff] }
 0x264   :  { %v809_v15 = vsel %vm802_vm1, %v9865_v18, 0.0 }
 0x265   :  { %810 = vadd.xlane.f32.xlu0 %v809_v15  ;;  %8719 = vpow2.f32 %v796_v60  ;;  %v1107_v60 = vld [vmem:[%s13237_s6 + $0x70] sm:$0xff]  ;;  %v1112_v15 = vld [vmem:[%s13237_s6 + $0x98] sm:$0xff] }
 0x266   :  { %v8712_v21 = vpop.eup %8711 }
 0x267   :  { %v9869_v22 = vpop.eup %8713  ;;  %v798_v29 = vmul.f32 1.442695, %v8712_v21 }
 0x268   :  { %v812_v5 = vsel %vm802_vm1, %v9869_v22, 0.0 }
 0x269   :  { %813 = vadd.xlane.f32.xlu0 %v812_v5  ;;  %8721 = vpow2.f32 %v798_v29 }
 0x26a   :  { %v8716_v12 = vpop.eup %8715 }
 0x26b   :  { %v9873_v20 = vpop.eup %8717  ;;  %v800_v62 = vmul.f32 1.442695, %v8716_v12  ;;  %v7859_v12 = vpack.c.bf16 %v1107_v60, %v1105_v17  ;;  %v1136_v17 = vld [vmem:[%s13237_s6 + $0x158] sm:$0xff] }
 0x26c   :  { %v815_v8 = vsel %vm802_vm1, %v9873_v20, 0.0 }
 0x26d   :  { %816 = vadd.xlane.f32.xlu0 %v815_v8  ;;  %8723 = vpow2.f32 %v800_v62  ;;  %v1109_v8 = vld [vmem:[%s13237_s6 + $0x80] sm:$0xff] }
 0x26f   :  { %v9877_v9 = vpop.eup %8719 }
 0x270   :  { %v818_v16 = vsel %vm802_vm1, %v9877_v9, 0.0 }
 0x271   :  { %819 = vadd.xlane.f32.xlu0 %v818_v16  ;;  %v1111_v16 = vld [vmem:[%s13237_s6 + $0x90] sm:$0xff] }
 0x272   :  { %v7863_v31 = vpack.c.bf16 %v1111_v16, %v1109_v8  ;;  %v1137_v8 = vld [vmem:[%s13237_s6 + $0x160] sm:$0xff]  ;;  %v1139_v16 = vld [vmem:[%s13237_s6 + $0x170] sm:$0xff] }
 0x273   :  { %v9881_v38 = vpop.eup %8721 }
 0x274   :  { %v821_v24 = vsel %vm802_vm1, %v9881_v38, 0.0 }
 0x275   :  { %822 = vadd.xlane.f32.xlu0 %v821_v24  ;;  %v1116_v24 = vld [vmem:[%s13237_s6 + $0xb8] sm:$0xff] }
 0x277   :  { %v9885_v25 = vpop.eup %8723 }
 0x278   :  { %v824_v26 = vsel %vm802_vm1, %v9885_v25, 0.0 }
 0x279   :  { %825 = vadd.xlane.f32.xlu0 %v824_v26 }
 0x2ea   :  { %v805_v46 = vpop.xlane.xlu0 %804 }
 0x2eb   :  { %8725 = vrcp.f32 %v805_v46 }
 0x2ee   :  { %v808_v48 = vpop.xlane.xlu1 %807 }
 0x2ef   :  { %8727 = vrcp.f32 %v808_v48  ;;  %v1113_v48 = vld [vmem:[%s13237_s6 + $0xa0] sm:$0xff] }
 0x2f2   :  { %v811_v23 = vpop.xlane.xlu0 %810 }
 0x2f3   :  { %8729 = vrcp.f32 %v811_v23  ;;  %v1115_v23 = vld [vmem:[%s13237_s6 + $0xb0] sm:$0xff] }
 0x2f4   :  { %v7867_v40 = vpack.c.bf16 %v1115_v23, %v1113_v48  ;;  %v1148_v48 = vld [vmem:[%s13237_s6 + $0x1b8] sm:$0xff] }
 0x2f5   :  { %v8726_v50 = vpop.eup %8725 }
 0x2f6   :  { %v814_v33 = vpop.xlane.xlu0 %813  ;;  %v835_v53 = vmul.f32 %v8726_v50, %v8700_v36  ;;  %v1101_v36 = vld [vmem:[%s13237_s6 + $0x40] sm:$0xff] }
 0x2f7   :  { %8731 = vrcp.f32 %v814_v33  ;;  %v7855_v1 = vpack.c.bf16 %v1103_v13, %v1101_v36  ;;  %v1117_v33 = vld [vmem:[%s13237_s6 + $0xc0] sm:$0xff] }
 0x2f8   :  { %7026 = vmatmul.mubr.msk.f32.vlgmr.msra.gmra.mrb[18].mxu0 %vm802_vm1, %v835_v53  ;;  %7034 = vmatmul.mubr.msk.f32.vlgmr.msra.gmra.mrb[18].mxu1 %vm802_vm1, %v835_v53  ;;  %v1119_v53 = vld [vmem:[%s13237_s6 + $0xd0] sm:$0xff]  ;;  %v1125_v13 = vld [vmem:[%s13237_s6 + $0x100] sm:$0xff] }
 0x2f9   :  { %v8728_v45 = vpop.eup %8727  ;;  %937 = vmatprep.mubr.f32.mxu0 %v13255_v3  ;;  %1050 = vmatprep.mubr.f32.mxu1 %v13255_v3  ;;  %v7871_v0 = vpack.c.bf16 %v1119_v53, %v1117_v33  ;;  %v1149_v53 = vld [vmem:[%s13237_s6 + $0x1c0] sm:$0xff] }
 0x2fa   :  { %v817_v55 = vpop.xlane.xlu0 %816  ;;  %v836_v63 = vmul.f32 %v8728_v45, %v9861_v51  ;;  %7848 = vmatpush1.bf16.msra.mxu0 %v7847_v57  ;;  %v1124_v57 = vld [vmem:[%s13237_s6 + $0xf8] sm:$0xff]  ;;  %v1123_v45 = vld [vmem:[%s13237_s6 + $0xf0] sm:$0xff] }
 0x2fb   :  { %8733 = vrcp.f32 %v817_v55  ;;  %7850 = vmatprep.subr.bf16.mxu0 %v7849_v43  ;;  %v1128_v55 = vld [vmem:[%s13237_s6 + $0x118] sm:$0xff] }
 0x2fc   :  { %7027 = vmatmul.mubr.msk.f32.gmra.mrb[20].mxu0 %vm802_vm1, %v836_v63  ;;  %7035 = vmatmul.mubr.msk.f32.gmra.mrb[20].mxu1 %vm802_vm1, %v836_v63 }
 0x2fd   :  { %v8730_v61 = vpop.eup %8729  ;;  %943 = vmatprep.mubr.f32.mxu0 %v13255_v3  ;;  %1056 = vmatprep.mubr.f32.mxu1 %v13255_v3 }
 0x2fe   :  { %v820_v47 = vpop.xlane.xlu0 %819  ;;  %v837_v51 = vmul.f32 %v8730_v61, %v9865_v18  ;;  %7852 = vmatpush1.bf16.msra.mxu0 %v7851_v10  ;;  %v1110_v18 = vld [vmem:[%s13237_s6 + $0x88] sm:$0xff]  ;;  %v7879_v61 = vpack.c.bf16 %v1127_v4, %v1125_v13  ;;  %v1164_v13 = vld [vmem:[%s13237_s6 + $0x238] sm:$0xff] }
 0x2ff   :  { %8735 = vrcp.f32 %v820_v47  ;;  %7854 = vmatprep.subr.bf16.mxu0 %v7853_v44  ;;  %v7861_v62 = vpack.c.bf16 %v1112_v15, %v1110_v18  ;;  %v7875_v44 = vpack.c.bf16 %v1123_v45, %v1121_v59  ;;  %v1133_v15 = vld [vmem:[%s13237_s6 + $0x140] sm:$0xff]  ;;  %v1155_v59 = vld [vmem:[%s13237_s6 + $0x1f0] sm:$0xff] }
 0x300   :  { %7028 = vmatmul.mubr.msk.f32.gmra.mrb[22].mxu0 %vm802_vm1, %v837_v51  ;;  %7036 = vmatmul.mubr.msk.f32.gmra.mrb[22].mxu1 %vm802_vm1, %v837_v51  ;;  %v1129_v51 = vld [vmem:[%s13237_s6 + $0x120] sm:$0xff] }
 0x301   :  { %v8732_v21 = vpop.eup %8731  ;;  %949 = vmatprep.mubr.f32.mxu0 %v13255_v3  ;;  %1062 = vmatprep.mubr.f32.mxu1 %v13255_v3 }
 0x302   :  { %v823_v29 = vpop.xlane.xlu0 %822  ;;  %v838_v5 = vmul.f32 %v8732_v21, %v9869_v22  ;;  %7856 = vmatpush1.bf16.msra.mxu0 %v7855_v1  ;;  %v1114_v22 = vld [vmem:[%s13237_s6 + $0xa8] sm:$0xff]  ;;  %v1131_v1 = vld [vmem:[%s13237_s6 + $0x130] sm:$0xff] }
 0x303   :  { %8737 = vrcp.f32 %v823_v29  ;;  %7858 = vmatprep.subr.bf16.mxu0 %v7857_v14  ;;  %v7865_v46 = vpack.c.bf16 %v1116_v24, %v1114_v22  ;;  %v1134_v14 = vld [vmem:[%s13237_s6 + $0x148] sm:$0xff]  ;;  %v7883_v60 = vpack.c.bf16 %v1131_v1, %v1129_v51  ;;  %v1135_v21 = vld [vmem:[%s13237_s6 + $0x150] sm:$0xff]  ;;  %v1144_v24 = vld [vmem:[%s13237_s6 + $0x198] sm:$0xff] }
 0x304   :  { %7029 = vmatmul.mubr.msk.f32.gmra.mrb[24].mxu0 %vm802_vm1, %v838_v5  ;;  %7037 = vmatmul.mubr.msk.f32.gmra.mrb[24].mxu1 %vm802_vm1, %v838_v5  ;;  %v7885_v18 = vpack.c.bf16 %v1136_v17, %v1134_v14  ;;  %v1138_v29 = vld [vmem:[%s13237_s6 + $0x168] sm:$0xff]  ;;  %v1140_v5 = vld [vmem:[%s13237_s6 + $0x178] sm:$0xff]  ;;  %v1161_v1 = vld [vmem:[%s13237_s6 + $0x220] sm:$0xff] }
 0x305   :  { %v8734_v26 = vpop.eup %8733  ;;  %955 = vmatprep.mubr.f32.mxu0 %v13255_v3  ;;  %1068 = vmatprep.mubr.f32.mxu1 %v13255_v3  ;;  %v1142_v22 = vld [vmem:[%s13237_s6 + $0x188] sm:$0xff]  ;;  %v1163_v14 = vld [vmem:[%s13237_s6 + $0x230] sm:$0xff] }
 0x306   :  { %v826_v27 = vpop.xlane.xlu0 %825  ;;  %v839_v30 = vmul.f32 %v8734_v26, %v9873_v20  ;;  %7860 = vmatpush1.bf16.msra.mxu0 %v7859_v12  ;;  %v1118_v20 = vld [vmem:[%s13237_s6 + $0xc8] sm:$0xff]  ;;  %v7887_v12 = vpack.c.bf16 %v1135_v21, %v1133_v15  ;;  %v7891_v26 = vpack.c.bf16 %v1139_v16, %v1137_v8  ;;  %v7915_v21 = vpack.c.bf16 %v1163_v14, %v1161_v1  ;;  %v1167_v8 = vld [vmem:[%s13237_s6 + $0x250] sm:$0xff]  ;;  %v1181_v14 = vld [vmem:[%s13237_s6 + $0x2c0] sm:$0xff] }
 0x307   :  { %8739 = vrcp.f32 %v826_v27  ;;  %7862 = vmatprep.subr.bf16.mxu0 %v7861_v62  ;;  %v7869_v50 = vpack.c.bf16 %v1120_v28, %v1118_v20  ;;  %v7889_v62 = vpack.c.bf16 %v1140_v5, %v1138_v29  ;;  %v7893_v27 = vpack.c.bf16 %v1144_v24, %v1142_v22  ;;  %v1145_v28 = vld [vmem:[%s13237_s6 + $0x1a0] sm:$0xff]  ;;  %v1166_v17 = vld [vmem:[%s13237_s6 + $0x248] sm:$0xff]  ;;  %v1172_v22 = vld [vmem:[%s13237_s6 + $0x278] sm:$0xff] }
 0x308   :  { %7030 = vmatmul.mubr.msk.f32.gmra.mrb[26].mxu0 %vm802_vm1, %v839_v30  ;;  %7038 = vmatmul.mubr.msk.f32.gmra.mrb[26].mxu1 %vm802_vm1, %v839_v30  ;;  %v1141_v30 = vld [vmem:[%s13237_s6 + $0x180] sm:$0xff]  ;;  %v1170_v16 = vld [vmem:[%s13237_s6 + $0x268] sm:$0xff] }
 0x309   :  { %v8736_v35 = vpop.eup %8735  ;;  %961 = vmatprep.mubr.f32.mxu0 %v13255_v3  ;;  %1074 = vmatprep.mubr.f32.mxu1 %v13255_v3 }
 0x30a   :  { %v840_v49 = vmul.f32 %v8736_v35, %v9877_v9  ;;  %7864 = vmatpush1.bf16.msra.mxu0 %v7863_v31  ;;  %v1122_v9 = vld [vmem:[%s13237_s6 + $0xe8] sm:$0xff]  ;;  %v1143_v31 = vld [vmem:[%s13237_s6 + $0x190] sm:$0xff] }
 0x30b   :  { %7866 = vmatprep.subr.bf16.mxu0 %v7865_v46  ;;  %v7873_v2 = vpack.c.bf16 %v1124_v57, %v1122_v9  ;;  %v1146_v46 = vld [vmem:[%s13237_s6 + $0x1a8] sm:$0xff]  ;;  %v7895_v23 = vpack.c.bf16 %v1143_v31, %v1141_v30  ;;  %v1147_v35 = vld [vmem:[%s13237_s6 + $0x1b0] sm:$0xff] }
 0x30c   :  { %7031 = vmatmul.mubr.msk.f32.gmra.mrb[28].mxu0 %vm802_vm1, %v840_v49  ;;  %7039 = vmatmul.mubr.msk.f32.gmra.mrb[28].mxu1 %vm802_vm1, %v840_v49  ;;  %v7897_v20 = vpack.c.bf16 %v1148_v48, %v1146_v46  ;;  %v1150_v49 = vld [vmem:[%s13237_s6 + $0x1c8] sm:$0xff]  ;;  %v1151_v9 = vld [vmem:[%s13237_s6 + $0x1d0] sm:$0xff]  ;;  %v7921_v46 = vpack.c.bf16 %v1172_v22, %v1170_v16  ;;  %v1169_v48 = vld [vmem:[%s13237_s6 + $0x260] sm:$0xff] }
 0x30d   :  { %v8738_v43 = vpop.eup %8737  ;;  %967 = vmatprep.mubr.f32.mxu0 %v13255_v3  ;;  %1080 = vmatprep.mubr.f32.mxu1 %v13255_v3  ;;  %v1154_v57 = vld [vmem:[%s13237_s6 + $0x1e8] sm:$0xff]  ;;  %v1185_v22 = vld [vmem:[%s13237_s6 + $0x2e0] sm:$0xff] }
 0x30e   :  { %v841_v58 = vmul.f32 %v8738_v43, %v9881_v38  ;;  %7868 = vmatpush1.bf16.msra.mxu0 %v7867_v40  ;;  %v1126_v38 = vld [vmem:[%s13237_s6 + $0x108] sm:$0xff]  ;;  %v1152_v40 = vld [vmem:[%s13237_s6 + $0x1d8] sm:$0xff] }
 0x30f   :  { %7870 = vmatprep.subr.bf16.mxu0 %v7869_v50  ;;  %v7877_v36 = vpack.c.bf16 %v1128_v55, %v1126_v38  ;;  %v7899_v50 = vpack.c.bf16 %v1147_v35, %v1145_v28  ;;  %v7901_v33 = vpack.c.bf16 %v1152_v40, %v1150_v49  ;;  %v1156_v43 = vld [vmem:[%s13237_s6 + $0x1f8] sm:$0xff]  ;;  %v1158_v38 = vld [vmem:[%s13237_s6 + $0x208] sm:$0xff] }
 0x310   :  { %7032 = vmatmul.mubr.msk.f32.gmra.mrb[30].mxu0 %vm802_vm1, %v841_v58  ;;  %7040 = vmatmul.mubr.msk.f32.gmra.mrb[30].mxu1 %vm802_vm1, %v841_v58  ;;  %v7903_v58 = vpack.c.bf16 %v1151_v9, %v1149_v53  ;;  %v1160_v55 = vld [vmem:[%s13237_s6 + $0x218] sm:$0xff]  ;;  %v1173_v9 = vld [vmem:[%s13237_s6 + $0x280] sm:$0xff] }
 0x311   :  { %v8740_v63 = vpop.eup %8739  ;;  %973 = vmatprep.mubr.f32.mxu0 %v13255_v3  ;;  %1086 = vmatprep.mubr.f32.mxu1 %v13255_v3  ;;  %v1176_v28 = vld [vmem:[%s13237_s6 + $0x298] sm:$0xff] }
 0x312   :  { %v842_v10 = vmul.f32 %v8740_v63, %v9885_v25  ;;  %7872 = vmatpush1.bf16.msra.mxu0 %v7871_v0  ;;  %v1130_v25 = vld [vmem:[%s13237_s6 + $0x128] sm:$0xff]  ;;  %v7905_v0 = vpack.c.bf16 %v1156_v43, %v1154_v57  ;;  %v7909_v63 = vpack.c.bf16 %v1160_v55, %v1158_v38  ;;  %v1175_v57 = vld [vmem:[%s13237_s6 + $0x290] sm:$0xff] }
 0x313   :  { %7874 = vmatprep.subr.bf16.mxu0 %v7873_v2  ;;  %v7881_v47 = vpack.c.bf16 %v1132_v54, %v1130_v25  ;;  %v1153_v2 = vld [vmem:[%s13237_s6 + $0x1e0] sm:$0xff]  ;;  %v1178_v43 = vld [vmem:[%s13237_s6 + $0x2a8] sm:$0xff] }
 0x314   :  { %7033 = vmatmul.mubr.msk.f32.gmra.mrb[32].mxu0 %vm802_vm1, %v842_v10  ;;  %7041 = vmatmul.mubr.msk.f32.gmra.mrb[32].mxu1 %vm802_vm1, %v842_v10  ;;  %v7907_v45 = vpack.c.bf16 %v1155_v59, %v1153_v2  ;;  %v1157_v10 = vld [vmem:[%s13237_s6 + $0x200] sm:$0xff]  ;;  %v7927_v59 = vpack.c.bf16 %v1175_v57, %v1173_v9  ;;  %v1196_v9 = vld [vmem:[%s13237_s6 + $0x338] sm:$0xff] }
 0x316   :  { %7876 = vmatpush1.bf16.msra.mxu0 %v7875_v44  ;;  %v1159_v44 = vld [vmem:[%s13237_s6 + $0x210] sm:$0xff] }
 0x317   :  { %7878 = vmatprep.subr.bf16.mxu0 %v7877_v36  ;;  %v1162_v36 = vld [vmem:[%s13237_s6 + $0x228] sm:$0xff]  ;;  %v7911_v54 = vpack.c.bf16 %v1159_v44, %v1157_v10  ;;  %v1179_v10 = vld [vmem:[%s13237_s6 + $0x2b0] sm:$0xff] }
 0x318   :  { %v7913_v51 = vpack.c.bf16 %v1164_v13, %v1162_v36  ;;  %v1182_v44 = vld [vmem:[%s13237_s6 + $0x2c8] sm:$0xff]  ;;  %v1184_v36 = vld [vmem:[%s13237_s6 + $0x2d8] sm:$0xff] }
 0x319   :  { %v7933_v1 = vpack.c.bf16 %v1184_v36, %v1182_v44  ;;  %v1202_v44 = vld [vmem:[%s13237_s6 + $0x368] sm:$0xff]  ;;  %v1204_v36 = vld [vmem:[%s13237_s6 + $0x378] sm:$0xff] }
 0x31a   :  { %7880 = vmatpush1.bf16.msra.mxu0 %v7879_v61 }
 0x31b   :  { %7882 = vmatprep.subr.bf16.mxu0 %v7881_v47 }
 0x31e   :  { %7884 = vmatpush1.bf16.msra.mxu0 %v7883_v60  ;;  %v1168_v60 = vld [vmem:[%s13237_s6 + $0x258] sm:$0xff] }
 0x31f   :  { %7886 = vmatprep.subr.bf16.mxu0 %v7885_v18 }
 0x322   :  { %7888 = vmatpush1.bf16.msra.mxu0 %v7887_v12  ;;  %v7917_v12 = vpack.c.bf16 %v1168_v60, %v1166_v17  ;;  %v1183_v17 = vld [vmem:[%s13237_s6 + $0x2d0] sm:$0xff]  ;;  %v1186_v60 = vld [vmem:[%s13237_s6 + $0x2e8] sm:$0xff] }
 0x323   :  { %7890 = vmatprep.subr.bf16.mxu0 %v7889_v62  ;;  %v1165_v62 = vld [vmem:[%s13237_s6 + $0x240] sm:$0xff] }
 0x326   :  { %7892 = vmatpush1.bf16.msra.mxu0 %v7891_v26 }
 0x327   :  { %7894 = vmatprep.subr.bf16.mxu0 %v7893_v27  ;;  %v7919_v27 = vpack.c.bf16 %v1167_v8, %v1165_v62 }
 0x32a   :  { %7896 = vmatpush1.bf16.msra.mxu0 %v7895_v23  ;;  %v1171_v23 = vld [vmem:[%s13237_s6 + $0x270] sm:$0xff] }
 0x32b   :  { %7898 = vmatprep.subr.bf16.mxu0 %v7897_v20  ;;  %v1174_v20 = vld [vmem:[%s13237_s6 + $0x288] sm:$0xff]  ;;  %v7923_v40 = vpack.c.bf16 %v1171_v23, %v1169_v48 }
 0x32c   :  { %v7925_v53 = vpack.c.bf16 %v1176_v28, %v1174_v20 }
 0x32e   :  { %7900 = vmatpush1.bf16.msra.mxu0 %v7899_v50 }
 0x32f   :  { %7902 = vmatprep.subr.bf16.mxu0 %v7901_v33 }
 0x332   :  { %7904 = vmatpush1.bf16.msra.mxu0 %v7903_v58  ;;  %v1180_v58 = vld [vmem:[%s13237_s6 + $0x2b8] sm:$0xff] }
 0x333   :  { %7906 = vmatprep.subr.bf16.mxu0 %v7905_v0  ;;  %v7929_v55 = vpack.c.bf16 %v1180_v58, %v1178_v43  ;;  %v1193_v58 = vld [vmem:[%s13237_s6 + $0x320] sm:$0xff] }
 0x336   :  { %7908 = vmatpush1.bf16.msra.mxu0 %v7907_v45 }
 0x337   :  { %7910 = vmatprep.subr.bf16.mxu0 %v7909_v63  ;;  %v1177_v63 = vld [vmem:[%s13237_s6 + $0x2a0] sm:$0xff] }
 0x3cb   :  { %v933_v4 = vpop.f32.mrb[18].mxu0  ;;  %v10136_v25 = vpop.f32.mrb[18].mxu1 }
 0x3cc   :  { %v935_v61 = vpop.f32.mrb[19].mxu0  ;;  %v10138_v47 = vpop.f32.mrb[19].mxu1 }
 0x3cd   :  { %1295 = vmatprep.mubr.f32.mxu0 %v935_v61 }
 0x3ce   :  { %1296 = vmatmul.mubr.f32.vlgmr.msra.gmra.mrb[34].mxu0 %v933_v4 }
 0x3cf   :  { %7912 = vmatpush1.bf16.msra.mxu0 %v7911_v54  ;;  %v939_v18 = vpop.f32.mrb[20].mxu0  ;;  %v10152_v15 = vpop.f32.mrb[20].mxu1  ;;  %v7931_v54 = vpack.c.bf16 %v1179_v10, %v1177_v63  ;;  %v1197_v63 = vld [vmem:[%s13237_s6 + $0x340] sm:$0xff]  ;;  %v1199_v10 = vld [vmem:[%s13237_s6 + $0x350] sm:$0xff] }
 0x3d0   :  { %v941_v29 = vpop.f32.mrb[21].mxu0  ;;  %v10154_v5 = vpop.f32.mrb[21].mxu1  ;;  %7914 = vmatprep.subr.bf16.mxu0 %v7913_v51 }
 0x3d1   :  { %1301 = vmatprep.mubr.f32.mxu0 %v941_v29 }
 0x3d2   :  { %1302 = vmatmul.mubr.f32.gmra.mrb[36].mxu0 %v939_v18  ;;  %v1188_v18 = vld [vmem:[%s13237_s6 + $0x2f8] sm:$0xff] }
 0x3d3   :  { %7916 = vmatpush1.bf16.msra.mxu0 %v7915_v21  ;;  %v945_v24 = vpop.f32.mrb[22].mxu0  ;;  %v10168_v26 = vpop.f32.mrb[22].mxu1  ;;  %v7937_v16 = vpack.c.bf16 %v1188_v18, %v1186_v60 }
 0x3d4   :  { %v947_v30 = vpop.f32.mrb[23].mxu0  ;;  %v10170_v31 = vpop.f32.mrb[23].mxu1  ;;  %7918 = vmatprep.subr.bf16.mxu0 %v7917_v12  ;;  %v7935_v12 = vpack.c.bf16 %v1183_v17, %v1181_v14  ;;  %v1206_v14 = vld [vmem:[%s13237_s6 + $0x388] sm:$0xff]  ;;  %v1208_v17 = vld [vmem:[%s13237_s6 + $0x398] sm:$0xff] }
 0x3d5   :  { %1307 = vmatprep.mubr.f32.mxu0 %v947_v30  ;;  %v1192_v30 = vld [vmem:[%s13237_s6 + $0x318] sm:$0xff]  ;;  %v7957_v18 = vpack.c.bf16 %v1208_v17, %v1206_v14 }
 0x3d6   :  { %1308 = vmatmul.mubr.f32.gmra.mrb[38].mxu0 %v945_v24  ;;  %v1187_v24 = vld [vmem:[%s13237_s6 + $0x2f0] sm:$0xff] }
 0x3d7   :  { %7920 = vmatpush1.bf16.msra.mxu0 %v7919_v27  ;;  %v951_v35 = vpop.f32.mrb[24].mxu0  ;;  %v10184_v49 = vpop.f32.mrb[24].mxu1  ;;  %v1190_v27 = vld [vmem:[%s13237_s6 + $0x308] sm:$0xff]  ;;  %v7939_v23 = vpack.c.bf16 %v1187_v24, %v1185_v22 }
 0x3d8   :  { %v953_v50 = vpop.f32.mrb[25].mxu0  ;;  %v10186_v33 = vpop.f32.mrb[25].mxu1  ;;  %7922 = vmatprep.subr.bf16.mxu0 %v7921_v46 }
 0x3d9   :  { %1313 = vmatprep.mubr.f32.mxu0 %v953_v50  ;;  %v1191_v50 = vld [vmem:[%s13237_s6 + $0x310] sm:$0xff] }
 0x3da   :  { %1314 = vmatmul.mubr.f32.gmra.mrb[40].mxu0 %v951_v35  ;;  %v7941_v35 = vpack.c.bf16 %v1192_v30, %v1190_v27  ;;  %v1209_v27 = vld [vmem:[%s13237_s6 + $0x3a0] sm:$0xff]  ;;  %v1211_v30 = vld [vmem:[%s13237_s6 + $0x3b0] sm:$0xff] }
 0x3db   :  { %7924 = vmatpush1.bf16.msra.mxu0 %v7923_v40  ;;  %v957_v0 = vpop.f32.mrb[26].mxu0  ;;  %v10200_v2 = vpop.f32.mrb[26].mxu1  ;;  %v1189_v40 = vld [vmem:[%s13237_s6 + $0x300] sm:$0xff] }
 0x3dc   :  { %v959_v45 = vpop.f32.mrb[27].mxu0  ;;  %v10202_v38 = vpop.f32.mrb[27].mxu1  ;;  %7926 = vmatprep.subr.bf16.mxu0 %v7925_v53  ;;  %v1194_v53 = vld [vmem:[%s13237_s6 + $0x328] sm:$0xff]  ;;  %v7943_v57 = vpack.c.bf16 %v1191_v50, %v1189_v40  ;;  %v1213_v40 = vld [vmem:[%s13237_s6 + $0x3c0] sm:$0xff]  ;;  %v1215_v50 = vld [vmem:[%s13237_s6 + $0x3d0] sm:$0xff] }
 0x3dd   :  { %1319 = vmatprep.mubr.f32.mxu0 %v959_v45  ;;  %v7945_v43 = vpack.c.bf16 %v1196_v9, %v1194_v53  ;;  %v1200_v45 = vld [vmem:[%s13237_s6 + $0x358] sm:$0xff]  ;;  %v1218_v53 = vld [vmem:[%s13237_s6 + $0x3e8] sm:$0xff] }
 0x3de   :  { %1320 = vmatmul.mubr.f32.gmra.mrb[42].mxu0 %v957_v0  ;;  %v1195_v0 = vld [vmem:[%s13237_s6 + $0x330] sm:$0xff]  ;;  %v1220_v9 = vld [vmem:[%s13237_s6 + $0x3f8] sm:$0xff] }
 0x3df   :  { %7928 = vmatpush1.bf16.msra.mxu0 %v7927_v59  ;;  %v963_v13 = vpop.f32.mrb[28].mxu0  ;;  %v10216_v4 = vpop.f32.mrb[28].mxu1  ;;  %v1198_v59 = vld [vmem:[%s13237_s6 + $0x348] sm:$0xff] }
 0x3e0   :  { %v965_v61 = vpop.f32.mrb[29].mxu0  ;;  %v10218_v51 = vpop.f32.mrb[29].mxu1  ;;  %7930 = vmatprep.subr.bf16.mxu0 %v7929_v55  ;;  %v7949_v55 = vpack.c.bf16 %v1200_v45, %v1198_v59 }
 0x3e1   :  { %1325 = vmatprep.mubr.f32.mxu0 %v965_v61  ;;  %v1201_v61 = vld [vmem:[%s13237_s6 + $0x360] sm:$0xff] }
 0x3e2   :  { %1326 = vmatmul.mubr.f32.gmra.mrb[44].mxu0 %v963_v13  ;;  %v7951_v13 = vpack.c.bf16 %v1199_v10, %v1197_v63 }
 0x3e3   :  { %7932 = vmatpush1.bf16.msra.mxu0 %v7931_v54  ;;  %v969_v21 = vpop.f32.mrb[30].mxu0  ;;  %v10232_v29 = vpop.f32.mrb[30].mxu1  ;;  %v7953_v54 = vpack.c.bf16 %v1204_v36, %v1202_v44 }
 0x3e4   :  { %v971_v62 = vpop.f32.mrb[31].mxu0  ;;  %v10234_v8 = vpop.f32.mrb[31].mxu1  ;;  %7934 = vmatprep.subr.bf16.mxu0 %v7933_v1  ;;  %v1203_v1 = vld [vmem:[%s13237_s6 + $0x370] sm:$0xff] }
 0x3e5   :  { %1331 = vmatprep.mubr.f32.mxu0 %v971_v62  ;;  %v7955_v60 = vpack.c.bf16 %v1203_v1, %v1201_v61  ;;  %v1210_v62 = vld [vmem:[%s13237_s6 + $0x3a8] sm:$0xff] }
 0x3e6   :  { %1332 = vmatmul.mubr.f32.gmra.mrb[46].mxu0 %v969_v21  ;;  %v1205_v21 = vld [vmem:[%s13237_s6 + $0x380] sm:$0xff] }
 0x3e7   :  { %7936 = vmatpush1.bf16.msra.mxu0 %v7935_v12  ;;  %v975_v46 = vpop.f32.mrb[32].mxu0  ;;  %v10248_v48 = vpop.f32.mrb[32].mxu1  ;;  %v1207_v12 = vld [vmem:[%s13237_s6 + $0x390] sm:$0xff] }
 0x3e8   :  { %v977_v20 = vpop.f32.mrb[33].mxu0  ;;  %v10250_v28 = vpop.f32.mrb[33].mxu1  ;;  %7938 = vmatprep.subr.bf16.mxu0 %v7937_v16  ;;  %v1212_v16 = vld [vmem:[%s13237_s6 + $0x3b8] sm:$0xff]  ;;  %v7959_v22 = vpack.c.bf16 %v1207_v12, %v1205_v21 }
 0x3e9   :  { %1337 = vmatprep.mubr.f32.mxu0 %v977_v20  ;;  %v7961_v24 = vpack.c.bf16 %v1212_v16, %v1210_v62  ;;  %v7963_v20 = vpack.c.bf16 %v1211_v30, %v1209_v27 }
 0x3ea   :  { %1338 = vmatmul.mubr.f32.gmra.mrb[48].mxu0 %v975_v46  ;;  %v1214_v46 = vld [vmem:[%s13237_s6 + $0x3c8] sm:$0xff] }
 0x3eb   :  { %7940 = vmatpush1.bf16.msra.mxu0 %v7939_v23  ;;  %1408 = vmatprep.mubr.f32.mxu0 %v10138_v47  ;;  %v7947_v47 = vpack.c.bf16 %v1195_v0, %v1193_v58  ;;  %v1216_v23 = vld [vmem:[%s13237_s6 + $0x3d8] sm:$0xff]  ;;  %v1217_v58 = vld [vmem:[%s13237_s6 + $0x3e0] sm:$0xff]  ;;  %v1219_v0 = vld [vmem:[%s13237_s6 + $0x3f0] sm:$0xff] }
 0x3ec   :  { %7942 = vmatprep.subr.bf16.mxu0 %v7941_v35  ;;  %v7965_v35 = vpack.c.bf16 %v1216_v23, %v1214_v46  ;;  %v7971_v59 = vpack.c.bf16 %v1219_v0, %v1217_v58 }
 0x3ef   :  { %7944 = vmatpush1.bf16.msra.mxu0 %v7943_v57  ;;  %v7967_v57 = vpack.c.bf16 %v1215_v50, %v1213_v40 }
 0x3f0   :  { %7946 = vmatprep.subr.bf16.mxu0 %v7945_v43  ;;  %v7969_v43 = vpack.c.bf16 %v1220_v9, %v1218_v53 }
 0x3f3   :  { %7948 = vmatpush1.bf16.msra.mxu0 %v7947_v47 }
 0x3f4   :  { %7950 = vmatprep.subr.bf16.mxu0 %v7949_v55 }
 0x3f7   :  { %7952 = vmatpush1.bf16.msra.mxu0 %v7951_v13 }
 0x3f8   :  { %7954 = vmatprep.subr.bf16.mxu0 %v7953_v54 }
 0x3fb   :  { %7956 = vmatpush1.bf16.msra.mxu0 %v7955_v60 }
 0x3fc   :  { %7958 = vmatprep.subr.bf16.mxu0 %v7957_v18 }
 0x3ff   :  { %7960 = vmatpush1.bf16.msra.mxu0 %v7959_v22 }
 0x400   :  { %7962 = vmatprep.subr.bf16.mxu0 %v7961_v24 }
 0x403   :  { %7964 = vmatpush1.bf16.msra.mxu0 %v7963_v20 }
 0x404   :  { %7966 = vmatprep.subr.bf16.mxu0 %v7965_v35 }
 0x407   :  { %7968 = vmatpush1.bf16.msra.mxu0 %v7967_v57 }
 0x408   :  { %7970 = vmatprep.subr.bf16.mxu0 %v7969_v43 }
 0x40b   :  { %7972 = vmatpush1.bf16.msra.mxu0 %v7971_v59 }
 0x40e   :  { %1409 = vmatmul.mubr.f32.vlgmr.msra.gmra.mrb[34].mxu0 %v10136_v25  ;;  %v1222_v25 = vld [vmem:[%s13238_s7 + $0x8] sm:$0xff] }
 0x40f   :  { %1414 = vmatprep.mubr.f32.mxu0 %v10154_v5  ;;  %1537 = vmatprep.mubr.f32.mxu1 %v1222_v25 }
 0x412   :  { %1415 = vmatmul.mubr.f32.gmra.mrb[36].mxu0 %v10152_v15  ;;  %v10364_v15 = vld [vmem:[%s13238_s7] sm:$0xff] }
 0x413   :  { %1420 = vmatprep.mubr.f32.mxu0 %v10170_v31  ;;  %v10368_v5 = vrot.slane %v10364_v15, %v9632_v37 }
 0x416   :  { %1421 = vmatmul.mubr.f32.gmra.mrb[38].mxu0 %v10168_v26  ;;  %v10371_v26 = vrot.slane %v1222_v25, %v9632_v37 }
 0x417   :  { %1426 = vmatprep.mubr.f32.mxu0 %v10186_v33  ;;  %v10376_v33 = vrot.slane %v10364_v15, %v9649_v41 }
 0x41a   :  { %1427 = vmatmul.mubr.f32.gmra.mrb[40].mxu0 %v10184_v49 }
 0x41b   :  { %1432 = vmatprep.mubr.f32.mxu0 %v10202_v38 }
 0x41e   :  { %1433 = vmatmul.mubr.f32.gmra.mrb[42].mxu0 %v10200_v2 }
 0x41f   :  { %1438 = vmatprep.mubr.f32.mxu0 %v10218_v51 }
 0x422   :  { %1439 = vmatmul.mubr.f32.gmra.mrb[44].mxu0 %v10216_v4  ;;  %v10380_v4 = vrot.slane %v1222_v25, %v9649_v41 }
 0x423   :  { %1444 = vmatprep.mubr.f32.mxu0 %v10234_v8 }
 0x426   :  { %1445 = vmatmul.mubr.f32.gmra.mrb[46].mxu0 %v10232_v29 }
 0x427   :  { %1450 = vmatprep.mubr.f32.mxu0 %v10250_v28 }
 0x42a   :  { %1451 = vmatmul.mubr.f32.gmra.mrb[48].mxu0 %v10248_v48 }
 0x4e1   :  { %v1410_v31 = vpop.f32.mrb[34].mxu0 }
 0x4e2   :  { %v8597_v49 = vadd.f32 %v1410_v31, %v10368_v5  ;;  %v1412_v2 = vpop.f32.mrb[35].mxu0 }
 0x4e3   :  { %v8598_v38 = vadd.f32 %v1412_v2, %v10371_v26 }
 0x4e4   :  { %v1457_v51 = vmax.f32 %v8597_v49, 0.0 }
 0x4e5   :  { %v1458_v29 = vmax.f32 %v8598_v38, 0.0  ;;  %v1416_v8 = vpop.f32.mrb[36].mxu0 }
 0x4e6   :  { %v1558_v48 = vmul.f32 %v10376_v33, %v1457_v51  ;;  %v8599_v28 = vadd.f32 %v1416_v8, %v10368_v5  ;;  %v1418_v45 = vpop.f32.mrb[37].mxu0 }
 0x4e7   :  { %v1559_v47 = vmul.f32 %v10380_v4, %v1458_v29  ;;  %v8600_v55 = vadd.f32 %v1418_v45, %v10371_v26 }
 0x4e8   :  { %v1459_v63 = vmax.f32 %v8599_v28, 0.0 }
 0x4e9   :  { %v1460_v10 = vmax.f32 %v8600_v55, 0.0  ;;  %v1422_v44 = vpop.f32.mrb[38].mxu0  ;;  %v1574_v36 = vadd.f32 %v1559_v47, %v1558_v48 }
 0x4ea   :  { %v10386_v13 = vpack.c.bf16 %v1459_v63, %v1457_v51  ;;  %v1560_v54 = vmul.f32 %v10376_v33, %v1459_v63  ;;  %v8601_v61 = vadd.f32 %v1422_v44, %v10368_v5  ;;  %v1424_v1 = vpop.f32.mrb[39].mxu0 }
 0x4eb   :  { %v10390_v14 = vpack.c.bf16 %v1460_v10, %v1458_v29  ;;  %v1561_v17 = vmul.f32 %v10380_v4, %v1460_v10  ;;  %v8602_v60 = vadd.f32 %v1424_v1, %v10371_v26  ;;  %1575 = vadd.xlane.f32.xlu1 %v1574_v36 }
 0x4ec   :  { %v1461_v18 = vmax.f32 %v8601_v61, 0.0 }
 0x4ed   :  { %v1462_v21 = vmax.f32 %v8602_v60, 0.0  ;;  %v1428_v12 = vpop.f32.mrb[40].mxu0  ;;  %7974 = vmatprep.subr.bf16.mxu1 %v10390_v14  ;;  %v1577_v62 = vadd.f32 %v1561_v17, %v1560_v54 }
 0x4ee   :  { %v1562_v16 = vmul.f32 %v10376_v33, %v1461_v18  ;;  %v8603_v22 = vadd.f32 %v1428_v12, %v10368_v5  ;;  %v1430_v24 = vpop.f32.mrb[41].mxu0  ;;  %7976 = vmatpush1.bf16.xpose.msra.mxu1 %v10386_v13 }
 0x4ef   :  { %v1563_v27 = vmul.f32 %v10380_v4, %v1462_v21  ;;  %v8604_v30 = vadd.f32 %v1430_v24, %v10371_v26  ;;  %1578 = vadd.xlane.f32.xlu0 %v1577_v62 }
 0x4f0   :  { %v1463_v46 = vmax.f32 %v8603_v22, 0.0 }
 0x4f1   :  { %v1464_v23 = vmax.f32 %v8604_v30, 0.0  ;;  %v1434_v20 = vpop.f32.mrb[42].mxu0  ;;  %v1580_v35 = vadd.f32 %v1563_v27, %v1562_v16 }
 0x4f2   :  { %v7979_v40 = vpack.c.bf16 %v1463_v46, %v1461_v18  ;;  %v1564_v50 = vmul.f32 %v10376_v33, %v1463_v46  ;;  %v8605_v53 = vadd.f32 %v1434_v20, %v10368_v5  ;;  %v1436_v9 = vpop.f32.mrb[43].mxu0 }
 0x4f3   :  { %v7977_v57 = vpack.c.bf16 %v1464_v23, %v1462_v21  ;;  %v1565_v43 = vmul.f32 %v10380_v4, %v1464_v23  ;;  %v8606_v58 = vadd.f32 %v1436_v9, %v10371_v26  ;;  %1581 = vadd.xlane.f32.xlu1 %v1580_v35 }
 0x4f4   :  { %v1465_v0 = vmax.f32 %v8605_v53, 0.0 }
 0x4f5   :  { %v1466_v59 = vmax.f32 %v8606_v58, 0.0  ;;  %v1440_v25 = vpop.f32.mrb[44].mxu0  ;;  %7978 = vmatprep.subr.bf16.mxu1 %v7977_v57  ;;  %v1583_v31 = vadd.f32 %v1565_v43, %v1564_v50 }
 0x4f6   :  { %v1566_v49 = vmul.f32 %v10376_v33, %v1465_v0  ;;  %v8607_v2 = vadd.f32 %v1440_v25, %v10368_v5  ;;  %v1442_v38 = vpop.f32.mrb[45].mxu0  ;;  %7980 = vmatpush1.bf16.xpose.msra.mxu1 %v7979_v40 }
 0x4f7   :  { %v1567_v51 = vmul.f32 %v10380_v4, %v1466_v59  ;;  %v8608_v29 = vadd.f32 %v1442_v38, %v10371_v26  ;;  %1584 = vadd.xlane.f32.xlu0 %v1583_v31 }
 0x4f8   :  { %v1467_v8 = vmax.f32 %v8607_v2, 0.0 }
 0x4f9   :  { %v1468_v48 = vmax.f32 %v8608_v29, 0.0  ;;  %v1446_v28 = vpop.f32.mrb[46].mxu0  ;;  %v1586_v45 = vadd.f32 %v1567_v51, %v1566_v49 }
 0x4fa   :  { %v7983_v47 = vpack.c.bf16 %v1467_v8, %v1465_v0  ;;  %v1568_v55 = vmul.f32 %v10376_v33, %v1467_v8  ;;  %v8609_v63 = vadd.f32 %v1446_v28, %v10368_v5  ;;  %v1448_v10 = vpop.f32.mrb[47].mxu0 }
 0x4fb   :  { %v7981_v44 = vpack.c.bf16 %v1468_v48, %v1466_v59  ;;  %v1569_v36 = vmul.f32 %v10380_v4, %v1468_v48  ;;  %v8610_v54 = vadd.f32 %v1448_v10, %v10371_v26  ;;  %1587 = vadd.xlane.f32.xlu1 %v1586_v45  ;;  %v10429_v48 = vld [vmem:[%s13236_s1] sm:$0xff]  ;;  %v10436_v10 = vld [vmem:[%s13236_s1 + $0x8] sm:$0xff] }
 0x4fc   :  { %v1469_v61 = vmax.f32 %v8609_v63, 0.0 }
 0x4fd   :  { %v1470_v1 = vmax.f32 %v8610_v54, 0.0  ;;  %v1452_v17 = vpop.f32.mrb[48].mxu0  ;;  %7982 = vmatprep.subr.bf16.mxu1 %v7981_v44  ;;  %v1589_v60 = vadd.f32 %v1569_v36, %v1568_v55 }
 0x4fe   :  { %v1570_v18 = vmul.f32 %v10376_v33, %v1469_v61  ;;  %v8611_v21 = vadd.f32 %v1452_v17, %v10368_v5  ;;  %v1454_v12 = vpop.f32.mrb[49].mxu0  ;;  %7984 = vmatpush1.bf16.xpose.msra.mxu1 %v7983_v47  ;;  %v1601_v5 = vrot.slane %v10364_v15, %v9796_v39  ;;  %v10443_v17 = vld [vmem:[%s13236_s1 + $0x10] sm:$0xff] }
 0x4ff   :  { %v1571_v62 = vmul.f32 %v10380_v4, %v1470_v1  ;;  %v8612_v16 = vadd.f32 %v1454_v12, %v10371_v26  ;;  %1590 = vadd.xlane.f32.xlu0 %v1589_v60 }
 0x500   :  { %v1471_v22 = vmax.f32 %v8611_v21, 0.0 }
 0x501   :  { %v1472_v24 = vmax.f32 %v8612_v16, 0.0  ;;  %v1592_v27 = vadd.f32 %v1571_v62, %v1570_v18  ;;  %v10450_v16 = vld [vmem:[%s13236_s1 + $0x18] sm:$0xff] }
 0x502   :  { %v7987_v30 = vpack.c.bf16 %v1471_v22, %v1469_v61  ;;  %v1572_v46 = vmul.f32 %v10376_v33, %v1471_v22 }
 0x503   :  { %v7985_v23 = vpack.c.bf16 %v1472_v24, %v1470_v1  ;;  %v1573_v20 = vmul.f32 %v10380_v4, %v1472_v24  ;;  %1593 = vadd.xlane.f32.xlu1 %v1592_v27 }
 0x505   :  { %7986 = vmatprep.subr.bf16.mxu1 %v7985_v23  ;;  %v1595_v35 = vadd.f32 %v1573_v20, %v1572_v46  ;;  %v10457_v20 = vld [vmem:[%s13236_s1 + $0x20] sm:$0xff] }
 0x506   :  { %7988 = vmatpush1.bf16.xpose.msra.mxu1 %v7987_v30 }
 0x507   :  { %1596 = vadd.xlane.f32.xlu0 %v1595_v35  ;;  %7990 = vmatprep.subr.bf16.mxu1 %v10390_v14 }
 0x50d   :  { %1538 = vmatmul.mubr.f32.vlgmr.msra.gmra.mrb[34].mxu1 %v10364_v15 }
 0x50e   :  { %7992 = vmatpush1.bf16.msra.mxu1 %v10386_v13  ;;  %1870 = vmatprep.mubr.f32.mxu1 %v13255_v3 }
 0x50f   :  { %7994 = vmatprep.subr.bf16.mxu1 %v7977_v57 }
 0x512   :  { %7996 = vmatpush1.bf16.msra.mxu1 %v7979_v40 }
 0x513   :  { %7998 = vmatprep.subr.bf16.mxu1 %v7981_v44 }
 0x514   :  { %1545 = vperm.xlu1 %8636, %v10364_v15  }
 0x516   :  { %8000 = vmatpush1.bf16.msra.mxu1 %v7983_v47 }
 0x517   :  { %8002 = vmatprep.subr.bf16.mxu1 %v7985_v23 }
 0x51a   :  { %8004 = vmatpush1.bf16.msra.mxu1 %v7987_v30 }
 0x578   :  { %v1576_v26 = vpop.xlane.xlu1 %1575 }
 0x579   :  { %v1602_v33 = vadd.f32 %v1601_v5, %v1576_v26 }
 0x57b   :  { %1624 = vperm.xlu0 %8635, %v1602_v33  }
 0x57c   :  { %v1579_v4 = vpop.xlane.xlu0 %1578 }
 0x57d   :  { %v1603_v14 = vadd.f32 %v1601_v5, %v1579_v4 }
 0x57f   :  { %1629 = vperm.xlu1 %8636, %v1603_v14  }
 0x580   :  { %v1582_v13 = vpop.xlane.xlu1 %1581 }
 0x581   :  { %v1604_v50 = vadd.f32 %v1601_v5, %v1582_v13 }
 0x583   :  { %1634 = vperm.xlu1 %8636, %v1604_v50   ;;  %v10464_v50 = vld [vmem:[%s13236_s1 + $0x28] sm:$0xff] }
 0x584   :  { %v1585_v53 = vpop.xlane.xlu0 %1584 }
 0x585   :  { %v1605_v40 = vadd.f32 %v1601_v5, %v1585_v53 }
 0x587   :  { %1639 = vperm.xlu0 %8635, %v1605_v40  }
 0x588   :  { %v1588_v9 = vpop.xlane.xlu1 %1587 }
 0x589   :  { %v1606_v57 = vadd.f32 %v1601_v5, %v1588_v9 }
 0x58b   :  { %1644 = vperm.xlu1 %8636, %v1606_v57  }
 0x58c   :  { %v1591_v43 = vpop.xlane.xlu0 %1590 }
 0x58d   :  { %v1607_v58 = vadd.f32 %v1601_v5, %v1591_v43 }
 0x58f   :  { %1649 = vperm.xlu0 %8635, %v1607_v58  }
 0x590   :  { %v1594_v0 = vpop.xlane.xlu1 %1593 }
 0x591   :  { %v1608_v15 = vadd.f32 %v1601_v5, %v1594_v0 }
 0x593   :  { %1654 = vperm.xlu1 %8636, %v1608_v15   ;;  %v10471_v15 = vld [vmem:[%s13236_s1 + $0x30] sm:$0xff] }
 0x594   :  { %v1597_v59 = vpop.xlane.xlu0 %1596  ;;  %v1546_v2 = vpop.permute.xlu1 %1545 }
 0x595   :  { %v1609_v25 = vadd.f32 %v1601_v5, %v1597_v59  ;;  %v1547_v38 = vrot.slane %v1546_v2, 2 }
 0x597   :  { %1659 = vperm.xlu0 %8635, %v1609_v25  }
 0x5e0   :  { %v1539_v31 = vpop.f32.mrb[34].mxu1 }
 0x5e1   :  { %v1541_v49 = vpop.f32.mrb[35].mxu1  ;;  %v1549_v51 = vadd.f32 %v1547_v38, %v1539_v31 }
 0x5e3   :  { %v1613_v29 = vrot.slane %v1549_v51, %v9831_v52 }
 0x5e5   :  { %v1614_v28 = vmul.f32 %v10429_v48, %v1613_v29  ;;  %v1615_v44 = vmul.f32 %v10436_v10, %v1613_v29  ;;  %v1616_v60 = vmul.f32 %v10443_v17, %v1613_v29  ;;  %v1617_v22 = vmul.f32 %v10450_v16, %v1613_v29 }
 0x5e6   :  { %v1618_v35 = vmul.f32 %v10457_v20, %v1613_v29  ;;  %v1619_v53 = vmul.f32 %v10464_v50, %v1613_v29  ;;  %v1620_v59 = vmul.f32 %v10471_v15, %v1613_v29 }
 0x5fa   :  { %v1625_v8 = vpop.permute.xlu0 %1624 }
 0x5fb   :  { %v1662_v45 = vmul.f32 %v1625_v8, %v9834_v42  ;;  %v10478_v8 = vld [vmem:[%s13236_s1 + $0x38] sm:$0xff] }
 0x5fd   :  { %v1670_v47 = vadd.f32 %v1662_v45, %v1614_v28  ;;  %v1621_v28 = vmul.f32 %v10478_v8, %v1613_v29 }
 0x5fe   :  { %v1630_v55 = vpop.permute.xlu1 %1629 }
 0x5ff   :  { %v7042_v63 = vmul.f32 -1.442695, %v1670_v47  ;;  %v1663_v36 = vmul.f32 %v1630_v55, %v9837_v6 }
 0x601   :  { %8741 = vpow2.f32 %v7042_v63  ;;  %v1671_v54 = vadd.f32 %v1663_v36, %v1615_v44 }
 0x602   :  { %v1635_v61 = vpop.permute.xlu1 %1634 }
 0x603   :  { %v7043_v1 = vmul.f32 -1.442695, %v1671_v54  ;;  %v1664_v18 = vmul.f32 %v1635_v61, %v9840_v34 }
 0x605   :  { %8743 = vpow2.f32 %v7043_v1  ;;  %v1672_v21 = vadd.f32 %v1664_v18, %v1616_v60 }
 0x606   :  { %v1640_v12 = vpop.permute.xlu0 %1639 }
 0x607   :  { %v7044_v62 = vmul.f32 -1.442695, %v1672_v21  ;;  %v1665_v24 = vmul.f32 %v1640_v12, %v9843_v7 }
 0x609   :  { %8745 = vpow2.f32 %v7044_v62  ;;  %v1673_v27 = vadd.f32 %v1665_v24, %v1617_v22 }
 0x60a   :  { %v1645_v30 = vpop.permute.xlu1 %1644 }
 0x60b   :  { %v8742_v46 = vpop.eup %8741  ;;  %v7045_v23 = vmul.f32 -1.442695, %v1673_v27  ;;  %v1666_v5 = vmul.f32 %v1645_v30, %v9846_v56 }
 0x60c   :  { %v1702_v26 = vadd.f32 1.0, %v8742_v46 }
 0x60d   :  { %8747 = vpow2.f32 %v7045_v23  ;;  %v1674_v33 = vadd.f32 %v1666_v5, %v1618_v35 }
 0x60e   :  { %8749 = vrcp.f32 %v1702_v26  ;;  %v1650_v4 = vpop.permute.xlu0 %1649 }
 0x60f   :  { %v8744_v14 = vpop.eup %8743  ;;  %v7046_v13 = vmul.f32 -1.442695, %v1674_v33  ;;  %v1667_v40 = vmul.f32 %v1650_v4, %v9849_v11 }
 0x610   :  { %v1703_v9 = vadd.f32 1.0, %v8744_v14 }
 0x611   :  { %8751 = vpow2.f32 %v7046_v13  ;;  %v1675_v57 = vadd.f32 %v1667_v40, %v1619_v53 }
 0x612   :  { %8753 = vrcp.f32 %v1703_v9  ;;  %v1655_v43 = vpop.permute.xlu1 %1654 }
 0x613   :  { %v8746_v58 = vpop.eup %8745  ;;  %v7047_v0 = vmul.f32 -1.442695, %v1675_v57  ;;  %v1668_v25 = vmul.f32 %v1655_v43, %v9852_v19 }
 0x614   :  { %v1704_v31 = vadd.f32 1.0, %v8746_v58 }
 0x615   :  { %8755 = vpow2.f32 %v7047_v0  ;;  %v1676_v49 = vadd.f32 %v1668_v25, %v1620_v59 }
 0x616   :  { %8757 = vrcp.f32 %v1704_v31  ;;  %v1660_v2 = vpop.permute.xlu0 %1659 }
 0x617   :  { %v8748_v38 = vpop.eup %8747  ;;  %v7048_v51 = vmul.f32 -1.442695, %v1676_v49  ;;  %v1669_v45 = vmul.f32 %v1660_v2, %v9856_v32 }
 0x618   :  { %v8750_v47 = vpop.eup %8749  ;;  %v1705_v55 = vadd.f32 1.0, %v8748_v38 }
 0x619   :  { %v1726_v63 = vmul.f32 1.442695, %v8750_v47  ;;  %8759 = vpow2.f32 %v7048_v51  ;;  %v1677_v44 = vadd.f32 %v1669_v45, %v1621_v28  ;;  %v1935_v47 = vld [vmem:[%s13239_s8 + $0x80] sm:$0xff] }
 0x61a   :  { %8761 = vrcp.f32 %v1705_v55  ;;  %v1936_v55 = vld [vmem:[%s13239_s8 + $0x88] sm:$0xff] }
 0x61b   :  { %v8752_v36 = vpop.eup %8751  ;;  %8763 = vpow2.f32 %v1726_v63  ;;  %v7049_v54 = vmul.f32 -1.442695, %v1677_v44  ;;  %v8005_v63 = vpack.c.bf16 %v1936_v55, %v1935_v47 }
 0x61c   :  { %v8754_v61 = vpop.eup %8753  ;;  %v1706_v1 = vadd.f32 1.0, %v8752_v36 }
 0x61d   :  { %v1728_v60 = vmul.f32 1.442695, %v8754_v61  ;;  %8765 = vpow2.f32 %v7049_v54  ;;  %8006 = vmatprep.subr.bf16.mxu1 %v8005_v63  ;;  %v1919_v61 = vld [vmem:[%s13239_s8] sm:$0xff] }
 0x61e   :  { %8767 = vrcp.f32 %v1706_v1  ;;  %v1920_v1 = vld [vmem:[%s13239_s8 + $0x8] sm:$0xff] }
 0x61f   :  { %v8756_v18 = vpop.eup %8755  ;;  %8769 = vpow2.f32 %v1728_v60  ;;  %v1937_v60 = vld [vmem:[%s13239_s8 + $0x90] sm:$0xff] }
 0x620   :  { %v8758_v21 = vpop.eup %8757  ;;  %v1707_v29 = vadd.f32 1.0, %v8756_v18  ;;  %v1938_v18 = vld [vmem:[%s13239_s8 + $0x98] sm:$0xff] }
 0x621   :  { %v1730_v12 = vmul.f32 1.442695, %v8758_v21 }
 0x622   :  { %8771 = vrcp.f32 %v1707_v29  ;;  %v8007_v29 = vpack.c.bf16 %v1920_v1, %v1919_v61  ;;  %v1945_v61 = vld [vmem:[%s13239_s8 + $0xd0] sm:$0xff]  ;;  %v1946_v1 = vld [vmem:[%s13239_s8 + $0xd8] sm:$0xff] }
 0x623   :  { %v8760_v62 = vpop.eup %8759  ;;  %8773 = vpow2.f32 %v1730_v12 }
 0x624   :  { %v8762_v22 = vpop.eup %8761  ;;  %v1708_v24 = vadd.f32 1.0, %v8760_v62 }
 0x625   :  { %v8764_v27 = vpop.eup %8763  ;;  %v1732_v30 = vmul.f32 1.442695, %v8762_v22  ;;  %v8009_v22 = vpack.c.bf16 %v1938_v18, %v1937_v60 }
 0x626   :  { %8775 = vrcp.f32 %v1708_v24  ;;  %v1742_v46 = vsel %vm802_vm1, %v8764_v27, 0.0  ;;  %v1921_v24 = vld [vmem:[%s13239_s8 + $0x10] sm:$0xff] }
 0x627   :  { %v8766_v23 = vpop.eup %8765  ;;  %8777 = vpow2.f32 %v1732_v30  ;;  %1743 = vadd.xlane.f32.xlu1 %v1742_v46  ;;  %v1922_v30 = vld [vmem:[%s13239_s8 + $0x18] sm:$0xff]  ;;  %v1939_v46 = vld [vmem:[%s13239_s8 + $0xa0] sm:$0xff] }
 0x628   :  { %v8768_v35 = vpop.eup %8767  ;;  %v1709_v5 = vadd.f32 1.0, %v8766_v23  ;;  %v1940_v23 = vld [vmem:[%s13239_s8 + $0xa8] sm:$0xff] }
 0x629   :  { %v10483_v26 = vpop.eup %8769  ;;  %v1734_v33 = vmul.f32 1.442695, %v8768_v35  ;;  %v8011_v35 = vpack.c.bf16 %v1922_v30, %v1921_v24  ;;  %v1948_v24 = vld [vmem:[%s13239_s8 + $0xe8] sm:$0xff] }
 0x62a   :  { %8779 = vrcp.f32 %v1709_v5  ;;  %v1745_v4 = vsel %vm802_vm1, %v10483_v26, 0.0 }
 0x62b   :  { %8781 = vpow2.f32 %v1734_v33  ;;  %1746 = vadd.xlane.f32.xlu0 %v1745_v4  ;;  %v8013_v4 = vpack.c.bf16 %v1940_v23, %v1939_v46 }
 0x62c   :  { %v8772_v14 = vpop.eup %8771 }
 0x62d   :  { %v10487_v13 = vpop.eup %8773  ;;  %v1736_v53 = vmul.f32 1.442695, %v8772_v14  ;;  %v1923_v14 = vld [vmem:[%s13239_s8 + $0x20] sm:$0xff] }
 0x62e   :  { %v1748_v40 = vsel %vm802_vm1, %v10487_v13, 0.0 }
 0x62f   :  { %8783 = vpow2.f32 %v1736_v53  ;;  %1749 = vadd.xlane.f32.xlu0 %v1748_v40  ;;  %v1924_v53 = vld [vmem:[%s13239_s8 + $0x28] sm:$0xff]  ;;  %v1941_v40 = vld [vmem:[%s13239_s8 + $0xb0] sm:$0xff] }
 0x630   :  { %v8776_v9 = vpop.eup %8775 }
 0x631   :  { %v10491_v57 = vpop.eup %8777  ;;  %v1738_v43 = vmul.f32 1.442695, %v8776_v9  ;;  %v1942_v9 = vld [vmem:[%s13239_s8 + $0xb8] sm:$0xff] }
 0x632   :  { %v1751_v58 = vsel %vm802_vm1, %v10491_v57, 0.0 }
 0x633   :  { %8785 = vpow2.f32 %v1738_v43  ;;  %1752 = vadd.xlane.f32.xlu1 %v1751_v58  ;;  %v8015_v43 = vpack.c.bf16 %v1924_v53, %v1923_v14 }
 0x634   :  { %v8780_v0 = vpop.eup %8779 }
 0x635   :  { %v10495_v59 = vpop.eup %8781  ;;  %v1740_v25 = vmul.f32 1.442695, %v8780_v0 }
 0x636   :  { %v1754_v31 = vsel %vm802_vm1, %v10495_v59, 0.0 }
 0x637   :  { %8787 = vpow2.f32 %v1740_v25  ;;  %1755 = vadd.xlane.f32.xlu0 %v1754_v31  ;;  %v8017_v25 = vpack.c.bf16 %v1942_v9, %v1941_v40  ;;  %v1925_v31 = vld [vmem:[%s13239_s8 + $0x30] sm:$0xff] }
 0x639   :  { %v10499_v49 = vpop.eup %8783 }
 0x63a   :  { %v1757_v2 = vsel %vm802_vm1, %v10499_v49, 0.0 }
 0x63b   :  { %1758 = vadd.xlane.f32.xlu1 %v1757_v2  ;;  %v1926_v2 = vld [vmem:[%s13239_s8 + $0x38] sm:$0xff] }
 0x63c   :  { %v8019_v47 = vpack.c.bf16 %v1926_v2, %v1925_v31 }
 0x63d   :  { %v10503_v38 = vpop.eup %8785 }
 0x63e   :  { %v1760_v51 = vsel %vm802_vm1, %v10503_v38, 0.0 }
 0x63f   :  { %1761 = vadd.xlane.f32.xlu0 %v1760_v51  ;;  %v1943_v51 = vld [vmem:[%s13239_s8 + $0xc0] sm:$0xff] }
 0x641   :  { %v10507_v28 = vpop.eup %8787 }
 0x642   :  { %v1763_v45 = vsel %vm802_vm1, %v10507_v28, 0.0 }
 0x643   :  { %1764 = vadd.xlane.f32.xlu1 %v1763_v45  ;;  %v1944_v45 = vld [vmem:[%s13239_s8 + $0xc8] sm:$0xff] }
 0x6b4   :  { %v1744_v44 = vpop.xlane.xlu1 %1743 }
 0x6b5   :  { %8789 = vrcp.f32 %v1744_v44  ;;  %v8021_v44 = vpack.c.bf16 %v1944_v45, %v1943_v51 }
 0x6b8   :  { %v1747_v36 = vpop.xlane.xlu0 %1746 }
 0x6b9   :  { %8791 = vrcp.f32 %v1747_v36  ;;  %v1927_v36 = vld [vmem:[%s13239_s8 + $0x40] sm:$0xff] }
 0x6bc   :  { %v1750_v54 = vpop.xlane.xlu0 %1749 }
 0x6bd   :  { %8793 = vrcp.f32 %v1750_v54  ;;  %v1928_v54 = vld [vmem:[%s13239_s8 + $0x48] sm:$0xff] }
 0x6be   :  { %v8023_v60 = vpack.c.bf16 %v1928_v54, %v1927_v36 }
 0x6bf   :  { %v8790_v21 = vpop.eup %8789 }
 0x6c0   :  { %v1753_v12 = vpop.xlane.xlu1 %1752  ;;  %v1774_v62 = vmul.f32 %v8790_v21, %v8764_v27 }
 0x6c1   :  { %8795 = vrcp.f32 %v1753_v12  ;;  %v1929_v12 = vld [vmem:[%s13239_s8 + $0x50] sm:$0xff] }
 0x6c2   :  { %7050 = vmatmul.mubr.msk.f32.vlgmr.msra.gmra.mrb[36].mxu1 %vm802_vm1, %v1774_v62  ;;  %v1930_v62 = vld [vmem:[%s13239_s8 + $0x58] sm:$0xff] }
 0x6c3   :  { %v8792_v27 = vpop.eup %8791  ;;  %1876 = vmatprep.mubr.f32.mxu1 %v13255_v3  ;;  %8008 = vmatpush3.bf16.msra.mxu1 %v8007_v29  ;;  %v8025_v29 = vpack.c.bf16 %v1946_v1, %v1945_v61  ;;  %v8027_v30 = vpack.c.bf16 %v1930_v62, %v1929_v12  ;;  %v13253_v1 = vmov 0.0|0.0  }
 0x6c4   :  { %v1756_v5 = vpop.xlane.xlu0 %1755  ;;  %v1775_v33 = vmul.f32 %v8792_v27, %v10483_v26  ;;  %8010 = vmatprep.subr.bf16.mxu1 %v8009_v22  ;;  %v1947_v22 = vld [vmem:[%s13239_s8 + $0xe0] sm:$0xff] }
 0x6c5   :  { %8797 = vrcp.f32 %v1756_v5  ;;  %v8029_v23 = vpack.c.bf16 %v1948_v24, %v1947_v22  ;;  %v1931_v27 = vld [vmem:[%s13239_s8 + $0x60] sm:$0xff]  ;;  %v1949_v5 = vld [vmem:[%s13239_s8 + $0xf0] sm:$0xff] }
 0x6c6   :  { %7051 = vmatmul.mubr.msk.f32.gmra.mrb[38].mxu1 %vm802_vm1, %v1775_v33  ;;  %v1950_v33 = vld [vmem:[%s13239_s8 + $0xf8] sm:$0xff] }
 0x6c7   :  { %v8794_v26 = vpop.eup %8793  ;;  %1882 = vmatprep.mubr.f32.mxu1 %v13255_v3  ;;  %8012 = vmatpush3.bf16.msra.mxu1 %v8011_v35  ;;  %v1932_v35 = vld [vmem:[%s13239_s8 + $0x68] sm:$0xff]  ;;  %v8033_v53 = vpack.c.bf16 %v1950_v33, %v1949_v5 }
 0x6c8   :  { %v1759_v58 = vpop.xlane.xlu1 %1758  ;;  %v1776_v0 = vmul.f32 %v8794_v26, %v10487_v13  ;;  %8014 = vmatprep.subr.bf16.mxu1 %v8013_v4  ;;  %v8031_v4 = vpack.c.bf16 %v1932_v35, %v1931_v27  ;;  %v1933_v26 = vld [vmem:[%s13239_s8 + $0x70] sm:$0xff] }
 0x6c9   :  { %8799 = vrcp.f32 %v1759_v58 }
 0x6ca   :  { %7052 = vmatmul.mubr.msk.f32.gmra.mrb[40].mxu1 %vm802_vm1, %v1776_v0 }
 0x6cb   :  { %v8796_v13 = vpop.eup %8795  ;;  %1888 = vmatprep.mubr.f32.mxu1 %v13255_v3  ;;  %8016 = vmatpush3.bf16.msra.mxu1 %v8015_v43 }
 0x6cc   :  { %v1762_v55 = vpop.xlane.xlu0 %1761  ;;  %v1777_v63 = vmul.f32 %v8796_v13, %v10491_v57  ;;  %8018 = vmatprep.subr.bf16.mxu1 %v8017_v25 }
 0x6cd   :  { %8801 = vrcp.f32 %v1762_v55 }
 0x6ce   :  { %7053 = vmatmul.mubr.msk.f32.gmra.mrb[42].mxu1 %vm802_vm1, %v1777_v63 }
 0x6cf   :  { %v8798_v57 = vpop.eup %8797  ;;  %1894 = vmatprep.mubr.f32.mxu1 %v13255_v3  ;;  %8020 = vmatpush3.bf16.msra.mxu1 %v8019_v47 }
 0x6d0   :  { %v1765_v18 = vpop.xlane.xlu1 %1764  ;;  %v1778_v21 = vmul.f32 %v8798_v57, %v10495_v59  ;;  %8022 = vmatprep.subr.bf16.mxu1 %v8021_v44  ;;  %v10635_v57 = vld [vmem:[%s13240_s9] sm:$0xff] }
 0x6d1   :  { %8803 = vrcp.f32 %v1765_v18  ;;  %v10639_v18 = vrot.slane %v10635_v57, %v9632_v37  ;;  %v10644_v22 = vrot.slane %v10635_v57, %v9649_v41 }
 0x6d2   :  { %7054 = vmatmul.mubr.msk.f32.gmra.mrb[44].mxu1 %vm802_vm1, %v1778_v21 }
 0x6d3   :  { %v8800_v59 = vpop.eup %8799  ;;  %1900 = vmatprep.mubr.f32.mxu1 %v13255_v3  ;;  %8024 = vmatpush3.bf16.msra.mxu1 %v8023_v60 }
 0x6d4   :  { %v1779_v46 = vmul.f32 %v8800_v59, %v10499_v49  ;;  %8026 = vmatprep.subr.bf16.mxu1 %v8025_v29 }
 0x6d6   :  { %7055 = vmatmul.mubr.msk.f32.gmra.mrb[46].mxu1 %vm802_vm1, %v1779_v46 }
 0x6d7   :  { %v8802_v49 = vpop.eup %8801  ;;  %1906 = vmatprep.mubr.f32.mxu1 %v13255_v3  ;;  %8028 = vmatpush3.bf16.msra.mxu1 %v8027_v30 }
 0x6d8   :  { %v1780_v14 = vmul.f32 %v8802_v49, %v10503_v38  ;;  %8030 = vmatprep.subr.bf16.mxu1 %v8029_v23  ;;  %v1934_v38 = vld [vmem:[%s13239_s8 + $0x78] sm:$0xff] }
 0x6d9   :  { %v8035_v43 = vpack.c.bf16 %v1934_v38, %v1933_v26 }
 0x6da   :  { %7056 = vmatmul.mubr.msk.f32.gmra.mrb[48].mxu1 %vm802_vm1, %v1780_v14 }
 0x6db   :  { %v8804_v40 = vpop.eup %8803  ;;  %1912 = vmatprep.mubr.f32.mxu1 %v13255_v3  ;;  %8032 = vmatpush3.bf16.msra.mxu1 %v8031_v4  ;;  %v13311_v4 = vmov 0 }
 0x6dc   :  { %v1781_v9 = vmul.f32 %v8804_v40, %v10507_v28  ;;  %8034 = vmatprep.subr.bf16.mxu1 %v8033_v53  ;;  %v13312_v4 = vsel %vm10651_vm3, 4294967295, %v13311_v4 }
 0x6dd   :  { %13313 = vst [vmem:[#allocation6_spill] sm:$0xff] %v13312_v4 }
 0x6de   :  { %7057 = vmatmul.mubr.msk.f32.gmra.mrb[50].mxu1 %vm802_vm1, %v1781_v9 }
 0x6df   :  { %8036 = vmatpush3.bf16.msra.mxu1 %v8035_v43 }
 0x6e0   :  { %8037 = vmatprep.subr.bf16.mxu1 %v13253_v1 }
 0x795   :  { %v1872_v58 = vpop.f32.mrb[36].mxu1 }
 0x796   :  { %v1874_v0 = vpop.f32.mrb[37].mxu1 }
 0x797   :  { %2020 = vmatprep.mubr.f32.mxu1 %v1874_v0 }
 0x798   :  { %2021 = vmatmul.mubr.f32.vlgmr.msra.gmra.mrb[52].mxu1 %v1872_v58 }
 0x799   :  { %v1878_v25 = vpop.f32.mrb[38].mxu1 }
 0x79a   :  { %v1880_v31 = vpop.f32.mrb[39].mxu1 }
 0x79b   :  { %2025 = vmatprep.mubr.f32.mxu1 %v1880_v31 }
 0x79c   :  { %2026 = vmatmul.mubr.f32.gmra.mrb[54].mxu1 %v1878_v25 }
 0x79d   :  { %v1884_v28 = vpop.f32.mrb[40].mxu1 }
 0x79e   :  { %v1886_v2 = vpop.f32.mrb[41].mxu1 }
 0x79f   :  { %2030 = vmatprep.mubr.f32.mxu1 %v1886_v2 }
 0x7a0   :  { %2031 = vmatmul.mubr.f32.gmra.mrb[56].mxu1 %v1884_v28 }
 0x7a1   :  { %v1890_v51 = vpop.f32.mrb[42].mxu1 }
 0x7a2   :  { %v1892_v45 = vpop.f32.mrb[43].mxu1 }
 0x7a3   :  { %2035 = vmatprep.mubr.f32.mxu1 %v1892_v45 }
 0x7a4   :  { %2036 = vmatmul.mubr.f32.gmra.mrb[58].mxu1 %v1890_v51 }
 0x7a5   :  { %v1896_v13 = vpop.f32.mrb[44].mxu1 }
 0x7a6   :  { %v1898_v47 = vpop.f32.mrb[45].mxu1 }
 0x7a7   :  { %2040 = vmatprep.mubr.f32.mxu1 %v1898_v47 }
 0x7a8   :  { %2041 = vmatmul.mubr.f32.gmra.mrb[60].mxu1 %v1896_v13 }
 0x7a9   :  { %v1902_v55 = vpop.f32.mrb[46].mxu1 }
 0x7aa   :  { %v1904_v63 = vpop.f32.mrb[47].mxu1 }
 0x7ab   :  { %2045 = vmatprep.mubr.f32.mxu1 %v1904_v63 }
 0x7ac   :  { %2046 = vmatmul.mubr.f32.gmra.mrb[62].mxu1 %v1902_v55 }
 0x7ad   :  { %v1908_v44 = vpop.f32.mrb[48].mxu1 }
 0x7ae   :  { %v1910_v36 = vpop.f32.mrb[49].mxu1 }
 0x7af   :  { %2050 = vmatprep.mubr.f32.mxu1 %v1910_v36 }
 0x7b0   :  { %2051 = vmatmul.mubr.f32.gmra.mrb[64].mxu1 %v1908_v44 }
 0x7b1   :  { %v1914_v54 = vpop.f32.mrb[50].mxu1 }
 0x7b2   :  { %v1916_v61 = vpop.f32.mrb[51].mxu1 }
 0x7b3   :  { %2055 = vmatprep.mubr.f32.mxu1 %v1916_v61 }
 0x7b4   :  { %2056 = vmatmul.mubr.f32.gmra.mrb[66].mxu1 %v1914_v54 }
 0x7b5   :  { %7552 = vmatprep.mubr.msk.f32.mxu1 %vm9426_vm2, %v13255_v3 }
 0x86b   :  { %v7229_v60 = vpop.f32.mrb[52].mxu1 }
 0x86c   :  { %v7230_v21 = vpop.f32.mrb[53].mxu1 }
 0x86d   :  { %v7231_v29 = vadd.f32 %v7230_v21, %v7229_v60 }
 0x86f   :  { %v2023_v12 = vadd.f32 %v7231_v29, %v10639_v18  ;;  %v7232_v62 = vpop.f32.mrb[54].mxu1 }
 0x870   :  { %v7233_v24 = vpop.f32.mrb[55].mxu1 }
 0x871   :  { %v2061_v59 = vmax.f32 %v2023_v12, 0.0  ;;  %v7234_v30 = vadd.f32 %v7233_v24, %v7232_v62 }
 0x873   :  { %v2028_v46 = vadd.f32 %v7234_v30, %v10639_v18  ;;  %v7235_v23 = vpop.f32.mrb[56].mxu1  ;;  %v2176_v27 = vmul.f32 %v10644_v22, %v2061_v59 }
 0x874   :  { %v7236_v35 = vpop.f32.mrb[57].mxu1 }
 0x875   :  { %v2062_v5 = vmax.f32 %v2028_v46, 0.0  ;;  %v7237_v33 = vadd.f32 %v7236_v35, %v7235_v23  ;;  %v2184_v49 = vsel %vm802_vm1, %v2176_v27, 0.0 }
 0x876   :  { %2185 = vadd.xlane.f32.xlu0 %v2184_v49 }
 0x877   :  { %v8038_v14 = vpack.c.bf16 %v2062_v5, %v2061_v59  ;;  %v2033_v53 = vadd.f32 %v7237_v33, %v10639_v18  ;;  %v7238_v40 = vpop.f32.mrb[58].mxu1  ;;  %v2177_v9 = vmul.f32 %v10644_v22, %v2062_v5 }
 0x878   :  { %v7239_v26 = vpop.f32.mrb[59].mxu1 }
 0x879   :  { %v2063_v38 = vmax.f32 %v2033_v53, 0.0  ;;  %v7240_v43 = vadd.f32 %v7239_v26, %v7238_v40  ;;  %8040 = vmatpush3.bf16.xpose.msk.msra.mxu1 %vm10651_vm3, %v8038_v14  ;;  %v2187_v58 = vsel %vm802_vm1, %v2177_v9, 0.0 }
 0x87a   :  { %2188 = vadd.xlane.f32.xlu1 %v2187_v58  ;;  %8041 = vmatprep.subr.bf16.mxu1 %v13253_v1 }
 0x87b   :  { %v2038_v0 = vadd.f32 %v7240_v43, %v10639_v18  ;;  %v7241_v25 = vpop.f32.mrb[60].mxu1  ;;  %v2178_v31 = vmul.f32 %v10644_v22, %v2063_v38 }
 0x87c   :  { %v7242_v28 = vpop.f32.mrb[61].mxu1 }
 0x87d   :  { %v2064_v2 = vmax.f32 %v2038_v0, 0.0  ;;  %v7243_v51 = vadd.f32 %v7242_v28, %v7241_v25  ;;  %v2190_v45 = vsel %vm802_vm1, %v2178_v31, 0.0 }
 0x87e   :  { %2191 = vadd.xlane.f32.xlu0 %v2190_v45 }
 0x87f   :  { %v8042_v13 = vpack.c.bf16 %v2064_v2, %v2063_v38  ;;  %v2043_v47 = vadd.f32 %v7243_v51, %v10639_v18  ;;  %v7244_v55 = vpop.f32.mrb[62].mxu1  ;;  %v2179_v63 = vmul.f32 %v10644_v22, %v2064_v2 }
 0x880   :  { %v7245_v44 = vpop.f32.mrb[63].mxu1 }
 0x881   :  { %v2065_v36 = vmax.f32 %v2043_v47, 0.0  ;;  %v7246_v54 = vadd.f32 %v7245_v44, %v7244_v55  ;;  %8044 = vmatpush3.bf16.xpose.msk.msra.mxu1 %vm10651_vm3, %v8042_v13  ;;  %v2193_v61 = vsel %vm802_vm1, %v2179_v63, 0.0 }
 0x882   :  { %2194 = vadd.xlane.f32.xlu1 %v2193_v61  ;;  %8045 = vmatprep.subr.bf16.mxu1 %v13253_v1 }
 0x883   :  { %v2048_v60 = vadd.f32 %v7246_v54, %v10639_v18  ;;  %v7247_v21 = vpop.f32.mrb[64].mxu1  ;;  %v2180_v29 = vmul.f32 %v10644_v22, %v2065_v36  ;;  %v10694_v54 = vld [vmem:[%s13241_s11 + $0x8] sm:$0xff] }
 0x884   :  { %v7248_v12 = vpop.f32.mrb[65].mxu1  ;;  %2940 = vmatprep.mubr.f32.mxu0 %v10694_v54 }
 0x885   :  { %v2066_v62 = vmax.f32 %v2048_v60, 0.0  ;;  %v7249_v24 = vadd.f32 %v7248_v12, %v7247_v21  ;;  %v2196_v59 = vsel %vm802_vm1, %v2180_v29, 0.0 }
 0x886   :  { %2197 = vadd.xlane.f32.xlu0 %v2196_v59 }
 0x887   :  { %v8046_v30 = vpack.c.bf16 %v2066_v62, %v2065_v36  ;;  %v2053_v46 = vadd.f32 %v7249_v24, %v10639_v18  ;;  %v7250_v23 = vpop.f32.mrb[66].mxu1  ;;  %v2181_v27 = vmul.f32 %v10644_v22, %v2066_v62 }
 0x888   :  { %v7251_v35 = vpop.f32.mrb[67].mxu1 }
 0x889   :  { %v2067_v5 = vmax.f32 %v2053_v46, 0.0  ;;  %v7252_v33 = vadd.f32 %v7251_v35, %v7250_v23  ;;  %8048 = vmatpush3.bf16.xpose.msk.msra.mxu1 %vm10651_vm3, %v8046_v30  ;;  %v2199_v49 = vsel %vm802_vm1, %v2181_v27, 0.0 }
 0x88a   :  { %2200 = vadd.xlane.f32.xlu1 %v2199_v49  ;;  %8049 = vmatprep.subr.bf16.mxu1 %v13253_v1 }
 0x88b   :  { %v2058_v53 = vadd.f32 %v7252_v33, %v10639_v18  ;;  %v2182_v40 = vmul.f32 %v10644_v22, %v2067_v5  ;;  %v2211_v18 = vrot.slane %v10635_v57, %v9796_v39 }
 0x88d   :  { %v2068_v9 = vmax.f32 %v2058_v53, 0.0  ;;  %v2202_v26 = vsel %vm802_vm1, %v2182_v40, 0.0 }
 0x88e   :  { %2203 = vadd.xlane.f32.xlu0 %v2202_v26 }
 0x88f   :  { %v8050_v38 = vpack.c.bf16 %v2068_v9, %v2067_v5  ;;  %v2183_v43 = vmul.f32 %v10644_v22, %v2068_v9 }
 0x891   :  { %8052 = vmatpush3.bf16.xpose.msk.msra.mxu1 %vm10651_vm3, %v8050_v38  ;;  %v2205_v58 = vsel %vm802_vm1, %v2183_v43, 0.0 }
 0x892   :  { %2206 = vadd.xlane.f32.xlu1 %v2205_v58  ;;  %8054 = vmatprep.subr.bf16.mxu1 %v8038_v14 }
 0x898   :  { %7553 = vmatmul.mubr.msk.f32.vlgmr.msra.gmra.mrb[68].mxu1 %vm802_vm1, %v10635_v57 }
 0x899   :  { %8056 = vmatpush3.bf16.msra.mxu1 %v8038_v14 }
 0x89a   :  { %8058 = vmatprep.subr.bf16.mxu1 %v8042_v13 }
 0x89d   :  { %8060 = vmatpush3.bf16.msra.mxu1 %v8042_v13 }
 0x89e   :  { %8062 = vmatprep.subr.bf16.mxu1 %v8046_v30 }
 0x8a1   :  { %8064 = vmatpush3.bf16.msra.mxu1 %v8046_v30 }
 0x8a2   :  { %8066 = vmatprep.subr.bf16.mxu1 %v8050_v38 }
 0x8a4   :  { %2167 = vperm.xlu0 %8635, %v10635_v57  }
 0x8a5   :  { %8068 = vmatpush3.bf16.msra.mxu1 %v8050_v38 }
 0x903   :  { %v2186_v22 = vpop.xlane.xlu0 %2185 }
 0x904   :  { %v2212_v0 = vadd.f32 %v2211_v18, %v2186_v22 }
 0x906   :  { %2234 = vperm.xlu1 %8636, %v2212_v0  }
 0x907   :  { %v2189_v25 = vpop.xlane.xlu1 %2188 }
 0x908   :  { %v2213_v31 = vadd.f32 %v2211_v18, %v2189_v25 }
 0x90a   :  { %2239 = vperm.xlu1 %8636, %v2213_v31  }
 0x90b   :  { %v2192_v28 = vpop.xlane.xlu0 %2191 }
 0x90c   :  { %v2214_v2 = vadd.f32 %v2211_v18, %v2192_v28 }
 0x90e   :  { %2244 = vperm.xlu0 %8635, %v2214_v2  }
 0x90f   :  { %v2195_v14 = vpop.xlane.xlu1 %2194 }
 0x910   :  { %v2215_v51 = vadd.f32 %v2211_v18, %v2195_v14 }
 0x912   :  { %2249 = vperm.xlu1 %8636, %v2215_v51  }
 0x913   :  { %v2198_v45 = vpop.xlane.xlu0 %2197 }
 0x914   :  { %v2216_v13 = vadd.f32 %v2211_v18, %v2198_v45 }
 0x916   :  { %2254 = vperm.xlu0 %8635, %v2216_v13  }
 0x917   :  { %v2201_v47 = vpop.xlane.xlu1 %2200 }
 0x918   :  { %v2217_v55 = vadd.f32 %v2211_v18, %v2201_v47 }
 0x91a   :  { %2259 = vperm.xlu1 %8636, %v2217_v55  }
 0x91b   :  { %v2204_v63 = vpop.xlane.xlu0 %2203 }
 0x91c   :  { %v2218_v57 = vadd.f32 %v2211_v18, %v2204_v63 }
 0x91e   :  { %2264 = vperm.xlu0 %8635, %v2218_v57  }
 0x91f   :  { %v2207_v44 = vpop.xlane.xlu1 %2206 }
 0x920   :  { %v2219_v36 = vadd.f32 %v2211_v18, %v2207_v44 }
 0x922   :  { %2269 = vperm.xlu1 %8636, %v2219_v36  }
 0x923   :  { %v2168_v21 = vpop.permute.xlu0 %2167 }
 0x924   :  { %v2169_v29 = vrot.slane %v2168_v21, 2 }
 0x96b   :  { %v2162_v61 = vpop.f32.mrb[68].mxu1 }
 0x96c   :  { %v7554_v60 = vpop.f32.mrb[69].mxu1  ;;  %v2171_v12 = vadd.f32 %v2169_v29, %v2162_v61 }
 0x96e   :  { %v2223_v62 = vrot.slane %v2171_v12, %v9831_v52 }
 0x970   :  { %v2224_v59 = vmul.f32 %v10429_v48, %v2223_v62  ;;  %v2225_v35 = vmul.f32 %v10436_v10, %v2223_v62  ;;  %v2226_v40 = vmul.f32 %v10443_v17, %v2223_v62  ;;  %v2228_v22 = vmul.f32 %v10457_v20, %v2223_v62 }
 0x985   :  { %v2235_v24 = vpop.permute.xlu1 %2234 }
 0x986   :  { %v2272_v30 = vmul.f32 %v2235_v24, %v9834_v42  ;;  %v2227_v42 = vmul.f32 %v10450_v16, %v2223_v62  ;;  %v2229_v16 = vmul.f32 %v10464_v50, %v2223_v62 }
 0x988   :  { %v2280_v46 = vadd.f32 %v2272_v30, %v2224_v59 }
 0x989   :  { %v2240_v23 = vpop.permute.xlu1 %2239 }
 0x98a   :  { %v7067_v27 = vmul.f32 -1.442695, %v2280_v46  ;;  %v2273_v5 = vmul.f32 %v2240_v23, %v9837_v6 }
 0x98c   :  { %8805 = vpow2.f32 %v7067_v27  ;;  %v2281_v33 = vadd.f32 %v2273_v5, %v2225_v35 }
 0x98d   :  { %v2245_v49 = vpop.permute.xlu0 %2244 }
 0x98e   :  { %v7068_v53 = vmul.f32 -1.442695, %v2281_v33  ;;  %v2274_v9 = vmul.f32 %v2245_v49, %v9840_v34 }
 0x990   :  { %8807 = vpow2.f32 %v7068_v53  ;;  %v2282_v26 = vadd.f32 %v2274_v9, %v2226_v40 }
 0x991   :  { %v2250_v48 = vpop.permute.xlu1 %2249 }
 0x992   :  { %v7069_v38 = vmul.f32 -1.442695, %v2282_v26  ;;  %v2275_v43 = vmul.f32 %v2250_v48, %v9843_v7 }
 0x994   :  { %8809 = vpow2.f32 %v7069_v38  ;;  %v2283_v10 = vadd.f32 %v2275_v43, %v2227_v42 }
 0x995   :  { %v2255_v58 = vpop.permute.xlu0 %2254 }
 0x996   :  { %v8806_v6 = vpop.eup %8805  ;;  %v7070_v18 = vmul.f32 -1.442695, %v2283_v10  ;;  %v2276_v0 = vmul.f32 %v2255_v58, %v9846_v56  ;;  %v2230_v56 = vmul.f32 %v10471_v15, %v2223_v62 }
 0x997   :  { %v2312_v17 = vadd.f32 1.0, %v8806_v6 }
 0x998   :  { %8811 = vpow2.f32 %v7070_v18  ;;  %v2284_v34 = vadd.f32 %v2276_v0, %v2228_v22 }
 0x999   :  { %8813 = vrcp.f32 %v2312_v17  ;;  %v2260_v25 = vpop.permute.xlu1 %2259 }
 0x99a   :  { %v8808_v31 = vpop.eup %8807  ;;  %v7071_v28 = vmul.f32 -1.442695, %v2284_v34  ;;  %v2277_v7 = vmul.f32 %v2260_v25, %v9849_v11  ;;  %v2231_v11 = vmul.f32 %v10478_v8, %v2223_v62 }
 0x99b   :  { %v2313_v2 = vadd.f32 1.0, %v8808_v31 }
 0x99c   :  { %8815 = vpow2.f32 %v7071_v28  ;;  %v2285_v14 = vadd.f32 %v2277_v7, %v2229_v16 }
 0x99d   :  { %8817 = vrcp.f32 %v2313_v2  ;;  %v2265_v51 = vpop.permute.xlu0 %2264 }
 0x99e   :  { %v8810_v45 = vpop.eup %8809  ;;  %v7072_v20 = vmul.f32 -1.442695, %v2285_v14  ;;  %v2278_v13 = vmul.f32 %v2265_v51, %v9852_v19  ;;  %v10749_v14 = vld [vmem:[%s13241_s11] sm:$0xff]  ;;  %v2610_v51 = vld [vmem:[%s13242_s10 + $0x8] sm:$0xff] }
 0x99f   :  { %v2314_v47 = vadd.f32 1.0, %v8810_v45  ;;  %v2612_v45 = vld [vmem:[%s13242_s10 + $0x18] sm:$0xff] }
 0x9a0   :  { %8819 = vpow2.f32 %v7072_v20  ;;  %v2286_v55 = vadd.f32 %v2278_v13, %v2230_v56  ;;  %v8069_v20 = vpack.c.bf16 %v2612_v45, %v2610_v51  ;;  %v2521_v56 = vld [vmem:[%s13243_s3] sm:$0xff]  ;;  %v2522_v13 = vld [vmem:[%s13243_s3 + $0x8] sm:$0xff] }
 0x9a1   :  { %8821 = vrcp.f32 %v2314_v47  ;;  %v2270_v63 = vpop.permute.xlu1 %2269  ;;  %v2523_v47 = vld [vmem:[%s13243_s3 + $0x10] sm:$0xff] }
 0x9a2   :  { %v8812_v57 = vpop.eup %8811  ;;  %v7073_v50 = vmul.f32 -1.442695, %v2286_v55  ;;  %v2279_v44 = vmul.f32 %v2270_v63, %v9856_v32  ;;  %8070 = vmatprep.subr.bf16.mxu1 %v8069_v20  ;;  %v2524_v55 = vld [vmem:[%s13243_s3 + $0x18] sm:$0xff]  ;;  %v2525_v63 = vld [vmem:[%s13243_s3 + $0x20] sm:$0xff] }
 0x9a3   :  { %v8814_v36 = vpop.eup %8813  ;;  %v2315_v61 = vadd.f32 1.0, %v8812_v57  ;;  %v2526_v57 = vld [vmem:[%s13243_s3 + $0x28] sm:$0xff] }
 0x9a4   :  { %v2336_v60 = vmul.f32 1.442695, %v8814_v36  ;;  %8823 = vpow2.f32 %v7073_v50  ;;  %v2287_v21 = vadd.f32 %v2279_v44, %v2231_v11  ;;  %v2527_v50 = vld [vmem:[%s13243_s3 + $0x30] sm:$0xff]  ;;  %v2528_v11 = vld [vmem:[%s13243_s3 + $0x38] sm:$0xff] }
 0x9a5   :  { %8825 = vrcp.f32 %v2315_v61 }
 0x9a6   :  { %v8816_v15 = vpop.eup %8815  ;;  %8827 = vpow2.f32 %v2336_v60  ;;  %v7074_v19 = vmul.f32 -1.442695, %v2287_v21 }
 0x9a7   :  { %v8818_v29 = vpop.eup %8817  ;;  %v2316_v12 = vadd.f32 1.0, %v8816_v15 }
 0x9a8   :  { %v2338_v24 = vmul.f32 1.442695, %v8818_v29  ;;  %8829 = vpow2.f32 %v7074_v19  ;;  %v2609_v19 = vld [vmem:[%s13242_s10] sm:$0xff]  ;;  %v2611_v29 = vld [vmem:[%s13242_s10 + $0x10] sm:$0xff] }
 0x9a9   :  { %8831 = vrcp.f32 %v2316_v12  ;;  %v2614_v12 = vld [vmem:[%s13242_s10 + $0x28] sm:$0xff] }
 0x9aa   :  { %v8820_v59 = vpop.eup %8819  ;;  %8833 = vpow2.f32 %v2338_v24  ;;  %v2616_v24 = vld [vmem:[%s13242_s10 + $0x38] sm:$0xff] }
 0x9ab   :  { %v8822_v30 = vpop.eup %8821  ;;  %v2317_v8 = vadd.f32 1.0, %v8820_v59 }
 0x9ac   :  { %v2340_v62 = vmul.f32 1.442695, %v8822_v30  ;;  %v8071_v30 = vpack.c.bf16 %v2611_v29, %v2609_v19  ;;  %v10875_v19 = vrot.slane %v10749_v14, %v9632_v37  ;;  %v10879_v29 = vrot.slane %v10694_v54, %v9632_v37 }
 0x9ad   :  { %8835 = vrcp.f32 %v2317_v8 }
 0x9ae   :  { %v8824_v32 = vpop.eup %8823  ;;  %8837 = vpow2.f32 %v2340_v62 }
 0x9af   :  { %v8826_v46 = vpop.eup %8825  ;;  %v2318_v23 = vadd.f32 1.0, %v8824_v32  ;;  %v8073_v32 = vpack.c.bf16 %v2616_v24, %v2614_v12  ;;  %v10883_v24 = vrot.slane %v10749_v14, %v9649_v41 }
 0x9b0   :  { %v10714_v27 = vpop.eup %8827  ;;  %v2342_v35 = vmul.f32 1.442695, %v8826_v46  ;;  %v2613_v46 = vld [vmem:[%s13242_s10 + $0x20] sm:$0xff] }
 0x9b1   :  { %8839 = vrcp.f32 %v2318_v23  ;;  %v2352_v5 = vsel %vm802_vm1, %v10714_v27, 0.0  ;;  %v2615_v23 = vld [vmem:[%s13242_s10 + $0x30] sm:$0xff] }
 0x9b2   :  { %v8830_v33 = vpop.eup %8829  ;;  %8841 = vpow2.f32 %v2342_v35  ;;  %2353 = vadd.xlane.f32.xlu0 %v2352_v5  ;;  %v2620_v35 = vld [vmem:[%s13242_s10 + $0x58] sm:$0xff] }
 0x9b3   :  { %v8832_v49 = vpop.eup %8831  ;;  %v2319_v53 = vadd.f32 1.0, %v8830_v33  ;;  %v8075_v33 = vpack.c.bf16 %v2615_v23, %v2613_v46 }
 0x9b4   :  { %v10718_v40 = vpop.eup %8833  ;;  %v2344_v9 = vmul.f32 1.442695, %v8832_v49 }
 0x9b5   :  { %8843 = vrcp.f32 %v2319_v53  ;;  %v2355_v26 = vsel %vm802_vm1, %v10718_v40, 0.0 }
 0x9b6   :  { %8845 = vpow2.f32 %v2344_v9  ;;  %2356 = vadd.xlane.f32.xlu1 %v2355_v26  ;;  %v2617_v9 = vld [vmem:[%s13242_s10 + $0x40] sm:$0xff]  ;;  %v2619_v26 = vld [vmem:[%s13242_s10 + $0x50] sm:$0xff] }
 0x9b7   :  { %v8836_v48 = vpop.eup %8835 }
 0x9b8   :  { %v10722_v38 = vpop.eup %8837  ;;  %v2346_v42 = vmul.f32 1.442695, %v8836_v48  ;;  %v2622_v48 = vld [vmem:[%s13242_s10 + $0x68] sm:$0xff] }
 0x9b9   :  { %v2358_v43 = vsel %vm802_vm1, %v10722_v38, 0.0 }
 0x9ba   :  { %8847 = vpow2.f32 %v2346_v42  ;;  %2359 = vadd.xlane.f32.xlu0 %v2358_v43  ;;  %v2624_v42 = vld [vmem:[%s13242_s10 + $0x78] sm:$0xff]  ;;  %v8079_v43 = vpack.c.bf16 %v2619_v26, %v2617_v9 }
 0x9bb   :  { %v8840_v10 = vpop.eup %8839 }
 0x9bc   :  { %v10726_v58 = vpop.eup %8841  ;;  %v2348_v6 = vmul.f32 1.442695, %v8840_v10 }
 0x9bd   :  { %v2361_v18 = vsel %vm802_vm1, %v10726_v58, 0.0 }
 0x9be   :  { %8849 = vpow2.f32 %v2348_v6  ;;  %2362 = vadd.xlane.f32.xlu0 %v2361_v18  ;;  %v8081_v18 = vpack.c.bf16 %v2624_v42, %v2622_v48 }
 0x9bf   :  { %v8844_v22 = vpop.eup %8843 }
 0x9c0   :  { %v10730_v0 = vpop.eup %8845  ;;  %v2350_v17 = vmul.f32 1.442695, %v8844_v22  ;;  %v2621_v22 = vld [vmem:[%s13242_s10 + $0x60] sm:$0xff] }
 0x9c1   :  { %v2364_v34 = vsel %vm802_vm1, %v10730_v0, 0.0 }
 0x9c2   :  { %8851 = vpow2.f32 %v2350_v17  ;;  %2365 = vadd.xlane.f32.xlu1 %v2364_v34  ;;  %v2623_v17 = vld [vmem:[%s13242_s10 + $0x70] sm:$0xff] }
 0x9c4   :  { %v10734_v25 = vpop.eup %8847 }
 0x9c5   :  { %v2367_v31 = vsel %vm802_vm1, %v10734_v25, 0.0 }
 0x9c6   :  { %2368 = vadd.xlane.f32.xlu0 %v2367_v31  ;;  %v8083_v31 = vpack.c.bf16 %v2623_v17, %v2621_v22 }
 0x9c8   :  { %v10738_v28 = vpop.eup %8849 }
 0x9c9   :  { %v2370_v16 = vsel %vm802_vm1, %v10738_v28, 0.0 }
 0x9ca   :  { %2371 = vadd.xlane.f32.xlu1 %v2370_v16 }
 0x9cc   :  { %v10742_v7 = vpop.eup %8851 }
 0x9cd   :  { %v2373_v2 = vsel %vm802_vm1, %v10742_v7, 0.0 }
 0x9ce   :  { %2374 = vadd.xlane.f32.xlu0 %v2373_v2 }
 0x9e4   :  { %2948 = vperm.xlu0 %8635, %v10749_v14  }
 0x9fd   :  { %2529 = vxpose.xlu1.b32.start [1/8] (short) (narrow) %v2521_v56, 64 }
 0xa01   :  { %2530 = vxpose.xlu1.b32.cont [2/8] (short) (narrow) %v2522_v13, 64 }
 0xa05   :  { %2531 = vxpose.xlu1.b32.cont [3/8] (short) (narrow) %v2523_v47, 64 }
 0xa09   :  { %2532 = vxpose.xlu1.b32.cont [4/8] (short) (narrow) %v2524_v55, 64 }
 0xa0d   :  { %2533 = vxpose.xlu1.b32.cont [5/8] (short) (narrow) %v2525_v63, 64 }
 0xa11   :  { %2534 = vxpose.xlu1.b32.cont [6/8] (short) (narrow) %v2526_v57, 64 }
 0xa15   :  { %2535 = vxpose.xlu1.b32.cont [7/8] (short) (narrow) %v2527_v50, 64 }
 0xa19   :  { %2536 = vxpose.xlu1.b32.end [8/8] (short) (narrow) %v2528_v11, 64 }
 0xa3f   :  { %v2354_v44 = vpop.xlane.xlu0 %2353 }
 0xa40   :  { %8853 = vrcp.f32 %v2354_v44 }
 0xa43   :  { %v2357_v36 = vpop.xlane.xlu1 %2356 }
 0xa44   :  { %8855 = vrcp.f32 %v2357_v36 }
 0xa47   :  { %v2360_v61 = vpop.xlane.xlu0 %2359 }
 0xa48   :  { %8857 = vrcp.f32 %v2360_v61 }
 0xa4a   :  { %v8854_v60 = vpop.eup %8853 }
 0xa4b   :  { %v2363_v21 = vpop.xlane.xlu0 %2362  ;;  %v2384_v15 = vmul.f32 %v8854_v60, %v10714_v27  ;;  %v2618_v27 = vld [vmem:[%s13242_s10 + $0x48] sm:$0xff] }
 0xa4c   :  { %8859 = vrcp.f32 %v2363_v21 }
 0xa4d   :  { %7571 = vmatprep.mubr.msk.f32.mxu1 %vm802_vm1, %v2384_v15 }
 0xa4e   :  { %v8856_v59 = vpop.eup %8855 }
 0xa4f   :  { %v2366_v8 = vpop.xlane.xlu1 %2365  ;;  %v2385_v62 = vmul.f32 %v8856_v59, %v10718_v40  ;;  %v8077_v40 = vpack.c.bf16 %v2620_v35, %v2618_v27 }
 0xa50   :  { %8861 = vrcp.f32 %v2366_v8  ;;  %v10888_v8 = vrot.slane %v10694_v54, %v9649_v41 }
 0xa51   :  { %7572 = vmatmul.mubr.msk.f32.vlgmr.msra.gmra.mrb[70].mxu1 %vm802_vm1, %v2385_v62 }
 0xa52   :  { %v8858_v5 = vpop.eup %8857  ;;  %8072 = vmatpush1.bf16.msra.mxu1 %v8071_v30 }
 0xa53   :  { %v2369_v49 = vpop.xlane.xlu0 %2368  ;;  %v2386_v53 = vmul.f32 %v8858_v5, %v10722_v38  ;;  %8074 = vmatprep.subr.bf16.mxu1 %v8073_v32 }
 0xa54   :  { %8863 = vrcp.f32 %v2369_v49 }
 0xa55   :  { %7574 = vmatprep.mubr.msk.f32.mxu1 %vm802_vm1, %v2386_v53 }
 0xa56   :  { %v8860_v38 = vpop.eup %8859  ;;  %8076 = vmatpush1.bf16.msra.mxu1 %v8075_v33 }
 0xa57   :  { %v2372_v10 = vpop.xlane.xlu1 %2371  ;;  %v2387_v6 = vmul.f32 %v8860_v38, %v10726_v58  ;;  %8078 = vmatprep.subr.bf16.mxu1 %v8077_v40 }
 0xa58   :  { %8865 = vrcp.f32 %v2372_v10 }
 0xa59   :  { %7575 = vmatmul.mubr.msk.f32.gmra.mrb[72].mxu1 %vm802_vm1, %v2387_v6 }
 0xa5a   :  { %v8862_v34 = vpop.eup %8861  ;;  %8080 = vmatpush1.bf16.msra.mxu1 %v8079_v43 }
 0xa5b   :  { %v2375_v16 = vpop.xlane.xlu0 %2374  ;;  %v2388_v2 = vmul.f32 %v8862_v34, %v10730_v0  ;;  %8082 = vmatprep.subr.bf16.mxu1 %v8081_v18 }
 0xa5c   :  { %8867 = vrcp.f32 %v2375_v16 }
 0xa5d   :  { %7577 = vmatprep.mubr.msk.f32.mxu1 %vm802_vm1, %v2388_v2 }
 0xa5e   :  { %v8864_v58 = vpop.eup %8863  ;;  %8084 = vmatpush1.bf16.msra.mxu1 %v8083_v31 }
 0xa5f   :  { %v2389_v51 = vmul.f32 %v8864_v58, %v10734_v25 }
 0xa61   :  { %7578 = vmatmul.mubr.msk.f32.gmra.mrb[74].mxu1 %vm802_vm1, %v2389_v51 }
 0xa62   :  { %v8866_v45 = vpop.eup %8865 }
 0xa63   :  { %v2390_v20 = vmul.f32 %v8866_v45, %v10738_v28 }
 0xa65   :  { %7580 = vmatprep.mubr.msk.f32.mxu1 %vm802_vm1, %v2390_v20 }
 0xa66   :  { %v8868_v56 = vpop.eup %8867 }
 0xa67   :  { %v2391_v13 = vmul.f32 %v8868_v56, %v10742_v7 }
 0xa69   :  { %7581 = vmatmul.mubr.msk.f32.gmra.mrb[76].mxu1 %vm802_vm1, %v2391_v13 }
 0xa6a   :  { %2747 = vmatprep.mubr.f32.mxu1 %v13255_v3 }
 0xa7d   :  { %v2545_v0 = vpop.trf.xlu1 }
 0xa7e   :  { %7083 = vmatmul.mubr.msk.f32.vlgmr.msra.gmra.mrb[78].mxu1 %vm802_vm1, %v2545_v0 }
 0xa7f   :  { %2753 = vmatprep.mubr.f32.mxu1 %v13255_v3 }
 0xa81   :  { %v2546_v25 = vpop.trf.xlu1 }
 0xa82   :  { %7084 = vmatmul.mubr.msk.f32.gmra.mrb[80].mxu1 %vm802_vm1, %v2546_v25 }
 0xa83   :  { %2759 = vmatprep.mubr.f32.mxu1 %v13255_v3 }
 0xa85   :  { %v2547_v28 = vpop.trf.xlu1 }
 0xa86   :  { %7085 = vmatmul.mubr.msk.f32.gmra.mrb[82].mxu1 %vm802_vm1, %v2547_v28 }
 0xa87   :  { %2765 = vmatprep.mubr.f32.mxu1 %v13255_v3 }
 0xa89   :  { %v2548_v7 = vpop.trf.xlu1 }
 0xa8a   :  { %7086 = vmatmul.mubr.msk.f32.gmra.mrb[84].mxu1 %vm802_vm1, %v2548_v7 }
 0xa8b   :  { %2771 = vmatprep.mubr.f32.mxu1 %v13255_v3 }
 0xa8d   :  { %v2549_v47 = vpop.trf.xlu1 }
 0xa8e   :  { %7087 = vmatmul.mubr.msk.f32.gmra.mrb[86].mxu1 %vm802_vm1, %v2549_v47 }
 0xa8f   :  { %2777 = vmatprep.mubr.f32.mxu1 %v13255_v3 }
 0xa91   :  { %v2550_v55 = vpop.trf.xlu1 }
 0xa92   :  { %7088 = vmatmul.mubr.msk.f32.gmra.mrb[88].mxu1 %vm802_vm1, %v2550_v55 }
 0xa93   :  { %2783 = vmatprep.mubr.f32.mxu1 %v13255_v3 }
 0xa95   :  { %v2551_v63 = vpop.trf.xlu1 }
 0xa96   :  { %7089 = vmatmul.mubr.msk.f32.gmra.mrb[90].mxu1 %vm802_vm1, %v2551_v63 }
 0xa97   :  { %2789 = vmatprep.mubr.f32.mxu1 %v13255_v3 }
 0xa99   :  { %v2552_v57 = vpop.trf.xlu1 }
 0xa9a   :  { %7090 = vmatmul.mubr.msk.f32.gmra.mrb[92].mxu1 %vm802_vm1, %v2552_v57 }
 0xa9b   :  { %2795 = vmatprep.mubr.f32.mxu1 %v13255_v3 }
 0xb24   :  { %v7573_v50 = vpop.f32.mrb[70].mxu1 }
 0xb25   :  { %v2482_v11 = vpop.f32.mrb[71].mxu1 }
 0xb26   :  { %7091 = vmatmul.mubr.msk.f32.gmra.mrb[94].mxu1 %vm802_vm1, %v2482_v11 }
 0xb27   :  { %2801 = vmatprep.mubr.f32.mxu1 %v13255_v3 }
 0xb2a   :  { %7092 = vmatmul.mubr.msk.f32.gmra.mrb[96].mxu1 %vm802_vm1, %v7573_v50 }
 0xb2b   :  { %2807 = vmatprep.mubr.f32.mxu1 %v13255_v3 }
 0xb2c   :  { %v7576_v44 = vpop.f32.mrb[72].mxu1 }
 0xb2d   :  { %v2492_v36 = vpop.f32.mrb[73].mxu1 }
 0xb2e   :  { %7093 = vmatmul.mubr.msk.f32.gmra.mrb[98].mxu1 %vm802_vm1, %v2492_v36 }
 0xb2f   :  { %2813 = vmatprep.mubr.f32.mxu1 %v13255_v3 }
 0xb32   :  { %7094 = vmatmul.mubr.msk.f32.gmra.mrb[100].mxu1 %vm802_vm1, %v7576_v44 }
 0xb33   :  { %2819 = vmatprep.mubr.f32.mxu1 %v13255_v3 }
 0xb34   :  { %v7579_v61 = vpop.f32.mrb[74].mxu1 }
 0xb35   :  { %v2502_v60 = vpop.f32.mrb[75].mxu1 }
 0xb36   :  { %7095 = vmatmul.mubr.msk.f32.gmra.mrb[102].mxu1 %vm802_vm1, %v2502_v60 }
 0xb37   :  { %2825 = vmatprep.mubr.f32.mxu1 %v13255_v3 }
 0xb3a   :  { %7096 = vmatmul.mubr.msk.f32.gmra.mrb[104].mxu1 %vm802_vm1, %v7579_v61 }
 0xb3b   :  { %2831 = vmatprep.mubr.f32.mxu1 %v13255_v3 }
 0xb3c   :  { %v7582_v21 = vpop.f32.mrb[76].mxu1 }
 0xb3d   :  { %v2512_v15 = vpop.f32.mrb[77].mxu1 }
 0xb3e   :  { %7097 = vmatmul.mubr.msk.f32.gmra.mrb[106].mxu1 %vm802_vm1, %v2512_v15 }
 0xb3f   :  { %2837 = vmatprep.mubr.f32.mxu1 %v13255_v3 }
 0xb42   :  { %7098 = vmatmul.mubr.msk.f32.gmra.mrb[108].mxu1 %vm802_vm1, %v7582_v21 }
 0xb43   :  { %3449 = vmatprep.mubr.f32.mxu1 %v13255_v3 }
 0xb51   :  { %v2749_v12 = vpop.f32.mrb[78].mxu1 }
 0xb52   :  { %v2750_v59 = vadd.f32 %v2749_v12, %v10875_v19  ;;  %v2751_v30 = vpop.f32.mrb[79].mxu1 }
 0xb53   :  { %v2752_v62 = vadd.f32 %v2751_v30, %v10879_v29 }
 0xb54   :  { %v2844_v32 = vmax.f32 %v2750_v59, 0.0 }
 0xb55   :  { %v2845_v46 = vmax.f32 %v2752_v62, 0.0  ;;  %v2755_v23 = vpop.f32.mrb[80].mxu1 }
 0xb56   :  { %v2961_v27 = vmul.f32 %v10883_v24, %v2844_v32  ;;  %v2756_v35 = vadd.f32 %v2755_v23, %v10875_v19  ;;  %v2757_v5 = vpop.f32.mrb[81].mxu1 }
 0xb57   :  { %v2962_v33 = vmul.f32 %v10888_v8, %v2845_v46  ;;  %v2758_v49 = vadd.f32 %v2757_v5, %v10879_v29 }
 0xb58   :  { %v2846_v53 = vmax.f32 %v2756_v35, 0.0 }
 0xb59   :  { %v2847_v40 = vmax.f32 %v2758_v49, 0.0  ;;  %v2761_v9 = vpop.f32.mrb[82].mxu1  ;;  %v2993_v26 = vadd.f32 %v2962_v33, %v2961_v27 }
 0xb5a   :  { %v8087_v54 = vpack.c.bf16 %v2846_v53, %v2844_v32  ;;  %v2963_v48 = vmul.f32 %v10883_v24, %v2846_v53  ;;  %v2762_v42 = vadd.f32 %v2761_v9, %v10875_v19  ;;  %v2763_v38 = vpop.f32.mrb[83].mxu1 }
 0xb5b   :  { %v8085_v43 = vpack.c.bf16 %v2847_v40, %v2845_v46  ;;  %v2964_v10 = vmul.f32 %v10888_v8, %v2847_v40  ;;  %v2764_v6 = vadd.f32 %v2763_v38, %v10879_v29  ;;  %2994 = vadd.xlane.f32.xlu0 %v2993_v26 }
 0xb5c   :  { %v2848_v18 = vmax.f32 %v2762_v42, 0.0 }
 0xb5d   :  { %v2849_v22 = vmax.f32 %v2764_v6, 0.0  ;;  %v2767_v17 = vpop.f32.mrb[84].mxu1  ;;  %8086 = vmatprep.subr.bf16.mxu0 %v8085_v43  ;;  %8118 = vmatprep.subr.bf16.mxu1 %v8085_v43  ;;  %v2996_v34 = vadd.f32 %v2964_v10, %v2963_v48 }
 0xb5e   :  { %v2965_v31 = vmul.f32 %v10883_v24, %v2848_v18  ;;  %v2768_v16 = vadd.f32 %v2767_v17, %v10875_v19  ;;  %v2769_v2 = vpop.f32.mrb[85].mxu1  ;;  %8088 = vmatpush1.bf16.xpose.msra.mxu0 %v8087_v54  ;;  %8120 = vmatpush1.bf16.msra.mxu1 %v8087_v54 }
 0xb5f   :  { %v2966_v58 = vmul.f32 %v10888_v8, %v2849_v22  ;;  %v2770_v51 = vadd.f32 %v2769_v2, %v10879_v29  ;;  %2997 = vadd.xlane.f32.xlu0 %v2996_v34  ;;  %v10925_v2 = vrot.slane %v10749_v14, %v9796_v39 }
 0xb60   :  { %v2850_v45 = vmax.f32 %v2768_v16, 0.0  ;;  %v10921_v16 = vpop.permute.xlu0 %2948 }
 0xb61   :  { %v2851_v20 = vmax.f32 %v2770_v51, 0.0  ;;  %v2773_v56 = vpop.f32.mrb[86].mxu1  ;;  %v2999_v13 = vadd.f32 %v2966_v58, %v2965_v31 }
 0xb62   :  { %v8091_v0 = vpack.c.bf16 %v2850_v45, %v2848_v18  ;;  %v2967_v25 = vmul.f32 %v10883_v24, %v2850_v45  ;;  %v2774_v28 = vadd.f32 %v2773_v56, %v10875_v19  ;;  %v2775_v7 = vpop.f32.mrb[87].mxu1 }
 0xb63   :  { %v8089_v47 = vpack.c.bf16 %v2851_v20, %v2849_v22  ;;  %v2968_v55 = vmul.f32 %v10888_v8, %v2851_v20  ;;  %v2776_v63 = vadd.f32 %v2775_v7, %v10879_v29  ;;  %3000 = vadd.xlane.f32.xlu0 %v2999_v13 }
 0xb64   :  { %v2852_v57 = vmax.f32 %v2774_v28, 0.0 }
 0xb65   :  { %v2853_v50 = vmax.f32 %v2776_v63, 0.0  ;;  %v2779_v11 = vpop.f32.mrb[88].mxu1  ;;  %8090 = vmatprep.subr.bf16.mxu0 %v8089_v47  ;;  %8122 = vmatprep.subr.bf16.mxu1 %v8089_v47  ;;  %v3002_v44 = vadd.f32 %v2968_v55, %v2967_v25 }
 0xb66   :  { %v2969_v36 = vmul.f32 %v10883_v24, %v2852_v57  ;;  %v2780_v61 = vadd.f32 %v2779_v11, %v10875_v19  ;;  %v2781_v60 = vpop.f32.mrb[89].mxu1  ;;  %8092 = vmatpush1.bf16.xpose.msra.mxu0 %v8091_v0  ;;  %8124 = vmatpush1.bf16.msra.mxu1 %v8091_v0 }
 0xb67   :  { %v2970_v21 = vmul.f32 %v10888_v8, %v2853_v50  ;;  %v2782_v15 = vadd.f32 %v2781_v60, %v10879_v29  ;;  %3003 = vadd.xlane.f32.xlu0 %v3002_v44 }
 0xb68   :  { %v2854_v12 = vmax.f32 %v2780_v61, 0.0 }
 0xb69   :  { %v2855_v59 = vmax.f32 %v2782_v15, 0.0  ;;  %v2785_v30 = vpop.f32.mrb[90].mxu1  ;;  %v3005_v62 = vadd.f32 %v2970_v21, %v2969_v36 }
 0xb6a   :  { %v8095_v32 = vpack.c.bf16 %v2854_v12, %v2852_v57  ;;  %v2971_v46 = vmul.f32 %v10883_v24, %v2854_v12  ;;  %v2786_v23 = vadd.f32 %v2785_v30, %v10875_v19  ;;  %v2787_v27 = vpop.f32.mrb[91].mxu1 }
 0xb6b   :  { %v8093_v35 = vpack.c.bf16 %v2855_v59, %v2853_v50  ;;  %v2972_v5 = vmul.f32 %v10888_v8, %v2855_v59  ;;  %v2788_v33 = vadd.f32 %v2787_v27, %v10879_v29  ;;  %3006 = vadd.xlane.f32.xlu0 %v3005_v62 }
 0xb6c   :  { %v2856_v49 = vmax.f32 %v2786_v23, 0.0 }
 0xb6d   :  { %v2857_v53 = vmax.f32 %v2788_v33, 0.0  ;;  %v2791_v40 = vpop.f32.mrb[92].mxu1  ;;  %8094 = vmatprep.subr.bf16.mxu0 %v8093_v35  ;;  %8126 = vmatprep.subr.bf16.mxu1 %v8093_v35  ;;  %v3008_v9 = vadd.f32 %v2972_v5, %v2971_v46 }
 0xb6e   :  { %v2973_v26 = vmul.f32 %v10883_v24, %v2856_v49  ;;  %v2792_v54 = vadd.f32 %v2791_v40, %v10875_v19  ;;  %v2793_v48 = vpop.f32.mrb[93].mxu1  ;;  %8096 = vmatpush1.bf16.xpose.msra.mxu0 %v8095_v32  ;;  %8128 = vmatpush1.bf16.msra.mxu1 %v8095_v32 }
 0xb6f   :  { %v2974_v42 = vmul.f32 %v10888_v8, %v2857_v53  ;;  %v2794_v38 = vadd.f32 %v2793_v48, %v10879_v29  ;;  %3009 = vadd.xlane.f32.xlu0 %v3008_v9 }
 0xb70   :  { %v2858_v43 = vmax.f32 %v2792_v54, 0.0 }
 0xb71   :  { %v2859_v10 = vmax.f32 %v2794_v38, 0.0  ;;  %v3011_v6 = vadd.f32 %v2974_v42, %v2973_v26 }
 0xb72   :  { %v8099_v18 = vpack.c.bf16 %v2858_v43, %v2856_v49  ;;  %v2975_v22 = vmul.f32 %v10883_v24, %v2858_v43 }
 0xb73   :  { %v8097_v17 = vpack.c.bf16 %v2859_v10, %v2857_v53  ;;  %v2976_v34 = vmul.f32 %v10888_v8, %v2859_v10  ;;  %3012 = vadd.xlane.f32.xlu0 %v3011_v6 }
 0xb75   :  { %8098 = vmatprep.subr.bf16.mxu0 %v8097_v17  ;;  %8130 = vmatprep.subr.bf16.mxu1 %v8097_v17  ;;  %v3014_v31 = vadd.f32 %v2976_v34, %v2975_v22 }
 0xb76   :  { %8100 = vmatpush1.bf16.xpose.msra.mxu0 %v8099_v18  ;;  %8132 = vmatpush1.bf16.msra.mxu1 %v8099_v18 }
 0xb77   :  { %3015 = vadd.xlane.f32.xlu0 %v3014_v31 }
 0xbe8   :  { %v2995_v58 = vpop.xlane.xlu0 %2994 }
 0xbe9   :  { %v3045_v51 = vadd.f32 %v10925_v2, %v2995_v58 }
 0xbeb   :  { %3083 = vperm.xlu1 %8636, %v3045_v51  }
 0xbec   :  { %v2998_v45 = vpop.xlane.xlu0 %2997 }
 0xbed   :  { %v3046_v20 = vadd.f32 %v10925_v2, %v2998_v45 }
 0xbef   :  { %3088 = vperm.xlu0 %8635, %v3046_v20  }
 0xbf0   :  { %v3001_v56 = vpop.xlane.xlu0 %3000 }
 0xbf1   :  { %v3047_v13 = vadd.f32 %v10925_v2, %v3001_v56 }
 0xbf3   :  { %3093 = vperm.xlu0 %8635, %v3047_v13  }
 0xbf4   :  { %v3004_v0 = vpop.xlane.xlu0 %3003 }
 0xbf5   :  { %v3048_v25 = vadd.f32 %v10925_v2, %v3004_v0 }
 0xbf7   :  { %3098 = vperm.xlu0 %8635, %v3048_v25  }
 0xbf8   :  { %v3007_v28 = vpop.xlane.xlu0 %3006 }
 0xbf9   :  { %v3049_v7 = vadd.f32 %v10925_v2, %v3007_v28  ;;  %v2797_v47 = vpop.f32.mrb[94].mxu1 }
 0xbfa   :  { %v2798_v55 = vadd.f32 %v2797_v47, %v10875_v19  ;;  %v2799_v63 = vpop.f32.mrb[95].mxu1 }
 0xbfb   :  { %v2800_v57 = vadd.f32 %v2799_v63, %v10879_v29  ;;  %3103 = vperm.xlu0 %8635, %v3049_v7  }
 0xbfc   :  { %v2860_v50 = vmax.f32 %v2798_v55, 0.0  ;;  %v3010_v11 = vpop.xlane.xlu0 %3009 }
 0xbfd   :  { %v2861_v44 = vmax.f32 %v2800_v57, 0.0  ;;  %v3050_v36 = vadd.f32 %v10925_v2, %v3010_v11  ;;  %v2803_v61 = vpop.f32.mrb[96].mxu1 }
 0xbfe   :  { %v2977_v60 = vmul.f32 %v10883_v24, %v2860_v50  ;;  %v2804_v21 = vadd.f32 %v2803_v61, %v10875_v19  ;;  %v2805_v15 = vpop.f32.mrb[97].mxu1 }
 0xbff   :  { %v2978_v12 = vmul.f32 %v10888_v8, %v2861_v44  ;;  %v2806_v59 = vadd.f32 %v2805_v15, %v10879_v29  ;;  %3108 = vperm.xlu0 %8635, %v3050_v36  }
 0xc00   :  { %v2862_v30 = vmax.f32 %v2804_v21, 0.0  ;;  %v3013_v62 = vpop.xlane.xlu0 %3012 }
 0xc01   :  { %v2863_v32 = vmax.f32 %v2806_v59, 0.0  ;;  %v3051_v46 = vadd.f32 %v10925_v2, %v3013_v62  ;;  %v2809_v23 = vpop.f32.mrb[98].mxu1  ;;  %v10940_v27 = vadd.f32 %v2978_v12, %v2977_v60 }
 0xc02   :  { %v8103_v35 = vpack.c.bf16 %v2862_v30, %v2860_v50  ;;  %v2979_v5 = vmul.f32 %v10883_v24, %v2862_v30  ;;  %v2810_v33 = vadd.f32 %v2809_v23, %v10875_v19  ;;  %v2811_v49 = vpop.f32.mrb[99].mxu1 }
 0xc03   :  { %v8101_v53 = vpack.c.bf16 %v2863_v32, %v2861_v44  ;;  %v2980_v40 = vmul.f32 %v10888_v8, %v2863_v32  ;;  %v2812_v9 = vadd.f32 %v2811_v49, %v10879_v29  ;;  %3113 = vperm.xlu0 %8635, %v3051_v46  }
 0xc04   :  { %v2864_v26 = vmax.f32 %v2810_v33, 0.0  ;;  %v3016_v54 = vpop.xlane.xlu0 %3015 }
 0xc05   :  { %v2865_v48 = vmax.f32 %v2812_v9, 0.0  ;;  %v3052_v42 = vadd.f32 %v10925_v2, %v3016_v54  ;;  %v2815_v38 = vpop.f32.mrb[100].mxu1  ;;  %8102 = vmatprep.subr.bf16.mxu0 %v8101_v53  ;;  %8134 = vmatprep.subr.bf16.mxu1 %v8101_v53  ;;  %v10947_v43 = vadd.f32 %v2980_v40, %v2979_v5 }
 0xc06   :  { %v2981_v10 = vmul.f32 %v10883_v24, %v2864_v26  ;;  %v2816_v6 = vadd.f32 %v2815_v38, %v10875_v19  ;;  %v2817_v18 = vpop.f32.mrb[101].mxu1  ;;  %8104 = vmatpush1.bf16.xpose.msra.mxu0 %v8103_v35  ;;  %8136 = vmatpush1.bf16.msra.mxu1 %v8103_v35 }
 0xc07   :  { %v2982_v22 = vmul.f32 %v10888_v8, %v2865_v48  ;;  %v2818_v17 = vadd.f32 %v2817_v18, %v10879_v29  ;;  %3118 = vperm.xlu1 %8636, %v3052_v42  }
 0xc08   :  { %v2866_v34 = vmax.f32 %v2816_v6, 0.0 }
 0xc09   :  { %v2867_v31 = vmax.f32 %v2818_v17, 0.0  ;;  %v2821_v58 = vpop.f32.mrb[102].mxu1  ;;  %v3023_v51 = vadd.f32 %v2982_v22, %v2981_v10 }
 0xc0a   :  { %v8107_v45 = vpack.c.bf16 %v2866_v34, %v2864_v26  ;;  %v2983_v20 = vmul.f32 %v10883_v24, %v2866_v34  ;;  %v2822_v56 = vadd.f32 %v2821_v58, %v10875_v19  ;;  %v2823_v13 = vpop.f32.mrb[103].mxu1  ;;  %v11019_v34 = vld [vmem:[%s13244_s2 + $0x38] sm:$0xff]  ;;  %v11031_v58 = vld [vmem:[%s13244_s2 + $0x48] sm:$0xff] }
 0xc0b   :  { %v8105_v0 = vpack.c.bf16 %v2867_v31, %v2865_v48  ;;  %v2984_v25 = vmul.f32 %v10888_v8, %v2867_v31  ;;  %v2824_v28 = vadd.f32 %v2823_v13, %v10879_v29  ;;  %v11025_v31 = vld [vmem:[%s13244_s2 + $0x40] sm:$0xff] }
 0xc0c   :  { %v2868_v7 = vmax.f32 %v2822_v56, 0.0  ;;  %v11043_v56 = vld [vmem:[%s13244_s2 + $0x58] sm:$0xff]  ;;  %v11049_v13 = vld [vmem:[%s13244_s2 + $0x60] sm:$0xff] }
 0xc0d   :  { %v2869_v47 = vmax.f32 %v2824_v28, 0.0  ;;  %v2827_v55 = vpop.f32.mrb[104].mxu1  ;;  %8106 = vmatprep.subr.bf16.mxu0 %v8105_v0  ;;  %8138 = vmatprep.subr.bf16.mxu1 %v8105_v0  ;;  %v3026_v63 = vadd.f32 %v2984_v25, %v2983_v20  ;;  %v11055_v25 = vld [vmem:[%s13244_s2 + $0x68] sm:$0xff] }
 0xc0e   :  { %v2985_v57 = vmul.f32 %v10883_v24, %v2868_v7  ;;  %v2828_v50 = vadd.f32 %v2827_v55, %v10875_v19  ;;  %v2829_v11 = vpop.f32.mrb[105].mxu1  ;;  %8108 = vmatpush1.bf16.xpose.msra.mxu0 %v8107_v45  ;;  %8140 = vmatpush1.bf16.msra.mxu1 %v8107_v45  ;;  %v11037_v45 = vld [vmem:[%s13244_s2 + $0x50] sm:$0xff] }
 0xc0f   :  { %v2986_v44 = vmul.f32 %v10888_v8, %v2869_v47  ;;  %v2830_v36 = vadd.f32 %v2829_v11, %v10879_v29 }
 0xc10   :  { %v2870_v61 = vmax.f32 %v2828_v50, 0.0 }
 0xc11   :  { %v2871_v60 = vmax.f32 %v2830_v36, 0.0  ;;  %v2833_v21 = vpop.f32.mrb[106].mxu1  ;;  %v3029_v15 = vadd.f32 %v2986_v44, %v2985_v57 }
 0xc12   :  { %v8111_v12 = vpack.c.bf16 %v2870_v61, %v2868_v7  ;;  %v2987_v59 = vmul.f32 %v10883_v24, %v2870_v61  ;;  %v2834_v30 = vadd.f32 %v2833_v21, %v10875_v19  ;;  %v2835_v62 = vpop.f32.mrb[107].mxu1  ;;  %v11061_v7 = vld [vmem:[%s13244_s2 + $0x70] sm:$0xff] }
 0xc13   :  { %v8109_v32 = vpack.c.bf16 %v2871_v60, %v2869_v47  ;;  %v2988_v46 = vmul.f32 %v10888_v8, %v2871_v60  ;;  %v2836_v23 = vadd.f32 %v2835_v62, %v10879_v29  ;;  %v11067_v47 = vld [vmem:[%s13244_s2 + $0x78] sm:$0xff] }
 0xc14   :  { %v2872_v35 = vmax.f32 %v2834_v30, 0.0 }
 0xc15   :  { %v2873_v5 = vmax.f32 %v2836_v23, 0.0  ;;  %v2839_v33 = vpop.f32.mrb[108].mxu1  ;;  %8110 = vmatprep.subr.bf16.mxu0 %v8109_v32  ;;  %8142 = vmatprep.subr.bf16.mxu1 %v8109_v32  ;;  %v3032_v49 = vadd.f32 %v2988_v46, %v2987_v59 }
 0xc16   :  { %v2989_v53 = vmul.f32 %v10883_v24, %v2872_v35  ;;  %v2840_v40 = vadd.f32 %v2839_v33, %v10875_v19  ;;  %v2841_v9 = vpop.f32.mrb[109].mxu1  ;;  %8112 = vmatpush1.bf16.xpose.msra.mxu0 %v8111_v12  ;;  %8144 = vmatpush1.bf16.msra.mxu1 %v8111_v12  ;;  %v10977_v19 = vld [vmem:[%s13244_s2] sm:$0xff] }
 0xc17   :  { %v2990_v26 = vmul.f32 %v10888_v8, %v2873_v5  ;;  %v2842_v54 = vadd.f32 %v2841_v9, %v10879_v29  ;;  %v10983_v29 = vld [vmem:[%s13244_s2 + $0x8] sm:$0xff] }
 0xc18   :  { %v2874_v48 = vmax.f32 %v2840_v40, 0.0 }
 0xc19   :  { %v2875_v42 = vmax.f32 %v2842_v54, 0.0  ;;  %v3035_v38 = vadd.f32 %v2990_v26, %v2989_v53 }
 0xc1a   :  { %v8115_v10 = vpack.c.bf16 %v2874_v48, %v2872_v35  ;;  %v2991_v6 = vmul.f32 %v10883_v24, %v2874_v48  ;;  %v10995_v24 = vld [vmem:[%s13244_s2 + $0x18] sm:$0xff] }
 0xc1b   :  { %v8113_v18 = vpack.c.bf16 %v2875_v42, %v2873_v5  ;;  %v2992_v22 = vmul.f32 %v10888_v8, %v2875_v42  ;;  %v11001_v8 = vld [vmem:[%s13244_s2 + $0x20] sm:$0xff] }
 0xc1d   :  { %8114 = vmatprep.subr.bf16.mxu0 %v8113_v18  ;;  %8146 = vmatprep.subr.bf16.mxu1 %v8113_v18  ;;  %v3038_v17 = vadd.f32 %v2992_v22, %v2991_v6 }
 0xc1e   :  { %8116 = vmatpush1.bf16.xpose.msra.mxu0 %v8115_v10  ;;  %8148 = vmatpush1.bf16.msra.mxu1 %v8115_v10 }
 0xc22   :  { %3018 = vadd.xlane.f32.xlu0 %v10940_v27  ;;  %v11007_v27 = vld [vmem:[%s13244_s2 + $0x28] sm:$0xff] }
 0xc25   :  { %2941 = vmatmul.mubr.f32.vlgmr.msra.gmra.mrb[50].mxu0 %v10749_v14  ;;  %v10989_v14 = vld [vmem:[%s13244_s2 + $0x10] sm:$0xff] }
 0xc26   :  { %3021 = vadd.xlane.f32.xlu0 %v10947_v43  ;;  %v11013_v43 = vld [vmem:[%s13244_s2 + $0x30] sm:$0xff] }
 0xc2a   :  { %3024 = vadd.xlane.f32.xlu0 %v3023_v51 }
 0xc2e   :  { %3027 = vadd.xlane.f32.xlu0 %v3026_v63 }
 0xc32   :  { %3030 = vadd.xlane.f32.xlu0 %v3029_v15 }
 0xc36   :  { %3033 = vadd.xlane.f32.xlu0 %v3032_v49  ;;  %v2950_v49 = vrot.slane %v10921_v16, 2 }
 0xc3a   :  { %3036 = vadd.xlane.f32.xlu0 %v3035_v38 }
 0xc3e   :  { %3039 = vadd.xlane.f32.xlu0 %v3038_v17 }
 0xc6b   :  { %2577 = vxpose.xlu0.b32.start [1/16] %v10977_v19, 128 }
 0xc6e   :  { %v3089_v51 = vpop.permute.xlu0 %3088 }
 0xc6f   :  { %2578 = vxpose.xlu0.b32.cont [2/16] %v10983_v29, 128 }
 0xc72   :  { %v3094_v20 = vpop.permute.xlu0 %3093 }
 0xc73   :  { %2579 = vxpose.xlu0.b32.cont [3/16] %v10989_v14, 128 }
 0xc76   :  { %v3099_v0 = vpop.permute.xlu0 %3098 }
 0xc77   :  { %2580 = vxpose.xlu0.b32.cont [4/16] %v10995_v24, 128 }
 0xc7a   :  { %v3104_v28 = vpop.permute.xlu0 %3103 }
 0xc7b   :  { %2581 = vxpose.xlu0.b32.cont [5/16] %v11001_v8, 128 }
 0xc7e   :  { %v3109_v55 = vpop.permute.xlu0 %3108 }
 0xc7f   :  { %2582 = vxpose.xlu0.b32.cont [6/16] %v11007_v27, 128 }
 0xc82   :  { %v11070_v63 = vpop.permute.xlu0 %3113 }
 0xc83   :  { %2583 = vxpose.xlu0.b32.cont [7/16] %v11013_v43, 128 }
 0xc87   :  { %2584 = vxpose.xlu0.b32.cont [8/16] %v11019_v34, 128 }
 0xc8b   :  { %2585 = vxpose.xlu0.b32.cont [9/16] %v11025_v31, 128 }
 0xc8f   :  { %2586 = vxpose.xlu0.b32.cont [10/16] %v11031_v58, 128 }
 0xc93   :  { %2587 = vxpose.xlu0.b32.cont [11/16] %v11037_v45, 128 }
 0xc97   :  { %2588 = vxpose.xlu0.b32.cont [12/16] %v11043_v56, 128 }
 0xc9b   :  { %2589 = vxpose.xlu0.b32.cont [13/16] %v11049_v13, 128 }
 0xc9f   :  { %2590 = vxpose.xlu0.b32.cont [14/16] %v11055_v25, 128 }
 0xca3   :  { %2591 = vxpose.xlu0.b32.cont [15/16] %v11061_v7, 128 }
 0xca7   :  { %2592 = vxpose.xlu0.b32.end [16/16] %v11067_v47, 128 }
 0xcaf   :  { %v3019_v57 = vpop.xlane.xlu0 %3018 }
 0xcb0   :  { %v3053_v50 = vadd.f32 %v10925_v2, %v3019_v57 }
 0xcb2   :  { %3123 = vperm.xlu1 %8636, %v3053_v50  }
 0xcb3   :  { %v3022_v11 = vpop.xlane.xlu0 %3021 }
 0xcb4   :  { %v3054_v44 = vadd.f32 %v10925_v2, %v3022_v11 }
 0xcb6   :  { %3128 = vperm.xlu1 %8636, %v3054_v44  }
 0xcb7   :  { %v3025_v36 = vpop.xlane.xlu0 %3024 }
 0xcb8   :  { %v3055_v61 = vadd.f32 %v10925_v2, %v3025_v36 }
 0xcba   :  { %3133 = vperm.xlu1 %8636, %v3055_v61  }
 0xcbb   :  { %v3028_v60 = vpop.xlane.xlu0 %3027 }
 0xcbc   :  { %v3056_v21 = vadd.f32 %v10925_v2, %v3028_v60 }
 0xcbe   :  { %3138 = vperm.xlu1 %8636, %v3056_v21  }
 0xcbf   :  { %v3031_v15 = vpop.xlane.xlu0 %3030 }
 0xcc0   :  { %v3057_v12 = vadd.f32 %v10925_v2, %v3031_v15 }
 0xcc2   :  { %3143 = vperm.xlu1 %8636, %v3057_v12  }
 0xcc3   :  { %v3034_v59 = vpop.xlane.xlu0 %3033 }
 0xcc4   :  { %v3058_v30 = vadd.f32 %v10925_v2, %v3034_v59 }
 0xcc6   :  { %3148 = vperm.xlu1 %8636, %v3058_v30  }
 0xcc7   :  { %v3037_v62 = vpop.xlane.xlu0 %3036 }
 0xcc8   :  { %v3059_v32 = vadd.f32 %v10925_v2, %v3037_v62 }
 0xcca   :  { %3153 = vperm.xlu1 %8636, %v3059_v32  }
 0xccb   :  { %v3040_v46 = vpop.xlane.xlu0 %3039 }
 0xccc   :  { %v3060_v23 = vadd.f32 %v10925_v2, %v3040_v46  ;;  %v3084_v2 = vpop.permute.xlu1 %3083 }
 0xcce   :  { %3158 = vperm.xlu1 %8636, %v3060_v23  }
 0xcd0   :  { %v3119_v21 = vpop.permute.xlu1 %3118 }
 0xceb   :  { %v11080_v35 = vpop.trf.xlu0 }
 0xcec   :  { %13314 = vst [vmem:[#allocation7_spill] sm:$0xff] %v11080_v35  ;;  %v3161_v42 = vmul.f32 %v3084_v2, %v11080_v35 }
 0xcef   :  { %v11082_v5 = vpop.trf.xlu0 }
 0xcf0   :  { %13315 = vst [vmem:[#allocation8_spill] sm:$0xff] %v11082_v5  ;;  %v3162_v38 = vmul.f32 %v3089_v51, %v11082_v5 }
 0xcf3   :  { %v11084_v33 = vpop.trf.xlu0 }
 0xcf4   :  { %13316 = vst [vmem:[#allocation9_spill] sm:$0xff] %v11084_v33  ;;  %v3163_v10 = vmul.f32 %v3094_v20, %v11084_v33 }
 0xcf7   :  { %v11087_v53 = vpop.trf.xlu0 }
 0xcf8   :  { %13317 = vst [vmem:[#allocation10_spill] sm:$0xff] %v11087_v53  ;;  %v2942_v40 = vpop.f32.mrb[50].mxu0  ;;  %v3164_v22 = vmul.f32 %v3099_v0, %v11087_v53 }
 0xcf9   :  { %v2952_v9 = vadd.f32 %v2950_v49, %v2942_v40  ;;  %v2944_v26 = vpop.f32.mrb[51].mxu0 }
 0xcfb   :  { %v11090_v54 = vrot.slane %v2952_v9, %v9831_v52  ;;  %v11092_v48 = vpop.trf.xlu0 }
 0xcfc   :  { %13318 = vst [vmem:[#allocation11_spill] sm:$0xff] %v11092_v48  ;;  %v3165_v57 = vmul.f32 %v3104_v28, %v11092_v48 }
 0xcfd   :  { %v3065_v16 = vmul.f32 %v11090_v54, %v10977_v19  ;;  %v3066_v6 = vmul.f32 %v11090_v54, %v10983_v29  ;;  %v3067_v18 = vmul.f32 %v11090_v54, %v10989_v14  ;;  %v3069_v17 = vmul.f32 %v11090_v54, %v11001_v8 }
 0xcfe   :  { %v3068_v51 = vmul.f32 %v11090_v54, %v10995_v24  ;;  %v3070_v28 = vmul.f32 %v11090_v54, %v11007_v27  ;;  %v3072_v12 = vmul.f32 %v11090_v54, %v11019_v34  ;;  %v3071_v62 = vmul.f32 %v11090_v54, %v11013_v43 }
 0xcff   :  { %v11107_v50 = vpop.trf.xlu0  ;;  %v3177_v20 = vadd.f32 %v3161_v42, %v3065_v16  ;;  %v3178_v19 = vadd.f32 %v3162_v38, %v3066_v6  ;;  %v3179_v11 = vadd.f32 %v3163_v10, %v3067_v18  ;;  %v3181_v61 = vadd.f32 %v3165_v57, %v3069_v17 }
 0xd00   :  { %13319 = vst [vmem:[#allocation12_spill] sm:$0xff] %v11107_v50  ;;  %v3180_v44 = vadd.f32 %v3164_v22, %v3068_v51  ;;  %v3166_v60 = vmul.f32 %v3109_v55, %v11107_v50 }
 0xd01   :  { %v7099_v29 = vmul.f32 -1.442695, %v3177_v20  ;;  %v7100_v36 = vmul.f32 -1.442695, %v3178_v19  ;;  %v7101_v0 = vmul.f32 -1.442695, %v3179_v11 }
 0xd02   :  { %v7102_v8 = vmul.f32 -1.442695, %v3180_v44  ;;  %v7103_v24 = vmul.f32 -1.442695, %v3181_v61  ;;  %v3182_v59 = vadd.f32 %v3166_v60, %v3070_v28 }
 0xd03   :  { %v11111_v14 = vpop.trf.xlu0  ;;  %8869 = vpow2.f32 %v7099_v29 }
 0xd04   :  { %13320 = vst [vmem:[#allocation13_spill] sm:$0xff] %v11111_v14  ;;  %8871 = vpow2.f32 %v7100_v36  ;;  %v3167_v30 = vmul.f32 %v11070_v63, %v11111_v14  ;;  %v7104_v27 = vmul.f32 -1.442695, %v3182_v59 }
 0xd05   :  { %8873 = vpow2.f32 %v7101_v0 }
 0xd06   :  { %8875 = vpow2.f32 %v7102_v8  ;;  %v3183_v46 = vadd.f32 %v3167_v30, %v3071_v62 }
 0xd07   :  { %v11116_v15 = vpop.trf.xlu0  ;;  %8877 = vpow2.f32 %v7103_v24 }
 0xd08   :  { %13321 = vst [vmem:[#allocation14_spill] sm:$0xff] %v11116_v15  ;;  %v3168_v55 = vmul.f32 %v3119_v21, %v11116_v15  ;;  %v7105_v9 = vmul.f32 -1.442695, %v3183_v46 }
 0xd0a   :  { %v3184_v32 = vadd.f32 %v3168_v55, %v3072_v12 }
 0xd0b   :  { %v11125_v29 = vpop.trf.xlu0 }
 0xd0c   :  { %v7106_v23 = vmul.f32 -1.442695, %v3184_v32  ;;  %13322 = vst [vmem:[#allocation15_spill] sm:$0xff] %v11125_v29 }
 0xd0d   :  { %v8870_v49 = vpop.eup %8869 }
 0xd0e   :  { %8879 = vpow2.f32 %v7106_v23  ;;  %v8872_v40 = vpop.eup %8871  ;;  %v3241_v34 = vadd.f32 1.0, %v8870_v49 }
 0xd0f   :  { %8881 = vpow2.f32 %v7104_v27  ;;  %v3242_v26 = vadd.f32 1.0, %v8872_v40  ;;  %v8874_v2 = vpop.eup %8873  ;;  %v11127_v21 = vpop.trf.xlu0  ;;  %v3073_v40 = vmul.f32 %v11090_v54, %v11025_v31 }
 0xd10   :  { %8883 = vrcp.f32 %v3241_v34  ;;  %v8876_v63 = vpop.eup %8875  ;;  %v3243_v42 = vadd.f32 1.0, %v8874_v2  ;;  %13323 = vst [vmem:[#allocation16_spill] sm:$0xff] %v11127_v21 }
 0xd11   :  { %8885 = vrcp.f32 %v3242_v26  ;;  %v3244_v43 = vadd.f32 1.0, %v8876_v63  ;;  %v8878_v38 = vpop.eup %8877 }
 0xd12   :  { %8887 = vpow2.f32 %v7105_v9  ;;  %v3245_v16 = vadd.f32 1.0, %v8878_v38 }
 0xd13   :  { %8889 = vrcp.f32 %v3243_v42  ;;  %v11135_v55 = vpop.trf.xlu0 }
 0xd14   :  { %8891 = vrcp.f32 %v3244_v43  ;;  %13324 = vst [vmem:[#allocation17_spill] sm:$0xff] %v11135_v55  ;;  %v3074_v43 = vmul.f32 %v11090_v54, %v11031_v58 }
 0xd17   :  { %v11146_v9 = vpop.trf.xlu0 }
 0xd18   :  { %v8880_v10 = vpop.eup %8879  ;;  %13325 = vst [vmem:[#allocation18_spill] sm:$0xff] %v11146_v9 }
 0xd19   :  { %v3248_v6 = vadd.f32 1.0, %v8880_v10  ;;  %v8882_v18 = vpop.eup %8881 }
 0xd1a   :  { %v8884_v22 = vpop.eup %8883  ;;  %v3246_v51 = vadd.f32 1.0, %v8882_v18 }
 0xd1b   :  { %8893 = vrcp.f32 %v3248_v6  ;;  %v8886_v17 = vpop.eup %8885  ;;  %v3289_v57 = vmul.f32 1.442695, %v8884_v22  ;;  %v11157_v6 = vpop.trf.xlu0  ;;  %v3075_v22 = vmul.f32 %v11090_v54, %v11037_v45 }
 0xd1c   :  { %8895 = vrcp.f32 %v3245_v16  ;;  %v8888_v20 = vpop.eup %8887  ;;  %v3291_v19 = vmul.f32 1.442695, %v8886_v17  ;;  %13326 = vst [vmem:[#allocation19_spill] sm:$0xff] %v11157_v6 }
 0xd1d   :  { %8897 = vpow2.f32 %v3289_v57  ;;  %v8890_v11 = vpop.eup %8889  ;;  %v3247_v44 = vadd.f32 1.0, %v8888_v20 }
 0xd1e   :  { %8899 = vrcp.f32 %v3246_v51  ;;  %v3293_v36 = vmul.f32 1.442695, %v8890_v11  ;;  %v8892_v61 = vpop.eup %8891 }
 0xd1f   :  { %8901 = vpow2.f32 %v3291_v19  ;;  %v3295_v8 = vmul.f32 1.442695, %v8892_v61  ;;  %v3076_v19 = vmul.f32 %v11090_v54, %v11043_v56 }
 0xd20   :  { %8903 = vrcp.f32 %v3247_v44  ;;  %v11168_v44 = vpop.trf.xlu0 }
 0xd21   :  { %8905 = vpow2.f32 %v3293_v36  ;;  %13327 = vst [vmem:[#allocation20_spill] sm:$0xff] %v11168_v44 }
 0xd25   :  { %v8894_v0 = vpop.eup %8893 }
 0xd26   :  { %v3303_v60 = vmul.f32 1.442695, %v8894_v0  ;;  %v8896_v28 = vpop.eup %8895 }
 0xd27   :  { %v11129_v24 = vpop.eup %8897  ;;  %v3297_v12 = vmul.f32 1.442695, %v8896_v28 }
 0xd28   :  { %8907 = vpow2.f32 %v3303_v60  ;;  %3321 = vadd.xlane.f32.xlu1 %v11129_v24  ;;  %v8900_v59 = vpop.eup %8899 }
 0xd29   :  { %8909 = vpow2.f32 %v3295_v8  ;;  %v11132_v30 = vpop.eup %8901  ;;  %v3299_v62 = vmul.f32 1.442695, %v8900_v59  ;;  %v3077_v8 = vmul.f32 %v11090_v54, %v11049_v13 }
 0xd2a   :  { %8911 = vpow2.f32 %v3297_v12  ;;  %v8904_v32 = vpop.eup %8903 }
 0xd2b   :  { %v11137_v27 = vpop.eup %8905  ;;  %8913 = vpow2.f32 %v3299_v62  ;;  %v3301_v49 = vmul.f32 1.442695, %v8904_v32  ;;  %v11176_v62 = vpop.trf.xlu0 }
 0xd2c   :  { %3323 = vadd.xlane.f32.xlu1 %v11132_v30  ;;  %13328 = vst [vmem:[#allocation21_spill] sm:$0xff] %v11176_v62 }
 0xd2d   :  { %8915 = vpow2.f32 %v3301_v49  ;;  %v3078_v49 = vmul.f32 %v11090_v54, %v11055_v25 }
 0xd30   :  { %3325 = vadd.xlane.f32.xlu1 %v11137_v27 }
 0xd31   :  { %v3124_v46 = vpop.permute.xlu1 %3123 }
 0xd32   :  { %v11140_v23 = vpop.eup %8907  ;;  %v3169_v34 = vmul.f32 %v3124_v46, %v11125_v29 }
 0xd33   :  { %3335 = vadd.xlane.f32.xlu0 %v11140_v23  ;;  %v11148_v26 = vpop.eup %8909 }
 0xd34   :  { %v3185_v2 = vadd.f32 %v3169_v34, %v3073_v40  ;;  %3327 = vadd.xlane.f32.xlu1 %v11148_v26  ;;  %v11154_v31 = vpop.eup %8911 }
 0xd35   :  { %v3129_v63 = vpop.permute.xlu1 %3128  ;;  %v11162_v57 = vpop.eup %8913 }
 0xd36   :  { %v7107_v42 = vmul.f32 -1.442695, %v3185_v2  ;;  %v3170_v38 = vmul.f32 %v3129_v63, %v11127_v21 }
 0xd37   :  { %v11170_v36 = vpop.eup %8915 }
 0xd38   :  { %8917 = vpow2.f32 %v7107_v42  ;;  %v3186_v10 = vadd.f32 %v3170_v38, %v3074_v43  ;;  %3329 = vadd.xlane.f32.xlu1 %v11154_v31  ;;  %v3079_v43 = vmul.f32 %v11090_v54, %v11061_v7 }
 0xd39   :  { %v3134_v16 = vpop.permute.xlu1 %3133 }
 0xd3a   :  { %v7108_v18 = vmul.f32 -1.442695, %v3186_v10  ;;  %v3171_v17 = vmul.f32 %v3134_v16, %v11135_v55  ;;  %v11184_v16 = vpop.trf.xlu0 }
 0xd3b   :  { %13329 = vst [vmem:[#allocation22_spill] sm:$0xff] %v11184_v16 }
 0xd3c   :  { %8919 = vpow2.f32 %v7108_v18  ;;  %v3187_v58 = vadd.f32 %v3171_v17, %v3075_v22  ;;  %3331 = vadd.xlane.f32.xlu1 %v11162_v57 }
 0xd3d   :  { %v3139_v51 = vpop.permute.xlu1 %3138 }
 0xd3e   :  { %v7109_v20 = vmul.f32 -1.442695, %v3187_v58  ;;  %v3172_v11 = vmul.f32 %v3139_v51, %v11146_v9  ;;  %v3080_v58 = vmul.f32 %v11090_v54, %v11067_v47 }
 0xd40   :  { %8921 = vpow2.f32 %v7109_v20  ;;  %v3188_v45 = vadd.f32 %v3172_v11, %v3076_v19  ;;  %3333 = vadd.xlane.f32.xlu1 %v11170_v36 }
 0xd41   :  { %v3144_v61 = vpop.permute.xlu1 %3143 }
 0xd42   :  { %v8918_v0 = vpop.eup %8917  ;;  %v7110_v60 = vmul.f32 -1.442695, %v3188_v45  ;;  %v3173_v28 = vmul.f32 %v3144_v61, %v11157_v6 }
 0xd43   :  { %v3249_v12 = vadd.f32 1.0, %v8918_v0 }
 0xd44   :  { %8923 = vpow2.f32 %v7110_v60  ;;  %v3189_v56 = vadd.f32 %v3173_v28, %v3077_v8 }
 0xd45   :  { %8925 = vrcp.f32 %v3249_v12  ;;  %v3149_v59 = vpop.permute.xlu1 %3148 }
 0xd46   :  { %v8920_v32 = vpop.eup %8919  ;;  %v7111_v46 = vmul.f32 -1.442695, %v3189_v56  ;;  %v3174_v40 = vmul.f32 %v3149_v59, %v11168_v44 }
 0xd47   :  { %v3250_v34 = vadd.f32 1.0, %v8920_v32 }
 0xd48   :  { %8927 = vpow2.f32 %v7111_v46  ;;  %v3190_v2 = vadd.f32 %v3174_v40, %v3078_v49 }
 0xd49   :  { %8929 = vrcp.f32 %v3250_v34  ;;  %v3154_v13 = vpop.permute.xlu1 %3153 }
 0xd4a   :  { %v8922_v63 = vpop.eup %8921  ;;  %v7112_v42 = vmul.f32 -1.442695, %v3190_v2  ;;  %v3175_v38 = vmul.f32 %v3154_v13, %v11176_v62 }
 0xd4b   :  { %v3251_v10 = vadd.f32 1.0, %v8922_v63 }
 0xd4c   :  { %8931 = vpow2.f32 %v7112_v42  ;;  %v3191_v18 = vadd.f32 %v3175_v38, %v3079_v43 }
 0xd4d   :  { %8933 = vrcp.f32 %v3251_v10  ;;  %v3159_v25 = vpop.permute.xlu1 %3158 }
 0xd4e   :  { %v8924_v22 = vpop.eup %8923  ;;  %v7113_v17 = vmul.f32 -1.442695, %v3191_v18  ;;  %v3176_v51 = vmul.f32 %v3159_v25, %v11184_v16 }
 0xd4f   :  { %v8926_v20 = vpop.eup %8925  ;;  %v3252_v19 = vadd.f32 1.0, %v8924_v22 }
 0xd50   :  { %v3305_v11 = vmul.f32 1.442695, %v8926_v20  ;;  %8935 = vpow2.f32 %v7113_v17  ;;  %v3192_v7 = vadd.f32 %v3176_v51, %v3080_v58 }
 0xd51   :  { %8937 = vrcp.f32 %v3252_v19 }
 0xd52   :  { %v8928_v45 = vpop.eup %8927  ;;  %8939 = vpow2.f32 %v3305_v11  ;;  %v7114_v61 = vmul.f32 -1.442695, %v3192_v7  ;;  %v3547_v11 = vld [vmem:[%s13245_s12 + $0x8] sm:$0xff] }
 0xd53   :  { %v8930_v0 = vpop.eup %8929  ;;  %v3253_v60 = vadd.f32 1.0, %v8928_v45  ;;  %v3551_v7 = vld [vmem:[%s13245_s12 + $0x28] sm:$0xff]  ;;  %v3549_v45 = vld [vmem:[%s13245_s12 + $0x18] sm:$0xff] }
 0xd54   :  { %v3307_v8 = vmul.f32 1.442695, %v8930_v0  ;;  %8941 = vpow2.f32 %v7114_v61  ;;  %v8149_v61 = vpack.c.bf16 %v3551_v7, %v3547_v11  ;;  %v3553_v0 = vld [vmem:[%s13245_s12 + $0x38] sm:$0xff]  ;;  %v3574_v11 = vld [vmem:[%s13245_s12 + $0xe0] sm:$0xff]  ;;  %v3579_v7 = vld [vmem:[%s13245_s12 + $0x108] sm:$0xff] }
 0xd55   :  { %8943 = vrcp.f32 %v3253_v60  ;;  %v3546_v60 = vld [vmem:[%s13245_s12] sm:$0xff] }
 0xd56   :  { %v8932_v28 = vpop.eup %8931  ;;  %8945 = vpow2.f32 %v3307_v8  ;;  %v3550_v8 = vld [vmem:[%s13245_s12 + $0x20] sm:$0xff]  ;;  %8150 = vmatprep.subr.bf16.mxu0 %v8149_v61 }
 0xd57   :  { %v8934_v12 = vpop.eup %8933  ;;  %v3254_v47 = vadd.f32 1.0, %v8932_v28  ;;  %v8213_v28 = vpack.c.bf16 %v3553_v0, %v3549_v45  ;;  %v3583_v45 = vld [vmem:[%s13245_s12 + $0x128] sm:$0xff] }
 0xd58   :  { %v3309_v54 = vmul.f32 1.442695, %v8934_v12  ;;  %v8151_v12 = vpack.c.bf16 %v3550_v8, %v3546_v60  ;;  %v8165_v0 = vpack.c.bf16 %v3583_v45, %v3579_v7  ;;  %v3578_v60 = vld [vmem:[%s13245_s12 + $0x100] sm:$0xff]  ;;  %v3615_v7 = vld [vmem:[%s13245_s12 + $0x228] sm:$0xff] }
 0xd59   :  { %8947 = vrcp.f32 %v3254_v47  ;;  %v3555_v47 = vld [vmem:[%s13245_s12 + $0x48] sm:$0xff]  ;;  %8214 = vmatprep.subr.bf16.mxu1 %v8213_v28  ;;  %v3582_v8 = vld [vmem:[%s13245_s12 + $0x120] sm:$0xff] }
 0xd5a   :  { %v8936_v56 = vpop.eup %8935  ;;  %8949 = vpow2.f32 %v3309_v54  ;;  %v3559_v54 = vld [vmem:[%s13245_s12 + $0x68] sm:$0xff]  ;;  %8152 = vmatpush1.bf16.msra.mxu0 %v8151_v12 }
 0xd5b   :  { %v8938_v59 = vpop.eup %8937  ;;  %v3255_v32 = vadd.f32 1.0, %v8936_v56  ;;  %v8153_v56 = vpack.c.bf16 %v3559_v54, %v3555_v47  ;;  %v3587_v28 = vld [vmem:[%s13245_s12 + $0x148] sm:$0xff]  ;;  %v8167_v47 = vpack.c.bf16 %v3582_v8, %v3578_v60  ;;  %v3614_v60 = vld [vmem:[%s13245_s12 + $0x220] sm:$0xff] }
 0xd5c   :  { %v11189_v46 = vpop.eup %8939  ;;  %v3311_v49 = vmul.f32 1.442695, %v8938_v59  ;;  %v3554_v59 = vld [vmem:[%s13245_s12 + $0x40] sm:$0xff]  ;;  %v3591_v12 = vld [vmem:[%s13245_s12 + $0x168] sm:$0xff] }
 0xd5d   :  { %8951 = vrcp.f32 %v3255_v32  ;;  %3337 = vadd.xlane.f32.xlu1 %v11189_v46  ;;  %v3558_v32 = vld [vmem:[%s13245_s12 + $0x60] sm:$0xff]  ;;  %8154 = vmatprep.subr.bf16.mxu0 %v8153_v56  ;;  %v8169_v54 = vpack.c.bf16 %v3591_v12, %v3587_v28  ;;  %v3619_v8 = vld [vmem:[%s13245_s12 + $0x248] sm:$0xff] }
 0xd5e   :  { %v8942_v40 = vpop.eup %8941  ;;  %8953 = vpow2.f32 %v3311_v49  ;;  %v8155_v49 = vpack.c.bf16 %v3558_v32, %v3554_v59  ;;  %v3586_v56 = vld [vmem:[%s13245_s12 + $0x140] sm:$0xff]  ;;  %v3595_v32 = vld [vmem:[%s13245_s12 + $0x188] sm:$0xff] }
 0xd5f   :  { %v8944_v34 = vpop.eup %8943  ;;  %v3256_v2 = vadd.f32 1.0, %v8942_v40  ;;  %v3563_v40 = vld [vmem:[%s13245_s12 + $0x88] sm:$0xff]  ;;  %v3590_v59 = vld [vmem:[%s13245_s12 + $0x160] sm:$0xff] }
 0xd60   :  { %v11192_v13 = vpop.eup %8945  ;;  %v3313_v63 = vmul.f32 1.442695, %v8944_v34  ;;  %v3567_v34 = vld [vmem:[%s13245_s12 + $0xa8] sm:$0xff]  ;;  %8156 = vmatpush1.bf16.msra.mxu0 %v8155_v49 }
 0xd61   :  { %8955 = vrcp.f32 %v3256_v2  ;;  %3339 = vadd.xlane.f32.xlu1 %v11192_v13  ;;  %v8157_v2 = vpack.c.bf16 %v3567_v34, %v3563_v40  ;;  %v3599_v49 = vld [vmem:[%s13245_s12 + $0x1a8] sm:$0xff]  ;;  %v8171_v40 = vpack.c.bf16 %v3590_v59, %v3586_v56  ;;  %v3618_v56 = vld [vmem:[%s13245_s12 + $0x240] sm:$0xff] }
 0xd62   :  { %8957 = vpow2.f32 %v3313_v63  ;;  %v3562_v63 = vld [vmem:[%s13245_s12 + $0x80] sm:$0xff]  ;;  %v8173_v34 = vpack.c.bf16 %v3599_v49, %v3595_v32  ;;  %v3623_v28 = vld [vmem:[%s13245_s12 + $0x268] sm:$0xff] }
 0xd63   :  { %v8948_v42 = vpop.eup %8947  ;;  %8158 = vmatprep.subr.bf16.mxu0 %v8157_v2  ;;  %v3594_v2 = vld [vmem:[%s13245_s12 + $0x180] sm:$0xff]  ;;  %v3627_v32 = vld [vmem:[%s13245_s12 + $0x288] sm:$0xff] }
 0xd64   :  { %v11195_v43 = vpop.eup %8949  ;;  %v3315_v38 = vmul.f32 1.442695, %v8948_v42  ;;  %v3566_v42 = vld [vmem:[%s13245_s12 + $0xa0] sm:$0xff]  ;;  %v3631_v49 = vld [vmem:[%s13245_s12 + $0x2a8] sm:$0xff] }
 0xd65   :  { %3341 = vadd.xlane.f32.xlu1 %v11195_v43  ;;  %v3622_v59 = vld [vmem:[%s13245_s12 + $0x260] sm:$0xff] }
 0xd66   :  { %8959 = vpow2.f32 %v3315_v38  ;;  %v8159_v38 = vpack.c.bf16 %v3566_v42, %v3562_v63  ;;  %v3598_v63 = vld [vmem:[%s13245_s12 + $0x1a0] sm:$0xff]  ;;  %v3603_v42 = vld [vmem:[%s13245_s12 + $0x1c8] sm:$0xff] }
 0xd67   :  { %v8952_v10 = vpop.eup %8951 }
 0xd68   :  { %v11198_v18 = vpop.eup %8953  ;;  %v3317_v25 = vmul.f32 1.442695, %v8952_v10  ;;  %v3571_v10 = vld [vmem:[%s13245_s12 + $0xc8] sm:$0xff]  ;;  %8160 = vmatpush1.bf16.msra.mxu0 %v8159_v38 }
 0xd69   :  { %3343 = vadd.xlane.f32.xlu1 %v11198_v18  ;;  %v3607_v38 = vld [vmem:[%s13245_s12 + $0x1e8] sm:$0xff] }
 0xd6a   :  { %8961 = vpow2.f32 %v3317_v25  ;;  %v3575_v25 = vld [vmem:[%s13245_s12 + $0xe8] sm:$0xff] }
 0xd6b   :  { %v8956_v22 = vpop.eup %8955 }
 0xd6c   :  { %v11201_v17 = vpop.eup %8957  ;;  %v3319_v58 = vmul.f32 1.442695, %v8956_v22  ;;  %v8161_v22 = vpack.c.bf16 %v3575_v25, %v3571_v10  ;;  %v8175_v10 = vpack.c.bf16 %v3598_v63, %v3594_v2  ;;  %v8177_v25 = vpack.c.bf16 %v3607_v38, %v3603_v42  ;;  %v3626_v63 = vld [vmem:[%s13245_s12 + $0x280] sm:$0xff]  ;;  %v3635_v38 = vld [vmem:[%s13245_s12 + $0x2c8] sm:$0xff] }
 0xd6d   :  { %3345 = vadd.xlane.f32.xlu1 %v11201_v17  ;;  %v8189_v2 = vpack.c.bf16 %v3631_v49, %v3627_v32  ;;  %v3630_v42 = vld [vmem:[%s13245_s12 + $0x2a0] sm:$0xff]  ;;  %v3556_v32 = vld [vmem:[%s13245_s12 + $0x50] sm:$0xff] }
 0xd6e   :  { %8963 = vpow2.f32 %v3319_v58  ;;  %v3570_v58 = vld [vmem:[%s13245_s12 + $0xc0] sm:$0xff]  ;;  %8162 = vmatprep.subr.bf16.mxu0 %v8161_v22  ;;  %v3560_v49 = vld [vmem:[%s13245_s12 + $0x70] sm:$0xff] }
 0xd6f   :  { %v8163_v61 = vpack.c.bf16 %v3574_v11, %v3570_v58  ;;  %v3602_v22 = vld [vmem:[%s13245_s12 + $0x1c0] sm:$0xff]  ;;  %v3611_v11 = vld [vmem:[%s13245_s12 + $0x208] sm:$0xff] }
 0xd70   :  { %v11204_v51 = vpop.eup %8959  ;;  %v3606_v58 = vld [vmem:[%s13245_s12 + $0x1e0] sm:$0xff] }
 0xd71   :  { %3347 = vadd.xlane.f32.xlu1 %v11204_v51  ;;  %8164 = vmatpush1.bf16.msra.mxu0 %v8163_v61  ;;  %v8179_v45 = vpack.c.bf16 %v3606_v58, %v3602_v22  ;;  %v8181_v61 = vpack.c.bf16 %v3615_v7, %v3611_v11  ;;  %v3548_v58 = vld [vmem:[%s13245_s12 + $0x10] sm:$0xff]  ;;  %v3557_v7 = vld [vmem:[%s13245_s12 + $0x58] sm:$0xff] }
 0xd72   :  { %8166 = vmatprep.subr.bf16.mxu0 %v8165_v0  ;;  %v3610_v0 = vld [vmem:[%s13245_s12 + $0x200] sm:$0xff]  ;;  %v3552_v11 = vld [vmem:[%s13245_s12 + $0x30] sm:$0xff] }
 0xd73   :  { %v8183_v12 = vpack.c.bf16 %v3614_v60, %v3610_v0  ;;  %v3634_v0 = vld [vmem:[%s13245_s12 + $0x2c0] sm:$0xff] }
 0xd74   :  { %v11207_v20 = vpop.eup %8961  ;;  %v3638_v60 = vld [vmem:[%s13245_s12 + $0x2e0] sm:$0xff] }
 0xd75   :  { %3349 = vadd.xlane.f32.xlu1 %v11207_v20  ;;  %8168 = vmatpush1.bf16.msra.mxu0 %v8167_v47 }
 0xd76   :  { %8170 = vmatprep.subr.bf16.mxu0 %v8169_v54  ;;  %v8185_v54 = vpack.c.bf16 %v3623_v28, %v3619_v8  ;;  %v3643_v8 = vld [vmem:[%s13245_s12 + $0x308] sm:$0xff] }
 0xd77   :  { %v3647_v28 = vld [vmem:[%s13245_s12 + $0x328] sm:$0xff] }
 0xd78   :  { %v11210_v19 = vpop.eup %8963 }
 0xd79   :  { %3351 = vadd.xlane.f32.xlu1 %v11210_v19  ;;  %8172 = vmatpush1.bf16.msra.mxu0 %v8171_v40  ;;  %v8187_v40 = vpack.c.bf16 %v3622_v59, %v3618_v56 }
 0xd7a   :  { %8174 = vmatprep.subr.bf16.mxu0 %v8173_v34 }
 0xd7d   :  { %8176 = vmatpush1.bf16.msra.mxu0 %v8175_v10  ;;  %v3639_v10 = vld [vmem:[%s13245_s12 + $0x2e8] sm:$0xff] }
 0xd7e   :  { %8178 = vmatprep.subr.bf16.mxu0 %v8177_v25  ;;  %v8191_v25 = vpack.c.bf16 %v3630_v42, %v3626_v63  ;;  %v3642_v63 = vld [vmem:[%s13245_s12 + $0x300] sm:$0xff] }
 0xd7f   :  { %v3646_v42 = vld [vmem:[%s13245_s12 + $0x320] sm:$0xff] }
 0xd81   :  { %8180 = vmatpush1.bf16.msra.mxu0 %v8179_v45  ;;  %v8193_v45 = vpack.c.bf16 %v3639_v10, %v3635_v38  ;;  %v3651_v38 = vld [vmem:[%s13245_s12 + $0x348] sm:$0xff] }
 0xd82   :  { %8182 = vmatprep.subr.bf16.mxu0 %v8181_v61  ;;  %v3561_v61 = vld [vmem:[%s13245_s12 + $0x78] sm:$0xff]  ;;  %v3655_v10 = vld [vmem:[%s13245_s12 + $0x368] sm:$0xff] }
 0xd83   :  { %v8217_v59 = vpack.c.bf16 %v3561_v61, %v3557_v7  ;;  %v3568_v61 = vld [vmem:[%s13245_s12 + $0xb0] sm:$0xff] }
 0xd85   :  { %8184 = vmatpush1.bf16.msra.mxu0 %v8183_v12 }
 0xd86   :  { %8186 = vmatprep.subr.bf16.mxu0 %v8185_v54 }
 0xd89   :  { %8188 = vmatpush1.bf16.msra.mxu0 %v8187_v40  ;;  %v3565_v40 = vld [vmem:[%s13245_s12 + $0x98] sm:$0xff] }
 0xd8a   :  { %8190 = vmatprep.subr.bf16.mxu0 %v8189_v2  ;;  %v8197_v2 = vpack.c.bf16 %v3647_v28, %v3643_v8  ;;  %v8201_v8 = vpack.c.bf16 %v3655_v10, %v3651_v38  ;;  %v3650_v28 = vld [vmem:[%s13245_s12 + $0x340] sm:$0xff] }
 0xd8b   :  { %v3658_v38 = vld [vmem:[%s13245_s12 + $0x380] sm:$0xff] }
 0xd8c   :  { %v3662_v10 = vld [vmem:[%s13245_s12 + $0x3a0] sm:$0xff] }
 0xd8d   :  { %8192 = vmatpush1.bf16.msra.mxu0 %v8191_v25 }
 0xd8e   :  { %8194 = vmatprep.subr.bf16.mxu0 %v8193_v45  ;;  %v3564_v45 = vld [vmem:[%s13245_s12 + $0x90] sm:$0xff] }
 0xdb5   :  { %v3322_v47 = vpop.xlane.xlu1 %3321 }
 0xdb6   :  { %8965 = vrcp.f32 %v3322_v47  ;;  %v8215_v47 = vpack.c.bf16 %v3552_v11, %v3548_v58 }
 0xdb9   :  { %v3324_v34 = vpop.xlane.xlu1 %3323 }
 0xdba   :  { %8967 = vrcp.f32 %v3324_v34  ;;  %v8195_v34 = vpack.c.bf16 %v3638_v60, %v3634_v0  ;;  %v3573_v0 = vld [vmem:[%s13245_s12 + $0xd8] sm:$0xff]  ;;  %v8199_v60 = vpack.c.bf16 %v3646_v42, %v3642_v63 }
 0xdbc   :  { %8196 = vmatpush1.bf16.msra.mxu0 %v8195_v34  ;;  %v3572_v34 = vld [vmem:[%s13245_s12 + $0xd0] sm:$0xff] }
 0xdbd   :  { %v3326_v22 = vpop.xlane.xlu1 %3325  ;;  %8198 = vmatprep.subr.bf16.mxu0 %v8197_v2  ;;  %v3581_v2 = vld [vmem:[%s13245_s12 + $0x118] sm:$0xff] }
 0xdbe   :  { %8969 = vrcp.f32 %v3326_v22  ;;  %v8219_v22 = vpack.c.bf16 %v3560_v49, %v3556_v32 }
 0xdc0   :  { %v8966_v12 = vpop.eup %8965  ;;  %8200 = vmatpush1.bf16.msra.mxu0 %v8199_v60  ;;  %v3580_v60 = vld [vmem:[%s13245_s12 + $0x110] sm:$0xff] }
 0xdc1   :  { %v3328_v54 = vpop.xlane.xlu1 %3327  ;;  %v3369_v56 = vmul.f32 %v8966_v12, %v11129_v24  ;;  %v3569_v24 = vld [vmem:[%s13245_s12 + $0xb8] sm:$0xff]  ;;  %v3654_v12 = vld [vmem:[%s13245_s12 + $0x360] sm:$0xff]  ;;  %8202 = vmatprep.subr.bf16.mxu0 %v8201_v8  ;;  %v8207_v8 = vpack.c.bf16 %v3662_v10, %v3658_v38 }
 0xdc2   :  { %8971 = vrcp.f32 %v3328_v54  ;;  %v8221_v7 = vpack.c.bf16 %v3569_v24, %v3565_v40  ;;  %v3663_v54 = vld [vmem:[%s13245_s12 + $0x3a8] sm:$0xff]  ;;  %v3576_v24 = vld [vmem:[%s13245_s12 + $0xf0] sm:$0xff]  ;;  %v8203_v63 = vpack.c.bf16 %v3654_v12, %v3650_v28  ;;  %v3589_v28 = vld [vmem:[%s13245_s12 + $0x158] sm:$0xff] }
 0xdc3   :  { %3450 = vmatmul.mubr.f32.vlgmr.msra.gmra.mrb[110].mxu1 %v3369_v56  ;;  %v3605_v38 = vld [vmem:[%s13245_s12 + $0x1d8] sm:$0xff] }
 0xdc4   :  { %v8968_v25 = vpop.eup %8967  ;;  %3455 = vmatprep.mubr.f32.mxu1 %v13255_v3  ;;  %8216 = vmatpush1.bf16.msra.mxu1 %v8215_v47  ;;  %v3659_v47 = vld [vmem:[%s13245_s12 + $0x388] sm:$0xff]  ;;  %v3609_v10 = vld [vmem:[%s13245_s12 + $0x1f8] sm:$0xff] }
 0xdc5   :  { %v3330_v58 = vpop.xlane.xlu1 %3329  ;;  %v3370_v11 = vmul.f32 %v8968_v25, %v11132_v30  ;;  %8218 = vmatprep.subr.bf16.mxu1 %v8217_v59  ;;  %v3577_v30 = vld [vmem:[%s13245_s12 + $0xf8] sm:$0xff]  ;;  %v8223_v59 = vpack.c.bf16 %v3568_v61, %v3564_v45  ;;  %v8205_v42 = vpack.c.bf16 %v3663_v54, %v3659_v47  ;;  %v3667_v25 = vld [vmem:[%s13245_s12 + $0x3c8] sm:$0xff]  ;;  %8204 = vmatpush1.bf16.msra.mxu0 %v8203_v63 }
 0xdc6   :  { %8973 = vrcp.f32 %v3330_v58  ;;  %v8225_v40 = vpack.c.bf16 %v3577_v30, %v3573_v0  ;;  %v3584_v30 = vld [vmem:[%s13245_s12 + $0x130] sm:$0xff] }
 0xdc7   :  { %3456 = vmatmul.mubr.f32.gmra.mrb[112].mxu1 %v3370_v11  ;;  %v8227_v11 = vpack.c.bf16 %v3576_v24, %v3572_v34  ;;  %8206 = vmatprep.subr.bf16.mxu0 %v8205_v42  ;;  %v8231_v54 = vpack.c.bf16 %v3584_v30, %v3580_v60  ;;  %v3601_v34 = vld [vmem:[%s13245_s12 + $0x1b8] sm:$0xff]  ;;  %v3600_v42 = vld [vmem:[%s13245_s12 + $0x1b0] sm:$0xff] }
 0xdc8   :  { %v8970_v56 = vpop.eup %8969  ;;  %3461 = vmatprep.mubr.f32.mxu1 %v13255_v3  ;;  %8220 = vmatpush1.bf16.msra.mxu1 %v8219_v22  ;;  %v3671_v22 = vld [vmem:[%s13245_s12 + $0x3e8] sm:$0xff] }
 0xdc9   :  { %v3332_v32 = vpop.xlane.xlu1 %3331  ;;  %v3371_v49 = vmul.f32 %v8970_v56, %v11137_v27  ;;  %8222 = vmatprep.subr.bf16.mxu1 %v8221_v7  ;;  %v3585_v27 = vld [vmem:[%s13245_s12 + $0x138] sm:$0xff]  ;;  %v3336_v7 = vpop.xlane.xlu0 %3335  ;;  %v8209_v12 = vpack.c.bf16 %v3671_v22, %v3667_v25  ;;  %8208 = vmatpush1.bf16.msra.mxu0 %v8207_v8  ;;  %v3612_v8 = vld [vmem:[%s13245_s12 + $0x210] sm:$0xff] }
 0xdca   :  { %8975 = vrcp.f32 %v3332_v32  ;;  %v8229_v0 = vpack.c.bf16 %v3585_v27, %v3581_v2  ;;  %v3588_v32 = vld [vmem:[%s13245_s12 + $0x150] sm:$0xff] }
 0xdcb   :  { %3462 = vmatmul.mubr.f32.gmra.mrb[114].mxu1 %v3371_v49  ;;  %v3592_v49 = vld [vmem:[%s13245_s12 + $0x170] sm:$0xff]  ;;  %8210 = vmatprep.subr.bf16.mxu0 %v8209_v12  ;;  %v3625_v12 = vld [vmem:[%s13245_s12 + $0x278] sm:$0xff] }
 0xdcc   :  { %v8972_v58 = vpop.eup %8971  ;;  %3467 = vmatprep.mubr.f32.mxu1 %v13255_v3  ;;  %8224 = vmatpush1.bf16.msra.mxu1 %v8223_v59  ;;  %v8235_v24 = vpack.c.bf16 %v3592_v49, %v3588_v32  ;;  %v3596_v27 = vld [vmem:[%s13245_s12 + $0x190] sm:$0xff]  ;;  %v3633_v32 = vld [vmem:[%s13245_s12 + $0x2b8] sm:$0xff] }
 0xdcd   :  { %v3334_v45 = vpop.xlane.xlu1 %3333  ;;  %v3372_v61 = vmul.f32 %v8972_v58, %v11148_v26  ;;  %8226 = vmatprep.subr.bf16.mxu1 %v8225_v40  ;;  %v3593_v26 = vld [vmem:[%s13245_s12 + $0x178] sm:$0xff]  ;;  %v8239_v25 = vpack.c.bf16 %v3600_v42, %v3596_v27  ;;  %v8241_v58 = vpack.c.bf16 %v3609_v10, %v3605_v38  ;;  %v3636_v38 = vld [vmem:[%s13245_s12 + $0x2d0] sm:$0xff] }
 0xdce   :  { %8977 = vrcp.f32 %v3334_v45  ;;  %v8233_v59 = vpack.c.bf16 %v3593_v26, %v3589_v28  ;;  %v3597_v40 = vld [vmem:[%s13245_s12 + $0x198] sm:$0xff]  ;;  %v3616_v28 = vld [vmem:[%s13245_s12 + $0x230] sm:$0xff] }
 0xdcf   :  { %3468 = vmatmul.mubr.f32.gmra.mrb[116].mxu1 %v3372_v61  ;;  %8979 = vrcp.f32 %v3336_v7  ;;  %v8237_v63 = vpack.c.bf16 %v3601_v34, %v3597_v40  ;;  %v3608_v7 = vld [vmem:[%s13245_s12 + $0x1f0] sm:$0xff]  ;;  %v3613_v61 = vld [vmem:[%s13245_s12 + $0x218] sm:$0xff] }
 0xdd0   :  { %v8974_v47 = vpop.eup %8973  ;;  %3473 = vmatprep.mubr.f32.mxu1 %v13255_v3  ;;  %8228 = vmatpush1.bf16.msra.mxu1 %v8227_v11  ;;  %v3604_v11 = vld [vmem:[%s13245_s12 + $0x1d0] sm:$0xff]  ;;  %v3621_v26 = vld [vmem:[%s13245_s12 + $0x258] sm:$0xff] }
 0xdd1   :  { %v3373_v56 = vmul.f32 %v8974_v47, %v11154_v31  ;;  %8230 = vmatprep.subr.bf16.mxu1 %v8229_v0  ;;  %v3617_v0 = vld [vmem:[%s13245_s12 + $0x238] sm:$0xff]  ;;  %v8249_v47 = vpack.c.bf16 %v3625_v12, %v3621_v26  ;;  %v3628_v34 = vld [vmem:[%s13245_s12 + $0x290] sm:$0xff] }
 0xdd2   :  { %v8245_v30 = vpack.c.bf16 %v3617_v0, %v3613_v61  ;;  %v3640_v10 = vld [vmem:[%s13245_s12 + $0x2f0] sm:$0xff]  ;;  %v3653_v61 = vld [vmem:[%s13245_s12 + $0x358] sm:$0xff] }
 0xdd3   :  { %3474 = vmatmul.mubr.f32.gmra.mrb[118].mxu1 %v3373_v56  ;;  %v3624_v56 = vld [vmem:[%s13245_s12 + $0x270] sm:$0xff]  ;;  %v3657_v0 = vld [vmem:[%s13245_s12 + $0x378] sm:$0xff] }
 0xdd4   :  { %v8976_v31 = vpop.eup %8975  ;;  %3479 = vmatprep.mubr.f32.mxu1 %v13255_v3  ;;  %8232 = vmatpush1.bf16.msra.mxu1 %v8231_v54  ;;  %v3620_v54 = vld [vmem:[%s13245_s12 + $0x250] sm:$0xff]  ;;  %v3661_v26 = vld [vmem:[%s13245_s12 + $0x398] sm:$0xff] }
 0xdd5   :  { %v3374_v2 = vmul.f32 %v8976_v31, %v11162_v57  ;;  %8234 = vmatprep.subr.bf16.mxu1 %v8233_v59  ;;  %v3629_v59 = vld [vmem:[%s13245_s12 + $0x298] sm:$0xff]  ;;  %v8251_v49 = vpack.c.bf16 %v3624_v56, %v3620_v54  ;;  %v3632_v31 = vld [vmem:[%s13245_s12 + $0x2b0] sm:$0xff] }
 0xdd6   :  { %v8253_v40 = vpack.c.bf16 %v3633_v32, %v3629_v59  ;;  %v3665_v12 = vld [vmem:[%s13245_s12 + $0x3b8] sm:$0xff]  ;;  %v3660_v32 = vld [vmem:[%s13245_s12 + $0x390] sm:$0xff] }
 0xdd7   :  { %3480 = vmatmul.mubr.f32.gmra.mrb[120].mxu1 %v3374_v2  ;;  %v3641_v2 = vld [vmem:[%s13245_s12 + $0x2f8] sm:$0xff]  ;;  %v8269_v59 = vpack.c.bf16 %v3665_v12, %v3661_v26 }
 0xdd8   :  { %v8978_v57 = vpop.eup %8977  ;;  %3485 = vmatprep.mubr.f32.mxu1 %v13255_v3  ;;  %8236 = vmatpush1.bf16.msra.mxu1 %v8235_v24  ;;  %v3637_v24 = vld [vmem:[%s13245_s12 + $0x2d8] sm:$0xff] }
 0xdd9   :  { %v3375_v22 = vmul.f32 %v8978_v57, %v11170_v36  ;;  %8238 = vmatprep.subr.bf16.mxu1 %v8237_v63  ;;  %v8980_v45 = vpop.eup %8979  ;;  %v8243_v36 = vpack.c.bf16 %v3608_v7, %v3604_v11  ;;  %v8255_v63 = vpack.c.bf16 %v3632_v31, %v3628_v34  ;;  %v8257_v42 = vpack.c.bf16 %v3641_v2, %v3637_v24  ;;  %v3645_v57 = vld [vmem:[%s13245_s12 + $0x318] sm:$0xff]  ;;  %v3644_v7 = vld [vmem:[%s13245_s12 + $0x310] sm:$0xff] }
 0xdda   :  { %v3376_v60 = vmul.f32 %v8980_v45, %v11140_v23  ;;  %v8247_v23 = vpack.c.bf16 %v3616_v28, %v3612_v8  ;;  %v3648_v45 = vld [vmem:[%s13245_s12 + $0x330] sm:$0xff]  ;;  %v3673_v34 = vld [vmem:[%s13245_s12 + $0x3f8] sm:$0xff] }
 0xddb   :  { %3486 = vmatmul.mubr.f32.gmra.mrb[122].mxu1 %v3375_v22  ;;  %v8259_v22 = vpack.c.bf16 %v3640_v10, %v3636_v38  ;;  %v3652_v8 = vld [vmem:[%s13245_s12 + $0x350] sm:$0xff] }
 0xddc   :  { %3491 = vmatprep.mubr.f32.mxu1 %v13255_v3  ;;  %8240 = vmatpush1.bf16.msra.mxu1 %v8239_v25  ;;  %v3649_v25 = vld [vmem:[%s13245_s12 + $0x338] sm:$0xff]  ;;  %v3656_v28 = vld [vmem:[%s13245_s12 + $0x370] sm:$0xff] }
 0xddd   :  { %8242 = vmatprep.subr.bf16.mxu1 %v8241_v58  ;;  %v8261_v11 = vpack.c.bf16 %v3649_v25, %v3645_v57 }
 0xddf   :  { %3492 = vmatmul.mubr.f32.gmra.mrb[124].mxu1 %v3376_v60 }
 0xde0   :  { %3497 = vmatprep.mubr.f32.mxu1 %v13255_v3  ;;  %8244 = vmatpush1.bf16.msra.mxu1 %v8243_v36  ;;  %v8263_v36 = vpack.c.bf16 %v3648_v45, %v3644_v7 }
 0xde1   :  { %8246 = vmatprep.subr.bf16.mxu1 %v8245_v30  ;;  %v8265_v30 = vpack.c.bf16 %v3657_v0, %v3653_v61  ;;  %v3668_v0 = vld [vmem:[%s13245_s12 + $0x3d0] sm:$0xff] }
 0xde4   :  { %8248 = vmatpush1.bf16.msra.mxu1 %v8247_v23 }
 0xde5   :  { %8250 = vmatprep.subr.bf16.mxu1 %v8249_v47  ;;  %v8267_v47 = vpack.c.bf16 %v3656_v28, %v3652_v8 }
 0xde8   :  { %8252 = vmatpush1.bf16.msra.mxu1 %v8251_v49  ;;  %v3664_v49 = vld [vmem:[%s13245_s12 + $0x3b0] sm:$0xff] }
 0xde9   :  { %8254 = vmatprep.subr.bf16.mxu1 %v8253_v40  ;;  %v3669_v40 = vld [vmem:[%s13245_s12 + $0x3d8] sm:$0xff]  ;;  %v8271_v31 = vpack.c.bf16 %v3664_v49, %v3660_v32 }
 0xdea   :  { %v3338_v27 = vpop.xlane.xlu1 %3337 }
 0xdeb   :  { %8981 = vrcp.f32 %v3338_v27 }
 0xdec   :  { %8256 = vmatpush1.bf16.msra.mxu1 %v8255_v63  ;;  %v8273_v63 = vpack.c.bf16 %v3673_v34, %v3669_v40 }
 0xded   :  { %8258 = vmatprep.subr.bf16.mxu1 %v8257_v42 }
 0xdee   :  { %v3340_v58 = vpop.xlane.xlu1 %3339 }
 0xdef   :  { %8983 = vrcp.f32 %v3340_v58 }
 0xdf0   :  { %8260 = vmatpush1.bf16.msra.mxu1 %v8259_v22 }
 0xdf1   :  { %8262 = vmatprep.subr.bf16.mxu1 %v8261_v11 }
 0xdf2   :  { %v3342_v60 = vpop.xlane.xlu1 %3341 }
 0xdf3   :  { %8985 = vrcp.f32 %v3342_v60 }
 0xdf4   :  { %8264 = vmatpush1.bf16.msra.mxu1 %v8263_v36  ;;  %v3672_v36 = vld [vmem:[%s13245_s12 + $0x3f0] sm:$0xff] }
 0xdf5   :  { %v8982_v23 = vpop.eup %8981  ;;  %8266 = vmatprep.subr.bf16.mxu1 %v8265_v30  ;;  %v8275_v60 = vpack.c.bf16 %v3672_v36, %v3668_v0 }
 0xdf6   :  { %v3344_v54 = vpop.xlane.xlu1 %3343  ;;  %v3377_v56 = vmul.f32 %v8982_v23, %v11189_v46 }
 0xdf7   :  { %8987 = vrcp.f32 %v3344_v54 }
 0xdf8   :  { %3498 = vmatmul.mubr.f32.gmra.mrb[126].mxu1 %v3377_v56 }
 0xdf9   :  { %v8984_v46 = vpop.eup %8983  ;;  %3503 = vmatprep.mubr.f32.mxu1 %v13255_v3  ;;  %8268 = vmatpush1.bf16.msra.mxu1 %v8267_v47 }
 0xdfa   :  { %v3346_v24 = vpop.xlane.xlu1 %3345  ;;  %v3378_v2 = vmul.f32 %v8984_v46, %v11192_v13  ;;  %8270 = vmatprep.subr.bf16.mxu1 %v8269_v59 }
 0xdfb   :  { %8989 = vrcp.f32 %v3346_v24 }
 0xdfc   :  { %3504 = vmatmul.mubr.f32.gmra.mrb[128].mxu1 %v3378_v2 }
 0xdfd   :  { %v8986_v27 = vpop.eup %8985  ;;  %3509 = vmatprep.mubr.f32.mxu1 %v13255_v3  ;;  %8272 = vmatpush1.bf16.msra.mxu1 %v8271_v31 }
 0xdfe   :  { %v3348_v42 = vpop.xlane.xlu1 %3347  ;;  %v3379_v38 = vmul.f32 %v8986_v27, %v11195_v43  ;;  %8274 = vmatprep.subr.bf16.mxu1 %v8273_v63 }
 0xdff   :  { %8991 = vrcp.f32 %v3348_v42 }
 0xe00   :  { %3510 = vmatmul.mubr.f32.gmra.mrb[130].mxu1 %v3379_v38 }
 0xe01   :  { %v8988_v10 = vpop.eup %8987  ;;  %3515 = vmatprep.mubr.f32.mxu1 %v13255_v3  ;;  %8276 = vmatpush1.bf16.msra.mxu1 %v8275_v60 }
 0xe02   :  { %v3350_v57 = vpop.xlane.xlu1 %3349  ;;  %v3380_v13 = vmul.f32 %v8988_v10, %v11198_v18 }
 0xe03   :  { %8993 = vrcp.f32 %v3350_v57 }
 0xe04   :  { %3516 = vmatmul.mubr.f32.gmra.mrb[132].mxu1 %v3380_v13 }
 0xe05   :  { %v8990_v25 = vpop.eup %8989  ;;  %3521 = vmatprep.mubr.f32.mxu1 %v13255_v3 }
 0xe06   :  { %v3352_v22 = vpop.xlane.xlu1 %3351  ;;  %v3381_v58 = vmul.f32 %v8990_v25, %v11201_v17  ;;  %v3666_v17 = vld [vmem:[%s13245_s12 + $0x3c0] sm:$0xff] }
 0xe07   :  { %8995 = vrcp.f32 %v3352_v22 }
 0xe08   :  { %3522 = vmatmul.mubr.f32.gmra.mrb[134].mxu1 %v3381_v58 }
 0xe09   :  { %v8992_v43 = vpop.eup %8991  ;;  %3527 = vmatprep.mubr.f32.mxu1 %v13255_v3 }
 0xe0a   :  { %v3382_v11 = vmul.f32 %v8992_v43, %v11204_v51  ;;  %v3670_v51 = vld [vmem:[%s13245_s12 + $0x3e0] sm:$0xff] }
 0xe0c   :  { %3528 = vmatmul.mubr.f32.gmra.mrb[136].mxu1 %v3382_v11 }
 0xe0d   :  { %v8994_v7 = vpop.eup %8993  ;;  %3533 = vmatprep.mubr.f32.mxu1 %v13255_v3 }
 0xe0e   :  { %v3383_v18 = vmul.f32 %v8994_v7, %v11207_v20  ;;  %v8211_v20 = vpack.c.bf16 %v3670_v51, %v3666_v17  ;;  %v11642_v17 = vld [vmem:[%s13246_s13 + $0x10] sm:$0xff] }
 0xe0f   :  { %v11650_v0 = vrot.slane %v11642_v17, %v9632_v37 }
 0xe10   :  { %3534 = vmatmul.mubr.f32.gmra.mrb[138].mxu1 %v3383_v18  ;;  %8212 = vmatpush1.bf16.msra.mxu0 %v8211_v20  ;;  %v3675_v18 = vld [vmem:[%s13246_s13 + $0x8] sm:$0xff] }
 0xe11   :  { %v8996_v45 = vpop.eup %8995  ;;  %3539 = vmatprep.mubr.f32.mxu1 %v13255_v3  ;;  %v11653_v20 = vrot.slane %v3675_v18, %v9632_v37 }
 0xe12   :  { %v3384_v61 = vmul.f32 %v8996_v45, %v11210_v19  ;;  %v3677_v45 = vld [vmem:[%s13246_s13 + $0x18] sm:$0xff] }
 0xe14   :  { %3540 = vmatmul.mubr.f32.gmra.mrb[140].mxu1 %v3384_v61  ;;  %v11637_v61 = vld [vmem:[%s13246_s13] sm:$0xff] }
 0xe15   :  { %v11646_v51 = vrot.slane %v11637_v61, %v9632_v37 }
 0xe96   :  { %v3451_v19 = vpop.f32.mrb[110].mxu1 }
 0xe97   :  { %v3453_v30 = vpop.f32.mrb[111].mxu1 }
 0xe98   :  { %3758 = vmatprep.mubr.f32.mxu0 %v3453_v30  ;;  %3919 = vmatprep.mubr.f32.mxu1 %v3453_v30 }
 0xe99   :  { %3759 = vmatmul.mubr.f32.vlgmr.msra.gmra.mrb[52].mxu0 %v3451_v19  ;;  %3920 = vmatmul.mubr.f32.vlgmr.msra.gmra.mrb[142].mxu1 %v3451_v19  ;;  %v11656_v19 = vrot.slane %v3677_v45, %v9632_v37 }
 0xe9a   :  { %v3457_v8 = vpop.f32.mrb[112].mxu1 }
 0xe9b   :  { %v3459_v28 = vpop.f32.mrb[113].mxu1 }
 0xe9c   :  { %3764 = vmatprep.mubr.f32.mxu0 %v3459_v28  ;;  %3925 = vmatprep.mubr.f32.mxu1 %v3459_v28 }
 0xe9d   :  { %3765 = vmatmul.mubr.f32.gmra.mrb[54].mxu0 %v3457_v8  ;;  %3926 = vmatmul.mubr.f32.gmra.mrb[144].mxu1 %v3457_v8  ;;  %v11661_v8 = vrot.slane %v11637_v61, %v9649_v41 }
 0xe9e   :  { %v3463_v26 = vpop.f32.mrb[114].mxu1 }
 0xe9f   :  { %v3465_v12 = vpop.f32.mrb[115].mxu1 }
 0xea0   :  { %3770 = vmatprep.mubr.f32.mxu0 %v3465_v12  ;;  %3931 = vmatprep.mubr.f32.mxu1 %v3465_v12 }
 0xea1   :  { %3771 = vmatmul.mubr.f32.gmra.mrb[56].mxu0 %v3463_v26  ;;  %3932 = vmatmul.mubr.f32.gmra.mrb[146].mxu1 %v3463_v26 }
 0xea2   :  { %v3469_v23 = vpop.f32.mrb[116].mxu1 }
 0xea3   :  { %v3471_v47 = vpop.f32.mrb[117].mxu1 }
 0xea4   :  { %3776 = vmatprep.mubr.f32.mxu0 %v3471_v47  ;;  %3937 = vmatprep.mubr.f32.mxu1 %v3471_v47  ;;  %v11666_v47 = vrot.slane %v3675_v18, %v9649_v41 }
 0xea5   :  { %3777 = vmatmul.mubr.f32.gmra.mrb[58].mxu0 %v3469_v23  ;;  %3938 = vmatmul.mubr.f32.gmra.mrb[148].mxu1 %v3469_v23 }
 0xea6   :  { %v3475_v54 = vpop.f32.mrb[118].mxu1 }
 0xea7   :  { %v3477_v56 = vpop.f32.mrb[119].mxu1 }
 0xea8   :  { %3782 = vmatprep.mubr.f32.mxu0 %v3477_v56  ;;  %3943 = vmatprep.mubr.f32.mxu1 %v3477_v56 }
 0xea9   :  { %3783 = vmatmul.mubr.f32.gmra.mrb[60].mxu0 %v3475_v54  ;;  %3944 = vmatmul.mubr.f32.gmra.mrb[150].mxu1 %v3475_v54 }
 0xeaa   :  { %v3481_v59 = vpop.f32.mrb[120].mxu1 }
 0xeab   :  { %v3483_v32 = vpop.f32.mrb[121].mxu1 }
 0xeac   :  { %3788 = vmatprep.mubr.f32.mxu0 %v3483_v32  ;;  %3949 = vmatprep.mubr.f32.mxu1 %v3483_v32 }
 0xead   :  { %3789 = vmatmul.mubr.f32.gmra.mrb[62].mxu0 %v3481_v59  ;;  %3950 = vmatmul.mubr.f32.gmra.mrb[152].mxu1 %v3481_v59 }
 0xeae   :  { %v3487_v49 = vpop.f32.mrb[122].mxu1 }
 0xeaf   :  { %v3489_v40 = vpop.f32.mrb[123].mxu1 }
 0xeb0   :  { %3794 = vmatprep.mubr.f32.mxu0 %v3489_v40  ;;  %3955 = vmatprep.mubr.f32.mxu1 %v3489_v40 }
 0xeb1   :  { %3795 = vmatmul.mubr.f32.gmra.mrb[64].mxu0 %v3487_v49  ;;  %3956 = vmatmul.mubr.f32.gmra.mrb[154].mxu1 %v3487_v49 }
 0xeb2   :  { %v3493_v34 = vpop.f32.mrb[124].mxu1 }
 0xeb3   :  { %v3495_v46 = vpop.f32.mrb[125].mxu1 }
 0xeb4   :  { %3800 = vmatprep.mubr.f32.mxu0 %v3495_v46  ;;  %3961 = vmatprep.mubr.f32.mxu1 %v3495_v46 }
 0xeb5   :  { %3801 = vmatmul.mubr.f32.gmra.mrb[66].mxu0 %v3493_v34  ;;  %3962 = vmatmul.mubr.f32.gmra.mrb[156].mxu1 %v3493_v34  ;;  %v11672_v34 = vrot.slane %v11642_v17, %v9649_v41 }
 0xecb   :  { %v3499_v31 = vpop.f32.mrb[126].mxu1 }
 0xecc   :  { %v3501_v24 = vpop.f32.mrb[127].mxu1 }
 0xecd   :  { %3806 = vmatprep.mubr.f32.mxu0 %v3501_v24  ;;  %3967 = vmatprep.mubr.f32.mxu1 %v3501_v24 }
 0xece   :  { %3807 = vmatmul.mubr.f32.gmra.mrb[68].mxu0 %v3499_v31  ;;  %3968 = vmatmul.mubr.f32.gmra.mrb[158].mxu1 %v3499_v31 }
 0xecf   :  { %v3505_v2 = vpop.f32.mrb[128].mxu1 }
 0xed0   :  { %v3507_v63 = vpop.f32.mrb[129].mxu1 }
 0xed1   :  { %3812 = vmatprep.mubr.f32.mxu0 %v3507_v63  ;;  %3973 = vmatprep.mubr.f32.mxu1 %v3507_v63 }
 0xed2   :  { %3813 = vmatmul.mubr.f32.gmra.mrb[70].mxu0 %v3505_v2  ;;  %3974 = vmatmul.mubr.f32.gmra.mrb[160].mxu1 %v3505_v2 }
 0xed3   :  { %v3511_v27 = vpop.f32.mrb[130].mxu1 }
 0xed4   :  { %v3513_v42 = vpop.f32.mrb[131].mxu1 }
 0xed5   :  { %3818 = vmatprep.mubr.f32.mxu0 %v3513_v42  ;;  %3979 = vmatprep.mubr.f32.mxu1 %v3513_v42 }
 0xed6   :  { %3819 = vmatmul.mubr.f32.gmra.mrb[72].mxu0 %v3511_v27  ;;  %3980 = vmatmul.mubr.f32.gmra.mrb[162].mxu1 %v3511_v27 }
 0xed7   :  { %v3517_v38 = vpop.f32.mrb[132].mxu1 }
 0xed8   :  { %v3519_v10 = vpop.f32.mrb[133].mxu1 }
 0xed9   :  { %3824 = vmatprep.mubr.f32.mxu0 %v3519_v10  ;;  %3985 = vmatprep.mubr.f32.mxu1 %v3519_v10  ;;  %v11680_v10 = vrot.slane %v3677_v45, %v9649_v41 }
 0xeda   :  { %3825 = vmatmul.mubr.f32.gmra.mrb[74].mxu0 %v3517_v38  ;;  %3986 = vmatmul.mubr.f32.gmra.mrb[164].mxu1 %v3517_v38 }
 0xedb   :  { %v3523_v57 = vpop.f32.mrb[134].mxu1 }
 0xedc   :  { %v3525_v13 = vpop.f32.mrb[135].mxu1 }
 0xedd   :  { %3830 = vmatprep.mubr.f32.mxu0 %v3525_v13  ;;  %3991 = vmatprep.mubr.f32.mxu1 %v3525_v13 }
 0xede   :  { %3831 = vmatmul.mubr.f32.gmra.mrb[76].mxu0 %v3523_v57  ;;  %3992 = vmatmul.mubr.f32.gmra.mrb[166].mxu1 %v3523_v57 }
 0xedf   :  { %v3529_v25 = vpop.f32.mrb[136].mxu1 }
 0xee0   :  { %v3531_v22 = vpop.f32.mrb[137].mxu1 }
 0xee1   :  { %3836 = vmatprep.mubr.f32.mxu0 %v3531_v22  ;;  %3997 = vmatprep.mubr.f32.mxu1 %v3531_v22 }
 0xee2   :  { %3837 = vmatmul.mubr.f32.gmra.mrb[78].mxu0 %v3529_v25  ;;  %3998 = vmatmul.mubr.f32.gmra.mrb[168].mxu1 %v3529_v25 }
 0xee3   :  { %v3535_v58 = vpop.f32.mrb[138].mxu1 }
 0xee4   :  { %v3537_v43 = vpop.f32.mrb[139].mxu1 }
 0xee5   :  { %3842 = vmatprep.mubr.f32.mxu0 %v3537_v43  ;;  %4003 = vmatprep.mubr.f32.mxu1 %v3537_v43 }
 0xee6   :  { %3843 = vmatmul.mubr.f32.gmra.mrb[80].mxu0 %v3535_v58  ;;  %4004 = vmatmul.mubr.f32.gmra.mrb[170].mxu1 %v3535_v58 }
 0xee7   :  { %v3541_v11 = vpop.f32.mrb[140].mxu1 }
 0xee8   :  { %v3543_v7 = vpop.f32.mrb[141].mxu1 }
 0xee9   :  { %3848 = vmatprep.mubr.f32.mxu0 %v3543_v7  ;;  %4009 = vmatprep.mubr.f32.mxu1 %v3543_v7 }
 0xeea   :  { %3849 = vmatmul.mubr.f32.gmra.mrb[82].mxu0 %v3541_v11  ;;  %4010 = vmatmul.mubr.f32.gmra.mrb[172].mxu1 %v3541_v11 }
 0xeeb   :  { %4144 = vmatprep.mubr.f32.mxu0 %v3675_v18  ;;  %4214 = vmatprep.mubr.f32.mxu1 %v3677_v45 }
 0xf6c   :  { %v3760_v36 = vpop.f32.mrb[52].mxu0  ;;  %v3921_v60 = vpop.f32.mrb[142].mxu1 }
 0xf6d   :  { %v3761_v30 = vadd.f32 %v3760_v36, %v11646_v51  ;;  %v3762_v28 = vpop.f32.mrb[53].mxu0  ;;  %v3923_v26 = vpop.f32.mrb[143].mxu1  ;;  %v3922_v12 = vadd.f32 %v3921_v60, %v11650_v0 }
 0xf6e   :  { %v3763_v23 = vadd.f32 %v3762_v28, %v11653_v20  ;;  %v3924_v59 = vadd.f32 %v3923_v26, %v11656_v19 }
 0xf6f   :  { %v4016_v54 = vmax.f32 %v3761_v30, 0.0  ;;  %v4018_v63 = vmax.f32 %v3922_v12, 0.0 }
 0xf70   :  { %v4017_v56 = vmax.f32 %v3763_v23, 0.0  ;;  %v3766_v32 = vpop.f32.mrb[54].mxu0  ;;  %v3927_v49 = vpop.f32.mrb[144].mxu1  ;;  %v4019_v22 = vmax.f32 %v3924_v59, 0.0 }
 0xf71   :  { %v4243_v40 = vmul.f32 %v11661_v8, %v4016_v54  ;;  %v3767_v46 = vadd.f32 %v3766_v32, %v11646_v51  ;;  %v3928_v31 = vadd.f32 %v3927_v49, %v11650_v0  ;;  %v3768_v24 = vpop.f32.mrb[55].mxu0  ;;  %v3929_v2 = vpop.f32.mrb[145].mxu1  ;;  %v4245_v26 = vmul.f32 %v11672_v34, %v4018_v63 }
 0xf72   :  { %v4244_v27 = vmul.f32 %v11666_v47, %v4017_v56  ;;  %v3769_v42 = vadd.f32 %v3768_v24, %v11653_v20  ;;  %v3930_v38 = vadd.f32 %v3929_v2, %v11656_v19 }
 0xf73   :  { %v4020_v57 = vmax.f32 %v3767_v46, 0.0  ;;  %v4022_v13 = vmax.f32 %v3928_v31, 0.0 }
 0xf74   :  { %v4307_v25 = vadd.f32 %v4244_v27, %v4243_v40  ;;  %v4021_v58 = vmax.f32 %v3769_v42, 0.0  ;;  %v4023_v43 = vmax.f32 %v3930_v38, 0.0  ;;  %v3772_v11 = vpop.f32.mrb[56].mxu0  ;;  %v3933_v7 = vpop.f32.mrb[146].mxu1  ;;  %v4246_v40 = vmul.f32 %v11680_v10, %v4019_v22 }
 0xf75   :  { %v11682_v18 = vpack.c.bf16 %v4020_v57, %v4016_v54  ;;  %v4247_v36 = vmul.f32 %v11661_v8, %v4020_v57  ;;  %v11685_v60 = vpack.c.bf16 %v4022_v13, %v4018_v63  ;;  %v3774_v30 = vpop.f32.mrb[57].mxu0  ;;  %v3935_v28 = vpop.f32.mrb[147].mxu1  ;;  %v3773_v59 = vadd.f32 %v3772_v11, %v11646_v51 }
 0xf76   :  { %v11688_v45 = vpack.c.bf16 %v4021_v58, %v4017_v56  ;;  %v4248_v12 = vmul.f32 %v11666_v47, %v4021_v58  ;;  %v11691_v23 = vpack.c.bf16 %v4023_v43, %v4019_v22  ;;  %v3934_v32 = vadd.f32 %v3933_v7, %v11650_v0 }
 0xf77   :  { %v3775_v54 = vadd.f32 %v3774_v30, %v11653_v20  ;;  %v3936_v49 = vadd.f32 %v3935_v28, %v11656_v19  ;;  %v4308_v56 = vadd.f32 %v4307_v25, %v4245_v26  ;;  %v4249_v2 = vmul.f32 %v11672_v34, %v4022_v13 }
 0xf78   :  { %v4312_v46 = vadd.f32 %v4248_v12, %v4247_v36  ;;  %v3778_v31 = vpop.f32.mrb[58].mxu0  ;;  %v3939_v24 = vpop.f32.mrb[148].mxu1  ;;  %8278 = vmatprep.subr.bf16.mxu0 %v11688_v45  ;;  %8310 = vmatprep.subr.bf16.mxu1 %v11691_v23  ;;  %v4024_v63 = vmax.f32 %v3773_v59, 0.0  ;;  %v4026_v27 = vmax.f32 %v3934_v32, 0.0  ;;  %v4250_v25 = vmul.f32 %v11680_v10, %v4023_v43 }
 0xf79   :  { %v4025_v42 = vmax.f32 %v3775_v54, 0.0  ;;  %v3780_v38 = vpop.f32.mrb[59].mxu0  ;;  %v3941_v57 = vpop.f32.mrb[149].mxu1  ;;  %8280 = vmatpush1.bf16.xpose.msra.mxu0 %v11682_v18  ;;  %8312 = vmatpush1.bf16.xpose.msra.mxu1 %v11685_v60  ;;  %v3779_v22 = vadd.f32 %v3778_v31, %v11646_v51  ;;  %v3940_v58 = vadd.f32 %v3939_v24, %v11650_v0  ;;  %v4027_v30 = vmax.f32 %v3936_v49, 0.0 }
 0xf7a   :  { %v3781_v11 = vadd.f32 %v3780_v38, %v11653_v20  ;;  %v3942_v7 = vadd.f32 %v3941_v57, %v11656_v19  ;;  %v4251_v13 = vmul.f32 %v11661_v8, %v4024_v63  ;;  %v4309_v1 = vadd.f32 %v4308_v56, %v4246_v40 }
 0xf7b   :  { %v4252_v36 = vmul.f32 %v11666_v47, %v4025_v42  ;;  %v4028_v28 = vmax.f32 %v3779_v22, 0.0  ;;  %v4030_v26 = vmax.f32 %v3940_v58, 0.0  ;;  %v4253_v43 = vmul.f32 %v11672_v34, %v4026_v27 }
 0xf7c   :  { %v4029_v12 = vmax.f32 %v3781_v11, 0.0  ;;  %v4031_v59 = vmax.f32 %v3942_v7, 0.0  ;;  %v3784_v32 = vpop.f32.mrb[60].mxu0  ;;  %v3945_v54 = vpop.f32.mrb[150].mxu1  ;;  %v4254_v58 = vmul.f32 %v11680_v10, %v4027_v30  ;;  %4310 = vadd.xlane.f32.xlu1 %v4309_v1 }
 0xf7d   :  { %v4317_v31 = vadd.f32 %v4252_v36, %v4251_v13  ;;  %v3785_v24 = vadd.f32 %v3784_v32, %v11646_v51  ;;  %v3946_v38 = vadd.f32 %v3945_v54, %v11650_v0  ;;  %v3786_v57 = vpop.f32.mrb[61].mxu0  ;;  %v3947_v3 = vpop.f32.mrb[151].mxu1  ;;  %v11713_v4 = vpack.c.bf16 %v4028_v28, %v4024_v63 }
 0xf7e   :  { %v4255_v49 = vmul.f32 %v11661_v8, %v4028_v28  ;;  %v11716_v22 = vpack.c.bf16 %v4030_v26, %v4026_v27  ;;  %v11719_v11 = vpack.c.bf16 %v4029_v12, %v4025_v42  ;;  %v4256_v40 = vmul.f32 %v11666_v47, %v4029_v12 }
 0xf7f   :  { %v11722_v56 = vpack.c.bf16 %v4031_v59, %v4027_v30  ;;  %v4032_v7 = vmax.f32 %v3785_v24, 0.0  ;;  %v4034_v13 = vmax.f32 %v3946_v38, 0.0  ;;  %v3787_v36 = vadd.f32 %v3786_v57, %v11653_v20 }
 0xf80   :  { %v3948_v63 = vadd.f32 %v3947_v3, %v11656_v19  ;;  %v3790_v32 = vpop.f32.mrb[62].mxu0  ;;  %v3951_v54 = vpop.f32.mrb[152].mxu1  ;;  %v4322_v28 = vadd.f32 %v4256_v40, %v4255_v49  ;;  %v4313_v27 = vadd.f32 %v4312_v46, %v4249_v2  ;;  %8282 = vmatprep.subr.bf16.mxu0 %v11719_v11  ;;  %v4257_v1 = vmul.f32 %v11672_v34, %v4030_v26 }
 0xf81   :  { %v3791_v37 = vadd.f32 %v3790_v32, %v11646_v51  ;;  %v3952_v42 = vadd.f32 %v3951_v54, %v11650_v0  ;;  %v3792_v12 = vpop.f32.mrb[63].mxu0  ;;  %v3953_v30 = vpop.f32.mrb[153].mxu1  ;;  %v4258_v24 = vmul.f32 %v11680_v10, %v4031_v59  ;;  %v4259_v38 = vmul.f32 %v11661_v8, %v4032_v7  ;;  %8314 = vmatprep.subr.bf16.mxu1 %v11722_v56 }
 0xf82   :  { %v4033_v57 = vmax.f32 %v3787_v36, 0.0  ;;  %8284 = vmatpush1.bf16.xpose.msra.mxu0 %v11713_v4  ;;  %v4314_v3 = vadd.f32 %v4313_v27, %v4250_v25  ;;  %v3793_v49 = vadd.f32 %v3792_v12, %v11653_v20  ;;  %8316 = vmatpush1.bf16.xpose.msra.mxu1 %v11716_v22  ;;  %v4035_v32 = vmax.f32 %v3948_v63, 0.0 }
 0xf83   :  { %v4036_v46 = vmax.f32 %v3791_v37, 0.0  ;;  %v4038_v2 = vmax.f32 %v3952_v42, 0.0  ;;  %v3954_v26 = vadd.f32 %v3953_v30, %v11656_v19  ;;  %v4318_v59 = vadd.f32 %v4317_v31, %v4253_v43 }
 0xf84   :  { %v4260_v40 = vmul.f32 %v11666_v47, %v4033_v57  ;;  %v3796_v54 = vpop.f32.mrb[64].mxu0  ;;  %v3957_v41 = vpop.f32.mrb[154].mxu1  ;;  %v4261_v36 = vmul.f32 %v11672_v34, %v4034_v13  ;;  %4315 = vadd.xlane.f32.xlu1 %v4314_v3  ;;  %v4037_v6 = vmax.f32 %v3793_v49, 0.0 }
 0xf85   :  { %v11739_v62 = vpack.c.bf16 %v4036_v46, %v4032_v7  ;;  %v4263_v37 = vmul.f32 %v11661_v8, %v4036_v46  ;;  %v11742_v25 = vpack.c.bf16 %v4038_v2, %v4034_v13  ;;  %v3798_v27 = vpop.f32.mrb[65].mxu0  ;;  %v3959_v42 = vpop.f32.mrb[155].mxu1  ;;  %v4039_v55 = vmax.f32 %v3954_v26, 0.0 }
 0xf86   :  { %v4327_v12 = vadd.f32 %v4260_v40, %v4259_v38  ;;  %v4319_v63 = vadd.f32 %v4318_v59, %v4254_v58  ;;  %v3797_v30 = vadd.f32 %v3796_v54, %v11646_v51  ;;  %v3958_v31 = vadd.f32 %v3957_v41, %v11650_v0 }
 0xf87   :  { %v3799_v43 = vadd.f32 %v3798_v27, %v11653_v20  ;;  %v3960_v3 = vadd.f32 %v3959_v42, %v11656_v19  ;;  %v4262_v7 = vmul.f32 %v11680_v10, %v4035_v32  ;;  %v11749_v16 = vpack.c.bf16 %v4037_v6, %v4033_v57 }
 0xf88   :  { %v4264_v13 = vmul.f32 %v11666_v47, %v4037_v6  ;;  %v11752_v46 = vpack.c.bf16 %v4039_v55, %v4035_v32  ;;  %v3802_v38 = vpop.f32.mrb[66].mxu0  ;;  %v3963_v49 = vpop.f32.mrb[156].mxu1  ;;  %v4265_v58 = vmul.f32 %v11672_v34, %v4038_v2  ;;  %4320 = vadd.xlane.f32.xlu1 %v4319_v63  ;;  %v4040_v40 = vmax.f32 %v3797_v30, 0.0 }
 0xf89   :  { %v4042_v26 = vmax.f32 %v3958_v31, 0.0  ;;  %v4041_v41 = vmax.f32 %v3799_v43, 0.0  ;;  %v3804_v59 = vpop.f32.mrb[67].mxu0  ;;  %v3965_v54 = vpop.f32.mrb[157].mxu1  ;;  %v4323_v42 = vadd.f32 %v4322_v28, %v4257_v1  ;;  %v3803_v29 = vadd.f32 %v3802_v38, %v11646_v51  ;;  %8286 = vmatprep.subr.bf16.mxu0 %v11749_v16 }
 0xf8a   :  { %v4332_v27 = vadd.f32 %v4264_v13, %v4263_v37  ;;  %v3964_v57 = vadd.f32 %v3963_v49, %v11650_v0  ;;  %v4266_v6 = vmul.f32 %v11680_v10, %v4039_v55  ;;  %v4267_v32 = vmul.f32 %v11661_v8, %v4040_v40  ;;  %8318 = vmatprep.subr.bf16.mxu1 %v11752_v46 }
 0xf8b   :  { %v4268_v2 = vmul.f32 %v11666_v47, %v4041_v41  ;;  %v4043_v63 = vmax.f32 %v3960_v3, 0.0  ;;  %v4324_v30 = vadd.f32 %v4323_v42, %v4258_v24  ;;  %v4044_v31 = vmax.f32 %v3803_v29, 0.0  ;;  %8288 = vmatpush1.bf16.xpose.msra.mxu0 %v11739_v62  ;;  %8320 = vmatpush1.bf16.xpose.msra.mxu1 %v11742_v25 }
 0xf8c   :  { %v4046_v43 = vmax.f32 %v3964_v57, 0.0  ;;  %v3805_v28 = vadd.f32 %v3804_v59, %v11653_v20  ;;  %v3966_v37 = vadd.f32 %v3965_v54, %v11656_v19  ;;  %v4328_v55 = vadd.f32 %v4327_v12, %v4261_v36 }
 0xf8d   :  { %v4337_v1 = vadd.f32 %v4268_v2, %v4267_v32  ;;  %v4333_v13 = vadd.f32 %v4332_v27, %v4265_v58  ;;  %v4269_v38 = vmul.f32 %v11672_v34, %v4042_v26  ;;  %4325 = vadd.xlane.f32.xlu0 %v4324_v30  ;;  %v11767_v3 = vpack.c.bf16 %v4044_v31, %v4040_v40 }
 0xf8e   :  { %v4271_v24 = vmul.f32 %v11661_v8, %v4044_v31  ;;  %v11770_v29 = vpack.c.bf16 %v4046_v43, %v4042_v26  ;;  %v4045_v49 = vmax.f32 %v3805_v28, 0.0  ;;  %v4047_v59 = vmax.f32 %v3966_v37, 0.0 }
 0xf8f   :  { %v4329_v42 = vadd.f32 %v4328_v55, %v4262_v7  ;;  %v4334_v57 = vadd.f32 %v4333_v13, %v4266_v6  ;;  %v4270_v44 = vmul.f32 %v11680_v10, %v4043_v63  ;;  %v4338_v32 = vadd.f32 %v4337_v1, %v4269_v38 }
 0xf90   :  { %v11773_v2 = vpack.c.bf16 %v4045_v49, %v4041_v41  ;;  %v4272_v36 = vmul.f32 %v11666_v47, %v4045_v49  ;;  %v11776_v12 = vpack.c.bf16 %v4047_v59, %v4043_v63  ;;  %v4273_v40 = vmul.f32 %v11672_v34, %v4046_v43 }
 0xf91   :  { %4330 = vadd.xlane.f32.xlu1 %v4329_v42  ;;  %4335 = vadd.xlane.f32.xlu0 %v4334_v57  ;;  %v4339_v58 = vadd.f32 %v4338_v32, %v4270_v44  ;;  %v4274_v7 = vmul.f32 %v11680_v10, %v4047_v59 }
 0xf92   :  { %v4342_v26 = vadd.f32 %v4272_v36, %v4271_v24  ;;  %8290 = vmatprep.subr.bf16.mxu0 %v11773_v2  ;;  %8322 = vmatprep.subr.bf16.mxu1 %v11776_v12 }
 0xf93   :  { %8292 = vmatpush1.bf16.xpose.msra.mxu0 %v11767_v3  ;;  %8324 = vmatpush1.bf16.xpose.msra.mxu1 %v11770_v29 }
 0xf94   :  { %v4343_v41 = vadd.f32 %v4342_v26, %v4273_v40 }
 0xf95   :  { %4340 = vadd.xlane.f32.xlu1 %v4339_v58 }
 0xf96   :  { %v4344_v54 = vadd.f32 %v4343_v41, %v4274_v7 }
 0xf98   :  { %4345 = vadd.xlane.f32.xlu0 %v4344_v54 }
 0xfa1   :  { %v3808_v27 = vpop.f32.mrb[68].mxu0  ;;  %v3969_v6 = vpop.f32.mrb[158].mxu1 }
 0xfa2   :  { %v3809_v44 = vadd.f32 %v3808_v27, %v11646_v51  ;;  %v3810_v63 = vpop.f32.mrb[69].mxu0  ;;  %v3971_v30 = vpop.f32.mrb[159].mxu1  ;;  %v3970_v31 = vadd.f32 %v3969_v6, %v11650_v0 }
 0xfa3   :  { %v3811_v43 = vadd.f32 %v3810_v63, %v11653_v20  ;;  %v3972_v37 = vadd.f32 %v3971_v30, %v11656_v19 }
 0xfa4   :  { %v4048_v28 = vmax.f32 %v3809_v44, 0.0  ;;  %v4050_v57 = vmax.f32 %v3970_v31, 0.0 }
 0xfa5   :  { %v4049_v1 = vmax.f32 %v3811_v43, 0.0  ;;  %v3814_v55 = vpop.f32.mrb[70].mxu0  ;;  %v3975_v13 = vpop.f32.mrb[160].mxu1  ;;  %v4051_v41 = vmax.f32 %v3972_v37, 0.0 }
 0xfa6   :  { %v4275_v38 = vmul.f32 %v11661_v8, %v4048_v28  ;;  %v3815_v24 = vadd.f32 %v3814_v55, %v11646_v51  ;;  %v3976_v49 = vadd.f32 %v3975_v13, %v11650_v0  ;;  %v3816_v59 = vpop.f32.mrb[71].mxu0  ;;  %v3977_v42 = vpop.f32.mrb[161].mxu1  ;;  %4222 = vperm.xlu1 %8636, %v11637_v61   ;;  %v4277_v13 = vmul.f32 %v11672_v34, %v4050_v57 }
 0xfa7   :  { %v4276_v32 = vmul.f32 %v11666_v47, %v4049_v1  ;;  %v3817_v36 = vadd.f32 %v3816_v59, %v11653_v20  ;;  %v3978_v58 = vadd.f32 %v3977_v42, %v11656_v19 }
 0xfa8   :  { %v4052_v40 = vmax.f32 %v3815_v24, 0.0  ;;  %v4054_v26 = vmax.f32 %v3976_v49, 0.0 }
 0xfa9   :  { %v4347_v7 = vadd.f32 %v4276_v32, %v4275_v38  ;;  %v4053_v54 = vmax.f32 %v3817_v36, 0.0  ;;  %v4055_v27 = vmax.f32 %v3978_v58, 0.0  ;;  %v3820_v6 = vpop.f32.mrb[72].mxu0  ;;  %v3981_v44 = vpop.f32.mrb[162].mxu1 }
 0xfaa   :  { %v11795_v63 = vpack.c.bf16 %v4052_v40, %v4048_v28  ;;  %v4279_v30 = vmul.f32 %v11661_v8, %v4052_v40  ;;  %v11798_v31 = vpack.c.bf16 %v4054_v26, %v4050_v57  ;;  %v3822_v43 = vpop.f32.mrb[73].mxu0  ;;  %v3983_v55 = vpop.f32.mrb[163].mxu1  ;;  %v3821_v37 = vadd.f32 %v3820_v6, %v11646_v51 }
 0xfab   :  { %v11801_v59 = vpack.c.bf16 %v4053_v54, %v4049_v1  ;;  %v4280_v24 = vmul.f32 %v11666_v47, %v4053_v54  ;;  %v11804_v38 = vpack.c.bf16 %v4055_v27, %v4051_v41  ;;  %v3982_v49 = vadd.f32 %v3981_v44, %v11650_v0 }
 0xfac   :  { %v3823_v28 = vadd.f32 %v3822_v43, %v11653_v20  ;;  %v3984_v42 = vadd.f32 %v3983_v55, %v11656_v19  ;;  %v11812_v1 = vadd.f32 %v4347_v7, %v4277_v13  ;;  %v11815_v57 = vmul.f32 %v11680_v10, %v4051_v41 }
 0xfad   :  { %v4352_v32 = vadd.f32 %v4280_v24, %v4279_v30  ;;  %v3826_v36 = vpop.f32.mrb[74].mxu0  ;;  %v3987_v58 = vpop.f32.mrb[164].mxu1  ;;  %8294 = vmatprep.subr.bf16.mxu0 %v11801_v59  ;;  %8326 = vmatprep.subr.bf16.mxu1 %v11804_v38  ;;  %v4281_v40 = vmul.f32 %v11672_v34, %v4054_v26  ;;  %v4056_v54 = vmax.f32 %v3821_v37, 0.0  ;;  %v4058_v24 = vmax.f32 %v3982_v49, 0.0 }
 0xfae   :  { %v4057_v6 = vmax.f32 %v3823_v28, 0.0  ;;  %v3828_v44 = vpop.f32.mrb[75].mxu0  ;;  %v3989_v43 = vpop.f32.mrb[165].mxu1  ;;  %8296 = vmatpush1.bf16.xpose.msra.mxu0 %v11795_v63  ;;  %8328 = vmatpush1.bf16.xpose.msra.mxu1 %v11798_v31  ;;  %v3827_v30 = vadd.f32 %v3826_v36, %v11646_v51  ;;  %v3988_v55 = vadd.f32 %v3987_v58, %v11650_v0  ;;  %v4059_v37 = vmax.f32 %v3984_v42, 0.0 }
 0xfaf   :  { %v3829_v7 = vadd.f32 %v3828_v44, %v11653_v20  ;;  %v3990_v13 = vadd.f32 %v3989_v43, %v11656_v19  ;;  %v4283_v41 = vmul.f32 %v11661_v8, %v4056_v54  ;;  %v4282_v36 = vmul.f32 %v11680_v10, %v4055_v27 }
 0xfb0   :  { %v4284_v26 = vmul.f32 %v11666_v47, %v4057_v6  ;;  %v4060_v28 = vmax.f32 %v3827_v30, 0.0  ;;  %v4062_v9 = vmax.f32 %v3988_v55, 0.0  ;;  %v4353_v5 = vadd.f32 %v4352_v32, %v4281_v40 }
 0xfb1   :  { %v4061_v21 = vmax.f32 %v3829_v7, 0.0  ;;  %v4063_v50 = vmax.f32 %v3990_v13, 0.0  ;;  %v3832_v48 = vpop.f32.mrb[76].mxu0  ;;  %v3993_v53 = vpop.f32.mrb[166].mxu1  ;;  %v11837_v55 = vmul.f32 %v11672_v34, %v4058_v24 }
 0xfb2   :  { %v11827_v33 = vadd.f32 %v4284_v26, %v4283_v41  ;;  %v3833_v58 = vadd.f32 %v3832_v48, %v11646_v51  ;;  %v3834_v44 = vpop.f32.mrb[77].mxu0  ;;  %v3995_v43 = vpop.f32.mrb[167].mxu1  ;;  %v11830_v35 = vpack.c.bf16 %v4060_v28, %v4056_v54  ;;  %v4287_v49 = vmul.f32 %v11661_v8, %v4060_v28 }
 0xfb3   :  { %v11833_v42 = vpack.c.bf16 %v4062_v9, %v4058_v24  ;;  %v3994_v30 = vadd.f32 %v3993_v53, %v11650_v0  ;;  %v11839_v7 = vpack.c.bf16 %v4061_v21, %v4057_v6  ;;  %v4288_v27 = vmul.f32 %v11666_v47, %v4061_v21 }
 0xfb4   :  { %13330 = vst [vmem:[#allocation23_spill] sm:$0xff] %v11830_v35  ;;  %v11842_v13 = vpack.c.bf16 %v4063_v50, %v4059_v37  ;;  %v11845_v48 = vmul.f32 %v11680_v10, %v4059_v37  ;;  %v4064_v32 = vmax.f32 %v3833_v58, 0.0  ;;  %v3835_v40 = vadd.f32 %v3834_v44, %v11653_v20 }
 0xfb5   :  { %13331 = vst [vmem:[#allocation24_spill] sm:$0xff] %v11833_v42  ;;  %v3996_v54 = vadd.f32 %v3995_v43, %v11656_v19  ;;  %v3838_v41 = vpop.f32.mrb[78].mxu0  ;;  %v3999_v26 = vpop.f32.mrb[168].mxu1  ;;  %v4362_v53 = vadd.f32 %v4288_v27, %v4287_v49  ;;  %v4354_v28 = vadd.f32 %v4353_v5, %v4282_v36  ;;  %8298 = vmatprep.subr.bf16.mxu0 %v11839_v7  ;;  %v4066_v14 = vmax.f32 %v3994_v30, 0.0 }
 0xfb6   :  { %13332 = vst [vmem:[#allocation25_spill] sm:$0xff] %v11842_v13  ;;  %v3839_v24 = vadd.f32 %v3838_v41, %v11646_v51  ;;  %v4000_v6 = vadd.f32 %v3999_v26, %v11650_v0  ;;  %v3840_v21 = vpop.f32.mrb[79].mxu0  ;;  %v4001_v15 = vpop.f32.mrb[169].mxu1  ;;  %v4289_v37 = vmul.f32 %v11672_v34, %v4062_v9  ;;  %v4291_v58 = vmul.f32 %v11661_v8, %v4064_v32 }
 0xfb7   :  { %v4065_v44 = vmax.f32 %v3835_v40, 0.0  ;;  %8330 = vmatprep.subr.bf16.mxu1 %v11842_v13  ;;  %8300 = vmatpush1.bf16.xpose.msra.mxu0 %v11830_v35  ;;  %v3841_v43 = vadd.f32 %v3840_v21, %v11653_v20  ;;  %v4002_v49 = vadd.f32 %v4001_v15, %v11656_v19  ;;  %v4290_v27 = vmul.f32 %v11680_v10, %v4063_v50 }
 0xfb8   :  { %4355 = vadd.xlane.f32.xlu0 %v4354_v28  ;;  %v4068_v5 = vmax.f32 %v3839_v24, 0.0  ;;  %v4070_v36 = vmax.f32 %v4000_v6, 0.0  ;;  %8332 = vmatpush1.bf16.xpose.msra.mxu1 %v11833_v42  ;;  %v4363_v40 = vadd.f32 %v4362_v53, %v4289_v37  ;;  %v11863_v26 = vadd.f32 %v11812_v1, %v11815_v57 }
 0xfb9   :  { %v4292_v9 = vmul.f32 %v11666_v47, %v4065_v44  ;;  %v3844_v41 = vpop.f32.mrb[80].mxu0  ;;  %v4005_v30 = vpop.f32.mrb[170].mxu1  ;;  %v4067_v28 = vmax.f32 %v3996_v54, 0.0  ;;  %v4069_v50 = vmax.f32 %v3841_v43, 0.0  ;;  %v4071_v42 = vmax.f32 %v4002_v49, 0.0 }
 0xfba   :  { %v11865_v24 = vpack.c.bf16 %v4068_v5, %v4064_v32  ;;  %v4295_v6 = vmul.f32 %v11661_v8, %v4068_v5  ;;  %v11868_v21 = vpack.c.bf16 %v4070_v36, %v4066_v14  ;;  %v3846_v15 = vpop.f32.mrb[81].mxu0  ;;  %v4007_v52 = vpop.f32.mrb[171].mxu1  ;;  %v3845_v35 = vadd.f32 %v3844_v41, %v11646_v51 }
 0xfbb   :  { %v4367_v39 = vadd.f32 %v4292_v9, %v4291_v58  ;;  %v4006_v53 = vadd.f32 %v4005_v30, %v11650_v0  ;;  %v3847_v37 = vadd.f32 %v3846_v15, %v11653_v20  ;;  %v4008_v1 = vadd.f32 %v4007_v52, %v11656_v19 }
 0xfbc   :  { %13333 = vst [vmem:[#allocation26_spill] sm:$0xff] %v11865_v24  ;;  %v4364_v57 = vadd.f32 %v4363_v40, %v4290_v27  ;;  %v4293_v32 = vmul.f32 %v11672_v34, %v4066_v14  ;;  %v11875_v54 = vpack.c.bf16 %v4069_v50, %v4065_v44  ;;  %v4296_v5 = vmul.f32 %v11666_v47, %v4069_v50 }
 0xfbd   :  { %v11878_v13 = vpack.c.bf16 %v4071_v42, %v4067_v28  ;;  %v3850_v58 = vpop.f32.mrb[82].mxu0  ;;  %v4011_v43 = vpop.f32.mrb[172].mxu1  ;;  %v4294_v49 = vmul.f32 %v11680_v10, %v4067_v28  ;;  %v4297_v9 = vmul.f32 %v11672_v34, %v4070_v36  ;;  %v4072_v41 = vmax.f32 %v3845_v35, 0.0 }
 0xfbe   :  { %v4073_v30 = vmax.f32 %v3847_v37, 0.0  ;;  %4365 = vadd.xlane.f32.xlu0 %v4364_v57  ;;  %v3852_v15 = vpop.f32.mrb[83].mxu0  ;;  %v4013_v52 = vpop.f32.mrb[173].mxu1  ;;  %v4372_v27 = vadd.f32 %v4296_v5, %v4295_v6  ;;  %v4074_v40 = vmax.f32 %v4006_v53, 0.0  ;;  %v3851_v14 = vadd.f32 %v3850_v58, %v11646_v51  ;;  %8302 = vmatprep.subr.bf16.mxu0 %v11875_v54 }
 0xfbf   :  { %13334 = vst [vmem:[#allocation27_spill] sm:$0xff] %v11878_v13  ;;  %v4012_v44 = vadd.f32 %v4011_v43, %v11650_v0  ;;  %8334 = vmatprep.subr.bf16.mxu1 %v11878_v13  ;;  %v4298_v50 = vmul.f32 %v11680_v10, %v4071_v42  ;;  %v4299_v28 = vmul.f32 %v11661_v8, %v4072_v41  ;;  %v4075_v36 = vmax.f32 %v4008_v1, 0.0 }
 0xfc0   :  { %v4300_v35 = vmul.f32 %v11666_v47, %v4073_v30  ;;  %8304 = vmatpush1.bf16.xpose.msra.mxu0 %v11865_v24  ;;  %v4076_v37 = vmax.f32 %v3851_v14, 0.0  ;;  %v3853_v53 = vadd.f32 %v3852_v15, %v11653_v20  ;;  %v4014_v51 = vadd.f32 %v4013_v52, %v11656_v19  ;;  %8336 = vmatpush1.bf16.xpose.msra.mxu1 %v11868_v21 }
 0xfc1   :  { %v4078_v6 = vmax.f32 %v4012_v44, 0.0  ;;  %v4373_v57 = vadd.f32 %v4372_v27, %v4297_v9  ;;  %v4358_v42 = vadd.f32 %v11827_v33, %v11837_v55  ;;  %v4368_v5 = vadd.f32 %v4367_v39, %v4293_v32 }
 0xfc2   :  { %v4377_v0 = vadd.f32 %v4300_v35, %v4299_v28  ;;  %v4301_v58 = vmul.f32 %v11672_v34, %v4074_v40  ;;  %v8307_v43 = vpack.c.bf16 %v4076_v37, %v4072_v41  ;;  %v4303_v1 = vmul.f32 %v11661_v8, %v4076_v37 }
 0xfc3   :  { %v8339_v24 = vpack.c.bf16 %v4078_v6, %v4074_v40  ;;  %v4077_v14 = vmax.f32 %v3853_v53, 0.0  ;;  %v4079_v44 = vmax.f32 %v4014_v51, 0.0  ;;  %v4374_v13 = vadd.f32 %v4373_v57, %v4298_v50 }
 0xfc4   :  { %v4359_v20 = vadd.f32 %v4358_v42, %v11845_v48  ;;  %v4302_v19 = vmul.f32 %v11680_v10, %v4075_v36  ;;  %v4369_v15 = vadd.f32 %v4368_v5, %v4294_v49  ;;  %v4378_v52 = vadd.f32 %v4377_v0, %v4301_v58 }
 0xfc5   :  { %v8305_v9 = vpack.c.bf16 %v4077_v14, %v4073_v30  ;;  %v4304_v27 = vmul.f32 %v11666_v47, %v4077_v14  ;;  %v8337_v33 = vpack.c.bf16 %v4079_v44, %v4075_v36  ;;  %4375 = vadd.xlane.f32.xlu0 %v4374_v13  ;;  %v4305_v55 = vmul.f32 %v11672_v34, %v4078_v6 }
 0xfc6   :  { %v4379_v39 = vadd.f32 %v4378_v52, %v4302_v19  ;;  %v4306_v8 = vmul.f32 %v11680_v10, %v4079_v44  ;;  %v13335_v34 = vmov 0.0   ;;  %v13340_v10 = vld [vmem:[#allocation26_spill] sm:$0xff] }
 0xfc7   :  { %v4382_v32 = vadd.f32 %v4304_v27, %v4303_v1  ;;  %8306 = vmatprep.subr.bf16.mxu0 %v8305_v9  ;;  %8338 = vmatprep.subr.bf16.mxu1 %v8337_v33 }
 0xfc8   :  { %8308 = vmatpush1.bf16.xpose.msra.mxu0 %v8307_v43  ;;  %8340 = vmatpush1.bf16.xpose.msra.mxu1 %v8339_v24 }
 0xfc9   :  { %8374 = vmatprep.subr.bf16.mxu1 %v11691_v23  ;;  %8342 = vmatprep.subr.bf16.mxu0 %v11688_v45  ;;  %v4383_v48 = vadd.f32 %v4382_v32, %v4305_v55  ;;  %v13343_v32 = vld [vmem:[#allocation13_spill] sm:$0xff] }
 0xfca   :  { %4350 = vadd.xlane.f32.xlu1 %v11863_v26 }
 0xfcb   :  { %v4384_v47 = vadd.f32 %v4383_v48, %v4306_v8  ;;  %v9390_v48 = vld [vmem:[%s13244_s2 + $0x38] sm:$0xff] }
 0xfcd   :  { %4385 = vadd.xlane.f32.xlu0 %v4384_v47 }
 0xfce   :  { %4360 = vadd.xlane.f32.xlu1 %v4359_v20 }
 0xfcf   :  { %4145 = vmatmul.mubr.f32.vlgmr.msra.gmra.mrb[84].mxu0 %v11637_v61  ;;  %4215 = vmatmul.mubr.f32.vlgmr.msra.gmra.mrb[174].mxu1 %v11642_v17  ;;  %v13339_v17 = vld [vmem:[#allocation27_spill] sm:$0xff] }
 0xfd0   :  { %8344 = vmatpush1.bf16.msra.mxu0 %v11682_v18  ;;  %8376 = vmatpush1.bf16.msra.mxu1 %v11685_v60  ;;  %v13341_v18 = vld [vmem:[#allocation4_spill] sm:$0xff] }
 0xfd1   :  { %8378 = vmatprep.subr.bf16.mxu1 %v11722_v56  ;;  %8346 = vmatprep.subr.bf16.mxu0 %v11719_v11  ;;  %v4390_v60 = vrot.slane %v11637_v61, %v13341_v18 }
 0xfd2   :  { %4370 = vadd.xlane.f32.xlu1 %v4369_v15  ;;  %4795 = vmatprep.mubr.f32.mxu0 %v13335_v34 }
 0xfd3   :  { %4956 = vmatprep.mubr.f32.mxu1 %v13335_v34 }
 0xfd4   :  { %8348 = vmatpush1.bf16.msra.mxu0 %v11713_v4  ;;  %8380 = vmatpush1.bf16.msra.mxu1 %v11716_v22  ;;  %v13336_v4 = vld [vmem:[#allocation25_spill] sm:$0xff] }
 0xfd5   :  { %8382 = vmatprep.subr.bf16.mxu1 %v11752_v46  ;;  %8350 = vmatprep.subr.bf16.mxu0 %v11749_v16  ;;  %v13338_v16 = vld [vmem:[#allocation24_spill] sm:$0xff] }
 0xfd6   :  { %4380 = vadd.xlane.f32.xlu1 %v4379_v39  ;;  %v9389_v39 = vld [vmem:[%s13244_s2 + $0x30] sm:$0xff] }
 0xfd8   :  { %8352 = vmatpush1.bf16.msra.mxu0 %v11739_v62  ;;  %8384 = vmatpush1.bf16.msra.mxu1 %v11742_v25  ;;  %v13337_v62 = vld [vmem:[#allocation23_spill] sm:$0xff] }
 0xfd9   :  { %8354 = vmatprep.subr.bf16.mxu0 %v11773_v2  ;;  %8386 = vmatprep.subr.bf16.mxu1 %v11776_v12 }
 0xfdc   :  { %8356 = vmatpush1.bf16.msra.mxu0 %v11767_v3  ;;  %8388 = vmatpush1.bf16.msra.mxu1 %v11770_v29 }
 0xfdd   :  { %8358 = vmatprep.subr.bf16.mxu0 %v11801_v59  ;;  %8390 = vmatprep.subr.bf16.mxu1 %v11804_v38 }
 0xfe0   :  { %8360 = vmatpush1.bf16.msra.mxu0 %v11795_v63  ;;  %8392 = vmatpush1.bf16.msra.mxu1 %v11798_v31 }
 0xfe1   :  { %8362 = vmatprep.subr.bf16.mxu0 %v11839_v7  ;;  %8394 = vmatprep.subr.bf16.mxu1 %v13336_v4  ;;  %v13344_v4 = vld [vmem:[#allocation14_spill] sm:$0xff] }
 0xfe4   :  { %8364 = vmatpush1.bf16.msra.mxu0 %v13337_v62  ;;  %8396 = vmatpush1.bf16.msra.mxu1 %v13338_v16  ;;  %v13345_v16 = vld [vmem:[#allocation7_spill] sm:$0xff] }
 0xfe5   :  { %8366 = vmatprep.subr.bf16.mxu0 %v11875_v54  ;;  %8398 = vmatprep.subr.bf16.mxu1 %v13339_v17 }
 0xfe8   :  { %8368 = vmatpush1.bf16.msra.mxu0 %v13340_v10  ;;  %8400 = vmatpush1.bf16.msra.mxu1 %v11868_v21  ;;  %v13346_v10 = vld [vmem:[#allocation8_spill] sm:$0xff] }
 0xfe9   :  { %8370 = vmatprep.subr.bf16.mxu0 %v8305_v9  ;;  %8402 = vmatprep.subr.bf16.mxu1 %v8337_v33  ;;  %v13342_v9 = vld [vmem:[#allocation5_spill] sm:$0xff] }
 0xfec   :  { %8372 = vmatpush1.bf16.msra.mxu0 %v8307_v43  ;;  %8404 = vmatpush1.bf16.msra.mxu1 %v8339_v24 }
0x1009   :  { %v4311_v45 = vpop.xlane.xlu1 %4310 }
0x100a   :  { %v4391_v23 = vadd.f32 %v4390_v60, %v4311_v45  ;;  %v9391_v45 = vld [vmem:[%s13244_s2 + $0x8] sm:$0xff] }
0x100c   :  { %4429 = vperm.xlu0 %8635, %v4391_v23  }
0x1011   :  { %v4316_v22 = vpop.xlane.xlu1 %4315 }
0x1012   :  { %v4392_v11 = vadd.f32 %v4390_v60, %v4316_v22  ;;  %v9392_v22 = vld [vmem:[%s13244_s2] sm:$0xff] }
0x1014   :  { %4434 = vperm.xlu1 %8636, %v4392_v11  }
0x1015   :  { %v4321_v56 = vpop.xlane.xlu1 %4320 }
0x1016   :  { %v4393_v25 = vadd.f32 %v4390_v60, %v4321_v56  ;;  %v13347_v56 = vld [vmem:[#allocation9_spill] sm:$0xff] }
0x1018   :  { %4439 = vperm.xlu1 %8636, %v4393_v25  }
0x101a   :  { %v4326_v46 = vpop.xlane.xlu0 %4325 }
0x101b   :  { %v4394_v3 = vadd.f32 %v4390_v60, %v4326_v46 }
0x101d   :  { %4444 = vperm.xlu0 %8635, %v4394_v3  }
0x101e   :  { %v4331_v29 = vpop.xlane.xlu1 %4330  ;;  %v4336_v12 = vpop.xlane.xlu0 %4335 }
0x101f   :  { %v4395_v2 = vadd.f32 %v4390_v60, %v4331_v29  ;;  %v4396_v63 = vadd.f32 %v4390_v60, %v4336_v12  ;;  %v9393_v29 = vld [vmem:[%s13244_s2 + $0x10] sm:$0xff]  ;;  %v13348_v12 = vld [vmem:[#allocation10_spill] sm:$0xff] }
0x1021   :  { %4449 = vperm.xlu1 %8636, %v4395_v2   ;;  %4454 = vperm.xlu0 %8635, %v4396_v63  }
0x1022   :  { %v4341_v31 = vpop.xlane.xlu1 %4340 }
0x1023   :  { %v4397_v61 = vadd.f32 %v4390_v60, %v4341_v31 }
0x1025   :  { %4459 = vperm.xlu1 %8636, %v4397_v61   ;;  %v4346_v59 = vpop.xlane.xlu0 %4345 }
0x1026   :  { %v4398_v38 = vadd.f32 %v4390_v60, %v4346_v59  ;;  %v4223_v54 = vpop.permute.xlu1 %4222  ;;  %v9394_v59 = vld [vmem:[%s13244_s2 + $0x18] sm:$0xff] }
0x1027   :  { %v4224_v1 = vrot.slane %v4223_v54, 2 }
0x1028   :  { %4464 = vperm.xlu0 %8635, %v4398_v38  }
0x1045   :  { %v4356_v7 = vpop.xlane.xlu0 %4355 }
0x1046   :  { %v4400_v13 = vadd.f32 %v4390_v60, %v4356_v7  ;;  %v13349_v7 = vld [vmem:[#allocation11_spill] sm:$0xff] }
0x1048   :  { %4474 = vperm.xlu0 %8635, %v4400_v13  }
0x104b   :  { %v4366_v26 = vpop.xlane.xlu0 %4365 }
0x104c   :  { %v4402_v24 = vadd.f32 %v4390_v60, %v4366_v26 }
0x104e   :  { %4484 = vperm.xlu0 %8635, %v4402_v24  }
0x1052   :  { %v4376_v21 = vpop.xlane.xlu0 %4375 }
0x1053   :  { %v4404_v49 = vadd.f32 %v4390_v60, %v4376_v21 }
0x1055   :  { %4494 = vperm.xlu0 %8635, %v4404_v49  }
0x1057   :  { %v4351_v41 = vpop.xlane.xlu1 %4350 }
0x1058   :  { %v4399_v30 = vadd.f32 %v4390_v60, %v4351_v41 }
0x105a   :  { %4469 = vperm.xlu1 %8636, %v4399_v30   ;;  %v4386_v40 = vpop.xlane.xlu0 %4385  ;;  %v9395_v30 = vld [vmem:[%s13244_s2 + $0x20] sm:$0xff] }
0x105b   :  { %v4406_v50 = vadd.f32 %v4390_v60, %v4386_v40  ;;  %v4361_v28 = vpop.xlane.xlu1 %4360 }
0x105c   :  { %v4401_v35 = vadd.f32 %v4390_v60, %v4361_v28 }
0x105d   :  { %4504 = vperm.xlu0 %8635, %v4406_v50   ;;  %v13350_v50 = vld [vmem:[#allocation12_spill] sm:$0xff] }
0x105e   :  { %4479 = vperm.xlu1 %8636, %v4401_v35  }
0x105f   :  { %v4371_v36 = vpop.xlane.xlu1 %4370 }
0x1060   :  { %v4403_v37 = vadd.f32 %v4390_v60, %v4371_v36  ;;  %v9396_v36 = vld [vmem:[%s13244_s2 + $0x28] sm:$0xff] }
0x1062   :  { %4489 = vperm.xlu1 %8636, %v4403_v37  }
0x1063   :  { %v4381_v6 = vpop.xlane.xlu1 %4380 }
0x1064   :  { %v4405_v53 = vadd.f32 %v4390_v60, %v4381_v6 }
0x1066   :  { %4499 = vperm.xlu1 %8636, %v4405_v53  }
0x108b   :  { %v4430_v0 = vpop.permute.xlu0 %4429 }
0x108c   :  { %v4507_v17 = vmul.f32 %v4430_v0, %v13345_v16 }
0x1093   :  { %v4435_v51 = vpop.permute.xlu1 %4434 }
0x1094   :  { %v4508_v60 = vmul.f32 %v4435_v51, %v13346_v10 }
0x1097   :  { %v4440_v57 = vpop.permute.xlu1 %4439 }
0x1098   :  { %v4509_v25 = vmul.f32 %v4440_v57, %v13347_v56 }
0x109c   :  { %v4445_v42 = vpop.permute.xlu0 %4444 }
0x109d   :  { %v4510_v63 = vmul.f32 %v4445_v42, %v13348_v12 }
0x10a0   :  { %v4450_v5 = vpop.permute.xlu1 %4449  ;;  %v4455_v19 = vpop.permute.xlu0 %4454 }
0x10a1   :  { %v4511_v13 = vmul.f32 %v4450_v5, %v13349_v7  ;;  %v4512_v28 = vmul.f32 %v4455_v19, %v13350_v50 }
0x10a2   :  { %v4146_v58 = vpop.f32.mrb[84].mxu0  ;;  %v4216_v43 = vpop.f32.mrb[174].mxu1 }
0x10a3   :  { %v4217_v14 = vadd.f32 %v4216_v43, %v4146_v58  ;;  %v4218_v44 = vpop.f32.mrb[175].mxu1  ;;  %v4148_v20 = vpop.f32.mrb[85].mxu0 }
0x10a4   :  { %v4460_v52 = vpop.permute.xlu1 %4459 }
0x10a5   :  { %v4226_v15 = vadd.f32 %v4224_v1, %v4217_v14  ;;  %v4513_v8 = vmul.f32 %v4460_v52, %v13343_v32 }
0x10a7   :  { %v11938_v27 = vrot.slane %v4226_v15, %v13342_v9  ;;  %v4465_v33 = vpop.permute.xlu0 %4464 }
0x10a8   :  { %v4514_v62 = vmul.f32 %v4465_v33, %v13344_v4 }
0x10a9   :  { %v4417_v55 = vmul.f32 %v9389_v39, %v11938_v27  ;;  %v4418_v47 = vmul.f32 %v9390_v48, %v11938_v27  ;;  %v4412_v23 = vmul.f32 %v9391_v45, %v11938_v27  ;;  %v4411_v11 = vmul.f32 %v9392_v22, %v11938_v27 }
0x10aa   :  { %v4413_v2 = vmul.f32 %v9393_v29, %v11938_v27  ;;  %v4414_v38 = vmul.f32 %v9394_v59, %v11938_v27  ;;  %v4415_v40 = vmul.f32 %v9395_v30, %v11938_v27  ;;  %v4416_v37 = vmul.f32 %v9396_v36, %v11938_v27 }
0x10ab   :  { %v4529_v46 = vadd.f32 %v4513_v8, %v4417_v55  ;;  %v4530_v3 = vadd.f32 %v4514_v62, %v4418_v47  ;;  %v4524_v31 = vadd.f32 %v4508_v60, %v4412_v23  ;;  %v4523_v61 = vadd.f32 %v4507_v17, %v4411_v11  ;;  %v9397_v62 = vld [vmem:[%s13244_s2 + $0x48] sm:$0xff]  ;;  %v13351_v60 = vld [vmem:[#allocation16_spill] sm:$0xff] }
0x10ac   :  { %v4525_v21 = vadd.f32 %v4509_v25, %v4413_v2  ;;  %v4526_v41 = vadd.f32 %v4510_v63, %v4414_v38  ;;  %v4527_v53 = vadd.f32 %v4511_v13, %v4415_v40  ;;  %v4528_v51 = vadd.f32 %v4512_v28, %v4416_v37  ;;  %v9398_v13 = vld [vmem:[%s13244_s2 + $0x58] sm:$0xff] }
0x10ad   :  { %v7121_v26 = vmul.f32 -1.442695, %v4529_v46  ;;  %v7122_v24 = vmul.f32 -1.442695, %v4530_v3  ;;  %v7116_v54 = vmul.f32 -1.442695, %v4524_v31  ;;  %v4420_v17 = vmul.f32 %v9397_v62, %v11938_v27 }
0x10ae   :  { %v7115_v49 = vmul.f32 -1.442695, %v4523_v61  ;;  %v7117_v35 = vmul.f32 -1.442695, %v4525_v21  ;;  %v7118_v6 = vmul.f32 -1.442695, %v4526_v41 }
0x10af   :  { %8997 = vpow2.f32 %v7121_v26  ;;  %v7119_v0 = vmul.f32 -1.442695, %v4527_v53  ;;  %v7120_v57 = vmul.f32 -1.442695, %v4528_v51  ;;  %v4422_v26 = vmul.f32 %v9398_v13, %v11938_v27  ;;  %v9399_v53 = vld [vmem:[%s13244_s2 + $0x68] sm:$0xff] }
0x10b0   :  { %8999 = vpow2.f32 %v7122_v24  ;;  %v13352_v24 = vld [vmem:[#allocation18_spill] sm:$0xff]  ;;  %v4424_v51 = vmul.f32 %v9399_v53, %v11938_v27 }
0x10b1   :  { %9001 = vpow2.f32 %v7116_v54 }
0x10b2   :  { %9003 = vpow2.f32 %v7115_v49 }
0x10b3   :  { %9005 = vpow2.f32 %v7117_v35 }
0x10b4   :  { %9007 = vpow2.f32 %v7118_v6 }
0x10b5   :  { %9009 = vpow2.f32 %v7119_v0  ;;  %v13353_v0 = vld [vmem:[#allocation20_spill] sm:$0xff] }
0x10b6   :  { %9011 = vpow2.f32 %v7120_v57 }
0x10b9   :  { %v8998_v42 = vpop.eup %8997 }
0x10ba   :  { %v9000_v5 = vpop.eup %8999  ;;  %v4593_v8 = vadd.f32 1.0, %v8998_v42 }
0x10bb   :  { %v9002_v58 = vpop.eup %9001  ;;  %v4594_v48 = vadd.f32 1.0, %v9000_v5 }
0x10bc   :  { %v9004_v43 = vpop.eup %9003  ;;  %v4588_v1 = vadd.f32 1.0, %v9002_v58 }
0x10bd   :  { %v9006_v14 = vpop.eup %9005  ;;  %v4587_v44 = vadd.f32 1.0, %v9004_v43 }
0x10be   :  { %v9008_v20 = vpop.eup %9007  ;;  %9013 = vrcp.f32 %v4588_v1  ;;  %v4589_v19 = vadd.f32 1.0, %v9006_v14 }
0x10bf   :  { %v9010_v15 = vpop.eup %9009  ;;  %9015 = vrcp.f32 %v4587_v44  ;;  %v4590_v52 = vadd.f32 1.0, %v9008_v20 }
0x10c0   :  { %v9012_v33 = vpop.eup %9011  ;;  %9017 = vrcp.f32 %v4589_v19  ;;  %v4591_v39 = vadd.f32 1.0, %v9010_v15  ;;  %v9400_v19 = vld [vmem:[%s13244_s2 + $0x40] sm:$0xff] }
0x10c1   :  { %9019 = vrcp.f32 %v4590_v52  ;;  %v4592_v55 = vadd.f32 1.0, %v9012_v33  ;;  %v4419_v15 = vmul.f32 %v9400_v19, %v11938_v27  ;;  %v13354_v52 = vld [vmem:[#allocation15_spill] sm:$0xff] }
0x10c2   :  { %9021 = vrcp.f32 %v4591_v39 }
0x10c3   :  { %9023 = vrcp.f32 %v4592_v55 }
0x10c4   :  { %9025 = vrcp.f32 %v4593_v8 }
0x10c5   :  { %9027 = vrcp.f32 %v4594_v48 }
0x10c7   :  { %v4475_v47 = vpop.permute.xlu0 %4474 }
0x10c8   :  { %v4516_v45 = vmul.f32 %v4475_v47, %v13351_v60  ;;  %v9014_v23 = vpop.eup %9013  ;;  %v9401_v47 = vld [vmem:[%s13244_s2 + $0x78] sm:$0xff] }
0x10c9   :  { %v9016_v22 = vpop.eup %9015  ;;  %v4637_v25 = vmul.f32 1.442695, %v9014_v23  ;;  %v4426_v62 = vmul.f32 %v9401_v47, %v11938_v27 }
0x10ca   :  { %v4532_v11 = vadd.f32 %v4516_v45, %v4420_v17  ;;  %v9018_v46 = vpop.eup %9017  ;;  %v4635_v3 = vmul.f32 1.442695, %v9016_v22  ;;  %v13355_v17 = vld [vmem:[#allocation22_spill] sm:$0xff] }
0x10cb   :  { %v9020_v29 = vpop.eup %9019  ;;  %9029 = vpow2.f32 %v4637_v25  ;;  %v4639_v63 = vmul.f32 1.442695, %v9018_v46  ;;  %v9402_v46 = vld [vmem:[%s13244_s2 + $0x50] sm:$0xff] }
0x10cc   :  { %v7124_v2 = vmul.f32 -1.442695, %v4532_v11  ;;  %v9022_v31 = vpop.eup %9021  ;;  %9031 = vpow2.f32 %v4635_v3  ;;  %v4641_v59 = vmul.f32 1.442695, %v9020_v29  ;;  %v4421_v3 = vmul.f32 %v9402_v46, %v11938_v27  ;;  %v13356_v29 = vld [vmem:[#allocation17_spill] sm:$0xff] }
0x10cd   :  { %v4485_v61 = vpop.permute.xlu0 %4484  ;;  %v9024_v38 = vpop.eup %9023  ;;  %v4643_v54 = vmul.f32 1.442695, %v9022_v31 }
0x10ce   :  { %9033 = vpow2.f32 %v7124_v2  ;;  %v4518_v21 = vmul.f32 %v4485_v61, %v13352_v24  ;;  %v9026_v41 = vpop.eup %9025  ;;  %v4645_v30 = vmul.f32 1.442695, %v9024_v38 }
0x10cf   :  { %9035 = vpow2.f32 %v4639_v63  ;;  %v9028_v40 = vpop.eup %9027  ;;  %v4647_v35 = vmul.f32 1.442695, %v9026_v41 }
0x10d0   :  { %v4534_v49 = vadd.f32 %v4518_v21, %v4422_v26  ;;  %9037 = vpow2.f32 %v4641_v59  ;;  %v4649_v36 = vmul.f32 1.442695, %v9028_v40  ;;  %v9403_v21 = vld [vmem:[%s13244_s2 + $0x60] sm:$0xff] }
0x10d1   :  { %9039 = vpow2.f32 %v4643_v54  ;;  %v4423_v54 = vmul.f32 %v9403_v21, %v11938_v27 }
0x10d2   :  { %v7126_v28 = vmul.f32 -1.442695, %v4534_v49  ;;  %v13357_v49 = vld [vmem:[#allocation19_spill] sm:$0xff] }
0x10d4   :  { %9041 = vpow2.f32 %v7126_v28  ;;  %v4495_v37 = vpop.permute.xlu0 %4494 }
0x10d5   :  { %9043 = vpow2.f32 %v4645_v30  ;;  %v11990_v6 = vpop.eup %9029  ;;  %v4520_v57 = vmul.f32 %v4495_v37, %v13353_v0 }
0x10d6   :  { %v11997_v42 = vpop.eup %9031  ;;  %4669 = vadd.xlane.f32.xlu0 %v11990_v6  ;;  %9045 = vpow2.f32 %v4647_v35 }
0x10d7   :  { %v4536_v58 = vadd.f32 %v4520_v57, %v4424_v51  ;;  %4667 = vadd.xlane.f32.xlu1 %v11997_v42  ;;  %9047 = vpow2.f32 %v4649_v36  ;;  %v9404_v51 = vld [vmem:[%s13244_s2 + $0x70] sm:$0xff] }
0x10d8   :  { %v9034_v5 = vpop.eup %9033  ;;  %v4425_v57 = vmul.f32 %v9404_v51, %v11938_v27  ;;  %v5054_v51 = vld [vmem:[%s13247_s16] sm:$0xff] }
0x10d9   :  { %v4596_v43 = vadd.f32 1.0, %v9034_v5  ;;  %v12001_v1 = vpop.eup %9035  ;;  %v7128_v14 = vmul.f32 -1.442695, %v4536_v58  ;;  %v4470_v44 = vpop.permute.xlu1 %4469  ;;  %v13358_v5 = vld [vmem:[#allocation21_spill] sm:$0xff] }
0x10da   :  { %v12003_v20 = vpop.eup %9037  ;;  %v4515_v33 = vmul.f32 %v4470_v44, %v13354_v52  ;;  %4671 = vadd.xlane.f32.xlu0 %v12001_v1 }
0x10db   :  { %9049 = vrcp.f32 %v4596_v43  ;;  %4673 = vadd.xlane.f32.xlu1 %v12003_v20  ;;  %v12012_v39 = vpop.eup %9039 }
0x10dc   :  { %9051 = vpow2.f32 %v7128_v14  ;;  %v4531_v55 = vadd.f32 %v4515_v33, %v4419_v15  ;;  %v4505_v8 = vpop.permute.xlu0 %4504 }
0x10dd   :  { %v4522_v45 = vmul.f32 %v4505_v8, %v13355_v17  ;;  %v4480_v23 = vpop.permute.xlu1 %4479 }
0x10de   :  { %v9042_v48 = vpop.eup %9041  ;;  %v7123_v25 = vmul.f32 -1.442695, %v4531_v55  ;;  %v4517_v2 = vmul.f32 %v4480_v23, %v13356_v29  ;;  %4675 = vadd.xlane.f32.xlu0 %v12012_v39 }
0x10df   :  { %v12019_v22 = vpop.eup %9043  ;;  %v4598_v11 = vadd.f32 1.0, %v9042_v48  ;;  %v4538_v63 = vadd.f32 %v4522_v45, %v4426_v62 }
0x10e0   :  { %4677 = vadd.xlane.f32.xlu1 %v12019_v22  ;;  %v4533_v31 = vadd.f32 %v4517_v2, %v4421_v3  ;;  %v12028_v61 = vpop.eup %9045 }
0x10e1   :  { %9053 = vrcp.f32 %v4598_v11  ;;  %v7130_v59 = vmul.f32 -1.442695, %v4538_v63  ;;  %v4490_v38 = vpop.permute.xlu1 %4489  ;;  %v12030_v13 = vpop.eup %9047 }
0x10e2   :  { %9055 = vpow2.f32 %v7123_v25  ;;  %v7125_v26 = vmul.f32 -1.442695, %v4533_v31  ;;  %v4519_v41 = vmul.f32 %v4490_v38, %v13357_v49  ;;  %4679 = vadd.xlane.f32.xlu0 %v12028_v61 }
0x10e3   :  { %9057 = vpow2.f32 %v7130_v59 }
0x10e4   :  { %4681 = vadd.xlane.f32.xlu1 %v12030_v13  ;;  %9059 = vpow2.f32 %v7125_v26  ;;  %v4535_v40 = vadd.f32 %v4519_v41, %v4423_v54 }
0x10e5   :  { %v9050_v30 = vpop.eup %9049  ;;  %v4500_v36 = vpop.permute.xlu1 %4499 }
0x10e6   :  { %v9052_v28 = vpop.eup %9051  ;;  %v4653_v35 = vmul.f32 1.442695, %v9050_v30  ;;  %v7127_v53 = vmul.f32 -1.442695, %v4535_v40  ;;  %v4521_v58 = vmul.f32 %v4500_v36, %v13358_v5 }
0x10e7   :  { %v4600_v37 = vadd.f32 1.0, %v9052_v28 }
0x10e8   :  { %9061 = vpow2.f32 %v4653_v35  ;;  %v4537_v43 = vadd.f32 %v4521_v58, %v4425_v57  ;;  %v13359_v57 = vld [vmem:[#allocation3_spill] sm:$0xff] }
0x10e9   :  { %9063 = vrcp.f32 %v4600_v37  ;;  %v6263_v58 = vrot.slane %v5054_v51, %v13359_v57 }
0x10ea   :  { %9065 = vpow2.f32 %v7127_v53  ;;  %v7129_v44 = vmul.f32 -1.442695, %v4537_v43  ;;  %v12077_v43 = vld [vmem:[%s13248_s15] sm:$0xff] }
0x10eb   :  { %v9054_v14 = vpop.eup %9053 }
0x10ec   :  { %v9056_v19 = vpop.eup %9055  ;;  %v4657_v15 = vmul.f32 1.442695, %v9054_v14  ;;  %9067 = vpow2.f32 %v7129_v44  ;;  %v5076_v14 = vld [vmem:[%s13249_s14 + $0x80] sm:$0xff]  ;;  %v5077_v44 = vld [vmem:[%s13249_s14 + $0x88] sm:$0xff] }
0x10ed   :  { %v4595_v33 = vadd.f32 1.0, %v9056_v19  ;;  %v9058_v55 = vpop.eup %9057  ;;  %v8405_v19 = vpack.c.bf16 %v5077_v44, %v5076_v14  ;;  %v5094_v44 = vld [vmem:[%s13249_s14 + $0x110] sm:$0xff] }
0x10ee   :  { %9069 = vpow2.f32 %v4657_v15  ;;  %v9060_v8 = vpop.eup %9059  ;;  %v4602_v48 = vadd.f32 1.0, %v9058_v55  ;;  %v5108_v15 = vld [vmem:[%s13249_s14 + $0x180] sm:$0xff] }
0x10ef   :  { %9071 = vrcp.f32 %v4595_v33  ;;  %v4597_v47 = vadd.f32 1.0, %v9060_v8  ;;  %v5109_v33 = vld [vmem:[%s13249_s14 + $0x188] sm:$0xff]  ;;  %8406 = vmatprep.subr.bf16.mxu0 %v8405_v19  ;;  %v5080_v19 = vld [vmem:[%s13249_s14 + $0xa0] sm:$0xff] }
0x10f0   :  { %9073 = vrcp.f32 %v4602_v48  ;;  %v8437_v55 = vpack.c.bf16 %v5109_v33, %v5108_v15  ;;  %v5081_v15 = vld [vmem:[%s13249_s14 + $0xa8] sm:$0xff]  ;;  %v5112_v33 = vld [vmem:[%s13249_s14 + $0x1a0] sm:$0xff] }
0x10f1   :  { %9075 = vrcp.f32 %v4597_v47 }
0x10f2   :  { %v12044_v27 = vpop.eup %9061  ;;  %8438 = vmatprep.subr.bf16.mxu1 %v8437_v55  ;;  %v5113_v55 = vld [vmem:[%s13249_s14 + $0x1a8] sm:$0xff] }
0x10f3   :  { %v9064_v62 = vpop.eup %9063  ;;  %4685 = vadd.xlane.f32.xlu1 %v12044_v27 }
0x10f4   :  { %v9066_v45 = vpop.eup %9065  ;;  %v4661_v23 = vmul.f32 1.442695, %v9064_v62 }
0x10f5   :  { %v4599_v11 = vadd.f32 1.0, %v9066_v45  ;;  %v5060_v45 = vld [vmem:[%s13249_s14] sm:$0xff] }
0x10f6   :  { %9077 = vpow2.f32 %v4661_v23  ;;  %v9068_v25 = vpop.eup %9067  ;;  %v5061_v23 = vld [vmem:[%s13249_s14 + $0x8] sm:$0xff] }
0x10f7   :  { %9079 = vrcp.f32 %v4599_v11  ;;  %v4601_v3 = vadd.f32 1.0, %v9068_v25  ;;  %v5092_v11 = vld [vmem:[%s13249_s14 + $0x100] sm:$0xff]  ;;  %v5093_v25 = vld [vmem:[%s13249_s14 + $0x108] sm:$0xff] }
0x10f8   :  { %v12047_v46 = vpop.eup %9069 }
0x10f9   :  { %v9072_v2 = vpop.eup %9071  ;;  %4689 = vadd.xlane.f32.xlu1 %v12047_v46  ;;  %9081 = vrcp.f32 %v4601_v3  ;;  %v5078_v3 = vld [vmem:[%s13249_s14 + $0x90] sm:$0xff] }
0x10fa   :  { %v4651_v63 = vmul.f32 1.442695, %v9072_v2  ;;  %v9074_v31 = vpop.eup %9073  ;;  %v5079_v2 = vld [vmem:[%s13249_s14 + $0x98] sm:$0xff] }
0x10fb   :  { %v9076_v59 = vpop.eup %9075  ;;  %v4665_v38 = vmul.f32 1.442695, %v9074_v31  ;;  %v5111_v31 = vld [vmem:[%s13249_s14 + $0x198] sm:$0xff] }
0x10fc   :  { %9083 = vpow2.f32 %v4651_v63  ;;  %v4655_v26 = vmul.f32 1.442695, %v9076_v59  ;;  %v5110_v63 = vld [vmem:[%s13249_s14 + $0x190] sm:$0xff] }
0x10fd   :  { %9085 = vpow2.f32 %v4665_v38  ;;  %v8441_v14 = vpack.c.bf16 %v5111_v31, %v5110_v63  ;;  %v5082_v63 = vld [vmem:[%s13249_s14 + $0xb0] sm:$0xff]  ;;  %v5083_v31 = vld [vmem:[%s13249_s14 + $0xb8] sm:$0xff] }
0x10fe   :  { %9087 = vpow2.f32 %v4655_v26 }
0x1100   :  { %v12050_v21 = vpop.eup %9077 }
0x1101   :  { %v9080_v54 = vpop.eup %9079  ;;  %4693 = vadd.xlane.f32.xlu1 %v12050_v21 }
0x1102   :  { %v4659_v41 = vmul.f32 1.442695, %v9080_v54  ;;  %v8407_v54 = vpack.c.bf16 %v5061_v23, %v5060_v45  ;;  %v5064_v45 = vld [vmem:[%s13249_s14 + $0x20] sm:$0xff]  ;;  %v5065_v23 = vld [vmem:[%s13249_s14 + $0x28] sm:$0xff] }
0x1103   :  { %v9082_v30 = vpop.eup %9081 }
0x1104   :  { %9089 = vpow2.f32 %v4659_v41  ;;  %v4663_v40 = vmul.f32 1.442695, %v9082_v30  ;;  %v8439_v41 = vpack.c.bf16 %v5093_v25, %v5092_v11  ;;  %v5062_v30 = vld [vmem:[%s13249_s14 + $0x10] sm:$0xff]  ;;  %v8413_v25 = vpack.c.bf16 %v5081_v15, %v5080_v19  ;;  %v5084_v19 = vld [vmem:[%s13249_s14 + $0xc0] sm:$0xff]  ;;  %v5085_v15 = vld [vmem:[%s13249_s14 + $0xc8] sm:$0xff] }
0x1106   :  { %v12053_v28 = vpop.eup %9083  ;;  %9091 = vpow2.f32 %v4663_v40  ;;  %v5063_v40 = vld [vmem:[%s13249_s14 + $0x18] sm:$0xff] }
0x1107   :  { %4683 = vadd.xlane.f32.xlu0 %v12053_v28  ;;  %v12056_v35 = vpop.eup %9085 }
0x1108   :  { %v12058_v36 = vpop.eup %9087  ;;  %4697 = vadd.xlane.f32.xlu1 %v12056_v35 }
0x110b   :  { %4687 = vadd.xlane.f32.xlu0 %v12058_v36 }
0x110e   :  { %v12062_v37 = vpop.eup %9089 }
0x110f   :  { %4691 = vadd.xlane.f32.xlu0 %v12062_v37 }
0x1110   :  { %v12065_v53 = vpop.eup %9091 }
0x1113   :  { %4695 = vadd.xlane.f32.xlu0 %v12065_v53 }
0x1129   :  { %5056 = vrot.lane.b32.xlu0 %v5054_v51, %s9427_s28 }
0x112d   :  { %6265 = vrot.lane.b32.xlu0 %v6263_v58, %s9427_s28  ;;  %v8409_v58 = vpack.c.bf16 %v5079_v2, %v5078_v3  ;;  %v8445_v3 = vpack.c.bf16 %v5113_v55, %v5112_v33  ;;  %v5097_v2 = vld [vmem:[%s13249_s14 + $0x128] sm:$0xff]  ;;  %v5116_v33 = vld [vmem:[%s13249_s14 + $0x1c0] sm:$0xff] }
0x112e   :  { %v5117_v55 = vld [vmem:[%s13249_s14 + $0x1c8] sm:$0xff] }
0x1131   :  { %5556 = vperm.xlu0 %8635, %v12077_v43  }
0x1163   :  { %v4670_v8 = vpop.xlane.xlu0 %4669 }
0x1164   :  { %v4668_v48 = vpop.xlane.xlu1 %4667 }
0x1165   :  { %9093 = vrcp.f32 %v4668_v48 }
0x1166   :  { %9095 = vrcp.f32 %v4670_v8 }
0x1167   :  { %v4672_v47 = vpop.xlane.xlu0 %4671 }
0x1168   :  { %9097 = vrcp.f32 %v4672_v47  ;;  %v4674_v62 = vpop.xlane.xlu1 %4673  ;;  %v8411_v47 = vpack.c.bf16 %v5063_v40, %v5062_v30  ;;  %v5066_v40 = vld [vmem:[%s13249_s14 + $0x30] sm:$0xff] }
0x1169   :  { %9099 = vrcp.f32 %v4674_v62 }
0x116b   :  { %v4676_v38 = vpop.xlane.xlu0 %4675 }
0x116c   :  { %9101 = vrcp.f32 %v4676_v38  ;;  %v5115_v38 = vld [vmem:[%s13249_s14 + $0x1b8] sm:$0xff] }
0x116d   :  { %v4678_v8 = vpop.xlane.xlu1 %4677 }
0x116e   :  { %9103 = vrcp.f32 %v4678_v8 }
0x116f   :  { %v9094_v59 = vpop.eup %9093 }
0x1170   :  { %v4715_v26 = vmul.f32 %v9094_v59, %v11997_v42  ;;  %v9096_v51 = vpop.eup %9095  ;;  %v5095_v42 = vld [vmem:[%s13249_s14 + $0x118] sm:$0xff]  ;;  %v5114_v59 = vld [vmem:[%s13249_s14 + $0x1b0] sm:$0xff] }
0x1171   :  { %v4716_v48 = vmul.f32 %v9096_v51, %v11990_v6  ;;  %v8443_v62 = vpack.c.bf16 %v5095_v42, %v5094_v44  ;;  %v5096_v6 = vld [vmem:[%s13249_s14 + $0x120] sm:$0xff]  ;;  %v5067_v51 = vld [vmem:[%s13249_s14 + $0x38] sm:$0xff]  ;;  %v8449_v44 = vpack.c.bf16 %v5115_v38, %v5114_v59  ;;  %v4682_v8 = vpop.xlane.xlu1 %4681 }
0x1172   :  { %4796 = vmatmul.mubr.f32.vlgmr.msra.gmra.mrb[86].mxu0 %v4715_v26  ;;  %4957 = vmatmul.mubr.f32.vlgmr.msra.gmra.mrb[176].mxu1 %v4715_v26  ;;  %v9098_v11 = vpop.eup %9097  ;;  %v4680_v26 = vpop.xlane.xlu0 %4679  ;;  %v8447_v30 = vpack.c.bf16 %v5097_v2, %v5096_v6  ;;  %v5099_v42 = vld [vmem:[%s13249_s14 + $0x138] sm:$0xff]  ;;  %v5101_v6 = vld [vmem:[%s13249_s14 + $0x148] sm:$0xff]  ;;  %v5086_v2 = vld [vmem:[%s13249_s14 + $0xd0] sm:$0xff] }
0x1173   :  { %4801 = vmatprep.mubr.f32.mxu0 %v13335_v34  ;;  %4962 = vmatprep.mubr.f32.mxu1 %v13335_v34  ;;  %9105 = vrcp.f32 %v4680_v26  ;;  %v5119_v59 = vld [vmem:[%s13249_s14 + $0x1d8] sm:$0xff] }
0x1174   :  { %8408 = vmatpush3.bf16.msra.mxu0 %v8407_v54  ;;  %8440 = vmatpush3.bf16.msra.mxu1 %v8439_v41  ;;  %v4717_v54 = vmul.f32 %v9098_v11, %v12001_v1  ;;  %v8415_v41 = vpack.c.bf16 %v5065_v23, %v5064_v45  ;;  %v5098_v1 = vld [vmem:[%s13249_s14 + $0x130] sm:$0xff]  ;;  %v5068_v45 = vld [vmem:[%s13249_s14 + $0x40] sm:$0xff]  ;;  %v5069_v23 = vld [vmem:[%s13249_s14 + $0x48] sm:$0xff]  ;;  %9107 = vrcp.f32 %v4682_v8 }
0x1175   :  { %8410 = vmatprep.subr.bf16.mxu0 %v8409_v58  ;;  %8442 = vmatprep.subr.bf16.mxu1 %v8441_v14  ;;  %v9100_v58 = vpop.eup %9099  ;;  %v8417_v14 = vpack.c.bf16 %v5083_v31, %v5082_v63  ;;  %v5087_v63 = vld [vmem:[%s13249_s14 + $0xd8] sm:$0xff]  ;;  %v5118_v31 = vld [vmem:[%s13249_s14 + $0x1d0] sm:$0xff]  ;;  %v8423_v26 = vpack.c.bf16 %v5069_v23, %v5068_v45  ;;  %v5072_v8 = vld [vmem:[%s13249_s14 + $0x60] sm:$0xff] }
0x1176   :  { %4802 = vmatmul.mubr.f32.gmra.mrb[88].mxu0 %v4716_v48  ;;  %4963 = vmatmul.mubr.f32.gmra.mrb[178].mxu1 %v4716_v48  ;;  %v4718_v48 = vmul.f32 %v9100_v58, %v12003_v20  ;;  %v9102_v11 = vpop.eup %9101  ;;  %v5100_v20 = vld [vmem:[%s13249_s14 + $0x140] sm:$0xff]  ;;  %v8457_v58 = vpack.c.bf16 %v5119_v59, %v5118_v31  ;;  %v5105_v23 = vld [vmem:[%s13249_s14 + $0x168] sm:$0xff]  ;;  %v5074_v31 = vld [vmem:[%s13249_s14 + $0x70] sm:$0xff] }
0x1177   :  { %4807 = vmatprep.mubr.f32.mxu0 %v13335_v34  ;;  %4968 = vmatprep.mubr.f32.mxu1 %v13335_v34  ;;  %v4719_v38 = vmul.f32 %v9102_v11, %v12012_v39  ;;  %v5102_v39 = vld [vmem:[%s13249_s14 + $0x150] sm:$0xff] }
0x1178   :  { %8412 = vmatpush3.bf16.msra.mxu0 %v8411_v47  ;;  %8444 = vmatpush3.bf16.msra.mxu1 %v8443_v62  ;;  %v8419_v47 = vpack.c.bf16 %v5067_v51, %v5066_v40  ;;  %v8451_v62 = vpack.c.bf16 %v5099_v42, %v5098_v1  ;;  %v9104_v40 = vpop.eup %9103  ;;  %v8425_v51 = vpack.c.bf16 %v5087_v63, %v5086_v2  ;;  %v5089_v1 = vld [vmem:[%s13249_s14 + $0xe8] sm:$0xff]  ;;  %v5120_v42 = vld [vmem:[%s13249_s14 + $0x1e0] sm:$0xff]  ;;  %v5090_v11 = vld [vmem:[%s13249_s14 + $0xf0] sm:$0xff] }
0x1179   :  { %8414 = vmatprep.subr.bf16.mxu0 %v8413_v25  ;;  %8446 = vmatprep.subr.bf16.mxu1 %v8445_v3  ;;  %v8421_v25 = vpack.c.bf16 %v5085_v15, %v5084_v19  ;;  %v8453_v3 = vpack.c.bf16 %v5117_v55, %v5116_v33  ;;  %v5121_v19 = vld [vmem:[%s13249_s14 + $0x1e8] sm:$0xff]  ;;  %v4720_v15 = vmul.f32 %v9104_v40, %v12019_v22  ;;  %v5104_v22 = vld [vmem:[%s13249_s14 + $0x160] sm:$0xff] }
0x117a   :  { %4808 = vmatmul.mubr.f32.gmra.mrb[90].mxu0 %v4717_v54  ;;  %4969 = vmatmul.mubr.f32.gmra.mrb[180].mxu1 %v4717_v54  ;;  %v8455_v54 = vpack.c.bf16 %v5101_v6, %v5100_v20  ;;  %v8461_v45 = vpack.c.bf16 %v5121_v19, %v5120_v42  ;;  %v5123_v20 = vld [vmem:[%s13249_s14 + $0x1f8] sm:$0xff]  ;;  %v8463_v63 = vpack.c.bf16 %v5105_v23, %v5104_v22 }
0x117b   :  { %4813 = vmatprep.mubr.f32.mxu0 %v13335_v34  ;;  %4974 = vmatprep.mubr.f32.mxu1 %v13335_v34 }
0x117c   :  { %8416 = vmatpush3.bf16.msra.mxu0 %v8415_v41  ;;  %8448 = vmatpush3.bf16.msra.mxu1 %v8447_v30  ;;  %v5070_v41 = vld [vmem:[%s13249_s14 + $0x50] sm:$0xff]  ;;  %v5071_v30 = vld [vmem:[%s13249_s14 + $0x58] sm:$0xff] }
0x117d   :  { %8418 = vmatprep.subr.bf16.mxu0 %v8417_v14  ;;  %8450 = vmatprep.subr.bf16.mxu1 %v8449_v44  ;;  %v5103_v14 = vld [vmem:[%s13249_s14 + $0x158] sm:$0xff]  ;;  %v5088_v44 = vld [vmem:[%s13249_s14 + $0xe0] sm:$0xff]  ;;  %v8427_v33 = vpack.c.bf16 %v5071_v30, %v5070_v41 }
0x117e   :  { %4814 = vmatmul.mubr.f32.gmra.mrb[92].mxu0 %v4718_v48  ;;  %4975 = vmatmul.mubr.f32.gmra.mrb[182].mxu1 %v4718_v48  ;;  %v8459_v55 = vpack.c.bf16 %v5103_v14, %v5102_v39  ;;  %v5073_v48 = vld [vmem:[%s13249_s14 + $0x68] sm:$0xff]  ;;  %v5107_v41 = vld [vmem:[%s13249_s14 + $0x178] sm:$0xff] }
0x117f   :  { %4819 = vmatprep.mubr.f32.mxu0 %v13335_v34  ;;  %4980 = vmatprep.mubr.f32.mxu1 %v13335_v34  ;;  %v8431_v2 = vpack.c.bf16 %v5073_v48, %v5072_v8 }
0x1180   :  { %8420 = vmatpush3.bf16.msra.mxu0 %v8419_v47  ;;  %8452 = vmatpush3.bf16.msra.mxu1 %v8451_v62  ;;  %v9106_v47 = vpop.eup %9105  ;;  %v8429_v62 = vpack.c.bf16 %v5089_v1, %v5088_v44  ;;  %v4686_v39 = vpop.xlane.xlu1 %4685 }
0x1181   :  { %8422 = vmatprep.subr.bf16.mxu0 %v8421_v25  ;;  %8454 = vmatprep.subr.bf16.mxu1 %v8453_v3  ;;  %v5091_v25 = vld [vmem:[%s13249_s14 + $0xf8] sm:$0xff]  ;;  %v5122_v3 = vld [vmem:[%s13249_s14 + $0x1f0] sm:$0xff]  ;;  %v4721_v6 = vmul.f32 %v9106_v47, %v12028_v61  ;;  %v9108_v59 = vpop.eup %9107 }
0x1182   :  { %4820 = vmatmul.mubr.f32.gmra.mrb[94].mxu0 %v4719_v38  ;;  %4981 = vmatmul.mubr.f32.gmra.mrb[184].mxu1 %v4719_v38  ;;  %v8433_v38 = vpack.c.bf16 %v5091_v25, %v5090_v11  ;;  %v5106_v61 = vld [vmem:[%s13249_s14 + $0x170] sm:$0xff]  ;;  %v4722_v30 = vmul.f32 %v9108_v59, %v12030_v13 }
0x1183   :  { %4825 = vmatprep.mubr.f32.mxu0 %v13335_v34  ;;  %4986 = vmatprep.mubr.f32.mxu1 %v13335_v34 }
0x1184   :  { %8424 = vmatpush3.bf16.msra.mxu0 %v8423_v26  ;;  %8456 = vmatpush3.bf16.msra.mxu1 %v8455_v54  ;;  %v5075_v26 = vld [vmem:[%s13249_s14 + $0x78] sm:$0xff]  ;;  %v8465_v54 = vpack.c.bf16 %v5123_v20, %v5122_v3  ;;  %s9428_s14 = smov 96  }
0x1185   :  { %8426 = vmatprep.subr.bf16.mxu0 %v8425_v51  ;;  %8458 = vmatprep.subr.bf16.mxu1 %v8457_v58  ;;  %v8435_v40 = vpack.c.bf16 %v5075_v26, %v5074_v31  ;;  %v8467_v51 = vpack.c.bf16 %v5107_v41, %v5106_v61  ;;  %v13360_v58 = vmov 0.0|0.0  }
0x1186   :  { %4826 = vmatmul.mubr.f32.gmra.mrb[96].mxu0 %v4720_v15  ;;  %4987 = vmatmul.mubr.f32.gmra.mrb[186].mxu1 %v4720_v15  ;;  %v4690_v44 = vpop.xlane.xlu1 %4689 }
0x1187   :  { %4831 = vmatprep.mubr.f32.mxu0 %v13335_v34  ;;  %4992 = vmatprep.mubr.f32.mxu1 %v13335_v34 }
0x1188   :  { %8428 = vmatpush3.bf16.msra.mxu0 %v8427_v33  ;;  %8460 = vmatpush3.bf16.msra.mxu1 %v8459_v55 }
0x1189   :  { %8430 = vmatprep.subr.bf16.mxu0 %v8429_v62  ;;  %8462 = vmatprep.subr.bf16.mxu1 %v8461_v45 }
0x118a   :  { %4832 = vmatmul.mubr.f32.gmra.mrb[98].mxu0 %v4721_v6  ;;  %4993 = vmatmul.mubr.f32.gmra.mrb[188].mxu1 %v4721_v6 }
0x118b   :  { %4837 = vmatprep.mubr.f32.mxu0 %v13335_v34  ;;  %4998 = vmatprep.mubr.f32.mxu1 %v13335_v34 }
0x118c   :  { %8432 = vmatpush3.bf16.msra.mxu0 %v8431_v2  ;;  %8464 = vmatpush3.bf16.msra.mxu1 %v8463_v63 }
0x118d   :  { %8434 = vmatprep.subr.bf16.mxu0 %v8433_v38  ;;  %8466 = vmatprep.subr.bf16.mxu1 %v8465_v54 }
0x118e   :  { %4838 = vmatmul.mubr.f32.gmra.mrb[100].mxu0 %v4722_v30  ;;  %4999 = vmatmul.mubr.f32.gmra.mrb[190].mxu1 %v4722_v30  ;;  %v4694_v33 = vpop.xlane.xlu1 %4693 }
0x118f   :  { %4843 = vmatprep.mubr.f32.mxu0 %v13335_v34  ;;  %5004 = vmatprep.mubr.f32.mxu1 %v13335_v34 }
0x1190   :  { %8436 = vmatpush3.bf16.msra.mxu0 %v8435_v40  ;;  %8468 = vmatpush3.bf16.msra.mxu1 %v8467_v51 }
0x1191   :  { %8469 = vmatprep.subr.bf16.mxu0 %v13360_v58 }
0x1194   :  { %v4684_v14 = vpop.xlane.xlu0 %4683 }
0x1195   :  { %9109 = vrcp.f32 %v4684_v14 }
0x1196   :  { %9111 = vrcp.f32 %v4686_v39 }
0x1198   :  { %v4688_v13 = vpop.xlane.xlu0 %4687 }
0x1199   :  { %9113 = vrcp.f32 %v4688_v13 }
0x119a   :  { %9115 = vrcp.f32 %v4690_v44 }
0x119c   :  { %v4692_v42 = vpop.xlane.xlu0 %4691 }
0x119d   :  { %9117 = vrcp.f32 %v4692_v42 }
0x119e   :  { %9119 = vrcp.f32 %v4694_v33 }
0x119f   :  { %v9110_v1 = vpop.eup %9109 }
0x11a0   :  { %v4723_v19 = vmul.f32 %v9110_v1, %v12053_v28  ;;  %v9112_v15 = vpop.eup %9111  ;;  %v4696_v28 = vpop.xlane.xlu0 %4695 }
0x11a1   :  { %v4724_v55 = vmul.f32 %v9112_v15, %v12044_v27  ;;  %9121 = vrcp.f32 %v4696_v28  ;;  %v4698_v27 = vpop.xlane.xlu1 %4697 }
0x11a2   :  { %4844 = vmatmul.mubr.f32.gmra.mrb[102].mxu0 %v4723_v19  ;;  %5005 = vmatmul.mubr.f32.gmra.mrb[192].mxu1 %v4723_v19  ;;  %9123 = vrcp.f32 %v4698_v27 }
0x11a3   :  { %4849 = vmatprep.mubr.f32.mxu0 %v13335_v34  ;;  %5010 = vmatprep.mubr.f32.mxu1 %v13335_v34  ;;  %v9114_v8 = vpop.eup %9113 }
0x11a4   :  { %v4725_v48 = vmul.f32 %v9114_v8, %v12058_v36  ;;  %v9116_v47 = vpop.eup %9115 }
0x11a5   :  { %v4726_v62 = vmul.f32 %v9116_v47, %v12047_v46 }
0x11a6   :  { %4850 = vmatmul.mubr.f32.gmra.mrb[104].mxu0 %v4724_v55  ;;  %5011 = vmatmul.mubr.f32.gmra.mrb[194].mxu1 %v4724_v55 }
0x11a7   :  { %4855 = vmatprep.mubr.f32.mxu0 %v13335_v34  ;;  %5016 = vmatprep.mubr.f32.mxu1 %v13335_v34  ;;  %v9118_v45 = vpop.eup %9117 }
0x11a8   :  { %v4727_v36 = vmul.f32 %v9118_v45, %v12062_v37  ;;  %v9120_v22 = vpop.eup %9119 }
0x11a9   :  { %v4728_v23 = vmul.f32 %v9120_v22, %v12050_v21 }
0x11aa   :  { %4856 = vmatmul.mubr.f32.gmra.mrb[106].mxu0 %v4725_v48  ;;  %5017 = vmatmul.mubr.f32.gmra.mrb[196].mxu1 %v4725_v48 }
0x11ab   :  { %4861 = vmatprep.mubr.f32.mxu0 %v13335_v34  ;;  %5022 = vmatprep.mubr.f32.mxu1 %v13335_v34  ;;  %v9122_v46 = vpop.eup %9121 }
0x11ac   :  { %v4729_v11 = vmul.f32 %v9122_v46, %v12065_v53  ;;  %v9124_v25 = vpop.eup %9123 }
0x11ad   :  { %v4730_v37 = vmul.f32 %v9124_v25, %v12056_v35 }
0x11ae   :  { %4862 = vmatmul.mubr.f32.gmra.mrb[108].mxu0 %v4726_v62  ;;  %5023 = vmatmul.mubr.f32.gmra.mrb[198].mxu1 %v4726_v62 }
0x11af   :  { %4867 = vmatprep.mubr.f32.mxu0 %v13335_v34  ;;  %5028 = vmatprep.mubr.f32.mxu1 %v13335_v34 }
0x11b2   :  { %4868 = vmatmul.mubr.f32.gmra.mrb[110].mxu0 %v4727_v36  ;;  %5029 = vmatmul.mubr.f32.gmra.mrb[200].mxu1 %v4727_v36 }
0x11b3   :  { %4873 = vmatprep.mubr.f32.mxu0 %v13335_v34  ;;  %5034 = vmatprep.mubr.f32.mxu1 %v13335_v34 }
0x11b6   :  { %4874 = vmatmul.mubr.f32.gmra.mrb[112].mxu0 %v4728_v23  ;;  %5035 = vmatmul.mubr.f32.gmra.mrb[202].mxu1 %v4728_v23 }
0x11b7   :  { %4879 = vmatprep.mubr.f32.mxu0 %v13335_v34  ;;  %5040 = vmatprep.mubr.f32.mxu1 %v13335_v34 }
0x11ba   :  { %4880 = vmatmul.mubr.f32.gmra.mrb[114].mxu0 %v4729_v11  ;;  %5041 = vmatmul.mubr.f32.gmra.mrb[204].mxu1 %v4729_v11 }
0x11bb   :  { %4885 = vmatprep.mubr.f32.mxu0 %v13335_v34  ;;  %5046 = vmatprep.mubr.f32.mxu1 %v13335_v34 }
0x11be   :  { %4886 = vmatmul.mubr.f32.gmra.mrb[116].mxu0 %v4730_v37  ;;  %5047 = vmatmul.mubr.f32.gmra.mrb[206].mxu1 %v4730_v37 }
0x1245   :  { %v4797_v21 = vpop.f32.mrb[86].mxu0  ;;  %v4958_v3 = vpop.f32.mrb[176].mxu1 }
0x1246   :  { %v4799_v20 = vpop.f32.mrb[87].mxu0  ;;  %v4960_v6 = vpop.f32.mrb[177].mxu1 }
0x1247   :  { %5192 = vmatprep.mubr.f32.mxu0 %v4799_v20  ;;  %5337 = vmatprep.mubr.f32.mxu1 %v4960_v6 }
0x1248   :  { %5193 = vmatmul.mubr.f32.vlgmr.msra.gmra.mrb[118].mxu0 %v4797_v21  ;;  %5338 = vmatmul.mubr.f32.vlgmr.msra.gmra.mrb[208].mxu1 %v4958_v3 }
0x1249   :  { %v4803_v53 = vpop.f32.mrb[88].mxu0  ;;  %v4964_v2 = vpop.f32.mrb[178].mxu1 }
0x124a   :  { %v4805_v63 = vpop.f32.mrb[89].mxu0  ;;  %v4966_v31 = vpop.f32.mrb[179].mxu1 }
0x124b   :  { %5197 = vmatprep.mubr.f32.mxu0 %v4805_v63  ;;  %5342 = vmatprep.mubr.f32.mxu1 %v4966_v31 }
0x124c   :  { %5198 = vmatmul.mubr.f32.gmra.mrb[120].mxu0 %v4803_v53  ;;  %5343 = vmatmul.mubr.f32.gmra.mrb[210].mxu1 %v4964_v2 }
0x124d   :  { %v4809_v59 = vpop.f32.mrb[90].mxu0  ;;  %v4970_v35 = vpop.f32.mrb[180].mxu1 }
0x124e   :  { %v4811_v38 = vpop.f32.mrb[91].mxu0  ;;  %v4972_v26 = vpop.f32.mrb[181].mxu1 }
0x124f   :  { %5202 = vmatprep.mubr.f32.mxu0 %v4811_v38  ;;  %5347 = vmatprep.mubr.f32.mxu1 %v4972_v26 }
0x1250   :  { %5203 = vmatmul.mubr.f32.gmra.mrb[122].mxu0 %v4809_v59  ;;  %5348 = vmatmul.mubr.f32.gmra.mrb[212].mxu1 %v4970_v35 }
0x1251   :  { %v4815_v54 = vpop.f32.mrb[92].mxu0  ;;  %v4976_v61 = vpop.f32.mrb[182].mxu1 }
0x1252   :  { %v4817_v41 = vpop.f32.mrb[93].mxu0  ;;  %v4978_v30 = vpop.f32.mrb[183].mxu1 }
0x1253   :  { %5207 = vmatprep.mubr.f32.mxu0 %v4817_v41  ;;  %5352 = vmatprep.mubr.f32.mxu1 %v4978_v30 }
0x1254   :  { %5208 = vmatmul.mubr.f32.gmra.mrb[124].mxu0 %v4815_v54  ;;  %5353 = vmatmul.mubr.f32.gmra.mrb[214].mxu1 %v4976_v61 }
0x1255   :  { %v4821_v40 = vpop.f32.mrb[94].mxu0  ;;  %v4982_v51 = vpop.f32.mrb[184].mxu1 }
0x1256   :  { %v4823_v39 = vpop.f32.mrb[95].mxu0  ;;  %v4984_v14 = vpop.f32.mrb[185].mxu1 }
0x1257   :  { %5212 = vmatprep.mubr.f32.mxu0 %v4823_v39  ;;  %5357 = vmatprep.mubr.f32.mxu1 %v4984_v14 }
0x1258   :  { %5213 = vmatmul.mubr.f32.gmra.mrb[126].mxu0 %v4821_v40  ;;  %5358 = vmatmul.mubr.f32.gmra.mrb[216].mxu1 %v4982_v51 }
0x1259   :  { %v4827_v13 = vpop.f32.mrb[96].mxu0  ;;  %v4988_v44 = vpop.f32.mrb[186].mxu1 }
0x125a   :  { %v4829_v1 = vpop.f32.mrb[97].mxu0  ;;  %v4990_v42 = vpop.f32.mrb[187].mxu1 }
0x125b   :  { %5217 = vmatprep.mubr.f32.mxu0 %v4829_v1  ;;  %5362 = vmatprep.mubr.f32.mxu1 %v4990_v42  ;;  %v5057_v1 = vpop.permute.xlu0 %5056 }
0x125c   :  { %5218 = vmatmul.mubr.f32.gmra.mrb[128].mxu0 %v4827_v13  ;;  %5363 = vmatmul.mubr.f32.gmra.mrb[218].mxu1 %v4988_v44  ;;  %v5059_v42 = vsel %vm140_vm0, %v12077_v43, %v5057_v1 }
0x125d   :  { %v4833_v19 = vpop.f32.mrb[98].mxu0  ;;  %v4994_v15 = vpop.f32.mrb[188].mxu1 }
0x125e   :  { %v4835_v33 = vpop.f32.mrb[99].mxu0  ;;  %v4996_v55 = vpop.f32.mrb[189].mxu1 }
0x125f   :  { %5222 = vmatprep.mubr.f32.mxu0 %v4835_v33  ;;  %5367 = vmatprep.mubr.f32.mxu1 %v4996_v55 }
0x1260   :  { %5223 = vmatmul.mubr.f32.gmra.mrb[130].mxu0 %v4833_v19  ;;  %5368 = vmatmul.mubr.f32.gmra.mrb[220].mxu1 %v4994_v15  ;;  %v13361_v19 = vld [vmem:[#allocation2_spill] sm:$0xff] }
0x1261   :  { %v4839_v8 = vpop.f32.mrb[100].mxu0  ;;  %v5000_v28 = vpop.f32.mrb[190].mxu1  ;;  %v12324_v15 = vrot.slane %v5059_v42, %v13361_v19 }
0x1262   :  { %v4841_v48 = vpop.f32.mrb[101].mxu0  ;;  %v5002_v47 = vpop.f32.mrb[191].mxu1 }
0x1263   :  { %5227 = vmatprep.mubr.f32.mxu0 %v4841_v48  ;;  %5372 = vmatprep.mubr.f32.mxu1 %v5002_v47 }
0x1264   :  { %5228 = vmatmul.mubr.f32.gmra.mrb[132].mxu0 %v4839_v8  ;;  %5373 = vmatmul.mubr.f32.gmra.mrb[222].mxu1 %v5000_v28 }
0x1275   :  { %v4845_v27 = vpop.f32.mrb[102].mxu0  ;;  %v5006_v62 = vpop.f32.mrb[192].mxu1 }
0x1276   :  { %v4847_v45 = vpop.f32.mrb[103].mxu0  ;;  %v5008_v36 = vpop.f32.mrb[193].mxu1 }
0x1277   :  { %5232 = vmatprep.mubr.f32.mxu0 %v4847_v45  ;;  %5377 = vmatprep.mubr.f32.mxu1 %v5008_v36 }
0x1278   :  { %5233 = vmatmul.mubr.f32.gmra.mrb[134].mxu0 %v4845_v27  ;;  %5378 = vmatmul.mubr.f32.gmra.mrb[224].mxu1 %v5006_v62 }
0x1279   :  { %v4851_v22 = vpop.f32.mrb[104].mxu0  ;;  %v5012_v23 = vpop.f32.mrb[194].mxu1 }
0x127a   :  { %v4853_v46 = vpop.f32.mrb[105].mxu0  ;;  %v5014_v11 = vpop.f32.mrb[195].mxu1 }
0x127b   :  { %5237 = vmatprep.mubr.f32.mxu0 %v4853_v46  ;;  %5382 = vmatprep.mubr.f32.mxu1 %v5014_v11 }
0x127c   :  { %5238 = vmatmul.mubr.f32.gmra.mrb[136].mxu0 %v4851_v22  ;;  %5383 = vmatmul.mubr.f32.gmra.mrb[226].mxu1 %v5012_v23 }
0x127d   :  { %v4857_v25 = vpop.f32.mrb[106].mxu0  ;;  %v5018_v37 = vpop.f32.mrb[196].mxu1 }
0x127e   :  { %v4859_v21 = vpop.f32.mrb[107].mxu0  ;;  %v5020_v3 = vpop.f32.mrb[197].mxu1 }
0x127f   :  { %5242 = vmatprep.mubr.f32.mxu0 %v4859_v21  ;;  %5387 = vmatprep.mubr.f32.mxu1 %v5020_v3 }
0x1280   :  { %5243 = vmatmul.mubr.f32.gmra.mrb[138].mxu0 %v4857_v25  ;;  %5388 = vmatmul.mubr.f32.gmra.mrb[228].mxu1 %v5018_v37  ;;  %v12327_v25 = vpop.permute.xlu0 %6265 }
0x1281   :  { %v4863_v20 = vpop.f32.mrb[108].mxu0  ;;  %v5024_v6 = vpop.f32.mrb[198].mxu1 }
0x1282   :  { %v4865_v53 = vpop.f32.mrb[109].mxu0  ;;  %v5026_v2 = vpop.f32.mrb[199].mxu1 }
0x1283   :  { %5247 = vmatprep.mubr.f32.mxu0 %v4865_v53  ;;  %5392 = vmatprep.mubr.f32.mxu1 %v5026_v2 }
0x1284   :  { %5248 = vmatmul.mubr.f32.gmra.mrb[140].mxu0 %v4863_v20  ;;  %5393 = vmatmul.mubr.f32.gmra.mrb[230].mxu1 %v5024_v6 }
0x1285   :  { %v4869_v63 = vpop.f32.mrb[110].mxu0  ;;  %v5030_v31 = vpop.f32.mrb[200].mxu1 }
0x1286   :  { %v4871_v59 = vpop.f32.mrb[111].mxu0  ;;  %v5032_v35 = vpop.f32.mrb[201].mxu1 }
0x1287   :  { %5252 = vmatprep.mubr.f32.mxu0 %v4871_v59  ;;  %5397 = vmatprep.mubr.f32.mxu1 %v5032_v35 }
0x1288   :  { %5253 = vmatmul.mubr.f32.gmra.mrb[142].mxu0 %v4869_v63  ;;  %5398 = vmatmul.mubr.f32.gmra.mrb[232].mxu1 %v5030_v31 }
0x1289   :  { %v4875_v38 = vpop.f32.mrb[112].mxu0  ;;  %v5036_v26 = vpop.f32.mrb[202].mxu1 }
0x128a   :  { %v4877_v54 = vpop.f32.mrb[113].mxu0  ;;  %v5038_v61 = vpop.f32.mrb[203].mxu1 }
0x128b   :  { %5257 = vmatprep.mubr.f32.mxu0 %v4877_v54  ;;  %5402 = vmatprep.mubr.f32.mxu1 %v5038_v61 }
0x128c   :  { %5258 = vmatmul.mubr.f32.gmra.mrb[144].mxu0 %v4875_v38  ;;  %5403 = vmatmul.mubr.f32.gmra.mrb[234].mxu1 %v5036_v26 }
0x128d   :  { %v4881_v41 = vpop.f32.mrb[114].mxu0  ;;  %v5042_v30 = vpop.f32.mrb[204].mxu1 }
0x128e   :  { %v4883_v40 = vpop.f32.mrb[115].mxu0  ;;  %v5044_v51 = vpop.f32.mrb[205].mxu1 }
0x128f   :  { %5262 = vmatprep.mubr.f32.mxu0 %v4883_v40  ;;  %5407 = vmatprep.mubr.f32.mxu1 %v5044_v51 }
0x1290   :  { %5263 = vmatmul.mubr.f32.gmra.mrb[146].mxu0 %v4881_v41  ;;  %5408 = vmatmul.mubr.f32.gmra.mrb[236].mxu1 %v5042_v30 }
0x1291   :  { %v4887_v39 = vpop.f32.mrb[116].mxu0  ;;  %v5048_v14 = vpop.f32.mrb[206].mxu1 }
0x1292   :  { %v4889_v13 = vpop.f32.mrb[117].mxu0  ;;  %v5050_v44 = vpop.f32.mrb[207].mxu1 }
0x1293   :  { %5267 = vmatprep.mubr.f32.mxu0 %v4889_v13  ;;  %5412 = vmatprep.mubr.f32.mxu1 %v5050_v44 }
0x1294   :  { %5268 = vmatmul.mubr.f32.gmra.mrb[148].mxu0 %v4887_v39  ;;  %5413 = vmatmul.mubr.f32.gmra.mrb[238].mxu1 %v5048_v14 }
0x1295   :  { %7615 = vmatprep.mubr.msk.f32.mxu0 %vm9426_vm2, %v13335_v34 }
0x131b   :  { %v7310_v33 = vpop.f32.mrb[118].mxu0  ;;  %v7390_v55 = vpop.f32.mrb[208].mxu1 }
0x131c   :  { %v7311_v8 = vpop.f32.mrb[119].mxu0  ;;  %v7391_v28 = vpop.f32.mrb[209].mxu1 }
0x131d   :  { %v7312_v48 = vadd.f32 %v7311_v8, %v7310_v33  ;;  %v7392_v47 = vadd.f32 %v7391_v28, %v7390_v55 }
0x131f   :  { %v5195_v27 = vadd.f32 %v7312_v48, %v12324_v15  ;;  %v7313_v62 = vpop.f32.mrb[120].mxu0  ;;  %v7393_v45 = vpop.f32.mrb[210].mxu1 }
0x1320   :  { %v7314_v36 = vpop.f32.mrb[121].mxu0  ;;  %v7394_v22 = vpop.f32.mrb[211].mxu1 }
0x1321   :  { %v5340_v23 = vadd.f32 %v7392_v47, %v5195_v27  ;;  %v7315_v46 = vadd.f32 %v7314_v36, %v7313_v62  ;;  %v7395_v11 = vadd.f32 %v7394_v22, %v7393_v45 }
0x1323   :  { %v12329_v37 = vmax.f32 %v5340_v23, 0.0  ;;  %v5200_v21 = vadd.f32 %v7315_v46, %v12324_v15  ;;  %v7316_v3 = vpop.f32.mrb[122].mxu0  ;;  %v7396_v20 = vpop.f32.mrb[212].mxu1 }
0x1324   :  { %v7317_v6 = vpop.f32.mrb[123].mxu0  ;;  %v7397_v53 = vpop.f32.mrb[213].mxu1 }
0x1325   :  { %v5345_v2 = vadd.f32 %v7395_v11, %v5200_v21  ;;  %v7318_v63 = vadd.f32 %v7317_v6, %v7316_v3  ;;  %v7398_v31 = vadd.f32 %v7397_v53, %v7396_v20  ;;  %v6268_v59 = vmul.f32 %v12327_v25, %v12329_v37 }
0x1327   :  { %v12334_v35 = vmax.f32 %v5345_v2, 0.0  ;;  %v5205_v38 = vadd.f32 %v7318_v63, %v12324_v15  ;;  %v7319_v26 = vpop.f32.mrb[124].mxu0  ;;  %v7399_v54 = vpop.f32.mrb[214].mxu1  ;;  %6300 = vrot.lane.b32.xlu1 %v6268_v59, %s9428_s14 }
0x1328   :  { %v7320_v61 = vpop.f32.mrb[125].mxu0  ;;  %v7400_v41 = vpop.f32.mrb[215].mxu1 }
0x1329   :  { %v8470_v40 = vpack.c.bf16 %v12334_v35, %v12329_v37  ;;  %v5350_v51 = vadd.f32 %v7398_v31, %v5205_v38  ;;  %v7321_v39 = vadd.f32 %v7320_v61, %v7319_v26  ;;  %v7401_v14 = vadd.f32 %v7400_v41, %v7399_v54 }
0x132a   :  { %v6269_v13 = vmul.f32 %v12327_v25, %v12334_v35  ;;  %v8637_v44 = vpack.i.bf16 %v12334_v35, %v12329_v37 }
0x132b   :  { %v5210_v1 = vadd.f32 %v7321_v39, %v12324_v15  ;;  %v7322_v42 = vpop.f32.mrb[126].mxu0  ;;  %v7402_v19 = vpop.f32.mrb[216].mxu1  ;;  %8472 = vmatpush3.bf16.xpose.msk.msra.mxu0 %vm12340_vm4, %v8470_v40  ;;  %8502 = vmatprep.subr.bf16.mxu1 %v8470_v40  ;;  %v12355_v47 = vmax.f32 %v5350_v51, 0.0 }
0x132c   :  { %6302 = vrot.lane.b32.xlu0 %v6269_v13, %s9428_s14  ;;  %v7323_v33 = vpop.f32.mrb[127].mxu0  ;;  %v7403_v55 = vpop.f32.mrb[217].mxu1  ;;  %8504 = vmatpush3.bf16.msra.mxu1 %v8470_v40 }
0x132d   :  { %v5355_v8 = vadd.f32 %v7401_v14, %v5210_v1  ;;  %v7324_v28 = vadd.f32 %v7323_v33, %v7322_v42  ;;  %v7404_v48 = vadd.f32 %v7403_v55, %v7402_v19  ;;  %8473 = vmatprep.subr.bf16.mxu0 %v13360_v58 }
0x132f   :  { %v12357_v27 = vmax.f32 %v5355_v8, 0.0  ;;  %v5215_v62 = vadd.f32 %v7324_v28, %v12324_v15  ;;  %v7325_v45 = vpop.f32.mrb[128].mxu0  ;;  %v7405_v36 = vpop.f32.mrb[218].mxu1 }
0x1330   :  { %v7326_v22 = vpop.f32.mrb[129].mxu0  ;;  %v7406_v23 = vpop.f32.mrb[219].mxu1 }
0x1331   :  { %v8474_v46 = vpack.c.bf16 %v12357_v27, %v12355_v47  ;;  %v5360_v11 = vadd.f32 %v7404_v48, %v5215_v62  ;;  %v7327_v21 = vadd.f32 %v7326_v22, %v7325_v45  ;;  %v7407_v3 = vadd.f32 %v7406_v23, %v7405_v36 }
0x1332   :  { %v8642_v20 = vpack.i.bf16 %v12357_v27, %v12355_v47  ;;  %v12391_v36 = vrot.slane %v12077_v43, %v13359_v57 }
0x1333   :  { %v5220_v6 = vadd.f32 %v7327_v21, %v12324_v15  ;;  %v7328_v53 = vpop.f32.mrb[130].mxu0  ;;  %v7408_v2 = vpop.f32.mrb[220].mxu1  ;;  %8476 = vmatpush3.bf16.xpose.msk.msra.mxu0 %vm12340_vm4, %v8474_v46  ;;  %8506 = vmatprep.subr.bf16.mxu1 %v8474_v46  ;;  %v12368_v54 = vmax.f32 %v5360_v11, 0.0 }
0x1334   :  { %v7329_v63 = vpop.f32.mrb[131].mxu0  ;;  %v7409_v31 = vpop.f32.mrb[221].mxu1  ;;  %8508 = vmatpush3.bf16.msra.mxu1 %v8474_v46  ;;  %8477 = vmatprep.subr.bf16.mxu0 %v13360_v58  ;;  %v5566_v22 = vmul.f32 %v12391_v36, %v12334_v35  ;;  %v5565_v23 = vmul.f32 %v12391_v36, %v12329_v37 }
0x1335   :  { %v5365_v59 = vadd.f32 %v7407_v3, %v5220_v6  ;;  %v7330_v38 = vadd.f32 %v7329_v63, %v7328_v53  ;;  %v7410_v26 = vadd.f32 %v7409_v31, %v7408_v2 }
0x1336   :  { %v5584_v46 = vsel %vm140_vm0, %v5566_v22, 0.0  ;;  %v5581_v57 = vsel %vm140_vm0, %v5565_v23, 0.0 }
0x1337   :  { %v12370_v61 = vmax.f32 %v5365_v59, 0.0  ;;  %v5225_v41 = vadd.f32 %v7330_v38, %v12324_v15  ;;  %v7331_v40 = vpop.f32.mrb[132].mxu0  ;;  %v7411_v51 = vpop.f32.mrb[222].mxu1 }
0x1338   :  { %v7332_v39 = vpop.f32.mrb[133].mxu0  ;;  %v7412_v14 = vpop.f32.mrb[223].mxu1 }
0x1339   :  { %v8478_v13 = vpack.c.bf16 %v12370_v61, %v12368_v54  ;;  %v5370_v1 = vadd.f32 %v7410_v26, %v5225_v41  ;;  %v7333_v42 = vadd.f32 %v7332_v39, %v7331_v40  ;;  %v7413_v19 = vadd.f32 %v7412_v14, %v7411_v51 }
0x133a   :  { %v8647_v33 = vpack.i.bf16 %v12370_v61, %v12368_v54 }
0x133b   :  { %v5230_v55 = vadd.f32 %v7333_v42, %v12324_v15  ;;  %8480 = vmatpush3.bf16.xpose.msk.msra.mxu0 %vm12340_vm4, %v8478_v13  ;;  %8510 = vmatprep.subr.bf16.mxu1 %v8478_v13  ;;  %v12381_v28 = vmax.f32 %v5370_v1, 0.0 }
0x133c   :  { %8512 = vmatpush3.bf16.msra.mxu1 %v8478_v13  ;;  %8481 = vmatprep.subr.bf16.mxu0 %v13360_v58 }
0x133d   :  { %v5375_v8 = vadd.f32 %v7413_v19, %v5230_v55 }
0x133f   :  { %v12383_v48 = vmax.f32 %v5375_v8, 0.0 }
0x1341   :  { %v8482_v62 = vpack.c.bf16 %v12383_v48, %v12381_v28  ;;  %v8652_v45 = vpack.i.bf16 %v12383_v48, %v12381_v28 }
0x1343   :  { %8484 = vmatpush3.bf16.xpose.msk.msra.mxu0 %vm12340_vm4, %v8482_v62  ;;  %8514 = vmatprep.subr.bf16.mxu1 %v8482_v62 }
0x1344   :  { %8516 = vmatpush3.bf16.msra.mxu1 %v8482_v62  ;;  %8485 = vmatprep.subr.bf16.mxu0 %v13360_v58 }
0x134b   :  { %v7334_v11 = vpop.f32.mrb[134].mxu0  ;;  %v7414_v21 = vpop.f32.mrb[224].mxu1  ;;  %5585 = vadd.xlane.f32.xlu0 %v5584_v46  ;;  %5582 = vadd.xlane.f32.xlu1 %v5581_v57 }
0x134c   :  { %v7335_v43 = vpop.f32.mrb[135].mxu0  ;;  %v7415_v3 = vpop.f32.mrb[225].mxu1 }
0x134d   :  { %v7336_v6 = vadd.f32 %v7335_v43, %v7334_v11  ;;  %v7416_v53 = vadd.f32 %v7415_v3, %v7414_v21 }
0x134f   :  { %v5235_v2 = vadd.f32 %v7336_v6, %v12324_v15  ;;  %v7337_v63 = vpop.f32.mrb[136].mxu0  ;;  %v7417_v31 = vpop.f32.mrb[226].mxu1 }
0x1350   :  { %v7338_v59 = vpop.f32.mrb[137].mxu0  ;;  %v7418_v38 = vpop.f32.mrb[227].mxu1 }
0x1351   :  { %v5380_v26 = vadd.f32 %v7416_v53, %v5235_v2  ;;  %v7339_v41 = vadd.f32 %v7338_v59, %v7337_v63  ;;  %v7419_v40 = vadd.f32 %v7418_v38, %v7417_v31 }
0x1353   :  { %v5240_v51 = vadd.f32 %v7339_v41, %v12324_v15  ;;  %v7340_v39 = vpop.f32.mrb[138].mxu0  ;;  %v7420_v14 = vpop.f32.mrb[228].mxu1  ;;  %v12404_v8 = vmax.f32 %v5380_v26, 0.0 }
0x1354   :  { %v7341_v13 = vpop.f32.mrb[139].mxu0  ;;  %v7421_v1 = vpop.f32.mrb[229].mxu1 }
0x1355   :  { %v5385_v42 = vadd.f32 %v7419_v40, %v5240_v51  ;;  %v7342_v19 = vadd.f32 %v7341_v13, %v7340_v39  ;;  %v7422_v55 = vadd.f32 %v7421_v1, %v7420_v14 }
0x1357   :  { %v12406_v62 = vmax.f32 %v5385_v42, 0.0  ;;  %v5245_v22 = vadd.f32 %v7342_v19, %v12324_v15  ;;  %v7343_v23 = vpop.f32.mrb[140].mxu0  ;;  %v7423_v46 = vpop.f32.mrb[230].mxu1  ;;  %v6270_v42 = vmul.f32 %v12327_v25, %v12355_v47 }
0x1358   :  { %v7344_v11 = vpop.f32.mrb[141].mxu0  ;;  %v7424_v21 = vpop.f32.mrb[231].mxu1 }
0x1359   :  { %v8486_v57 = vpack.c.bf16 %v12406_v62, %v12404_v8  ;;  %v5390_v43 = vadd.f32 %v7422_v55, %v5245_v22  ;;  %v7345_v3 = vadd.f32 %v7344_v11, %v7343_v23  ;;  %v7425_v6 = vadd.f32 %v7424_v21, %v7423_v46 }
0x135a   :  { %v8657_v53 = vpack.i.bf16 %v12406_v62, %v12404_v8  ;;  %v6271_v22 = vmul.f32 %v12327_v25, %v12357_v27 }
0x135b   :  { %v5250_v2 = vadd.f32 %v7345_v3, %v12324_v15  ;;  %v7346_v63 = vpop.f32.mrb[142].mxu0  ;;  %v7426_v31 = vpop.f32.mrb[232].mxu1  ;;  %8488 = vmatpush3.bf16.xpose.msk.msra.mxu0 %vm12340_vm4, %v8486_v57  ;;  %8518 = vmatprep.subr.bf16.mxu1 %v8486_v57  ;;  %v12421_v51 = vmax.f32 %v5390_v43, 0.0 }
0x135c   :  { %v7347_v59 = vpop.f32.mrb[143].mxu0  ;;  %v7427_v38 = vpop.f32.mrb[233].mxu1  ;;  %8520 = vmatpush3.bf16.msra.mxu1 %v8486_v57  ;;  %8489 = vmatprep.subr.bf16.mxu0 %v13360_v58 }
0x135d   :  { %v5395_v26 = vadd.f32 %v7425_v6, %v5250_v2  ;;  %v7348_v41 = vadd.f32 %v7347_v59, %v7346_v63  ;;  %v7428_v40 = vadd.f32 %v7427_v38, %v7426_v31  ;;  %8638 = vrot.lane.b32.xlu1 %v8637_v44, %s9428_s14 }
0x135f   :  { %v12423_v39 = vmax.f32 %v5395_v26, 0.0  ;;  %v5255_v14 = vadd.f32 %v7348_v41, %v12324_v15  ;;  %v7349_v13 = vpop.f32.mrb[144].mxu0  ;;  %v7429_v1 = vpop.f32.mrb[234].mxu1 }
0x1360   :  { %v7350_v19 = vpop.f32.mrb[145].mxu0  ;;  %v7430_v55 = vpop.f32.mrb[235].mxu1 }
0x1361   :  { %v8490_v37 = vpack.c.bf16 %v12423_v39, %v12421_v51  ;;  %v5400_v35 = vadd.f32 %v7428_v40, %v5255_v14  ;;  %v7351_v44 = vadd.f32 %v7350_v19, %v7349_v13  ;;  %v7431_v23 = vadd.f32 %v7430_v55, %v7429_v1  ;;  %6304 = vrot.lane.b32.xlu1 %v6270_v42, %s9428_s14 }
0x1362   :  { %6306 = vrot.lane.b32.xlu0 %v6271_v22, %s9428_s14  ;;  %v8662_v46 = vpack.i.bf16 %v12423_v39, %v12421_v51 }
0x1363   :  { %v5260_v11 = vadd.f32 %v7351_v44, %v12324_v15  ;;  %v7352_v21 = vpop.f32.mrb[146].mxu0  ;;  %v7432_v57 = vpop.f32.mrb[236].mxu1  ;;  %8492 = vmatpush3.bf16.xpose.msk.msra.mxu0 %vm12340_vm4, %v8490_v37  ;;  %8522 = vmatprep.subr.bf16.mxu1 %v8490_v37  ;;  %v12440_v31 = vmax.f32 %v5400_v35, 0.0 }
0x1364   :  { %v7353_v43 = vpop.f32.mrb[147].mxu0  ;;  %v7433_v3 = vpop.f32.mrb[237].mxu1  ;;  %8524 = vmatpush3.bf16.msra.mxu1 %v8490_v37  ;;  %8493 = vmatprep.subr.bf16.mxu0 %v13360_v58 }
0x1365   :  { %v5405_v6 = vadd.f32 %v7431_v23, %v5260_v11  ;;  %v7354_v2 = vadd.f32 %v7353_v43, %v7352_v21  ;;  %v7434_v63 = vadd.f32 %v7433_v3, %v7432_v57  ;;  %v5568_v21 = vmul.f32 %v12391_v36, %v12357_v27 }
0x1366   :  { %v5569_v57 = vmul.f32 %v12391_v36, %v12368_v54  ;;  %v5567_v43 = vmul.f32 %v12391_v36, %v12355_v47  ;;  %v5570_v47 = vmul.f32 %v12391_v36, %v12370_v61 }
0x1367   :  { %v12442_v59 = vmax.f32 %v5405_v6, 0.0  ;;  %v5265_v38 = vadd.f32 %v7354_v2, %v12324_v15  ;;  %v7355_v26 = vpop.f32.mrb[148].mxu0  ;;  %v7435_v41 = vpop.f32.mrb[238].mxu1  ;;  %v5590_v30 = vsel %vm140_vm0, %v5568_v21, 0.0  ;;  %v6273_v2 = vmul.f32 %v12327_v25, %v12370_v61 }
0x1368   :  { %v7356_v40 = vpop.f32.mrb[149].mxu0  ;;  %v7436_v14 = vpop.f32.mrb[239].mxu1  ;;  %v5593_v3 = vsel %vm140_vm0, %v5569_v57, 0.0  ;;  %v5587_v6 = vsel %vm140_vm0, %v5567_v43, 0.0  ;;  %v6277_v21 = vmul.f32 %v12327_v25, %v12406_v62 }
0x1369   :  { %v8494_v13 = vpack.c.bf16 %v12442_v59, %v12440_v31  ;;  %v5410_v1 = vadd.f32 %v7434_v63, %v5265_v38  ;;  %v7357_v42 = vadd.f32 %v7356_v40, %v7355_v26  ;;  %v7437_v19 = vadd.f32 %v7436_v14, %v7435_v41 }
0x136a   :  { %v8667_v55 = vpack.i.bf16 %v12442_v59, %v12440_v31  ;;  %v5571_v63 = vmul.f32 %v12391_v36, %v12381_v28 }
0x136b   :  { %v5270_v22 = vadd.f32 %v7357_v42, %v12324_v15  ;;  %8496 = vmatpush3.bf16.xpose.msk.msra.mxu0 %vm12340_vm4, %v8494_v13  ;;  %8526 = vmatprep.subr.bf16.mxu1 %v8494_v13  ;;  %v12453_v35 = vmax.f32 %v5410_v1, 0.0  ;;  %v12467_v15 = vld [vmem:[%s13248_s15] sm:$0xff]  ;;  %v5572_v1 = vmul.f32 %v12391_v36, %v12383_v48 }
0x136c   :  { %8528 = vmatpush3.bf16.msra.mxu1 %v8494_v13  ;;  %8497 = vmatprep.subr.bf16.mxu0 %v13360_v58  ;;  %v5599_v27 = vsel %vm140_vm0, %v5571_v63, 0.0 }
0x136d   :  { %v5415_v37 = vadd.f32 %v7437_v19, %v5270_v22  ;;  %v5602_v42 = vsel %vm140_vm0, %v5572_v1, 0.0  ;;  %v12529_v19 = vpop.permute.xlu0 %5556 }
0x136f   :  { %v12455_v44 = vmax.f32 %v5415_v37, 0.0 }
0x1371   :  { %v8498_v23 = vpack.c.bf16 %v12455_v44, %v12453_v35  ;;  %v8672_v11 = vpack.i.bf16 %v12455_v44, %v12453_v35 }
0x1373   :  { %8500 = vmatpush3.bf16.xpose.msk.msra.mxu0 %vm12340_vm4, %v8498_v23  ;;  %8530 = vmatprep.subr.bf16.mxu1 %v8498_v23 }
0x1374   :  { %8532 = vmatpush3.bf16.msra.mxu1 %v8498_v23  ;;  %8533 = vmatprep.subr.bf16.mxu0 %v13360_v58  ;;  %v6276_v23 = vmul.f32 %v12327_v25, %v12404_v8 }
0x137a   :  { %7616 = vmatmul.mubr.msk.f32.vlgmr.msra.gmra.mrb[150].mxu0 %vm140_vm0, %v12467_v15 }
0x137b   :  { %7706 = vmatprep.mubr.msk.f32.mxu0 %vm9426_vm2, %v13335_v34  ;;  %v6272_v34 = vmul.f32 %v12327_v25, %v12368_v54  ;;  %v6274_v54 = vmul.f32 %v12327_v25, %v12381_v28  ;;  %v5573_v28 = vmul.f32 %v12391_v36, %v12404_v8 }
0x1381   :  { %5591 = vadd.xlane.f32.xlu0 %v5590_v30 }
0x1385   :  { %5594 = vadd.xlane.f32.xlu0 %v5593_v3  ;;  %5588 = vadd.xlane.f32.xlu1 %v5587_v6 }
0x1396   :  { %8643 = vrot.lane.b32.xlu1 %v8642_v20, %s9428_s14  ;;  %v5596_v20 = vsel %vm140_vm0, %v5570_v47, 0.0 }
0x1399   :  { %v12512_v61 = vpop.permute.xlu1 %6300 }
0x139a   :  { %6308 = vrot.lane.b32.xlu1 %v6272_v34, %s9428_s14 }
0x139b   :  { %8648 = vrot.lane.b32.xlu0 %v8647_v33, %s9428_s14  ;;  %v6275_v33 = vmul.f32 %v12327_v25, %v12383_v48 }
0x139e   :  { %v12531_v22 = vpop.permute.xlu0 %6302 }
0x139f   :  { %6310 = vrot.lane.b32.xlu0 %v6273_v2, %s9428_s14 }
0x13be   :  { %5600 = vadd.xlane.f32.xlu0 %v5599_v27  ;;  %5597 = vadd.xlane.f32.xlu1 %v5596_v20  ;;  %v5575_v20 = vmul.f32 %v12391_v36, %v12421_v51 }
0x13cf   :  { %6312 = vrot.lane.b32.xlu1 %v6274_v54, %s9428_s14  ;;  %v5574_v54 = vmul.f32 %v12391_v36, %v12406_v62 }
0x13d3   :  { %8653 = vrot.lane.b32.xlu1 %v8652_v45, %s9428_s14  ;;  %v5605_v45 = vsel %vm140_vm0, %v5573_v28, 0.0 }
0x13d4   :  { %6314 = vrot.lane.b32.xlu0 %v6275_v33, %s9428_s14  ;;  %v5611_v33 = vsel %vm140_vm0, %v5575_v20, 0.0 }
0x13d8   :  { %v12514_v38 = vpop.xlane.xlu1 %5582  ;;  %v12533_v37 = vpop.xlane.xlu0 %5585 }
0x13dc   :  { %v8639_v26 = vpop.permute.xlu1 %8638  ;;  %v12542_v48 = vpop.permute.xlu0 %6306 }
0x13dd   :  { %v8641_v41 = vunpack.i.h.bf16 %v8639_v26  ;;  %v8640_v40 = vunpack.i.l.bf16 %v8639_v26  ;;  %v5608_v26 = vsel %vm140_vm0, %v5574_v54, 0.0 }
0x13df   :  { %v12516_v14 = vpack.c.bf16 %v8641_v41, %v8640_v40  ;;  %v6278_v41 = vmul.f32 %v12327_v25, %v12421_v51  ;;  %v6279_v40 = vmul.f32 %v12327_v25, %v12423_v39  ;;  %v5577_v51 = vmul.f32 %v12391_v36, %v12440_v31 }
0x13e0   :  { %v12547_v30 = vpop.permute.xlu1 %6304 }
0x13e1   :  { %8536 = vmatpush3.bf16.xpose.msk.msra.mxu0 %vm10651_vm3, %v12516_v14  ;;  %8566 = vmatprep.subr.bf16.mxu1 %v12516_v14 }
0x13e2   :  { %8537 = vmatprep.subr.bf16.mxu0 %v13360_v58 }
0x13f3   :  { %5606 = vadd.xlane.f32.xlu0 %v5605_v45 }
0x13f7   :  { %5603 = vadd.xlane.f32.xlu1 %v5602_v42 }
0x1408   :  { %6316 = vrot.lane.b32.xlu1 %v6276_v23, %s9428_s14 }
0x1409   :  { %8658 = vrot.lane.b32.xlu0 %v8657_v53, %s9428_s14 }
0x140d   :  { %6318 = vrot.lane.b32.xlu0 %v6277_v21, %s9428_s14 }
0x140e   :  { %v12549_v57 = vpop.xlane.xlu0 %5591 }
0x1412   :  { %v12551_v43 = vpop.xlane.xlu1 %5588  ;;  %v12553_v3 = vpop.xlane.xlu0 %5594 }
0x1416   :  { %v8644_v6 = vpop.permute.xlu1 %8643  ;;  %v8649_v53 = vpop.permute.xlu0 %8648 }
0x1417   :  { %v8646_v34 = vunpack.i.h.bf16 %v8644_v6  ;;  %v8645_v2 = vunpack.i.l.bf16 %v8644_v6  ;;  %v8651_v63 = vunpack.i.h.bf16 %v8649_v53  ;;  %v8650_v47 = vunpack.i.l.bf16 %v8649_v53 }
0x1419   :  { %v12555_v8 = vpack.c.bf16 %v8646_v34, %v8645_v2  ;;  %v12561_v27 = vpack.c.bf16 %v8651_v63, %v8650_v47  ;;  %v5576_v2 = vmul.f32 %v12391_v36, %v12423_v39  ;;  %v6280_v47 = vmul.f32 %v12327_v25, %v12440_v31 }
0x141a   :  { %v6309_v62 = vpop.permute.xlu1 %6308  ;;  %v6311_v63 = vpop.permute.xlu0 %6310  ;;  %v6281_v39 = vmul.f32 %v12327_v25, %v12442_v59  ;;  %v5578_v31 = vmul.f32 %v12391_v36, %v12442_v59 }
0x141b   :  { %8540 = vmatpush3.bf16.xpose.msk.msra.mxu0 %vm10651_vm3, %v12555_v8  ;;  %v5614_v53 = vsel %vm140_vm0, %v5576_v2, 0.0  ;;  %v6360_v59 = vsel %vm802_vm1, %v6309_v62, 0.0 }
0x141c   :  { %8541 = vmatprep.subr.bf16.mxu0 %v13360_v58 }
0x1423   :  { %8544 = vmatpush3.bf16.xpose.msk.msra.mxu0 %vm10651_vm3, %v12561_v27 }
0x1424   :  { %8545 = vmatprep.subr.bf16.mxu0 %v13360_v58 }
0x142c   :  { %5612 = vadd.xlane.f32.xlu0 %v5611_v33  ;;  %5609 = vadd.xlane.f32.xlu1 %v5608_v26  ;;  %v6282_v33 = vmul.f32 %v12327_v25, %v12453_v35 }
0x143d   :  { %6320 = vrot.lane.b32.xlu1 %v6278_v41, %s9428_s14 }
0x1441   :  { %8663 = vrot.lane.b32.xlu1 %v8662_v46, %s9428_s14  ;;  %v5617_v46 = vsel %vm140_vm0, %v5577_v51, 0.0  ;;  %v6348_v51 = vsel %vm802_vm1, %v12512_v61, 0.0  ;;  %v6283_v61 = vmul.f32 %v12327_v25, %v12455_v44 }
0x1442   :  { %6322 = vrot.lane.b32.xlu0 %v6279_v40, %s9428_s14 }
0x144b   :  { %v12583_v28 = vpop.xlane.xlu1 %5597  ;;  %v12601_v20 = vpop.xlane.xlu0 %5600 }
0x144d   :  { %v12585_v45 = vpop.f32.mrb[150].mxu0 }
0x144e   :  { %v7617_v1 = vpop.f32.mrb[151].mxu0 }
0x144f   :  { %v6313_v42 = vpop.permute.xlu1 %6312  ;;  %v6315_v54 = vpop.permute.xlu0 %6314 }
0x1453   :  { %v8654_v23 = vpop.permute.xlu1 %8653 }
0x1454   :  { %v8656_v21 = vunpack.i.h.bf16 %v8654_v23  ;;  %v8655_v6 = vunpack.i.l.bf16 %v8654_v23 }
0x1456   :  { %v12587_v34 = vpack.c.bf16 %v8656_v21, %v8655_v6  ;;  %v5579_v21 = vmul.f32 %v12391_v36, %v12453_v35  ;;  %v12648_v35 = vrot.slane %v12467_v15, %v13341_v18  ;;  %v6351_v15 = vsel %vm802_vm1, %v12531_v22, 0.0 }
0x1458   :  { %8548 = vmatpush3.bf16.xpose.msk.msra.mxu0 %vm10651_vm3, %v12587_v34  ;;  %v5623_v6 = vsel %vm140_vm0, %v5579_v21, 0.0  ;;  %v5635_v25 = vadd.f32 %v12648_v35, %v12551_v43  ;;  %v6357_v43 = vsel %vm802_vm1, %v12542_v48, 0.0  ;;  %v6369_v21 = vsel %vm802_vm1, %v6315_v54, 0.0 }
0x1459   :  { %8549 = vmatprep.subr.bf16.mxu0 %v13360_v58  ;;  %v5633_v22 = vadd.f32 %v12648_v35, %v12514_v38  ;;  %v5634_v54 = vadd.f32 %v12648_v35, %v12533_v37 }
0x1461   :  { %5618 = vadd.xlane.f32.xlu0 %v5617_v46  ;;  %v6354_v46 = vsel %vm802_vm1, %v12547_v30, 0.0 }
0x1465   :  { %5615 = vadd.xlane.f32.xlu1 %v5614_v53  ;;  %v6366_v53 = vsel %vm802_vm1, %v6313_v42, 0.0  ;;  %v5580_v42 = vmul.f32 %v12391_v36, %v12455_v44 }
0x1476   :  { %6324 = vrot.lane.b32.xlu1 %v6280_v47, %s9428_s14 }
0x1477   :  { %8668 = vrot.lane.b32.xlu0 %v8667_v55, %s9428_s14  ;;  %v5620_v55 = vsel %vm140_vm0, %v5578_v31, 0.0  ;;  %v6363_v31 = vsel %vm802_vm1, %v6311_v63, 0.0 }
0x147b   :  { %6326 = vrot.lane.b32.xlu0 %v6281_v39, %s9428_s14 }
0x147f   :  { %6328 = vrot.lane.b32.xlu0 %v6282_v33, %s9428_s14 }
0x1480   :  { %v12614_v26 = vpop.xlane.xlu0 %5606 }
0x1484   :  { %v8659_v41 = vpop.permute.xlu0 %8658  ;;  %v12632_v2 = vpop.xlane.xlu1 %5603 }
0x1485   :  { %v8661_v40 = vunpack.i.h.bf16 %v8659_v41  ;;  %v8660_v1 = vunpack.i.l.bf16 %v8659_v41 }
0x1487   :  { %v12616_v23 = vpack.c.bf16 %v8661_v40, %v8660_v1  ;;  %v5626_v1 = vsel %vm140_vm0, %v5580_v42, 0.0 }
0x1488   :  { %v6317_v47 = vpop.permute.xlu1 %6316 }
0x1489   :  { %8552 = vmatpush3.bf16.xpose.msk.msra.mxu0 %vm10651_vm3, %v12616_v23  ;;  %v6372_v30 = vsel %vm802_vm1, %v6317_v47, 0.0 }
0x148a   :  { %8553 = vmatprep.subr.bf16.mxu0 %v13360_v58 }
0x149a   :  { %5621 = vadd.xlane.f32.xlu1 %v5620_v55  ;;  %v6319_v55 = vpop.permute.xlu0 %6318 }
0x149e   :  { %5624 = vadd.xlane.f32.xlu0 %v5623_v6 }
0x14a2   :  { %6349 = vadd.xlane.f32.xlu0 %v6348_v51 }
0x14a6   :  { %6355 = vadd.xlane.f32.xlu0 %v6354_v46 }
0x14aa   :  { %6361 = vadd.xlane.f32.xlu0 %v6360_v59 }
0x14ab   :  { %8673 = vrot.lane.b32.xlu1 %v8672_v11, %s9428_s14 }
0x14ae   :  { %6367 = vadd.xlane.f32.xlu0 %v6366_v53  ;;  %v5637_v53 = vadd.f32 %v12648_v35, %v12553_v3 }
0x14af   :  { %6330 = vrot.lane.b32.xlu1 %v6283_v61, %s9428_s14 }
0x14b2   :  { %6373 = vadd.xlane.f32.xlu0 %v6372_v30  ;;  %v6375_v30 = vsel %vm802_vm1, %v6319_v55, 0.0 }
0x14b9   :  { %v12644_v39 = vpop.xlane.xlu1 %5609  ;;  %v12667_v6 = vpop.xlane.xlu0 %5612 }
0x14bd   :  { %v6321_v62 = vpop.permute.xlu1 %6320  ;;  %v6323_v44 = vpop.permute.xlu0 %6322 }
0x14be   :  { %v6378_v36 = vsel %vm802_vm1, %v6321_v62, 0.0 }
0x14c1   :  { %v8664_v33 = vpop.permute.xlu1 %8663 }
0x14c2   :  { %v8666_v41 = vunpack.i.h.bf16 %v8664_v33  ;;  %v8665_v40 = vunpack.i.l.bf16 %v8664_v33 }
0x14c4   :  { %v12650_v11 = vpack.c.bf16 %v8666_v41, %v8665_v40 }
0x14c6   :  { %8556 = vmatpush3.bf16.xpose.msk.msra.mxu0 %vm10651_vm3, %v12650_v11 }
0x14c7   :  { %8557 = vmatprep.subr.bf16.mxu0 %v13360_v58 }
0x14c8   :  { %5681 = vperm.xlu0 %8635, %v5635_v25  }
0x14d3   :  { %5627 = vadd.xlane.f32.xlu1 %v5626_v1 }
0x14d7   :  { %6352 = vadd.xlane.f32.xlu1 %v6351_v15  ;;  %v5639_v15 = vadd.f32 %v12648_v35, %v12601_v20 }
0x14db   :  { %6358 = vadd.xlane.f32.xlu1 %v6357_v43 }
0x14df   :  { %6364 = vadd.xlane.f32.xlu1 %v6363_v31  ;;  %v9406_v31 = vld [vmem:[%s13247_s16] sm:$0xff] }
0x14e3   :  { %6370 = vadd.xlane.f32.xlu1 %v6369_v21  ;;  %v5558_v21 = vrot.slane %v12529_v19, 2 }
0x14e5   :  { %v5560_v20 = vadd.f32 %v5558_v21, %v12585_v45  ;;  %v6381_v45 = vsel %vm802_vm1, %v6323_v44, 0.0  ;;  %v12743_v21 = vld [vmem:[%s13244_s2] sm:$0xff] }
0x14e7   :  { %6379 = vadd.xlane.f32.xlu0 %v6378_v36  ;;  %v12718_v13 = vrot.slane %v5560_v20, %v13342_v9  ;;  %v12749_v20 = vrot.slane %v9406_v31, %v13341_v18 }
0x14ee   :  { %v5619_v51 = vpop.xlane.xlu0 %5618 }
0x14ef   :  { %v5645_v44 = vadd.f32 %v12648_v35, %v5619_v51 }
0x14f2   :  { %v8669_v46 = vpop.permute.xlu0 %8668  ;;  %v12682_v38 = vpop.xlane.xlu1 %5615 }
0x14f3   :  { %v8671_v48 = vunpack.i.h.bf16 %v8669_v46  ;;  %v8670_v59 = vunpack.i.l.bf16 %v8669_v46  ;;  %v12723_v46 = vld [vmem:[%s13244_s2 + $0x10] sm:$0xff] }
0x14f4   :  { %5671 = vperm.xlu1 %8636, %v5633_v22  }
0x14f5   :  { %v12672_v63 = vpack.c.bf16 %v8671_v48, %v8670_v59  ;;  %v5655_v48 = vmul.f32 %v12723_v46, %v12718_v13 }
0x14f6   :  { %v6325_v61 = vpop.permute.xlu1 %6324  ;;  %v12686_v37 = vpop.permute.xlu0 %6326 }
0x14f7   :  { %8560 = vmatpush3.bf16.xpose.msk.msra.mxu0 %vm10651_vm3, %v12672_v63  ;;  %v6384_v47 = vsel %vm802_vm1, %v6325_v61, 0.0  ;;  %v5638_v61 = vadd.f32 %v12648_v35, %v12583_v28 }
0x14f8   :  { %5676 = vperm.xlu1 %8636, %v5634_v54   ;;  %8561 = vmatprep.subr.bf16.mxu0 %v13360_v58  ;;  %v5636_v58 = vadd.f32 %v12648_v35, %v12549_v57 }
0x14fa   :  { %v6329_v62 = vpop.permute.xlu0 %6328 }
0x14fb   :  { %v6390_v19 = vsel %vm802_vm1, %v6329_v62, 0.0 }
0x14fd   :  { %5691 = vperm.xlu0 %8635, %v5637_v53  }
0x151c   :  { %6385 = vadd.xlane.f32.xlu0 %v6384_v47  ;;  %6376 = vadd.xlane.f32.xlu1 %v6375_v30 }
0x1527   :  { %v12688_v33 = vpop.xlane.xlu1 %5621 }
0x152b   :  { %v12692_v41 = vpop.xlane.xlu0 %5624  ;;  %v8674_v3 = vpop.permute.xlu1 %8673 }
0x152c   :  { %v8676_v40 = vunpack.i.h.bf16 %v8674_v3  ;;  %v8675_v25 = vunpack.i.l.bf16 %v8674_v3 }
0x152d   :  { %5686 = vperm.xlu1 %8636, %v5636_v58   ;;  %v5641_v58 = vadd.f32 %v12648_v35, %v12614_v26  ;;  %v5653_v26 = vmul.f32 %v12743_v21, %v12718_v13 }
0x152e   :  { %v12694_v42 = vpack.c.bf16 %v8676_v40, %v8675_v25  ;;  %v5643_v40 = vadd.f32 %v12648_v35, %v12667_v6 }
0x152f   :  { %v12696_v1 = vpop.xlane.xlu0 %6349  ;;  %v6331_v53 = vpop.permute.xlu1 %6330 }
0x1530   :  { %8564 = vmatpush3.bf16.xpose.msk.msra.mxu0 %vm10651_vm3, %v12694_v42 }
0x1532   :  { %5701 = vperm.xlu0 %8635, %v5639_v15  }
0x1533   :  { %v12703_v43 = vpop.xlane.xlu0 %6355 }
0x1537   :  { %v12705_v57 = vpop.xlane.xlu0 %6361  ;;  %7707 = vmatmul.mubr.msk.f32.vlgmr.msra.gmra.mrb[152].mxu0 %vm802_vm1, %v9406_v31 }
0x153b   :  { %v12711_v55 = vpop.xlane.xlu0 %6367 }
0x153f   :  { %v12715_v36 = vpop.xlane.xlu0 %6373 }
0x1547   :  { %v5682_v22 = vpop.permute.xlu0 %5681 }
0x1548   :  { %v5751_v59 = vmul.f32 %v5682_v22, %v13347_v56 }
0x154a   :  { %v12728_v54 = vadd.f32 %v5751_v59, %v5655_v48 }
0x1551   :  { %6391 = vadd.xlane.f32.xlu0 %v6390_v19  ;;  %6382 = vadd.xlane.f32.xlu1 %v6381_v45  ;;  %v12757_v19 = vld [vmem:[%s13244_s2 + $0x8] sm:$0xff] }
0x1552   :  { %v5654_v45 = vmul.f32 %v12757_v19, %v12718_v13 }
0x1560   :  { %v5628_v47 = vpop.xlane.xlu1 %5627 }
0x1561   :  { %v5648_v28 = vadd.f32 %v12648_v35, %v5628_v47 }
0x1562   :  { %5696 = vperm.xlu1 %8636, %v5638_v61  }
0x1564   :  { %v6353_v30 = vpop.xlane.xlu1 %6352 }
0x1565   :  { %v6401_v59 = vadd.f32 %v12749_v20, %v6353_v30  ;;  %v12768_v30 = vld [vmem:[%s13244_s2 + $0x20] sm:$0xff] }
0x1567   :  { %5711 = vperm.xlu0 %8635, %v5641_v58   ;;  %v5657_v58 = vmul.f32 %v12768_v30, %v12718_v13 }
0x1568   :  { %v6359_v3 = vpop.xlane.xlu1 %6358 }
0x156b   :  { %5721 = vperm.xlu0 %8635, %v5643_v40  }
0x156c   :  { %v6365_v62 = vpop.xlane.xlu1 %6364 }
0x156f   :  { %5731 = vperm.xlu0 %8635, %v5645_v44  }
0x1570   :  { %v6371_v25 = vpop.xlane.xlu1 %6370 }
0x1573   :  { %6255 = vperm.xlu0 %8635, %v9406_v31   ;;  %v6403_v31 = vadd.f32 %v12749_v20, %v6359_v3  ;;  %v6387_v3 = vsel %vm802_vm1, %v12686_v37, 0.0 }
0x1574   :  { %v5672_v15 = vpop.permute.xlu1 %5671  ;;  %v12751_v22 = vpop.xlane.xlu0 %6379 }
0x1575   :  { %v5749_v6 = vmul.f32 %v5672_v15, %v13345_v16  ;;  %v6405_v15 = vadd.f32 %v12749_v20, %v6365_v62  ;;  %v12785_v62 = vld [vmem:[%s13244_s2 + $0x30] sm:$0xff] }
0x1576   :  { %v5659_v37 = vmul.f32 %v12785_v62, %v12718_v13 }
0x1577   :  { %v5765_v51 = vadd.f32 %v5749_v6, %v5653_v26  ;;  %5746 = vperm.xlu0 %8635, %v5648_v28   ;;  %v6407_v28 = vadd.f32 %v12749_v20, %v6371_v25  ;;  %v5640_v26 = vadd.f32 %v12648_v35, %v12632_v2  ;;  %v6393_v2 = vsel %vm802_vm1, %v6331_v53, 0.0 }
0x1578   :  { %v5677_v48 = vpop.permute.xlu1 %5676  ;;  %v6400_v53 = vadd.f32 %v12749_v20, %v12696_v1 }
0x1579   :  { %v5750_v61 = vmul.f32 %v5677_v48, %v13346_v10 }
0x157b   :  { %v12762_v47 = vadd.f32 %v5750_v61, %v5654_v45  ;;  %6443 = vperm.xlu0 %8635, %v6401_v59  }
0x157c   :  { %v5692_v18 = vpop.permute.xlu0 %5691 }
0x157d   :  { %v5753_v40 = vmul.f32 %v5692_v18, %v13349_v7  ;;  %v5642_v18 = vadd.f32 %v12648_v35, %v12644_v39  ;;  %v6402_v39 = vadd.f32 %v12749_v20, %v12703_v43  ;;  %v12814_v43 = vld [vmem:[%s13244_s2 + $0x18] sm:$0xff] }
0x157f   :  { %v12773_v44 = vadd.f32 %v5753_v40, %v5657_v58  ;;  %6453 = vperm.xlu0 %8635, %v6403_v31   ;;  %v5644_v31 = vadd.f32 %v12648_v35, %v12682_v38  ;;  %v5646_v58 = vadd.f32 %v12648_v35, %v12688_v33  ;;  %v5647_v40 = vadd.f32 %v12648_v35, %v12692_v41 }
0x1580   :  { %v6404_v33 = vadd.f32 %v12749_v20, %v12705_v57  ;;  %v6406_v35 = vadd.f32 %v12749_v20, %v12711_v55  ;;  %v7148_v57 = vmul.f32 -1.442695, %v5765_v51  ;;  %v12824_v55 = vld [vmem:[%s13244_s2 + $0x28] sm:$0xff] }
0x1582   :  { %9125 = vpow2.f32 %v7148_v57 }
0x1583   :  { %6463 = vperm.xlu0 %8635, %v6405_v15  }
0x1586   :  { %6388 = vadd.xlane.f32.xlu1 %v6387_v3  ;;  %v5656_v3 = vmul.f32 %v12814_v43, %v12718_v13 }
0x1587   :  { %6473 = vperm.xlu0 %8635, %v6407_v28  }
0x1597   :  { %5706 = vperm.xlu1 %8636, %v5640_v26   ;;  %v6408_v26 = vadd.f32 %v12749_v20, %v12715_v36 }
0x15a9   :  { %v6377_v6 = vpop.xlane.xlu1 %6376  ;;  %v6386_v59 = vpop.xlane.xlu0 %6385 }
0x15aa   :  { %v6409_v48 = vadd.f32 %v12749_v20, %v6377_v6  ;;  %v6412_v36 = vadd.f32 %v12749_v20, %v6386_v59 }
0x15ac   :  { %6483 = vperm.xlu0 %8635, %v6409_v48  }
0x15ad   :  { %v5687_v15 = vpop.permute.xlu1 %5686 }
0x15ae   :  { %v5752_v41 = vmul.f32 %v5687_v15, %v13348_v12 }
0x15b0   :  { %v5768_v6 = vadd.f32 %v5752_v41, %v5656_v3 }
0x15b1   :  { %v5702_v45 = vpop.permute.xlu0 %5701 }
0x15b2   :  { %v5755_v25 = vmul.f32 %v5702_v45, %v13343_v32  ;;  %v5658_v45 = vmul.f32 %v12824_v55, %v12718_v13 }
0x15b4   :  { %v12790_v61 = vadd.f32 %v5755_v25, %v5659_v37  ;;  %v6410_v37 = vadd.f32 %v12749_v20, %v12751_v22  ;;  %v7151_v25 = vmul.f32 -1.442695, %v5768_v6 }
0x15b6   :  { %9127 = vpow2.f32 %v7151_v25 }
0x15bb   :  { %6394 = vadd.xlane.f32.xlu1 %v6393_v2 }
0x15cc   :  { %5716 = vperm.xlu1 %8636, %v5642_v18  }
0x15d0   :  { %5726 = vperm.xlu1 %8636, %v5644_v31  }
0x15d4   :  { %5736 = vperm.xlu1 %8636, %v5646_v58   ;;  %v9126_v58 = vpop.eup %9125 }
0x15d8   :  { %5741 = vperm.xlu1 %8636, %v5647_v40   ;;  %v5829_v40 = vadd.f32 1.0, %v9126_v58 }
0x15dc   :  { %6438 = vperm.xlu1 %8636, %v6400_v53   ;;  %v9128_v53 = vpop.eup %9127 }
0x15dd   :  { %v5832_v15 = vadd.f32 1.0, %v9128_v53 }
0x15de   :  { %v6383_v28 = vpop.xlane.xlu1 %6382  ;;  %v6392_v51 = vpop.xlane.xlu0 %6391 }
0x15df   :  { %v6411_v38 = vadd.f32 %v12749_v20, %v6383_v28  ;;  %v6414_v31 = vadd.f32 %v12749_v20, %v6392_v51 }
0x15e0   :  { %6448 = vperm.xlu1 %8636, %v6402_v39  }
0x15e1   :  { %6493 = vperm.xlu0 %8635, %v6411_v38  }
0x15e2   :  { %v5697_v1 = vpop.permute.xlu1 %5696 }
0x15e3   :  { %v5754_v48 = vmul.f32 %v5697_v1, %v13350_v50 }
0x15e4   :  { %6458 = vperm.xlu1 %8636, %v6404_v33  }
0x15e5   :  { %v5770_v2 = vadd.f32 %v5754_v48, %v5658_v45  ;;  %v12838_v48 = vld [vmem:[%s13244_s2 + $0x38] sm:$0xff] }
0x15e6   :  { %v5660_v45 = vmul.f32 %v12838_v48, %v12718_v13  ;;  %v5712_v25 = vpop.permute.xlu0 %5711 }
0x15e7   :  { %v7153_v18 = vmul.f32 -1.442695, %v5770_v2 }
0x15e8   :  { %6468 = vperm.xlu1 %8636, %v6406_v35  }
0x15e9   :  { %9129 = vpow2.f32 %v7153_v18 }
0x15ea   :  { %9131 = vrcp.f32 %v5829_v40 }
0x15eb   :  { %9133 = vrcp.f32 %v5832_v15 }
0x15ec   :  { %6478 = vperm.xlu1 %8636, %v6408_v26  }
0x15f0   :  { %6488 = vperm.xlu1 %8636, %v6410_v37  }
0x15f3   :  { %v9130_v22 = vpop.eup %9129 }
0x15f4   :  { %6498 = vperm.xlu1 %8636, %v6412_v36   ;;  %v5834_v39 = vadd.f32 1.0, %v9130_v22  ;;  %v9132_v28 = vpop.eup %9131  ;;  %v7150_v22 = vmul.f32 -1.442695, %v12728_v54  ;;  %v7152_v54 = vmul.f32 -1.442695, %v12773_v44 }
0x15f5   :  { %v5877_v33 = vmul.f32 1.442695, %v9132_v28  ;;  %v9134_v35 = vpop.eup %9133 }
0x15f6   :  { %9135 = vrcp.f32 %v5834_v39  ;;  %v5883_v41 = vmul.f32 1.442695, %v9134_v35  ;;  %v5757_v39 = vmul.f32 %v5712_v25, %v13354_v52  ;;  %v7149_v35 = vmul.f32 -1.442695, %v12762_v47  ;;  %v12876_v47 = vld [vmem:[%s13244_s2 + $0x60] sm:$0xff] }
0x15f7   :  { %9137 = vpow2.f32 %v5877_v33  ;;  %v5665_v44 = vmul.f32 %v12876_v47, %v12718_v13 }
0x15f8   :  { %6508 = vperm.xlu1 %8636, %v6414_v31   ;;  %9139 = vpow2.f32 %v5883_v41  ;;  %v5722_v31 = vpop.permute.xlu0 %5721 }
0x15f9   :  { %v5759_v41 = vmul.f32 %v5722_v31, %v13356_v29 }
0x15fc   :  { %v5732_v40 = vpop.permute.xlu0 %5731 }
0x1600   :  { %v9136_v1 = vpop.eup %9135  ;;  %v6256_v28 = vpop.permute.xlu0 %6255 }
0x1601   :  { %v5887_v57 = vmul.f32 1.442695, %v9136_v1  ;;  %v12843_v36 = vpop.eup %9137 }
0x1602   :  { %v12846_v18 = vpop.eup %9139 }
0x1603   :  { %9141 = vpow2.f32 %v5887_v57  ;;  %v5761_v57 = vmul.f32 %v5732_v40, %v13357_v49 }
0x160a   :  { %v12832_v38 = vpop.f32.mrb[152].mxu0 }
0x160b   :  { %v7708_v59 = vpop.f32.mrb[153].mxu0 }
0x160c   :  { %v12857_v59 = vld [vmem:[%s13244_s2 + $0x40] sm:$0xff] }
0x160d   :  { %v12849_v58 = vpop.eup %9141  ;;  %v5661_v33 = vmul.f32 %v12857_v59, %v12718_v13 }
0x160f   :  { %v5773_v1 = vadd.f32 %v5757_v39, %v5661_v33 }
0x1611   :  { %v7156_v25 = vmul.f32 -1.442695, %v5773_v1 }
0x1613   :  { %v6389_v3 = vpop.xlane.xlu1 %6388 }
0x1614   :  { %v6413_v26 = vadd.f32 %v12749_v20, %v6389_v3  ;;  %v12867_v3 = vld [vmem:[%s13244_s2 + $0x50] sm:$0xff] }
0x1616   :  { %6503 = vperm.xlu0 %8635, %v6413_v26   ;;  %v5663_v26 = vmul.f32 %v12867_v3, %v12718_v13 }
0x1617   :  { %v5707_v6 = vpop.permute.xlu1 %5706 }
0x1618   :  { %v5756_v37 = vmul.f32 %v5707_v6, %v13344_v4  ;;  %v7154_v6 = vmul.f32 -1.442695, %v12790_v61  ;;  %v12884_v61 = vld [vmem:[%s13244_s2 + $0x78] sm:$0xff] }
0x161a   :  { %v5772_v2 = vadd.f32 %v5756_v37, %v5660_v45  ;;  %v5775_v45 = vadd.f32 %v5759_v41, %v5663_v26  ;;  %v5747_v37 = vpop.permute.xlu0 %5746  ;;  %v6257_v41 = vrot.slane %v6256_v28, 2 }
0x161b   :  { %v5764_v31 = vmul.f32 %v5747_v37, %v13355_v17 }
0x161c   :  { %v7155_v51 = vmul.f32 -1.442695, %v5772_v2  ;;  %5909 = vadd.xlane.f32.xlu1 %v12843_v36  ;;  %v5777_v2 = vadd.f32 %v5761_v57, %v5665_v44  ;;  %v7158_v40 = vmul.f32 -1.442695, %v5775_v45  ;;  %v6259_v26 = vadd.f32 %v6257_v41, %v12832_v38 }
0x161e   :  { %9143 = vpow2.f32 %v7155_v51  ;;  %v7160_v39 = vmul.f32 -1.442695, %v5777_v2 }
0x1620   :  { %5915 = vadd.xlane.f32.xlu1 %v12846_v18 }
0x1624   :  { %5919 = vadd.xlane.f32.xlu1 %v12849_v58 }
0x1628   :  { %v9144_v53 = vpop.eup %9143 }
0x1629   :  { %v5836_v15 = vadd.f32 1.0, %v9144_v53 }
0x162b   :  { %9145 = vrcp.f32 %v5836_v15  ;;  %v5668_v15 = vmul.f32 %v12884_v61, %v12718_v13 }
0x162c   :  { %9147 = vpow2.f32 %v7150_v22 }
0x162d   :  { %9149 = vpow2.f32 %v7149_v35  ;;  %v5780_v33 = vadd.f32 %v5764_v31, %v5668_v15 }
0x162e   :  { %9151 = vpow2.f32 %v7152_v54 }
0x162f   :  { %9153 = vpow2.f32 %v7154_v6  ;;  %v7163_v54 = vmul.f32 -1.442695, %v5780_v33 }
0x1630   :  { %9155 = vpow2.f32 %v7156_v25  ;;  %v12890_v25 = vrot.slane %v6259_v26, %v13342_v9 }
0x1632   :  { %v6421_v38 = vmul.f32 %v12757_v19, %v12890_v25 }
0x1635   :  { %v9146_v51 = vpop.eup %9145 }
0x1636   :  { %v5891_v53 = vmul.f32 1.442695, %v9146_v51  ;;  %v9148_v22 = vpop.eup %9147  ;;  %v6444_v51 = vpop.permute.xlu0 %6443 }
0x1637   :  { %v5831_v35 = vadd.f32 1.0, %v9148_v22  ;;  %v9150_v1 = vpop.eup %9149  ;;  %v6517_v22 = vmul.f32 %v6444_v51, %v13346_v10  ;;  %v12905_v10 = vld [vmem:[%s13244_s2 + $0x48] sm:$0xff] }
0x1638   :  { %9157 = vpow2.f32 %v5891_v53  ;;  %v9152_v57 = vpop.eup %9151  ;;  %v5830_v6 = vadd.f32 1.0, %v9150_v1 }
0x1639   :  { %9159 = vpow2.f32 %v7158_v40  ;;  %v9154_v45 = vpop.eup %9153  ;;  %v5833_v37 = vadd.f32 1.0, %v9152_v57  ;;  %v6533_v1 = vadd.f32 %v6517_v22, %v6421_v38  ;;  %v6425_v22 = vmul.f32 %v12824_v55, %v12890_v25  ;;  %v12924_v55 = vld [vmem:[%s13244_s2 + $0x68] sm:$0xff] }
0x163a   :  { %9161 = vpow2.f32 %v7160_v39  ;;  %v9156_v44 = vpop.eup %9155  ;;  %v5835_v28 = vadd.f32 1.0, %v9154_v45  ;;  %v6454_v9 = vpop.permute.xlu0 %6453  ;;  %v5662_v45 = vmul.f32 %v12905_v10, %v12718_v13 }
0x163b   :  { %9163 = vrcp.f32 %v5831_v35  ;;  %v5837_v40 = vadd.f32 1.0, %v9156_v44  ;;  %v6519_v19 = vmul.f32 %v6454_v9, %v13348_v12 }
0x163c   :  { %9165 = vpow2.f32 %v7163_v54  ;;  %v6423_v54 = vmul.f32 %v12814_v43, %v12890_v25  ;;  %v7182_v43 = vmul.f32 -1.442695, %v6533_v1 }
0x163d   :  { %9167 = vrcp.f32 %v5830_v6 }
0x163e   :  { %9169 = vrcp.f32 %v5833_v37  ;;  %v6535_v37 = vadd.f32 %v6519_v19, %v6423_v54 }
0x163f   :  { %9171 = vrcp.f32 %v5835_v28  ;;  %v6464_v28 = vpop.permute.xlu0 %6463 }
0x1640   :  { %9173 = vrcp.f32 %v5837_v40  ;;  %v6521_v54 = vmul.f32 %v6464_v28, %v13350_v50 }
0x1642   :  { %v12892_v2 = vpop.eup %9157 }
0x1643   :  { %5923 = vadd.xlane.f32.xlu1 %v12892_v2  ;;  %v9160_v31 = vpop.eup %9159 }
0x1644   :  { %v9162_v53 = vpop.eup %9161  ;;  %v5839_v15 = vadd.f32 1.0, %v9160_v31 }
0x1645   :  { %v9164_v33 = vpop.eup %9163  ;;  %v5841_v35 = vadd.f32 1.0, %v9162_v53  ;;  %v12913_v53 = vld [vmem:[%s13244_s2 + $0x58] sm:$0xff] }
0x1646   :  { %v9166_v26 = vpop.eup %9165  ;;  %9175 = vrcp.f32 %v5839_v15  ;;  %v5881_v57 = vmul.f32 1.442695, %v9164_v33  ;;  %v5664_v15 = vmul.f32 %v12913_v53, %v12718_v13 }
0x1647   :  { %9177 = vrcp.f32 %v5841_v35  ;;  %v5844_v51 = vadd.f32 1.0, %v9166_v26  ;;  %v7184_v35 = vmul.f32 -1.442695, %v6535_v37  ;;  %v6537_v37 = vadd.f32 %v6521_v54, %v6425_v22 }
0x1648   :  { %v6395_v39 = vpop.xlane.xlu1 %6394  ;;  %9179 = vpow2.f32 %v5881_v57  ;;  %v6474_v57 = vpop.permute.xlu0 %6473 }
0x1649   :  { %v6415_v41 = vadd.f32 %v12749_v20, %v6395_v39  ;;  %v9168_v20 = vpop.eup %9167  ;;  %9181 = vpow2.f32 %v7182_v43 }
0x164a   :  { %v9170_v12 = vpop.eup %9169  ;;  %v5879_v40 = vmul.f32 1.442695, %v9168_v20  ;;  %9183 = vrcp.f32 %v5844_v51  ;;  %v6427_v20 = vmul.f32 %v12838_v48, %v12890_v25  ;;  %v12935_v48 = vld [vmem:[%s13244_s2 + $0x70] sm:$0xff] }
0x164b   :  { %6513 = vperm.xlu0 %8635, %v6415_v41   ;;  %v9172_v9 = vpop.eup %9171  ;;  %v5885_v1 = vmul.f32 1.442695, %v9170_v12  ;;  %v6523_v12 = vmul.f32 %v6474_v57, %v13344_v4  ;;  %v6429_v57 = vmul.f32 %v12905_v10, %v12890_v25 }
0x164c   :  { %v5717_v6 = vpop.permute.xlu1 %5716  ;;  %v9174_v41 = vpop.eup %9173  ;;  %v5889_v19 = vmul.f32 1.442695, %v9172_v9  ;;  %v5667_v9 = vmul.f32 %v12935_v48, %v12718_v13 }
0x164d   :  { %v5758_v44 = vmul.f32 %v5717_v6, %v13351_v60  ;;  %v5893_v51 = vmul.f32 1.442695, %v9174_v41 }
0x164f   :  { %v5774_v31 = vadd.f32 %v5758_v44, %v5662_v45  ;;  %v5666_v45 = vmul.f32 %v12924_v55, %v12718_v13 }
0x1650   :  { %v5727_v38 = vpop.permute.xlu1 %5726  ;;  %v9176_v44 = vpop.eup %9175 }
0x1651   :  { %v7157_v39 = vmul.f32 -1.442695, %v5774_v31  ;;  %v5760_v33 = vmul.f32 %v5727_v38, %v13352_v24  ;;  %v9178_v28 = vpop.eup %9177  ;;  %v6484_v38 = vpop.permute.xlu0 %6483 }
0x1652   :  { %v12940_v4 = vpop.eup %9179  ;;  %v5901_v41 = vmul.f32 1.442695, %v9178_v28  ;;  %v6525_v54 = vmul.f32 %v6484_v38, %v13351_v60  ;;  %v6422_v38 = vmul.f32 %v12723_v46, %v12890_v25 }
0x1653   :  { %9185 = vpow2.f32 %v7157_v39  ;;  %v5776_v26 = vadd.f32 %v5760_v33, %v5664_v15  ;;  %v7186_v33 = vmul.f32 -1.442695, %v6537_v37 }
0x1654   :  { %9187 = vpow2.f32 %v5879_v40  ;;  %v5737_v6 = vpop.permute.xlu1 %5736  ;;  %v5897_v40 = vmul.f32 1.442695, %v9176_v44  ;;  %v6541_v28 = vadd.f32 %v6525_v54, %v6429_v57 }
0x1655   :  { %v7159_v43 = vmul.f32 -1.442695, %v5776_v26  ;;  %v5762_v50 = vmul.f32 %v5737_v6, %v13353_v0  ;;  %9189 = vpow2.f32 %v7184_v35  ;;  %v6539_v35 = vadd.f32 %v6523_v12, %v6427_v20 }
0x1656   :  { %9191 = vpow2.f32 %v5885_v1  ;;  %v9182_v1 = vpop.eup %9181  ;;  %v6420_v6 = vmul.f32 %v12743_v21, %v12890_v25 }
0x1657   :  { %9193 = vpow2.f32 %v7159_v43  ;;  %v5778_v31 = vadd.f32 %v5762_v50, %v5666_v45  ;;  %v7188_v43 = vmul.f32 -1.442695, %v6539_v35  ;;  %v6597_v37 = vadd.f32 1.0, %v9182_v1 }
0x1658   :  { %9195 = vpow2.f32 %v5889_v19  ;;  %v5742_v15 = vpop.permute.xlu1 %5741  ;;  %v9184_v19 = vpop.eup %9183  ;;  %v7190_v1 = vmul.f32 -1.442695, %v6541_v28 }
0x1659   :  { %v7161_v22 = vmul.f32 -1.442695, %v5778_v31  ;;  %v5763_v39 = vmul.f32 %v5742_v15, %v13358_v5  ;;  %9197 = vpow2.f32 %v5893_v51  ;;  %v5907_v31 = vmul.f32 1.442695, %v9184_v19 }
0x165b   :  { %9199 = vpow2.f32 %v7161_v22  ;;  %v5779_v26 = vadd.f32 %v5763_v39, %v5667_v9 }
0x165c   :  { %9201 = vpow2.f32 %v5897_v40  ;;  %v6439_v13 = vpop.permute.xlu1 %6438  ;;  %v6431_v40 = vmul.f32 %v12913_v53, %v12890_v25 }
0x165d   :  { %v9186_v45 = vpop.eup %9185  ;;  %v7162_v20 = vmul.f32 -1.442695, %v5779_v26  ;;  %v6516_v44 = vmul.f32 %v6439_v13, %v13345_v16  ;;  %9203 = vpow2.f32 %v7186_v33 }
0x165e   :  { %v12948_v50 = vpop.eup %9187  ;;  %9205 = vpow2.f32 %v5901_v41  ;;  %v5838_v60 = vadd.f32 1.0, %v9186_v45 }
0x165f   :  { %v9190_v51 = vpop.eup %9189  ;;  %9207 = vpow2.f32 %v7162_v20  ;;  %v6532_v12 = vadd.f32 %v6516_v44, %v6420_v6 }
0x1660   :  { %v12950_v10 = vpop.eup %9191  ;;  %9209 = vrcp.f32 %v5838_v60  ;;  %v6494_v21 = vpop.permute.xlu0 %6493  ;;  %v6599_v41 = vadd.f32 1.0, %v9190_v51 }
0x1661   :  { %v6449_v16 = vpop.permute.xlu1 %6448  ;;  %v9194_v15 = vpop.eup %9193  ;;  %v7181_v9 = vmul.f32 -1.442695, %v6532_v12  ;;  %v6527_v22 = vmul.f32 %v6494_v21, %v13352_v24  ;;  %9211 = vpow2.f32 %v7188_v43 }
0x1662   :  { %v6518_v39 = vmul.f32 %v6449_v16, %v13347_v56  ;;  %v12958_v33 = vpop.eup %9195  ;;  %v5840_v35 = vadd.f32 1.0, %v9194_v15  ;;  %9213 = vrcp.f32 %v6597_v37  ;;  %v6424_v56 = vmul.f32 %v12768_v30, %v12890_v25 }
0x1663   :  { %9215 = vpow2.f32 %v7181_v9  ;;  %v6543_v54 = vadd.f32 %v6527_v22, %v6431_v40  ;;  %v12960_v26 = vpop.eup %9197  ;;  %v6426_v30 = vmul.f32 %v12785_v62, %v12890_v25  ;;  %v6428_v62 = vmul.f32 %v12857_v59, %v12890_v25 }
0x1664   :  { %v6534_v53 = vadd.f32 %v6518_v39, %v6422_v38  ;;  %9217 = vrcp.f32 %v5840_v35 }
0x1665   :  { %v6459_v46 = vpop.permute.xlu1 %6458  ;;  %v9200_v19 = vpop.eup %9199  ;;  %9219 = vpow2.f32 %v5907_v31  ;;  %v7192_v45 = vmul.f32 -1.442695, %v6543_v54 }
0x1666   :  { %v7183_v57 = vmul.f32 -1.442695, %v6534_v53  ;;  %v6520_v24 = vmul.f32 %v6459_v46, %v13349_v7  ;;  %v12965_v13 = vpop.eup %9201  ;;  %v5842_v6 = vadd.f32 1.0, %v9200_v19  ;;  %9221 = vrcp.f32 %v6599_v41 }
0x1667   :  { %v9204_v20 = vpop.eup %9203  ;;  %9223 = vpow2.f32 %v7190_v1 }
0x1668   :  { %v6536_v44 = vadd.f32 %v6520_v24, %v6424_v56  ;;  %v12967_v43 = vpop.eup %9205  ;;  %9225 = vrcp.f32 %v5842_v6  ;;  %v6601_v31 = vadd.f32 1.0, %v9204_v20 }
0x1669   :  { %v6469_v60 = vpop.permute.xlu1 %6468  ;;  %v9208_v37 = vpop.eup %9207  ;;  %9227 = vpow2.f32 %v7183_v57 }
0x166a   :  { %v7185_v51 = vmul.f32 -1.442695, %v6536_v44  ;;  %v6522_v7 = vmul.f32 %v6469_v60, %v13343_v32  ;;  %v9210_v28 = vpop.eup %9209  ;;  %v5843_v12 = vadd.f32 1.0, %v9208_v37  ;;  %9229 = vpow2.f32 %v7192_v45  ;;  %5911 = vadd.xlane.f32.xlu0 %v12948_v50 }
0x166b   :  { %v9212_v21 = vpop.eup %9211  ;;  %v5895_v40 = vmul.f32 1.442695, %v9210_v28 }
0x166c   :  { %9231 = vpow2.f32 %v7185_v51  ;;  %v6538_v16 = vadd.f32 %v6522_v7, %v6426_v30  ;;  %v9214_v38 = vpop.eup %9213  ;;  %v6603_v41 = vadd.f32 1.0, %v9212_v21  ;;  %v6432_v30 = vmul.f32 %v12876_v47, %v12890_v25 }
0x166d   :  { %9233 = vrcp.f32 %v5843_v12  ;;  %v6479_v15 = vpop.permute.xlu1 %6478  ;;  %v9216_v9 = vpop.eup %9215  ;;  %v6646_v57 = vmul.f32 1.442695, %v9214_v38 }
0x166e   :  { %9235 = vpow2.f32 %v5895_v40  ;;  %v7187_v22 = vmul.f32 -1.442695, %v6538_v16  ;;  %v6524_v32 = vmul.f32 %v6479_v15, %v13354_v52  ;;  %v9218_v39 = vpop.eup %9217  ;;  %v6596_v35 = vadd.f32 1.0, %v9216_v9  ;;  %5913 = vadd.xlane.f32.xlu0 %v12940_v4 }
0x166f   :  { %9237 = vrcp.f32 %v6601_v31  ;;  %v12977_v1 = vpop.eup %9219  ;;  %v5899_v54 = vmul.f32 1.442695, %v9218_v39  ;;  %v6430_v52 = vmul.f32 %v12867_v3, %v12890_v25  ;;  %v6434_v15 = vmul.f32 %v12935_v48, %v12890_v25 }
0x1670   :  { %9239 = vpow2.f32 %v7187_v22  ;;  %v6540_v53 = vadd.f32 %v6524_v32, %v6428_v62  ;;  %v9222_v46 = vpop.eup %9221 }
0x1671   :  { %9241 = vrcp.f32 %v6596_v35  ;;  %v6489_v19 = vpop.permute.xlu1 %6488  ;;  %v9224_v56 = vpop.eup %9223 }
0x1672   :  { %9243 = vpow2.f32 %v5899_v54  ;;  %v7189_v59 = vmul.f32 -1.442695, %v6540_v53  ;;  %v6526_v24 = vmul.f32 %v6489_v19, %v13356_v29  ;;  %v9226_v6 = vpop.eup %9225  ;;  %5917 = vadd.xlane.f32.xlu0 %v12950_v10  ;;  %v6605_v28 = vadd.f32 1.0, %v9224_v56 }
0x1673   :  { %9245 = vrcp.f32 %v6603_v41  ;;  %v9228_v45 = vpop.eup %9227  ;;  %v5903_v20 = vmul.f32 1.442695, %v9226_v6 }
0x1674   :  { %9247 = vpow2.f32 %v7189_v59  ;;  %v6542_v44 = vadd.f32 %v6526_v24, %v6430_v52  ;;  %v9230_v60 = vpop.eup %9229  ;;  %v6598_v37 = vadd.f32 1.0, %v9228_v45 }
0x1675   :  { %v6499_v51 = vpop.permute.xlu1 %6498  ;;  %9249 = vpow2.f32 %v6646_v57  ;;  %v6650_v57 = vmul.f32 1.442695, %v9222_v46 }
0x1676   :  { %v9232_v7 = vpop.eup %9231  ;;  %9251 = vpow2.f32 %v5903_v20  ;;  %v7191_v3 = vmul.f32 -1.442695, %v6542_v44  ;;  %v6528_v29 = vmul.f32 %v6499_v51, %v13357_v49  ;;  %5921 = vadd.xlane.f32.xlu0 %v12958_v33  ;;  %v6607_v49 = vadd.f32 1.0, %v9230_v60 }
0x1677   :  { %v9234_v12 = vpop.eup %9233  ;;  %9253 = vrcp.f32 %v6598_v37  ;;  %v6600_v31 = vadd.f32 1.0, %v9232_v7 }
0x1678   :  { %v12987_v21 = vpop.eup %9235  ;;  %v5905_v40 = vmul.f32 1.442695, %v9234_v12  ;;  %9255 = vpow2.f32 %v7191_v3  ;;  %v6544_v16 = vadd.f32 %v6528_v29, %v6432_v30 }
0x1679   :  { %v9238_v38 = vpop.eup %9237  ;;  %9257 = vrcp.f32 %v6600_v31  ;;  %v6509_v47 = vpop.permute.xlu1 %6508  ;;  %5927 = vadd.xlane.f32.xlu1 %v12987_v21 }
0x167a   :  { %v9240_v9 = vpop.eup %9239  ;;  %9259 = vrcp.f32 %v6605_v28  ;;  %v7193_v22 = vmul.f32 -1.442695, %v6544_v16  ;;  %v6530_v62 = vmul.f32 %v6509_v47, %v13358_v5  ;;  %5925 = vadd.xlane.f32.xlu0 %v12960_v26  ;;  %v6654_v45 = vmul.f32 1.442695, %v9238_v38 }
0x167b   :  { %v9242_v32 = vpop.eup %9241  ;;  %9261 = vpow2.f32 %v5905_v40  ;;  %v6602_v39 = vadd.f32 1.0, %v9240_v9 }
0x167c   :  { %v12994_v35 = vpop.eup %9243  ;;  %v6644_v41 = vmul.f32 1.442695, %v9242_v32  ;;  %9263 = vpow2.f32 %v7193_v22  ;;  %v6546_v54 = vadd.f32 %v6530_v62, %v6434_v15 }
0x167d   :  { %v9246_v53 = vpop.eup %9245  ;;  %9265 = vrcp.f32 %v6602_v39  ;;  %5931 = vadd.xlane.f32.xlu1 %v12994_v35 }
0x167e   :  { %v9248_v48 = vpop.eup %9247  ;;  %9267 = vrcp.f32 %v6607_v49  ;;  %v7195_v19 = vmul.f32 -1.442695, %v6546_v54  ;;  %5929 = vadd.xlane.f32.xlu0 %v12965_v13  ;;  %v6658_v30 = vmul.f32 1.442695, %v9246_v53 }
0x167f   :  { %v12997_v56 = vpop.eup %9249  ;;  %9269 = vpow2.f32 %v6644_v41  ;;  %v6604_v5 = vadd.f32 1.0, %v9248_v48 }
0x1680   :  { %v13000_v59 = vpop.eup %9251  ;;  %9271 = vpow2.f32 %v7195_v19 }
0x1681   :  { %v9254_v52 = vpop.eup %9253  ;;  %9273 = vrcp.f32 %v6604_v5  ;;  %5935 = vadd.xlane.f32.xlu1 %v13000_v59  ;;  %v6433_v5 = vmul.f32 %v12924_v55, %v12890_v25 }
0x1682   :  { %v9256_v24 = vpop.eup %9255  ;;  %v6648_v6 = vmul.f32 1.442695, %v9254_v52  ;;  %9275 = vpow2.f32 %v6650_v57  ;;  %5933 = vadd.xlane.f32.xlu0 %v12967_v43 }
0x1683   :  { %v9258_v20 = vpop.eup %9257  ;;  %v6606_v44 = vadd.f32 1.0, %v9256_v24 }
0x1684   :  { %v9260_v46 = vpop.eup %9259  ;;  %9277 = vpow2.f32 %v6648_v6  ;;  %v6652_v60 = vmul.f32 1.442695, %v9258_v20 }
0x1685   :  { %v13004_v37 = vpop.eup %9261  ;;  %9279 = vrcp.f32 %v6606_v44  ;;  %5939 = vadd.xlane.f32.xlu1 %v12977_v1  ;;  %v6662_v40 = vmul.f32 1.442695, %v9260_v46 }
0x1686   :  { %v9264_v51 = vpop.eup %9263  ;;  %9281 = vpow2.f32 %v6654_v45  ;;  %5937 = vadd.xlane.f32.xlu0 %v13004_v37 }
0x1687   :  { %v9266_v7 = vpop.eup %9265  ;;  %v6608_v28 = vadd.f32 1.0, %v9264_v51  ;;  %9283 = vpow2.f32 %v6652_v60 }
0x1688   :  { %v9268_v3 = vpop.eup %9267  ;;  %v6656_v29 = vmul.f32 1.442695, %v9266_v7 }
0x1689   :  { %v13008_v12 = vpop.eup %9269  ;;  %9285 = vrcp.f32 %v6608_v28  ;;  %6678 = vadd.xlane.f32.xlu1 %v12997_v56  ;;  %v6666_v49 = vmul.f32 1.442695, %v9268_v3 }
0x168a   :  { %v9272_v31 = vpop.eup %9271  ;;  %9287 = vpow2.f32 %v6658_v30  ;;  %6676 = vadd.xlane.f32.xlu0 %v13008_v12 }
0x168b   :  { %v9274_v16 = vpop.eup %9273  ;;  %v6610_v38 = vadd.f32 1.0, %v9272_v31  ;;  %9289 = vpow2.f32 %v6656_v29 }
0x168c   :  { %v13012_v47 = vpop.eup %9275  ;;  %v6660_v15 = vmul.f32 1.442695, %v9274_v16 }
0x168d   :  { %9291 = vrcp.f32 %v6610_v38  ;;  %6682 = vadd.xlane.f32.xlu1 %v13012_v47  ;;  %v6435_v38 = vmul.f32 %v12884_v61, %v12890_v25 }
0x168e   :  { %v13015_v9 = vpop.eup %9277  ;;  %9293 = vpow2.f32 %v6662_v40 }
0x168f   :  { %v9280_v22 = vpop.eup %9279  ;;  %6680 = vadd.xlane.f32.xlu0 %v13015_v9  ;;  %9295 = vpow2.f32 %v6660_v15 }
0x1690   :  { %v13018_v62 = vpop.eup %9281  ;;  %v6664_v32 = vmul.f32 1.442695, %v9280_v22  ;;  %9297 = vpow2.f32 %v6666_v49 }
0x1691   :  { %6686 = vadd.xlane.f32.xlu1 %v13018_v62  ;;  %v13021_v39 = vpop.eup %9283 }
0x1692   :  { %9299 = vpow2.f32 %v6664_v32 }
0x1693   :  { %v9286_v41 = vpop.eup %9285  ;;  %6684 = vadd.xlane.f32.xlu0 %v13021_v39 }
0x1694   :  { %v13024_v54 = vpop.eup %9287  ;;  %v6668_v53 = vmul.f32 1.442695, %v9286_v41 }
0x1695   :  { %6690 = vadd.xlane.f32.xlu1 %v13024_v54  ;;  %v13027_v48 = vpop.eup %9289  ;;  %v6504_v19 = vpop.permute.xlu0 %6503 }
0x1696   :  { %v6529_v52 = vmul.f32 %v6504_v19, %v13353_v0  ;;  %9301 = vpow2.f32 %v6668_v53 }
0x1697   :  { %v9292_v57 = vpop.eup %9291  ;;  %6688 = vadd.xlane.f32.xlu0 %v13027_v48 }
0x1698   :  { %v13033_v24 = vpop.eup %9293  ;;  %v6672_v6 = vmul.f32 1.442695, %v9292_v57  ;;  %v6545_v45 = vadd.f32 %v6529_v52, %v6433_v5 }
0x1699   :  { %6694 = vadd.xlane.f32.xlu1 %v13033_v24  ;;  %v13036_v20 = vpop.eup %9295 }
0x169a   :  { %v7194_v44 = vmul.f32 -1.442695, %v6545_v45  ;;  %v13039_v46 = vpop.eup %9297  ;;  %9303 = vpow2.f32 %v6672_v6 }
0x169b   :  { %6692 = vadd.xlane.f32.xlu0 %v13036_v20 }
0x169c   :  { %9305 = vpow2.f32 %v7194_v44  ;;  %v13042_v0 = vpop.eup %9299 }
0x169d   :  { %6698 = vadd.xlane.f32.xlu1 %v13039_v46 }
0x169f   :  { %6696 = vadd.xlane.f32.xlu0 %v13042_v0 }
0x16a0   :  { %v13045_v55 = vpop.eup %9301 }
0x16a3   :  { %6700 = vadd.xlane.f32.xlu0 %v13045_v55 }
0x16a4   :  { %v13048_v60 = vpop.eup %9303 }
0x16a6   :  { %v9306_v51 = vpop.eup %9305 }
0x16a7   :  { %6704 = vadd.xlane.f32.xlu0 %v13048_v60  ;;  %v6609_v30 = vadd.f32 1.0, %v9306_v51 }
0x16a9   :  { %9307 = vrcp.f32 %v6609_v30  ;;  %v5910_v7 = vpop.xlane.xlu1 %5909 }
0x16aa   :  { %9309 = vrcp.f32 %v5910_v7 }
0x16ad   :  { %v5916_v57 = vpop.xlane.xlu1 %5915 }
0x16b1   :  { %v5920_v25 = vpop.xlane.xlu1 %5919 }
0x16b3   :  { %v9308_v28 = vpop.eup %9307 }
0x16b4   :  { %v9310_v3 = vpop.eup %9309  ;;  %v6670_v29 = vmul.f32 1.442695, %v9308_v28 }
0x16b5   :  { %v5957_v31 = vmul.f32 %v9310_v3, %v12843_v36 }
0x16b6   :  { %9311 = vpow2.f32 %v6670_v29 }
0x16b7   :  { %7650 = vmatprep.mubr.f32.mxu1 %v5957_v31 }
0x16c0   :  { %v13052_v40 = vpop.eup %9311 }
0x16c1   :  { %6702 = vadd.xlane.f32.xlu1 %v13052_v40 }
0x16ca   :  { %v6514_v16 = vpop.permute.xlu0 %6513 }
0x16cb   :  { %v6531_v15 = vmul.f32 %v6514_v16, %v13355_v17 }
0x16cd   :  { %v6547_v49 = vadd.f32 %v6531_v15, %v6435_v38 }
0x16cf   :  { %v7196_v22 = vmul.f32 -1.442695, %v6547_v49 }
0x16d0   :  { %v5924_v52 = vpop.xlane.xlu1 %5923 }
0x16d1   :  { %9313 = vpow2.f32 %v7196_v22 }
0x16db   :  { %v9314_v32 = vpop.eup %9313 }
0x16dc   :  { %v6611_v41 = vadd.f32 1.0, %v9314_v32 }
0x16de   :  { %9315 = vrcp.f32 %v6611_v41 }
0x16e8   :  { %v9316_v53 = vpop.eup %9315 }
0x16e9   :  { %v6674_v36 = vmul.f32 1.442695, %v9316_v53 }
0x16eb   :  { %9317 = vpow2.f32 %v6674_v36 }
0x16f5   :  { %v13058_v19 = vpop.eup %9317 }
0x16f6   :  { %6706 = vadd.xlane.f32.xlu1 %v13058_v19 }
0x16f7   :  { %v5912_v5 = vpop.xlane.xlu0 %5911 }
0x16f8   :  { %9319 = vrcp.f32 %v5912_v5 }
0x16f9   :  { %9321 = vrcp.f32 %v5916_v57 }
0x16fb   :  { %v5914_v61 = vpop.xlane.xlu0 %5913 }
0x16fc   :  { %9323 = vrcp.f32 %v5914_v61 }
0x16fd   :  { %9325 = vrcp.f32 %v5920_v25 }
0x16ff   :  { %v5918_v17 = vpop.xlane.xlu0 %5917 }
0x1700   :  { %9327 = vrcp.f32 %v5918_v17 }
0x1701   :  { %9329 = vrcp.f32 %v5924_v52 }
0x1702   :  { %v9320_v6 = vpop.eup %9319 }
0x1703   :  { %v5958_v45 = vmul.f32 %v9320_v6, %v12948_v50  ;;  %v5922_v44 = vpop.xlane.xlu0 %5921  ;;  %v9322_v51 = vpop.eup %9321 }
0x1704   :  { %9331 = vrcp.f32 %v5922_v44  ;;  %v5960_v50 = vmul.f32 %v9322_v51, %v12846_v18 }
0x1705   :  { %7651 = vmatmul.mubr.f32.vlgmr.msra.gmra.mrb[240].mxu1 %v5958_v45 }
0x1706   :  { %v5928_v30 = vpop.xlane.xlu1 %5927  ;;  %v9324_v7 = vpop.eup %9323  ;;  %8568 = vmatpush3.bf16.msra.mxu1 %v12516_v14 }
0x1707   :  { %9333 = vrcp.f32 %v5928_v30  ;;  %8570 = vmatprep.subr.bf16.mxu1 %v12555_v8  ;;  %v5926_v28 = vpop.xlane.xlu0 %5925  ;;  %v5959_v3 = vmul.f32 %v9324_v7, %v12940_v4  ;;  %v9326_v29 = vpop.eup %9325 }
0x1708   :  { %9335 = vrcp.f32 %v5926_v28  ;;  %v5962_v49 = vmul.f32 %v9326_v29, %v12849_v58 }
0x1709   :  { %7653 = vmatprep.mubr.f32.mxu1 %v5959_v3 }
0x170a   :  { %v5932_v31 = vpop.xlane.xlu1 %5931  ;;  %v9328_v16 = vpop.eup %9327  ;;  %8572 = vmatpush3.bf16.msra.mxu1 %v12555_v8 }
0x170b   :  { %9337 = vrcp.f32 %v5932_v31  ;;  %7654 = vmatmul.mubr.f32.gmra.mrb[242].mxu1 %v5960_v50  ;;  %8574 = vmatprep.subr.bf16.mxu1 %v12561_v27  ;;  %v5930_v14 = vpop.xlane.xlu0 %5929  ;;  %v5961_v38 = vmul.f32 %v9328_v16, %v12950_v10  ;;  %v9330_v15 = vpop.eup %9329 }
0x170c   :  { %9339 = vrcp.f32 %v5930_v14  ;;  %v5964_v41 = vmul.f32 %v9330_v15, %v12892_v2 }
0x170d   :  { %7656 = vmatprep.mubr.f32.mxu1 %v5961_v38 }
0x170e   :  { %v5936_v4 = vpop.xlane.xlu1 %5935  ;;  %v9332_v22 = vpop.eup %9331  ;;  %8576 = vmatpush3.bf16.msra.mxu1 %v12561_v27 }
0x170f   :  { %9341 = vrcp.f32 %v5936_v4  ;;  %7657 = vmatmul.mubr.f32.gmra.mrb[244].mxu1 %v5962_v49  ;;  %8578 = vmatprep.subr.bf16.mxu1 %v12587_v34  ;;  %v5934_v8 = vpop.xlane.xlu0 %5933  ;;  %v5963_v18 = vmul.f32 %v9332_v22, %v12958_v33 }
0x1710   :  { %9343 = vrcp.f32 %v5934_v8 }
0x1711   :  { %v9334_v32 = vpop.eup %9333  ;;  %7659 = vmatprep.mubr.f32.mxu1 %v5963_v18 }
0x1712   :  { %v5940_v10 = vpop.xlane.xlu1 %5939  ;;  %v9336_v53 = vpop.eup %9335  ;;  %8580 = vmatpush3.bf16.msra.mxu1 %v12587_v34  ;;  %v5966_v57 = vmul.f32 %v9334_v32, %v12987_v21 }
0x1713   :  { %9345 = vrcp.f32 %v5940_v10  ;;  %7660 = vmatmul.mubr.f32.gmra.mrb[246].mxu1 %v5964_v41  ;;  %8582 = vmatprep.subr.bf16.mxu1 %v12616_v23  ;;  %v5938_v27 = vpop.xlane.xlu0 %5937  ;;  %v5965_v58 = vmul.f32 %v9336_v53, %v12960_v26 }
0x1714   :  { %9347 = vrcp.f32 %v5938_v27 }
0x1715   :  { %v9338_v36 = vpop.eup %9337  ;;  %7662 = vmatprep.mubr.f32.mxu1 %v5965_v58 }
0x1716   :  { %v6679_v33 = vpop.xlane.xlu1 %6678  ;;  %v9340_v5 = vpop.eup %9339  ;;  %8584 = vmatpush3.bf16.msra.mxu1 %v12616_v23  ;;  %v5968_v25 = vmul.f32 %v9338_v36, %v12994_v35 }
0x1717   :  { %9349 = vrcp.f32 %v6679_v33  ;;  %7663 = vmatmul.mubr.f32.gmra.mrb[248].mxu1 %v5966_v57  ;;  %8586 = vmatprep.subr.bf16.mxu1 %v12650_v11  ;;  %v6677_v34 = vpop.xlane.xlu0 %6676  ;;  %v5967_v2 = vmul.f32 %v9340_v5, %v12965_v13 }
0x1718   :  { %9351 = vrcp.f32 %v6677_v34 }
0x1719   :  { %v9342_v61 = vpop.eup %9341  ;;  %7665 = vmatprep.mubr.f32.mxu1 %v5967_v2 }
0x171a   :  { %v6683_v26 = vpop.xlane.xlu1 %6682  ;;  %v9344_v17 = vpop.eup %9343  ;;  %8588 = vmatpush3.bf16.msra.mxu1 %v12650_v11  ;;  %v5970_v6 = vmul.f32 %v9342_v61, %v13000_v59 }
0x171b   :  { %9353 = vrcp.f32 %v6683_v26  ;;  %7666 = vmatmul.mubr.f32.gmra.mrb[250].mxu1 %v5968_v25  ;;  %8590 = vmatprep.subr.bf16.mxu1 %v12672_v63  ;;  %v5969_v21 = vmul.f32 %v9344_v17, %v12967_v43 }
0x171c   :  { %v6681_v23 = vpop.xlane.xlu0 %6680 }
0x171d   :  { %9355 = vrcp.f32 %v6681_v23  ;;  %v9346_v52 = vpop.eup %9345  ;;  %7668 = vmatprep.mubr.f32.mxu1 %v5969_v21 }
0x171e   :  { %v6687_v13 = vpop.xlane.xlu1 %6686  ;;  %v9348_v45 = vpop.eup %9347  ;;  %8592 = vmatpush3.bf16.msra.mxu1 %v12672_v63  ;;  %v5972_v51 = vmul.f32 %v9346_v52, %v12977_v1 }
0x171f   :  { %9357 = vrcp.f32 %v6687_v13  ;;  %7669 = vmatmul.mubr.f32.gmra.mrb[252].mxu1 %v5970_v6  ;;  %8594 = vmatprep.subr.bf16.mxu1 %v12694_v42  ;;  %v5971_v35 = vmul.f32 %v9348_v45, %v13004_v37 }
0x1720   :  { %v6685_v11 = vpop.xlane.xlu0 %6684 }
0x1721   :  { %9359 = vrcp.f32 %v6685_v11  ;;  %v9350_v44 = vpop.eup %9349  ;;  %7671 = vmatprep.mubr.f32.mxu1 %v5971_v35 }
0x1722   :  { %v6691_v43 = vpop.xlane.xlu1 %6690  ;;  %v9352_v30 = vpop.eup %9351  ;;  %8596 = vmatpush3.bf16.msra.mxu1 %v12694_v42  ;;  %v6725_v28 = vmul.f32 %v9350_v44, %v12997_v56 }
0x1723   :  { %9361 = vrcp.f32 %v6691_v43  ;;  %7672 = vmatmul.mubr.f32.gmra.mrb[254].mxu1 %v5972_v51  ;;  %v6724_v63 = vmul.f32 %v9352_v30, %v13008_v12 }
0x1724   :  { %v6689_v59 = vpop.xlane.xlu0 %6688 }
0x1725   :  { %9363 = vrcp.f32 %v6689_v59  ;;  %v9354_v7 = vpop.eup %9353  ;;  %7741 = vmatprep.mubr.f32.mxu1 %v6724_v63 }
0x1726   :  { %v6695_v3 = vpop.xlane.xlu1 %6694  ;;  %v6727_v42 = vmul.f32 %v9354_v7, %v13012_v47 }
0x1727   :  { %v9356_v37 = vpop.eup %9355  ;;  %9365 = vrcp.f32 %v6695_v3  ;;  %7742 = vmatmul.mubr.f32.vlgmr.msra.gmra.mrb[0].mxu1 %v6725_v28 }
0x1728   :  { %v6693_v29 = vpop.xlane.xlu0 %6692  ;;  %v6726_v1 = vmul.f32 %v9356_v37, %v13015_v9 }
0x1729   :  { %9367 = vrcp.f32 %v6693_v29  ;;  %v9358_v31 = vpop.eup %9357 }
0x172a   :  { %v6699_v50 = vpop.xlane.xlu1 %6698  ;;  %7744 = vmatprep.mubr.f32.mxu1 %v6726_v1  ;;  %v6729_v38 = vmul.f32 %v9358_v31, %v13018_v62 }
0x172b   :  { %v9360_v16 = vpop.eup %9359  ;;  %9369 = vrcp.f32 %v6699_v50  ;;  %7745 = vmatmul.mubr.f32.gmra.mrb[2].mxu1 %v6727_v42 }
0x172c   :  { %v6697_v12 = vpop.xlane.xlu0 %6696  ;;  %v6728_v56 = vmul.f32 %v9360_v16, %v13021_v39 }
0x172d   :  { %9371 = vrcp.f32 %v6697_v12  ;;  %v9362_v14 = vpop.eup %9361 }
0x172e   :  { %7747 = vmatprep.mubr.f32.mxu1 %v6728_v56  ;;  %v6731_v49 = vmul.f32 %v9362_v14, %v13024_v54 }
0x172f   :  { %v9364_v15 = vpop.eup %9363  ;;  %7748 = vmatmul.mubr.f32.gmra.mrb[4].mxu1 %v6729_v38 }
0x1730   :  { %v6701_v9 = vpop.xlane.xlu0 %6700  ;;  %v6730_v4 = vmul.f32 %v9364_v15, %v13027_v48 }
0x1731   :  { %9373 = vrcp.f32 %v6701_v9  ;;  %v9366_v47 = vpop.eup %9365 }
0x1732   :  { %7750 = vmatprep.mubr.f32.mxu1 %v6730_v4  ;;  %v6733_v18 = vmul.f32 %v9366_v47, %v13033_v24 }
0x1733   :  { %v9368_v22 = vpop.eup %9367  ;;  %7751 = vmatmul.mubr.f32.gmra.mrb[6].mxu1 %v6731_v49 }
0x1734   :  { %v6732_v8 = vmul.f32 %v9368_v22, %v13036_v20  ;;  %v6705_v41 = vpop.xlane.xlu0 %6704 }
0x1735   :  { %v9370_v39 = vpop.eup %9369  ;;  %9375 = vrcp.f32 %v6705_v41 }
0x1736   :  { %7753 = vmatprep.mubr.f32.mxu1 %v6732_v8  ;;  %v6735_v10 = vmul.f32 %v9370_v39, %v13039_v46 }
0x1737   :  { %v9372_v62 = vpop.eup %9371  ;;  %7754 = vmatmul.mubr.f32.gmra.mrb[8].mxu1 %v6733_v18 }
0x1738   :  { %v6734_v32 = vmul.f32 %v9372_v62, %v13042_v0 }
0x173a   :  { %7756 = vmatprep.mubr.f32.mxu1 %v6734_v32 }
0x173b   :  { %v9374_v48 = vpop.eup %9373  ;;  %7757 = vmatmul.mubr.f32.gmra.mrb[10].mxu1 %v6735_v10 }
0x173c   :  { %v6736_v54 = vmul.f32 %v9374_v48, %v13045_v55 }
0x173e   :  { %7759 = vmatprep.mubr.f32.mxu1 %v6736_v54 }
0x173f   :  { %v9376_v20 = vpop.eup %9375 }
0x1740   :  { %v6738_v58 = vmul.f32 %v9376_v20, %v13048_v60 }
0x174e   :  { %v6703_v53 = vpop.xlane.xlu1 %6702 }
0x174f   :  { %9377 = vrcp.f32 %v6703_v53 }
0x1759   :  { %v9378_v27 = vpop.eup %9377 }
0x175a   :  { %v6737_v24 = vmul.f32 %v9378_v27, %v13052_v40 }
0x175c   :  { %7760 = vmatmul.mubr.f32.gmra.mrb[12].mxu1 %v6737_v24 }
0x175d   :  { %7762 = vmatprep.mubr.f32.mxu1 %v6738_v58 }
0x1783   :  { %v6707_v0 = vpop.xlane.xlu1 %6706 }
0x1784   :  { %9379 = vrcp.f32 %v6707_v0 }
0x178e   :  { %v9380_v46 = vpop.eup %9379 }
0x178f   :  { %v6739_v36 = vmul.f32 %v9380_v46, %v13058_v19 }
0x1791   :  { %7763 = vmatmul.mubr.f32.gmra.mrb[14].mxu1 %v6739_v36 }
0x17d8   :  { %v7652_v55 = vpop.f32.mrb[240].mxu1 }
0x17d9   :  { %v6039_v33 = vpop.f32.mrb[241].mxu1 }
0x17de   :  { %v7655_v57 = vpop.f32.mrb[242].mxu1 }
0x17df   :  { %v6049_v5 = vpop.f32.mrb[243].mxu1 }
0x17e2   :  { %v7658_v34 = vpop.f32.mrb[244].mxu1 }
0x17e3   :  { %v6059_v2 = vpop.f32.mrb[245].mxu1 }
0x17e6   :  { %v13107_v61 = vpop.f32.mrb[246].mxu1 }
0x17e7   :  { %v13109_v26 = vpop.f32.mrb[247].mxu1 }
0x17ea   :  { %v13111_v40 = vpop.f32.mrb[248].mxu1 }
0x17eb   :  { %v13113_v60 = vpop.f32.mrb[249].mxu1 }
0x17ee   :  { %v13115_v25 = vpop.f32.mrb[250].mxu1 }
0x17ef   :  { %v13117_v17 = vpop.f32.mrb[251].mxu1 }
0x17f2   :  { %v13119_v19 = vpop.f32.mrb[252].mxu1 }
0x17f3   :  { %v13121_v23 = vpop.f32.mrb[253].mxu1 }
0x17f6   :  { %v13123_v21 = vpop.f32.mrb[254].mxu1 }
0x17f7   :  { %v13125_v52 = vpop.f32.mrb[255].mxu1 }
0x17fa   :  { %v7743_v13 = vpop.f32.mrb[0].mxu1 }
0x17fb   :  { %6919 = vrot.lane.b32.xlu1 %v7743_v13, %s9427_s28  ;;  %v6822_v6 = vpop.f32.mrb[1].mxu1 }
0x17fc   :  { %6917 = vrot.lane.b32.xlu0 %v6822_v6, %s9427_s28 }
0x17fe   :  { %v7746_v45 = vpop.f32.mrb[2].mxu1 }
0x17ff   :  { %v6832_v11 = vpop.f32.mrb[3].mxu1 }
0x1800   :  { %6923 = vrot.lane.b32.xlu0 %v7746_v45, %s9427_s28  ;;  %6921 = vrot.lane.b32.xlu1 %v6832_v11, %s9427_s28 }
0x1802   :  { %v7749_v35 = vpop.f32.mrb[4].mxu1 }
0x1803   :  { %v6842_v44 = vpop.f32.mrb[5].mxu1 }
0x1804   :  { %6927 = vrot.lane.b32.xlu0 %v7749_v35, %s9427_s28  ;;  %6925 = vrot.lane.b32.xlu1 %v6842_v44, %s9427_s28 }
0x1806   :  { %v7752_v43 = vpop.f32.mrb[6].mxu1 }
0x1807   :  { %v6852_v51 = vpop.f32.mrb[7].mxu1 }
0x1808   :  { %6931 = vrot.lane.b32.xlu0 %v7752_v43, %s9427_s28  ;;  %6929 = vrot.lane.b32.xlu1 %v6852_v51, %s9427_s28 }
0x180a   :  { %v7755_v30 = vpop.f32.mrb[8].mxu1 }
0x180b   :  { %v6862_v59 = vpop.f32.mrb[9].mxu1 }
0x180c   :  { %6935 = vrot.lane.b32.xlu0 %v7755_v30, %s9427_s28  ;;  %6933 = vrot.lane.b32.xlu1 %v6862_v59, %s9427_s28 }
0x180e   :  { %v7758_v63 = vpop.f32.mrb[10].mxu1 }
0x180f   :  { %v6872_v7 = vpop.f32.mrb[11].mxu1 }
0x1810   :  { %6939 = vrot.lane.b32.xlu0 %v7758_v63, %s9427_s28  ;;  %6937 = vrot.lane.b32.xlu1 %v6872_v7, %s9427_s28 }
0x182f   :  { %v7761_v28 = vpop.f32.mrb[12].mxu1 }
0x1830   :  { %6943 = vrot.lane.b32.xlu0 %v7761_v28, %s9427_s28  ;;  %v6882_v3 = vpop.f32.mrb[13].mxu1 }
0x1831   :  { %6941 = vrot.lane.b32.xlu1 %v6882_v3, %s9427_s28 }
0x1864   :  { %v7764_v37 = vpop.f32.mrb[14].mxu1 }
0x1865   :  { %6947 = vrot.lane.b32.xlu0 %v7764_v37, %s9427_s28  ;;  %v6892_v29 = vpop.f32.mrb[15].mxu1 }
0x1866   :  { %6945 = vrot.lane.b32.xlu1 %v6892_v29, %s9427_s28 }
0x186d   :  { %v6920_v1 = vpop.permute.xlu1 %6919 }
0x186e   :  { %v6966_v31 = vsel %vm140_vm0, %v7652_v55, %v6920_v1  ;;  %v6918_v42 = vpop.permute.xlu0 %6917 }
0x186f   :  { %6983 = vst.msk [vmem:[%s13250_s17 + $0x8] sm:$0xff] %vm6981_vm5, %v6966_v31  ;;  %v6965_v50 = vsel %vm140_vm0, %v6039_v33, %v6918_v42 }
0x1870   :  { %6982 = vst.msk [vmem:[%s13250_s17] sm:$0xff] %vm6981_vm5, %v6965_v50 }
0x1872   :  { %v6922_v16 = vpop.permute.xlu1 %6921  ;;  %v6924_v12 = vpop.permute.xlu0 %6923 }
0x1873   :  { %v6967_v56 = vsel %vm140_vm0, %v6049_v5, %v6922_v16  ;;  %v6968_v14 = vsel %vm140_vm0, %v7655_v57, %v6924_v12 }
0x1874   :  { %6984 = vst.msk [vmem:[%s13250_s17 + $0x10] sm:$0xff] %vm6981_vm5, %v6967_v56  ;;  %6985 = vst.msk [vmem:[%s13250_s17 + $0x18] sm:$0xff] %vm6981_vm5, %v6968_v14 }
0x1876   :  { %v6926_v38 = vpop.permute.xlu1 %6925  ;;  %v6928_v15 = vpop.permute.xlu0 %6927 }
0x1877   :  { %v6969_v9 = vsel %vm140_vm0, %v6059_v2, %v6926_v38  ;;  %v6970_v4 = vsel %vm140_vm0, %v7658_v34, %v6928_v15 }
0x1878   :  { %6986 = vst.msk [vmem:[%s13250_s17 + $0x20] sm:$0xff] %vm6981_vm5, %v6969_v9  ;;  %6987 = vst.msk [vmem:[%s13250_s17 + $0x28] sm:$0xff] %vm6981_vm5, %v6970_v4 }
0x187a   :  { %v6930_v47 = vpop.permute.xlu1 %6929  ;;  %v6932_v49 = vpop.permute.xlu0 %6931 }
0x187b   :  { %v6971_v22 = vsel %vm140_vm0, %v13109_v26, %v6930_v47  ;;  %v6972_v8 = vsel %vm140_vm0, %v13107_v61, %v6932_v49 }
0x187c   :  { %6988 = vst.msk [vmem:[%s13250_s17 + $0x30] sm:$0xff] %vm6981_vm5, %v6971_v22  ;;  %6989 = vst.msk [vmem:[%s13250_s17 + $0x38] sm:$0xff] %vm6981_vm5, %v6972_v8 }
0x187e   :  { %v6934_v39 = vpop.permute.xlu1 %6933  ;;  %v6936_v18 = vpop.permute.xlu0 %6935 }
0x187f   :  { %v6973_v62 = vsel %vm140_vm0, %v13113_v60, %v6934_v39  ;;  %v6974_v32 = vsel %vm140_vm0, %v13111_v40, %v6936_v18 }
0x1880   :  { %6990 = vst.msk [vmem:[%s13250_s17 + $0x40] sm:$0xff] %vm6981_vm5, %v6973_v62  ;;  %6991 = vst.msk [vmem:[%s13250_s17 + $0x48] sm:$0xff] %vm6981_vm5, %v6974_v32 }
0x1882   :  { %v6938_v10 = vpop.permute.xlu1 %6937  ;;  %v6940_v48 = vpop.permute.xlu0 %6939 }
0x1883   :  { %v6975_v54 = vsel %vm140_vm0, %v13117_v17, %v6938_v10  ;;  %v6976_v41 = vsel %vm140_vm0, %v13115_v25, %v6940_v48 }
0x1884   :  { %6992 = vst.msk [vmem:[%s13250_s17 + $0x50] sm:$0xff] %vm6981_vm5, %v6975_v54  ;;  %6993 = vst.msk [vmem:[%s13250_s17 + $0x58] sm:$0xff] %vm6981_vm5, %v6976_v41 }
0x18a2   :  { %v6944_v53 = vpop.permute.xlu0 %6943 }
0x18a3   :  { %v6978_v20 = vsel %vm140_vm0, %v13119_v19, %v6944_v53  ;;  %v6942_v27 = vpop.permute.xlu1 %6941 }
0x18a4   :  { %6995 = vst.msk [vmem:[%s13250_s17 + $0x68] sm:$0xff] %vm6981_vm5, %v6978_v20  ;;  %v6977_v24 = vsel %vm140_vm0, %v13121_v23, %v6942_v27 }
0x18a5   :  { %6994 = vst.msk [vmem:[%s13250_s17 + $0x60] sm:$0xff] %vm6981_vm5, %v6977_v24 }
0x18d7   :  { %v6948_v58 = vpop.permute.xlu0 %6947 }
0x18d8   :  { %v6980_v0 = vsel %vm140_vm0, %v13123_v21, %v6948_v58  ;;  %v6946_v46 = vpop.permute.xlu1 %6945 }
0x18d9   :  { %6997 = vst.msk [vmem:[%s13250_s17 + $0x78] sm:$0xff] %vm6981_vm5, %v6980_v0  ;;  %v6979_v36 = vsel %vm140_vm0, %v13125_v52, %v6946_v46 }
0x18da   :  { %6996 = vst.msk [vmem:[%s13250_s17 + $0x70] sm:$0xff] %vm6981_vm5, %v6979_v36 }

</bundles_post_ra>
